<compile_context>
chip_gen: v5e
topology: v5e:2x2
jax: 0.10.0
libtpu: 0.0.40
codegen_flags: <defaults>
</compile_context>

<pallas_src>
import math
from functools import partial

import jax
import jax.numpy as jnp
from jax.experimental import pallas as pl
from jax.experimental.pallas import tpu as pltpu

NEG_INF = -1e9

# --------------------------- model configuration ---------------------------
D_MODEL = 32
NHEAD = 4
D_HEAD = D_MODEL // NHEAD
D_FF = 64
NUM_LAYERS = 2
SRC_VOCAB = 50
TGT_VOCAB = 40
V_PAD = ((TGT_VOCAB + 127) // 128) * 128      # lane-dense logits width (128)

ENC_KEYS = ("wqkv", "bqkv", "wo", "bo", "ln1g", "ln1b",
            "w1", "b1", "w2", "b2", "ln2g", "ln2b")
DEC_KEYS = ("wqkv_sa", "bqkv_sa", "wo_sa", "bo_sa", "ln1g", "ln1b",
            "wq_ca", "bq_ca", "wkv_ca", "bkv_ca", "wo_ca", "bo_ca",
            "ln2g", "ln2b", "w1", "b1", "w2", "b2", "ln3g", "ln3b")


# --------------------------- in-kernel helpers ------------------------------
def _bf16(x):
    return x.astype(jnp.bfloat16)


def _layer_norm(v, g, b):
    mu = jnp.mean(v, axis=-1, keepdims=True)
    var = jnp.mean((v - mu) ** 2, axis=-1, keepdims=True)
    return (v - mu) * jax.lax.rsqrt(var + 1e-5) * g + b


def _mha(q3, k3, v3, bias, wo, bo, nhead, dh):
    """Multi-head attention, batched over the batch dim.

    q3: [B, Sq, D] (1/sqrt(dh) already folded into Q weights),
    k3/v3: [B, Sk, D], bias broadcastable to [B, Sq, Sk],
    wo: [D, D], bo: [1, D].  Returns [B*Sq, D] float32.
    Per-head context is folded directly into the output projection (summed
    partial matmuls) so no lane-concat is needed.
    """
    B, Sq, D = q3.shape
    acc = jnp.zeros((B * Sq, D), jnp.float32)
    for h in range(nhead):
        sl = slice(h * dh, (h + 1) * dh)
        s = jnp.einsum("bqd,bkd->bqk", _bf16(q3[..., sl]), _bf16(k3[..., sl]),
                       preferred_element_type=jnp.float32) + bias
        m = jnp.max(s, axis=-1, keepdims=True)
        p = jnp.exp(s - m)
        p = p * pl.reciprocal(jnp.sum(p, axis=-1, keepdims=True), approx=True)
        ctx = jnp.einsum("bqk,bkd->bqd", _bf16(p), _bf16(v3[..., sl]),
                         preferred_element_type=jnp.float32)          # [B,Sq,dh]
        acc = acc + jnp.dot(_bf16(ctx.reshape(B * Sq, dh)), _bf16(wo[sl, :]),
                            preferred_element_type=jnp.float32)
    return acc + bo


# ------------------------------ Pallas kernel -------------------------------
def _model_kernel(
    # activations / masks
    l_x_ref, r_x_ref, t_x_ref, l_kp_ref, r_kp_ref, t_kp_ref, mem_kp_ref,
    # encoder weights, stacked [2 towers, L, ...]
    e_wqkv, e_bqkv, e_wo, e_bo, e_ln1g, e_ln1b,
    e_w1, e_b1, e_w2, e_b2, e_ln2g, e_ln2b,
    # decoder weights, stacked [L, ...]
    d_wqkv_sa, d_bqkv_sa, d_wo_sa, d_bo_sa, d_ln1g, d_ln1b,
    d_wq_ca, d_bq_ca, d_wkv_ca, d_bkv_ca, d_wo_ca, d_bo_ca, d_ln2g, d_ln2b,
    d_w1, d_b1, d_w2, d_b2, d_ln3g, d_ln3b,
    # memory fusion (row-split) + output projection (lane-padded)
    fwl_ref, fwr_ref, fb_ref, ow_ref, ob_ref,
    # output
    o_ref,
    *, num_layers, nhead):
    D = l_x_ref.shape[-1]
    dh = D // nhead

    # ------------------------- encoder towers -------------------------------
    def encoder_tower(x3, kp, t):
        B, S, _ = x3.shape
        bias = kp[:, None, :]                                  # [B,1,S]
        x2 = x3.reshape(B * S, D)
        for l in range(num_layers):
            qkv = jnp.dot(_bf16(x2), _bf16(e_wqkv[t, l]),
                          preferred_element_type=jnp.float32) + e_bqkv[t, l]
            q3 = qkv[:, 0:D].reshape(B, S, D)
            k3 = qkv[:, D:2 * D].reshape(B, S, D)
            v3 = qkv[:, 2 * D:3 * D].reshape(B, S, D)
            attn = _mha(q3, k3, v3, bias, e_wo[t, l], e_bo[t, l], nhead, dh)
            x2 = _layer_norm(x2 + attn, e_ln1g[t, l], e_ln1b[t, l])
            h = jnp.maximum(
                jnp.dot(_bf16(x2), _bf16(e_w1[t, l]),
                        preferred_element_type=jnp.float32) + e_b1[t, l], 0.0)
            h = jnp.dot(_bf16(h), _bf16(e_w2[t, l]),
                        preferred_element_type=jnp.float32) + e_b2[t, l]
            x2 = _layer_norm(x2 + h, e_ln2g[t, l], e_ln2b[t, l])
        return x2.reshape(B, S, D)

    l_mem3 = encoder_tower(l_x_ref[...].astype(jnp.float32), l_kp_ref[...], 0)
    r_mem3 = encoder_tower(r_x_ref[...].astype(jnp.float32), r_kp_ref[...], 1)

    # ------------------------- memory fusion --------------------------------
    B, Ls, _ = l_mem3.shape
    Lr = r_mem3.shape[1]
    Lm = max(Ls, Lr)
    if Ls < Lm:                                   # pad shorter tower with zeros
        l_mem3 = jnp.concatenate(
            [l_mem3, jnp.zeros((B, Lm - Ls, D), jnp.float32)], axis=1)
    if Lr < Lm:
        r_mem3 = jnp.concatenate(
            [r_mem3, jnp.zeros((B, Lm - Lr, D), jnp.float32)], axis=1)
    # Linear(2D, D) on concat([l, r], -1) == l @ W[:D] + r @ W[D:] + b
    mem2 = (jnp.dot(_bf16(l_mem3.reshape(B * Lm, D)), _bf16(fwl_ref[...]),
                    preferred_element_type=jnp.float32)
            + jnp.dot(_bf16(r_mem3.reshape(B * Lm, D)), _bf16(fwr_ref[...]),
                      preferred_element_type=jnp.float32)
            + fb_ref[...])                                       # [B*Lm, D]
    cbias = mem_kp_ref[...][:, None, :]                          # [B,1,Lm]

    # --------------------------- decoder stack ------------------------------
    T = t_x_ref.shape[1]
    x2 = t_x_ref[...].astype(jnp.float32).reshape(B * T, D)
    row = jax.lax.broadcasted_iota(jnp.int32, (T, T), 0)
    col = jax.lax.broadcasted_iota(jnp.int32, (T, T), 1)
    causal = jnp.where(col > row, NEG_INF, 0.0).astype(jnp.float32)
    sbias = causal[None, :, :] + t_kp_ref[...][:, None, :]       # [B,T,T]

    for l in range(num_layers):
        # masked self-attention
        qkv = jnp.dot(_bf16(x2), _bf16(d_wqkv_sa[l]),
                      preferred_element_type=jnp.float32) + d_bqkv_sa[l]
        q3 = qkv[:, 0:D].reshape(B, T, D)
        k3 = qkv[:, D:2 * D].reshape(B, T, D)
        v3 = qkv[:, 2 * D:3 * D].reshape(B, T, D)
        sa = _mha(q3, k3, v3, sbias, d_wo_sa[l], d_bo_sa[l], nhead, dh)
        x2 = _layer_norm(x2 + sa, d_ln1g[l], d_ln1b[l])
        # cross-attention over fused memory
        q = jnp.dot(_bf16(x2), _bf16(d_wq_ca[l]),
                    preferred_element_type=jnp.float32) + d_bq_ca[l]
        kv = jnp.dot(_bf16(mem2), _bf16(d_wkv_ca[l]),
                     preferred_element_type=jnp.float32) + d_bkv_ca[l]
        q3 = q.reshape(B, T, D)
        k3 = kv[:, 0:D].reshape(B, Lm, D)
        v3 = kv[:, D:2 * D].reshape(B, Lm, D)
        ca = _mha(q3, k3, v3, cbias, d_wo_ca[l], d_bo_ca[l], nhead, dh)
        x2 = _layer_norm(x2 + ca, d_ln2g[l], d_ln2b[l])
        # feed forward (ReLU)
        h = jnp.maximum(
            jnp.dot(_bf16(x2), _bf16(d_w1[l]),
                    preferred_element_type=jnp.float32) + d_b1[l], 0.0)
        h = jnp.dot(_bf16(h), _bf16(d_w2[l]),
                    preferred_element_type=jnp.float32) + d_b2[l]
        x2 = _layer_norm(x2 + h, d_ln3g[l], d_ln3b[l])

    # output projection, padded to 128 lanes -> lane-dense HBM store
    logits = jnp.dot(_bf16(x2), _bf16(ow_ref[...]),
                     preferred_element_type=jnp.float32) + ob_ref[...]
    o_ref[...] = logits.reshape(B, T, V_PAD).astype(o_ref.dtype)


# ---------------------------------- forward ---------------------------------
def forward(params, l_ids, r_ids, tgt, l_mask=None, r_mask=None, tgt_mask=None):
    B, Ls = l_ids.shape
    Lr = r_ids.shape[1]
    T = tgt.shape[1]
    Lm = max(Ls, Lr)

    # TODO(synk): embedding gathers stay in XLA (a Pallas gather buys nothing at
    # this size).  sqrt(d_model) is pre-folded into the tables at init.
    l_x = params["l_embedding"][l_ids]            # dropout == identity (eval)
    r_x = params["r_embedding"][r_ids]
    t_x = params["tgt_embedding"][tgt]

    def kp_bias(mask, S):
        # PyTorch key_padding_mask semantics: True == padded -> masked out.
        # Fully-masked rows give a uniform softmax (NEG_INF is finite).
        if mask is None:
            return jnp.zeros((B, S), jnp.float32)
        return jnp.where(mask, NEG_INF, 0.0).astype(jnp.float32)

    l_kp = kp_bias(l_mask, Ls)
    r_kp = kp_bias(r_mask, Lr)
    t_kp = kp_bias(tgt_mask, T)
    if l_mask is not None and r_mask is not None:
        fused_mask = l_mask if Ls >= Lr else r_mask      # reference fuse_mask
    else:
        fused_mask = None
    mem_kp = kp_bias(fused_mask, Lm)

    enc, dec = params["enc"], params["dec"]
    args = ([l_x, r_x, t_x, l_kp, r_kp, t_kp, mem_kp]
            + [enc[k] for k in ENC_KEYS]
            + [dec[k] for k in DEC_KEYS]
            + [params["fusion_wl"], params["fusion_wr"], params["fusion_b"],
               params["out_w_pad"], params["out_b_pad"]])

    # Single grid-less pallas_call: every input maps to a full-array VMEM block.
    logits = pl.pallas_call(
        partial(_model_kernel, num_layers=NUM_LAYERS, nhead=NHEAD),
        out_shape=jax.ShapeDtypeStruct((B, T, V_PAD), jnp.float32),
    )(*args)
    return logits[:, :, :TGT_VOCAB]                  # drop lane-padding columns


# ------------------------------ parameter init ------------------------------
class KeyGen:
    def __init__(self, key):
        self.key = key

    def __call__(self):
        self.key, sub = jax.random.split(self.key)
        return sub


def xavier(kg, shape):
    fan_in, fan_out = shape[0], shape[1]
    lim = math.sqrt(6.0 / (fan_in + fan_out))
    return jax.random.uniform(kg(), shape, jnp.float32, -lim, lim)


def _stack_layers(layers):
    return {k: jnp.stack([ly[k] for ly in layers]) for k in layers[0]}


def _init_enc_layer(kg, q_scale):
    d, f = D_MODEL, D_FF
    wq = xavier(kg, (d, d)) * q_scale        # attention scale folded into Q
    wk = xavier(kg, (d, d))
    wv = xavier(kg, (d, d))
    return {
        "wqkv": jnp.concatenate([wq, wk, wv], axis=1),
        "bqkv": jnp.zeros((1, 3 * d), jnp.float32),
        "wo": xavier(kg, (d, d)), "bo": jnp.zeros((1, d), jnp.float32),
        "ln1g": jnp.ones((1, d), jnp.float32), "ln1b": jnp.zeros((1, d), jnp.float32),
        "w1": xavier(kg, (d, f)), "b1": jnp.zeros((1, f), jnp.float32),
        "w2": xavier(kg, (f, d)), "b2": jnp.zeros((1, d), jnp.float32),
        "ln2g": jnp.ones((1, d), jnp.float32), "ln2b": jnp.zeros((1, d), jnp.float32),
    }


def _init_dec_layer(kg, q_scale):
    d, f = D_MODEL, D_FF
    wq = xavier(kg, (d, d)) * q_scale
    wk = xavier(kg, (d, d))
    wv = xavier(kg, (d, d))
    cq = xavier(kg, (d, d)) * q_scale
    ck = xavier(kg, (d, d))
    cv = xavier(kg, (d, d))
    return {
        "wqkv_sa": jnp.concatenate([wq, wk, wv], axis=1),
        "bqkv_sa": jnp.zeros((1, 3 * d), jnp.float32),
        "wo_sa": xavier(kg, (d, d)), "bo_sa": jnp.zeros((1, d), jnp.float32),
        "ln1g": jnp.ones((1, d), jnp.float32), "ln1b": jnp.zeros((1, d), jnp.float32),
        "wq_ca": cq, "bq_ca": jnp.zeros((1, d), jnp.float32),
        "wkv_ca": jnp.concatenate([ck, cv], axis=1),
        "bkv_ca": jnp.zeros((1, 2 * d), jnp.float32),
        "wo_ca": xavier(kg, (d, d)), "bo_ca": jnp.zeros((1, d), jnp.float32),
        "ln2g": jnp.ones((1, d), jnp.float32), "ln2b": jnp.zeros((1, d), jnp.float32),
        "w1": xavier(kg, (d, f)), "b1": jnp.zeros((1, f), jnp.float32),
        "w2": xavier(kg, (f, d)), "b2": jnp.zeros((1, d), jnp.float32),
        "ln3g": jnp.ones((1, d), jnp.float32), "ln3b": jnp.zeros((1, d), jnp.float32),
    }


def init_params(key):
    kg = KeyGen(key)
    q_scale = 1.0 / math.sqrt(D_HEAD)             # folded into Q weights
    emb_std = D_MODEL ** (-0.5)
    emb_scale = math.sqrt(D_MODEL)                # folded into embedding tables

    l_enc = _stack_layers([_init_enc_layer(kg, q_scale) for _ in range(NUM_LAYERS)])
    r_enc = _stack_layers([_init_enc_layer(kg, q_scale) for _ in range(NUM_LAYERS)])
    enc = {k: jnp.stack([l_enc[k], r_enc[k]]) for k in l_enc}   # [2 towers, L, ...]
    dec = _stack_layers([_init_dec_layer(kg, q_scale) for _ in range(NUM_LAYERS)])

    fusion_w = xavier(kg, (2 * D_MODEL, D_MODEL))
    out_w = xavier(kg, (D_MODEL, TGT_VOCAB))

    return {
        "l_embedding": jax.random.normal(kg(), (SRC_VOCAB, D_MODEL), jnp.float32)
                       * emb_std * emb_scale,
        "r_embedding": jax.random.normal(kg(), (SRC_VOCAB, D_MODEL), jnp.float32)
                       * emb_std * emb_scale,
        "tgt_embedding": jax.random.normal(kg(), (TGT_VOCAB, D_MODEL), jnp.float32)
                         * emb_std * emb_scale,
        "enc": enc,
        "dec": dec,
        "fusion_wl": fusion_w[:D_MODEL],          # row-split memory_fusion
        "fusion_wr": fusion_w[D_MODEL:],
        "fusion_b": jnp.zeros((1, D_MODEL), jnp.float32),
        "out_w_pad": jnp.pad(out_w, ((0, 0), (0, V_PAD - TGT_VOCAB))),
        "out_b_pad": jnp.zeros((1, V_PAD), jnp.float32),
    }


# ---------------------------------- driver ----------------------------------
if __name__ == "__main__":
    key = jax.random.PRNGKey(0)
    params = init_params(key)

    B, L_LEN, R_LEN, T_LEN = 2, 8, 8, 8
    k1, k2, k3 = jax.random.split(jax.random.PRNGKey(0), 3)
    l_ids = jax.random.randint(k1, (B, L_LEN), 0, SRC_VOCAB, dtype=jnp.int32)
    r_ids = jax.random.randint(k2, (B, R_LEN), 0, SRC_VOCAB, dtype=jnp.int32)
    tgt = jax.random.randint(k3, (B, T_LEN), 0, TGT_VOCAB, dtype=jnp.int32)

    fwd = jax.jit(lambda p, a, b, c: forward(p, a, b, c))
    out = fwd(params, l_ids, r_ids, tgt)
    jax.block_until_ready(out)
    assert out.shape == (B, T_LEN, TGT_VOCAB), out.shape
    assert bool(jnp.all(jnp.isfinite(out)))
    print("KERNEL_OK")
</pallas_src>

<mosaic_0001>
module attributes {stable_mosaic.version = 11 : i64} {
  func.func @_model_kernel(%arg0: memref<2x8x32xf32, #tpu.memory_space<vmem>>, %arg1: memref<2x8x32xf32, #tpu.memory_space<vmem>>, %arg2: memref<2x8x32xf32, #tpu.memory_space<vmem>>, %arg3: memref<2x8xf32, #tpu.memory_space<vmem>>, %arg4: memref<2x8xf32, #tpu.memory_space<vmem>>, %arg5: memref<2x8xf32, #tpu.memory_space<vmem>>, %arg6: memref<2x8xf32, #tpu.memory_space<vmem>>, %arg7: memref<2x2x32x96xf32, #tpu.memory_space<vmem>>, %arg8: memref<2x2x1x96xf32, #tpu.memory_space<vmem>>, %arg9: memref<2x2x32x32xf32, #tpu.memory_space<vmem>>, %arg10: memref<2x2x1x32xf32, #tpu.memory_space<vmem>>, %arg11: memref<2x2x1x32xf32, #tpu.memory_space<vmem>>, %arg12: memref<2x2x1x32xf32, #tpu.memory_space<vmem>>, %arg13: memref<2x2x32x64xf32, #tpu.memory_space<vmem>>, %arg14: memref<2x2x1x64xf32, #tpu.memory_space<vmem>>, %arg15: memref<2x2x64x32xf32, #tpu.memory_space<vmem>>, %arg16: memref<2x2x1x32xf32, #tpu.memory_space<vmem>>, %arg17: memref<2x2x1x32xf32, #tpu.memory_space<vmem>>, %arg18: memref<2x2x1x32xf32, #tpu.memory_space<vmem>>, %arg19: memref<2x32x96xf32, #tpu.memory_space<vmem>>, %arg20: memref<2x1x96xf32, #tpu.memory_space<vmem>>, %arg21: memref<2x32x32xf32, #tpu.memory_space<vmem>>, %arg22: memref<2x1x32xf32, #tpu.memory_space<vmem>>, %arg23: memref<2x1x32xf32, #tpu.memory_space<vmem>>, %arg24: memref<2x1x32xf32, #tpu.memory_space<vmem>>, %arg25: memref<2x32x32xf32, #tpu.memory_space<vmem>>, %arg26: memref<2x1x32xf32, #tpu.memory_space<vmem>>, %arg27: memref<2x32x64xf32, #tpu.memory_space<vmem>>, %arg28: memref<2x1x64xf32, #tpu.memory_space<vmem>>, %arg29: memref<2x32x32xf32, #tpu.memory_space<vmem>>, %arg30: memref<2x1x32xf32, #tpu.memory_space<vmem>>, %arg31: memref<2x1x32xf32, #tpu.memory_space<vmem>>, %arg32: memref<2x1x32xf32, #tpu.memory_space<vmem>>, %arg33: memref<2x32x64xf32, #tpu.memory_space<vmem>>, %arg34: memref<2x1x64xf32, #tpu.memory_space<vmem>>, %arg35: memref<2x64x32xf32, #tpu.memory_space<vmem>>, %arg36: memref<2x1x32xf32, #tpu.memory_space<vmem>>, %arg37: memref<2x1x32xf32, #tpu.memory_space<vmem>>, %arg38: memref<2x1x32xf32, #tpu.memory_space<vmem>>, %arg39: memref<32x32xf32, #tpu.memory_space<vmem>>, %arg40: memref<32x32xf32, #tpu.memory_space<vmem>>, %arg41: memref<1x32xf32, #tpu.memory_space<vmem>>, %arg42: memref<32x128xf32, #tpu.memory_space<vmem>>, %arg43: memref<1x128xf32, #tpu.memory_space<vmem>>, %arg44: memref<2x8x128xf32, #tpu.memory_space<vmem>>) attributes {dimension_semantics = [], scalar_prefetch = 0 : i64, scratch_operands = 0 : i64, tpu.core_type = #tpu.core_type<tc>} {
    %c0 = arith.constant 0 : index
    %c0_0 = arith.constant 0 : index
    %c0_1 = arith.constant 0 : index
    %0 = vector.load %arg0[%c0, %c0_0, %c0_1] : memref<2x8x32xf32, #tpu.memory_space<vmem>>, vector<2x8x32xf32>
    %c0_2 = arith.constant 0 : index
    %c0_3 = arith.constant 0 : index
    %1 = vector.load %arg3[%c0_2, %c0_3] : memref<2x8xf32, #tpu.memory_space<vmem>>, vector<2x8xf32>
    %2 = vector.shape_cast %1 : vector<2x8xf32> to vector<2x1x8xf32>
    %3 = vector.shape_cast %0 : vector<2x8x32xf32> to vector<16x32xf32>
    %4 = arith.truncf %3 : vector<16x32xf32> to vector<16x32xbf16>
    %c0_4 = arith.constant 0 : index
    %c0_5 = arith.constant 0 : index
    %c0_6 = arith.constant 0 : index
    %c0_7 = arith.constant 0 : index
    %5 = vector.load %arg7[%c0_4, %c0_5, %c0_6, %c0_7] : memref<2x2x32x96xf32, #tpu.memory_space<vmem>>, vector<1x1x32x96xf32>
    %6 = vector.shape_cast %5 : vector<1x1x32x96xf32> to vector<32x96xf32>
    %7 = arith.truncf %6 : vector<32x96xf32> to vector<32x96xbf16>
    %cst = arith.constant dense<0.000000e+00> : vector<16x96xf32>
    %8 = tpu.matmul %4, %7, %cst {dimension_numbers = #tpu.dot_dimension_numbers<[1], [0], [0], [1], [0, 0, 1, 1], [], []>} : vector<16x32xbf16>, vector<32x96xbf16>, vector<16x96xf32> -> vector<16x96xf32>
    %c0_8 = arith.constant 0 : index
    %c0_9 = arith.constant 0 : index
    %c0_10 = arith.constant 0 : index
    %c0_11 = arith.constant 0 : index
    %9 = vector.load %arg8[%c0_8, %c0_9, %c0_10, %c0_11] : memref<2x2x1x96xf32, #tpu.memory_space<vmem>>, vector<1x1x1x96xf32>
    %10 = vector.shape_cast %9 : vector<1x1x1x96xf32> to vector<1x96xf32>
    %11 = vector.broadcast %10 : vector<1x96xf32> to vector<16x96xf32>
    %12 = arith.addf %8, %11 : vector<16x96xf32>
    %13 = vector.extract_strided_slice %12 {offsets = [0, 0], sizes = [16, 32], strides = [1, 1]} : vector<16x96xf32> to vector<16x32xf32>
    %14 = vector.shape_cast %13 : vector<16x32xf32> to vector<2x8x32xf32>
    %15 = vector.extract_strided_slice %12 {offsets = [0, 32], sizes = [16, 32], strides = [1, 1]} : vector<16x96xf32> to vector<16x32xf32>
    %16 = vector.shape_cast %15 : vector<16x32xf32> to vector<2x8x32xf32>
    %17 = vector.extract_strided_slice %12 {offsets = [0, 64], sizes = [16, 32], strides = [1, 1]} : vector<16x96xf32> to vector<16x32xf32>
    %18 = vector.shape_cast %17 : vector<16x32xf32> to vector<2x8x32xf32>
    %c0_12 = arith.constant 0 : index
    %c0_13 = arith.constant 0 : index
    %c0_14 = arith.constant 0 : index
    %c0_15 = arith.constant 0 : index
    %19 = vector.load %arg9[%c0_12, %c0_13, %c0_14, %c0_15] : memref<2x2x32x32xf32, #tpu.memory_space<vmem>>, vector<1x1x32x32xf32>
    %20 = vector.shape_cast %19 : vector<1x1x32x32xf32> to vector<32x32xf32>
    %c0_16 = arith.constant 0 : index
    %c0_17 = arith.constant 0 : index
    %c0_18 = arith.constant 0 : index
    %c0_19 = arith.constant 0 : index
    %21 = vector.load %arg10[%c0_16, %c0_17, %c0_18, %c0_19] : memref<2x2x1x32xf32, #tpu.memory_space<vmem>>, vector<1x1x1x32xf32>
    %22 = vector.shape_cast %21 : vector<1x1x1x32xf32> to vector<1x32xf32>
    %cst_20 = arith.constant 0.000000e+00 : f32
    %23 = vector.broadcast %cst_20 : f32 to vector<16x32xf32>
    %24 = vector.extract_strided_slice %14 {offsets = [0, 0, 0], sizes = [2, 8, 8], strides = [1, 1, 1]} : vector<2x8x32xf32> to vector<2x8x8xf32>
    %25 = arith.truncf %24 : vector<2x8x8xf32> to vector<2x8x8xbf16>
    %26 = vector.extract_strided_slice %16 {offsets = [0, 0, 0], sizes = [2, 8, 8], strides = [1, 1, 1]} : vector<2x8x32xf32> to vector<2x8x8xf32>
    %27 = arith.truncf %26 : vector<2x8x8xf32> to vector<2x8x8xbf16>
    "tpu.trace_start"() <{level = 10 : i32, message = "bqd,bkd->bqk"}> : () -> ()
    %cst_21 = arith.constant dense<0.000000e+00> : vector<2x8x8xf32>
    %28 = tpu.matmul %25, %27, %cst_21 {dimension_numbers = #tpu.dot_dimension_numbers<[2], [2], [1], [1], [0, 0, 0, 1, 1, 1], [0], [0]>} : vector<2x8x8xbf16>, vector<2x8x8xbf16>, vector<2x8x8xf32> -> vector<2x8x8xf32>
    "tpu.trace_stop"() : () -> ()
    %29 = vector.broadcast %2 : vector<2x1x8xf32> to vector<2x8x8xf32>
    %30 = arith.addf %28, %29 : vector<2x8x8xf32>
    %cst_22 = arith.constant dense<0xFF800000> : vector<2x8xf32>
    %31 = vector.multi_reduction <maximumf>, %30, %cst_22 [2] : vector<2x8x8xf32> to vector<2x8xf32>
    %32 = vector.shape_cast %31 : vector<2x8xf32> to vector<2x8x1xf32>
    %33 = vector.broadcast %32 : vector<2x8x1xf32> to vector<2x8x8xf32>
    %34 = arith.subf %30, %33 : vector<2x8x8xf32>
    %35 = math.exp %34 : vector<2x8x8xf32>
    %cst_23 = arith.constant dense<0.000000e+00> : vector<2x8xf32>
    %36 = vector.multi_reduction <add>, %35, %cst_23 [2] : vector<2x8x8xf32> to vector<2x8xf32>
    %37 = vector.shape_cast %36 : vector<2x8xf32> to vector<2x8x1xf32>
    %38 = tpu.reciprocal %37 {approx = true} : vector<2x8x1xf32> -> vector<2x8x1xf32>
    %39 = vector.broadcast %38 : vector<2x8x1xf32> to vector<2x8x8xf32>
    %40 = arith.mulf %35, %39 : vector<2x8x8xf32>
    %41 = arith.truncf %40 : vector<2x8x8xf32> to vector<2x8x8xbf16>
    %42 = vector.extract_strided_slice %18 {offsets = [0, 0, 0], sizes = [2, 8, 8], strides = [1, 1, 1]} : vector<2x8x32xf32> to vector<2x8x8xf32>
    %43 = arith.truncf %42 : vector<2x8x8xf32> to vector<2x8x8xbf16>
    "tpu.trace_start"() <{level = 10 : i32, message = "bqk,bkd->bqd"}> : () -> ()
    %cst_24 = arith.constant dense<0.000000e+00> : vector<2x8x8xf32>
    %44 = tpu.matmul %41, %43, %cst_24 {dimension_numbers = #tpu.dot_dimension_numbers<[2], [1], [1], [2], [0, 0, 0, 1, 1, 2], [0], [0]>} : vector<2x8x8xbf16>, vector<2x8x8xbf16>, vector<2x8x8xf32> -> vector<2x8x8xf32>
    "tpu.trace_stop"() : () -> ()
    %45 = vector.shape_cast %44 : vector<2x8x8xf32> to vector<16x8xf32>
    %46 = arith.truncf %45 : vector<16x8xf32> to vector<16x8xbf16>
    %47 = vector.extract_strided_slice %20 {offsets = [0, 0], sizes = [8, 32], strides = [1, 1]} : vector<32x32xf32> to vector<8x32xf32>
    %48 = arith.truncf %47 : vector<8x32xf32> to vector<8x32xbf16>
    %cst_25 = arith.constant dense<0.000000e+00> : vector<16x32xf32>
    %49 = tpu.matmul %46, %48, %cst_25 {dimension_numbers = #tpu.dot_dimension_numbers<[1], [0], [0], [1], [0, 0, 1, 1], [], []>} : vector<16x8xbf16>, vector<8x32xbf16>, vector<16x32xf32> -> vector<16x32xf32>
    %50 = arith.addf %23, %49 : vector<16x32xf32>
    %51 = vector.extract_strided_slice %14 {offsets = [0, 0, 8], sizes = [2, 8, 8], strides = [1, 1, 1]} : vector<2x8x32xf32> to vector<2x8x8xf32>
    %52 = arith.truncf %51 : vector<2x8x8xf32> to vector<2x8x8xbf16>
    %53 = vector.extract_strided_slice %16 {offsets = [0, 0, 8], sizes = [2, 8, 8], strides = [1, 1, 1]} : vector<2x8x32xf32> to vector<2x8x8xf32>
    %54 = arith.truncf %53 : vector<2x8x8xf32> to vector<2x8x8xbf16>
    "tpu.trace_start"() <{level = 10 : i32, message = "bqd,bkd->bqk"}> : () -> ()
    %cst_26 = arith.constant dense<0.000000e+00> : vector<2x8x8xf32>
    %55 = tpu.matmul %52, %54, %cst_26 {dimension_numbers = #tpu.dot_dimension_numbers<[2], [2], [1], [1], [0, 0, 0, 1, 1, 1], [0], [0]>} : vector<2x8x8xbf16>, vector<2x8x8xbf16>, vector<2x8x8xf32> -> vector<2x8x8xf32>
    "tpu.trace_stop"() : () -> ()
    %56 = vector.broadcast %2 : vector<2x1x8xf32> to vector<2x8x8xf32>
    %57 = arith.addf %55, %56 : vector<2x8x8xf32>
    %cst_27 = arith.constant dense<0xFF800000> : vector<2x8xf32>
    %58 = vector.multi_reduction <maximumf>, %57, %cst_27 [2] : vector<2x8x8xf32> to vector<2x8xf32>
    %59 = vector.shape_cast %58 : vector<2x8xf32> to vector<2x8x1xf32>
    %60 = vector.broadcast %59 : vector<2x8x1xf32> to vector<2x8x8xf32>
    %61 = arith.subf %57, %60 : vector<2x8x8xf32>
    %62 = math.exp %61 : vector<2x8x8xf32>
    %cst_28 = arith.constant dense<0.000000e+00> : vector<2x8xf32>
    %63 = vector.multi_reduction <add>, %62, %cst_28 [2] : vector<2x8x8xf32> to vector<2x8xf32>
    %64 = vector.shape_cast %63 : vector<2x8xf32> to vector<2x8x1xf32>
    %65 = tpu.reciprocal %64 {approx = true} : vector<2x8x1xf32> -> vector<2x8x1xf32>
    %66 = vector.broadcast %65 : vector<2x8x1xf32> to vector<2x8x8xf32>
    %67 = arith.mulf %62, %66 : vector<2x8x8xf32>
    %68 = arith.truncf %67 : vector<2x8x8xf32> to vector<2x8x8xbf16>
    %69 = vector.extract_strided_slice %18 {offsets = [0, 0, 8], sizes = [2, 8, 8], strides = [1, 1, 1]} : vector<2x8x32xf32> to vector<2x8x8xf32>
    %70 = arith.truncf %69 : vector<2x8x8xf32> to vector<2x8x8xbf16>
    "tpu.trace_start"() <{level = 10 : i32, message = "bqk,bkd->bqd"}> : () -> ()
    %cst_29 = arith.constant dense<0.000000e+00> : vector<2x8x8xf32>
    %71 = tpu.matmul %68, %70, %cst_29 {dimension_numbers = #tpu.dot_dimension_numbers<[2], [1], [1], [2], [0, 0, 0, 1, 1, 2], [0], [0]>} : vector<2x8x8xbf16>, vector<2x8x8xbf16>, vector<2x8x8xf32> -> vector<2x8x8xf32>
    "tpu.trace_stop"() : () -> ()
    %72 = vector.shape_cast %71 : vector<2x8x8xf32> to vector<16x8xf32>
    %73 = arith.truncf %72 : vector<16x8xf32> to vector<16x8xbf16>
    %74 = vector.extract_strided_slice %20 {offsets = [8, 0], sizes = [8, 32], strides = [1, 1]} : vector<32x32xf32> to vector<8x32xf32>
    %75 = arith.truncf %74 : vector<8x32xf32> to vector<8x32xbf16>
    %cst_30 = arith.constant dense<0.000000e+00> : vector<16x32xf32>
    %76 = tpu.matmul %73, %75, %cst_30 {dimension_numbers = #tpu.dot_dimension_numbers<[1], [0], [0], [1], [0, 0, 1, 1], [], []>} : vector<16x8xbf16>, vector<8x32xbf16>, vector<16x32xf32> -> vector<16x32xf32>
    %77 = arith.addf %50, %76 : vector<16x32xf32>
    %78 = vector.extract_strided_slice %14 {offsets = [0, 0, 16], sizes = [2, 8, 8], strides = [1, 1, 1]} : vector<2x8x32xf32> to vector<2x8x8xf32>
    %79 = arith.truncf %78 : vector<2x8x8xf32> to vector<2x8x8xbf16>
    %80 = vector.extract_strided_slice %16 {offsets = [0, 0, 16], sizes = [2, 8, 8], strides = [1, 1, 1]} : vector<2x8x32xf32> to vector<2x8x8xf32>
    %81 = arith.truncf %80 : vector<2x8x8xf32> to vector<2x8x8xbf16>
    "tpu.trace_start"() <{level = 10 : i32, message = "bqd,bkd->bqk"}> : () -> ()
    %cst_31 = arith.constant dense<0.000000e+00> : vector<2x8x8xf32>
    %82 = tpu.matmul %79, %81, %cst_31 {dimension_numbers = #tpu.dot_dimension_numbers<[2], [2], [1], [1], [0, 0, 0, 1, 1, 1], [0], [0]>} : vector<2x8x8xbf16>, vector<2x8x8xbf16>, vector<2x8x8xf32> -> vector<2x8x8xf32>
    "tpu.trace_stop"() : () -> ()
    %83 = vector.broadcast %2 : vector<2x1x8xf32> to vector<2x8x8xf32>
    %84 = arith.addf %82, %83 : vector<2x8x8xf32>
    %cst_32 = arith.constant dense<0xFF800000> : vector<2x8xf32>
    %85 = vector.multi_reduction <maximumf>, %84, %cst_32 [2] : vector<2x8x8xf32> to vector<2x8xf32>
    %86 = vector.shape_cast %85 : vector<2x8xf32> to vector<2x8x1xf32>
    %87 = vector.broadcast %86 : vector<2x8x1xf32> to vector<2x8x8xf32>
    %88 = arith.subf %84, %87 : vector<2x8x8xf32>
    %89 = math.exp %88 : vector<2x8x8xf32>
    %cst_33 = arith.constant dense<0.000000e+00> : vector<2x8xf32>
    %90 = vector.multi_reduction <add>, %89, %cst_33 [2] : vector<2x8x8xf32> to vector<2x8xf32>
    %91 = vector.shape_cast %90 : vector<2x8xf32> to vector<2x8x1xf32>
    %92 = tpu.reciprocal %91 {approx = true} : vector<2x8x1xf32> -> vector<2x8x1xf32>
    %93 = vector.broadcast %92 : vector<2x8x1xf32> to vector<2x8x8xf32>
    %94 = arith.mulf %89, %93 : vector<2x8x8xf32>
    %95 = arith.truncf %94 : vector<2x8x8xf32> to vector<2x8x8xbf16>
    %96 = vector.extract_strided_slice %18 {offsets = [0, 0, 16], sizes = [2, 8, 8], strides = [1, 1, 1]} : vector<2x8x32xf32> to vector<2x8x8xf32>
    %97 = arith.truncf %96 : vector<2x8x8xf32> to vector<2x8x8xbf16>
    "tpu.trace_start"() <{level = 10 : i32, message = "bqk,bkd->bqd"}> : () -> ()
    %cst_34 = arith.constant dense<0.000000e+00> : vector<2x8x8xf32>
    %98 = tpu.matmul %95, %97, %cst_34 {dimension_numbers = #tpu.dot_dimension_numbers<[2], [1], [1], [2], [0, 0, 0, 1, 1, 2], [0], [0]>} : vector<2x8x8xbf16>, vector<2x8x8xbf16>, vector<2x8x8xf32> -> vector<2x8x8xf32>
    "tpu.trace_stop"() : () -> ()
    %99 = vector.shape_cast %98 : vector<2x8x8xf32> to vector<16x8xf32>
    %100 = arith.truncf %99 : vector<16x8xf32> to vector<16x8xbf16>
    %101 = vector.extract_strided_slice %20 {offsets = [16, 0], sizes = [8, 32], strides = [1, 1]} : vector<32x32xf32> to vector<8x32xf32>
    %102 = arith.truncf %101 : vector<8x32xf32> to vector<8x32xbf16>
    %cst_35 = arith.constant dense<0.000000e+00> : vector<16x32xf32>
    %103 = tpu.matmul %100, %102, %cst_35 {dimension_numbers = #tpu.dot_dimension_numbers<[1], [0], [0], [1], [0, 0, 1, 1], [], []>} : vector<16x8xbf16>, vector<8x32xbf16>, vector<16x32xf32> -> vector<16x32xf32>
    %104 = arith.addf %77, %103 : vector<16x32xf32>
    %105 = vector.extract_strided_slice %14 {offsets = [0, 0, 24], sizes = [2, 8, 8], strides = [1, 1, 1]} : vector<2x8x32xf32> to vector<2x8x8xf32>
    %106 = arith.truncf %105 : vector<2x8x8xf32> to vector<2x8x8xbf16>
    %107 = vector.extract_strided_slice %16 {offsets = [0, 0, 24], sizes = [2, 8, 8], strides = [1, 1, 1]} : vector<2x8x32xf32> to vector<2x8x8xf32>
    %108 = arith.truncf %107 : vector<2x8x8xf32> to vector<2x8x8xbf16>
    "tpu.trace_start"() <{level = 10 : i32, message = "bqd,bkd->bqk"}> : () -> ()
    %cst_36 = arith.constant dense<0.000000e+00> : vector<2x8x8xf32>
    %109 = tpu.matmul %106, %108, %cst_36 {dimension_numbers = #tpu.dot_dimension_numbers<[2], [2], [1], [1], [0, 0, 0, 1, 1, 1], [0], [0]>} : vector<2x8x8xbf16>, vector<2x8x8xbf16>, vector<2x8x8xf32> -> vector<2x8x8xf32>
    "tpu.trace_stop"() : () -> ()
    %110 = vector.broadcast %2 : vector<2x1x8xf32> to vector<2x8x8xf32>
    %111 = arith.addf %109, %110 : vector<2x8x8xf32>
    %cst_37 = arith.constant dense<0xFF800000> : vector<2x8xf32>
    %112 = vector.multi_reduction <maximumf>, %111, %cst_37 [2] : vector<2x8x8xf32> to vector<2x8xf32>
    %113 = vector.shape_cast %112 : vector<2x8xf32> to vector<2x8x1xf32>
    %114 = vector.broadcast %113 : vector<2x8x1xf32> to vector<2x8x8xf32>
    %115 = arith.subf %111, %114 : vector<2x8x8xf32>
    %116 = math.exp %115 : vector<2x8x8xf32>
    %cst_38 = arith.constant dense<0.000000e+00> : vector<2x8xf32>
    %117 = vector.multi_reduction <add>, %116, %cst_38 [2] : vector<2x8x8xf32> to vector<2x8xf32>
    %118 = vector.shape_cast %117 : vector<2x8xf32> to vector<2x8x1xf32>
    %119 = tpu.reciprocal %118 {approx = true} : vector<2x8x1xf32> -> vector<2x8x1xf32>
    %120 = vector.broadcast %119 : vector<2x8x1xf32> to vector<2x8x8xf32>
    %121 = arith.mulf %116, %120 : vector<2x8x8xf32>
    %122 = arith.truncf %121 : vector<2x8x8xf32> to vector<2x8x8xbf16>
    %123 = vector.extract_strided_slice %18 {offsets = [0, 0, 24], sizes = [2, 8, 8], strides = [1, 1, 1]} : vector<2x8x32xf32> to vector<2x8x8xf32>
    %124 = arith.truncf %123 : vector<2x8x8xf32> to vector<2x8x8xbf16>
    "tpu.trace_start"() <{level = 10 : i32, message = "bqk,bkd->bqd"}> : () -> ()
    %cst_39 = arith.constant dense<0.000000e+00> : vector<2x8x8xf32>
    %125 = tpu.matmul %122, %124, %cst_39 {dimension_numbers = #tpu.dot_dimension_numbers<[2], [1], [1], [2], [0, 0, 0, 1, 1, 2], [0], [0]>} : vector<2x8x8xbf16>, vector<2x8x8xbf16>, vector<2x8x8xf32> -> vector<2x8x8xf32>
    "tpu.trace_stop"() : () -> ()
    %126 = vector.shape_cast %125 : vector<2x8x8xf32> to vector<16x8xf32>
    %127 = arith.truncf %126 : vector<16x8xf32> to vector<16x8xbf16>
    %128 = vector.extract_strided_slice %20 {offsets = [24, 0], sizes = [8, 32], strides = [1, 1]} : vector<32x32xf32> to vector<8x32xf32>
    %129 = arith.truncf %128 : vector<8x32xf32> to vector<8x32xbf16>
    %cst_40 = arith.constant dense<0.000000e+00> : vector<16x32xf32>
    %130 = tpu.matmul %127, %129, %cst_40 {dimension_numbers = #tpu.dot_dimension_numbers<[1], [0], [0], [1], [0, 0, 1, 1], [], []>} : vector<16x8xbf16>, vector<8x32xbf16>, vector<16x32xf32> -> vector<16x32xf32>
    %131 = arith.addf %104, %130 : vector<16x32xf32>
    %132 = vector.broadcast %22 : vector<1x32xf32> to vector<16x32xf32>
    %133 = arith.addf %131, %132 : vector<16x32xf32>
    %134 = arith.addf %3, %133 : vector<16x32xf32>
    %c0_41 = arith.constant 0 : index
    %c0_42 = arith.constant 0 : index
    %c0_43 = arith.constant 0 : index
    %c0_44 = arith.constant 0 : index
    %135 = vector.load %arg11[%c0_41, %c0_42, %c0_43, %c0_44] : memref<2x2x1x32xf32, #tpu.memory_space<vmem>>, vector<1x1x1x32xf32>
    %136 = vector.shape_cast %135 : vector<1x1x1x32xf32> to vector<1x32xf32>
    %c0_45 = arith.constant 0 : index
    %c0_46 = arith.constant 0 : index
    %c0_47 = arith.constant 0 : index
    %c0_48 = arith.constant 0 : index
    %137 = vector.load %arg12[%c0_45, %c0_46, %c0_47, %c0_48] : memref<2x2x1x32xf32, #tpu.memory_space<vmem>>, vector<1x1x1x32xf32>
    %138 = vector.shape_cast %137 : vector<1x1x1x32xf32> to vector<1x32xf32>
    %cst_49 = arith.constant dense<0.000000e+00> : vector<16xf32>
    %139 = vector.multi_reduction <add>, %134, %cst_49 [1] : vector<16x32xf32> to vector<16xf32>
    %140 = vector.shape_cast %139 : vector<16xf32> to vector<16x1xf32>
    %cst_50 = arith.constant 3.200000e+01 : f32
    %141 = vector.broadcast %cst_50 : f32 to vector<16x1xf32>
    %142 = arith.divf %140, %141 : vector<16x1xf32>
    %143 = vector.broadcast %142 : vector<16x1xf32> to vector<16x32xf32>
    %144 = arith.subf %134, %143 : vector<16x32xf32>
    %145 = arith.mulf %144, %144 : vector<16x32xf32>
    %cst_51 = arith.constant dense<0.000000e+00> : vector<16xf32>
    %146 = vector.multi_reduction <add>, %145, %cst_51 [1] : vector<16x32xf32> to vector<16xf32>
    %147 = vector.shape_cast %146 : vector<16xf32> to vector<16x1xf32>
    %cst_52 = arith.constant 3.200000e+01 : f32
    %148 = vector.broadcast %cst_52 : f32 to vector<16x1xf32>
    %149 = arith.divf %147, %148 : vector<16x1xf32>
    %150 = vector.broadcast %142 : vector<16x1xf32> to vector<16x32xf32>
    %151 = arith.subf %134, %150 : vector<16x32xf32>
    %cst_53 = arith.constant 9.99999974E-6 : f32
    %152 = vector.broadcast %cst_53 : f32 to vector<16x1xf32>
    %153 = arith.addf %149, %152 : vector<16x1xf32>
    %154 = math.rsqrt %153 : vector<16x1xf32>
    %155 = vector.broadcast %154 : vector<16x1xf32> to vector<16x32xf32>
    %156 = arith.mulf %151, %155 : vector<16x32xf32>
    %157 = vector.broadcast %136 : vector<1x32xf32> to vector<16x32xf32>
    %158 = arith.mulf %156, %157 : vector<16x32xf32>
    %159 = vector.broadcast %138 : vector<1x32xf32> to vector<16x32xf32>
    %160 = arith.addf %158, %159 : vector<16x32xf32>
    %161 = arith.truncf %160 : vector<16x32xf32> to vector<16x32xbf16>
    %c0_54 = arith.constant 0 : index
    %c0_55 = arith.constant 0 : index
    %c0_56 = arith.constant 0 : index
    %c0_57 = arith.constant 0 : index
    %162 = vector.load %arg13[%c0_54, %c0_55, %c0_56, %c0_57] : memref<2x2x32x64xf32, #tpu.memory_space<vmem>>, vector<1x1x32x64xf32>
    %163 = vector.shape_cast %162 : vector<1x1x32x64xf32> to vector<32x64xf32>
    %164 = arith.truncf %163 : vector<32x64xf32> to vector<32x64xbf16>
    %cst_58 = arith.constant dense<0.000000e+00> : vector<16x64xf32>
    %165 = tpu.matmul %161, %164, %cst_58 {dimension_numbers = #tpu.dot_dimension_numbers<[1], [0], [0], [1], [0, 0, 1, 1], [], []>} : vector<16x32xbf16>, vector<32x64xbf16>, vector<16x64xf32> -> vector<16x64xf32>
    %c0_59 = arith.constant 0 : index
    %c0_60 = arith.constant 0 : index
    %c0_61 = arith.constant 0 : index
    %c0_62 = arith.constant 0 : index
    %166 = vector.load %arg14[%c0_59, %c0_60, %c0_61, %c0_62] : memref<2x2x1x64xf32, #tpu.memory_space<vmem>>, vector<1x1x1x64xf32>
    %167 = vector.shape_cast %166 : vector<1x1x1x64xf32> to vector<1x64xf32>
    %168 = vector.broadcast %167 : vector<1x64xf32> to vector<16x64xf32>
    %169 = arith.addf %165, %168 : vector<16x64xf32>
    %cst_63 = arith.constant 0.000000e+00 : f32
    %170 = vector.broadcast %cst_63 : f32 to vector<16x64xf32>
    %171 = arith.maximumf %169, %170 : vector<16x64xf32>
    %172 = arith.truncf %171 : vector<16x64xf32> to vector<16x64xbf16>
    %c0_64 = arith.constant 0 : index
    %c0_65 = arith.constant 0 : index
    %c0_66 = arith.constant 0 : index
    %c0_67 = arith.constant 0 : index
    %173 = vector.load %arg15[%c0_64, %c0_65, %c0_66, %c0_67] : memref<2x2x64x32xf32, #tpu.memory_space<vmem>>, vector<1x1x64x32xf32>
    %174 = vector.shape_cast %173 : vector<1x1x64x32xf32> to vector<64x32xf32>
    %175 = arith.truncf %174 : vector<64x32xf32> to vector<64x32xbf16>
    %cst_68 = arith.constant dense<0.000000e+00> : vector<16x32xf32>
    %176 = tpu.matmul %172, %175, %cst_68 {dimension_numbers = #tpu.dot_dimension_numbers<[1], [0], [0], [1], [0, 0, 1, 1], [], []>} : vector<16x64xbf16>, vector<64x32xbf16>, vector<16x32xf32> -> vector<16x32xf32>
    %c0_69 = arith.constant 0 : index
    %c0_70 = arith.constant 0 : index
    %c0_71 = arith.constant 0 : index
    %c0_72 = arith.constant 0 : index
    %177 = vector.load %arg16[%c0_69, %c0_70, %c0_71, %c0_72] : memref<2x2x1x32xf32, #tpu.memory_space<vmem>>, vector<1x1x1x32xf32>
    %178 = vector.shape_cast %177 : vector<1x1x1x32xf32> to vector<1x32xf32>
    %179 = vector.broadcast %178 : vector<1x32xf32> to vector<16x32xf32>
    %180 = arith.addf %176, %179 : vector<16x32xf32>
    %181 = arith.addf %160, %180 : vector<16x32xf32>
    %c0_73 = arith.constant 0 : index
    %c0_74 = arith.constant 0 : index
    %c0_75 = arith.constant 0 : index
    %c0_76 = arith.constant 0 : index
    %182 = vector.load %arg17[%c0_73, %c0_74, %c0_75, %c0_76] : memref<2x2x1x32xf32, #tpu.memory_space<vmem>>, vector<1x1x1x32xf32>
    %183 = vector.shape_cast %182 : vector<1x1x1x32xf32> to vector<1x32xf32>
    %c0_77 = arith.constant 0 : index
    %c0_78 = arith.constant 0 : index
    %c0_79 = arith.constant 0 : index
    %c0_80 = arith.constant 0 : index
    %184 = vector.load %arg18[%c0_77, %c0_78, %c0_79, %c0_80] : memref<2x2x1x32xf32, #tpu.memory_space<vmem>>, vector<1x1x1x32xf32>
    %185 = vector.shape_cast %184 : vector<1x1x1x32xf32> to vector<1x32xf32>
    %cst_81 = arith.constant dense<0.000000e+00> : vector<16xf32>
    %186 = vector.multi_reduction <add>, %181, %cst_81 [1] : vector<16x32xf32> to vector<16xf32>
    %187 = vector.shape_cast %186 : vector<16xf32> to vector<16x1xf32>
    %cst_82 = arith.constant 3.200000e+01 : f32
    %188 = vector.broadcast %cst_82 : f32 to vector<16x1xf32>
    %189 = arith.divf %187, %188 : vector<16x1xf32>
    %190 = vector.broadcast %189 : vector<16x1xf32> to vector<16x32xf32>
    %191 = arith.subf %181, %190 : vector<16x32xf32>
    %192 = arith.mulf %191, %191 : vector<16x32xf32>
    %cst_83 = arith.constant dense<0.000000e+00> : vector<16xf32>
    %193 = vector.multi_reduction <add>, %192, %cst_83 [1] : vector<16x32xf32> to vector<16xf32>
    %194 = vector.shape_cast %193 : vector<16xf32> to vector<16x1xf32>
    %cst_84 = arith.constant 3.200000e+01 : f32
    %195 = vector.broadcast %cst_84 : f32 to vector<16x1xf32>
    %196 = arith.divf %194, %195 : vector<16x1xf32>
    %197 = vector.broadcast %189 : vector<16x1xf32> to vector<16x32xf32>
    %198 = arith.subf %181, %197 : vector<16x32xf32>
    %cst_85 = arith.constant 9.99999974E-6 : f32
    %199 = vector.broadcast %cst_85 : f32 to vector<16x1xf32>
    %200 = arith.addf %196, %199 : vector<16x1xf32>
    %201 = math.rsqrt %200 : vector<16x1xf32>
    %202 = vector.broadcast %201 : vector<16x1xf32> to vector<16x32xf32>
    %203 = arith.mulf %198, %202 : vector<16x32xf32>
    %204 = vector.broadcast %183 : vector<1x32xf32> to vector<16x32xf32>
    %205 = arith.mulf %203, %204 : vector<16x32xf32>
    %206 = vector.broadcast %185 : vector<1x32xf32> to vector<16x32xf32>
    %207 = arith.addf %205, %206 : vector<16x32xf32>
    %208 = arith.truncf %207 : vector<16x32xf32> to vector<16x32xbf16>
    %c0_86 = arith.constant 0 : index
    %c1 = arith.constant 1 : index
    %c0_87 = arith.constant 0 : index
    %c0_88 = arith.constant 0 : index
    %209 = vector.load %arg7[%c0_86, %c1, %c0_87, %c0_88] : memref<2x2x32x96xf32, #tpu.memory_space<vmem>>, vector<1x1x32x96xf32>
    %210 = vector.shape_cast %209 : vector<1x1x32x96xf32> to vector<32x96xf32>
    %211 = arith.truncf %210 : vector<32x96xf32> to vector<32x96xbf16>
    %cst_89 = arith.constant dense<0.000000e+00> : vector<16x96xf32>
    %212 = tpu.matmul %208, %211, %cst_89 {dimension_numbers = #tpu.dot_dimension_numbers<[1], [0], [0], [1], [0, 0, 1, 1], [], []>} : vector<16x32xbf16>, vector<32x96xbf16>, vector<16x96xf32> -> vector<16x96xf32>
    %c0_90 = arith.constant 0 : index
    %c1_91 = arith.constant 1 : index
    %c0_92 = arith.constant 0 : index
    %c0_93 = arith.constant 0 : index
    %213 = vector.load %arg8[%c0_90, %c1_91, %c0_92, %c0_93] : memref<2x2x1x96xf32, #tpu.memory_space<vmem>>, vector<1x1x1x96xf32>
    %214 = vector.shape_cast %213 : vector<1x1x1x96xf32> to vector<1x96xf32>
    %215 = vector.broadcast %214 : vector<1x96xf32> to vector<16x96xf32>
    %216 = arith.addf %212, %215 : vector<16x96xf32>
    %217 = vector.extract_strided_slice %216 {offsets = [0, 0], sizes = [16, 32], strides = [1, 1]} : vector<16x96xf32> to vector<16x32xf32>
    %218 = vector.shape_cast %217 : vector<16x32xf32> to vector<2x8x32xf32>
    %219 = vector.extract_strided_slice %216 {offsets = [0, 32], sizes = [16, 32], strides = [1, 1]} : vector<16x96xf32> to vector<16x32xf32>
    %220 = vector.shape_cast %219 : vector<16x32xf32> to vector<2x8x32xf32>
    %221 = vector.extract_strided_slice %216 {offsets = [0, 64], sizes = [16, 32], strides = [1, 1]} : vector<16x96xf32> to vector<16x32xf32>
    %222 = vector.shape_cast %221 : vector<16x32xf32> to vector<2x8x32xf32>
    %c0_94 = arith.constant 0 : index
    %c1_95 = arith.constant 1 : index
    %c0_96 = arith.constant 0 : index
    %c0_97 = arith.constant 0 : index
    %223 = vector.load %arg9[%c0_94, %c1_95, %c0_96, %c0_97] : memref<2x2x32x32xf32, #tpu.memory_space<vmem>>, vector<1x1x32x32xf32>
    %224 = vector.shape_cast %223 : vector<1x1x32x32xf32> to vector<32x32xf32>
    %c0_98 = arith.constant 0 : index
    %c1_99 = arith.constant 1 : index
    %c0_100 = arith.constant 0 : index
    %c0_101 = arith.constant 0 : index
    %225 = vector.load %arg10[%c0_98, %c1_99, %c0_100, %c0_101] : memref<2x2x1x32xf32, #tpu.memory_space<vmem>>, vector<1x1x1x32xf32>
    %226 = vector.shape_cast %225 : vector<1x1x1x32xf32> to vector<1x32xf32>
    %cst_102 = arith.constant 0.000000e+00 : f32
    %227 = vector.broadcast %cst_102 : f32 to vector<16x32xf32>
    %228 = vector.extract_strided_slice %218 {offsets = [0, 0, 0], sizes = [2, 8, 8], strides = [1, 1, 1]} : vector<2x8x32xf32> to vector<2x8x8xf32>
    %229 = arith.truncf %228 : vector<2x8x8xf32> to vector<2x8x8xbf16>
    %230 = vector.extract_strided_slice %220 {offsets = [0, 0, 0], sizes = [2, 8, 8], strides = [1, 1, 1]} : vector<2x8x32xf32> to vector<2x8x8xf32>
    %231 = arith.truncf %230 : vector<2x8x8xf32> to vector<2x8x8xbf16>
    "tpu.trace_start"() <{level = 10 : i32, message = "bqd,bkd->bqk"}> : () -> ()
    %cst_103 = arith.constant dense<0.000000e+00> : vector<2x8x8xf32>
    %232 = tpu.matmul %229, %231, %cst_103 {dimension_numbers = #tpu.dot_dimension_numbers<[2], [2], [1], [1], [0, 0, 0, 1, 1, 1], [0], [0]>} : vector<2x8x8xbf16>, vector<2x8x8xbf16>, vector<2x8x8xf32> -> vector<2x8x8xf32>
    "tpu.trace_stop"() : () -> ()
    %233 = vector.broadcast %2 : vector<2x1x8xf32> to vector<2x8x8xf32>
    %234 = arith.addf %232, %233 : vector<2x8x8xf32>
    %cst_104 = arith.constant dense<0xFF800000> : vector<2x8xf32>
    %235 = vector.multi_reduction <maximumf>, %234, %cst_104 [2] : vector<2x8x8xf32> to vector<2x8xf32>
    %236 = vector.shape_cast %235 : vector<2x8xf32> to vector<2x8x1xf32>
    %237 = vector.broadcast %236 : vector<2x8x1xf32> to vector<2x8x8xf32>
    %238 = arith.subf %234, %237 : vector<2x8x8xf32>
    %239 = math.exp %238 : vector<2x8x8xf32>
    %cst_105 = arith.constant dense<0.000000e+00> : vector<2x8xf32>
    %240 = vector.multi_reduction <add>, %239, %cst_105 [2] : vector<2x8x8xf32> to vector<2x8xf32>
    %241 = vector.shape_cast %240 : vector<2x8xf32> to vector<2x8x1xf32>
    %242 = tpu.reciprocal %241 {approx = true} : vector<2x8x1xf32> -> vector<2x8x1xf32>
    %243 = vector.broadcast %242 : vector<2x8x1xf32> to vector<2x8x8xf32>
    %244 = arith.mulf %239, %243 : vector<2x8x8xf32>
    %245 = arith.truncf %244 : vector<2x8x8xf32> to vector<2x8x8xbf16>
    %246 = vector.extract_strided_slice %222 {offsets = [0, 0, 0], sizes = [2, 8, 8], strides = [1, 1, 1]} : vector<2x8x32xf32> to vector<2x8x8xf32>
    %247 = arith.truncf %246 : vector<2x8x8xf32> to vector<2x8x8xbf16>
    "tpu.trace_start"() <{level = 10 : i32, message = "bqk,bkd->bqd"}> : () -> ()
    %cst_106 = arith.constant dense<0.000000e+00> : vector<2x8x8xf32>
    %248 = tpu.matmul %245, %247, %cst_106 {dimension_numbers = #tpu.dot_dimension_numbers<[2], [1], [1], [2], [0, 0, 0, 1, 1, 2], [0], [0]>} : vector<2x8x8xbf16>, vector<2x8x8xbf16>, vector<2x8x8xf32> -> vector<2x8x8xf32>
    "tpu.trace_stop"() : () -> ()
    %249 = vector.shape_cast %248 : vector<2x8x8xf32> to vector<16x8xf32>
    %250 = arith.truncf %249 : vector<16x8xf32> to vector<16x8xbf16>
    %251 = vector.extract_strided_slice %224 {offsets = [0, 0], sizes = [8, 32], strides = [1, 1]} : vector<32x32xf32> to vector<8x32xf32>
    %252 = arith.truncf %251 : vector<8x32xf32> to vector<8x32xbf16>
    %cst_107 = arith.constant dense<0.000000e+00> : vector<16x32xf32>
    %253 = tpu.matmul %250, %252, %cst_107 {dimension_numbers = #tpu.dot_dimension_numbers<[1], [0], [0], [1], [0, 0, 1, 1], [], []>} : vector<16x8xbf16>, vector<8x32xbf16>, vector<16x32xf32> -> vector<16x32xf32>
    %254 = arith.addf %227, %253 : vector<16x32xf32>
    %255 = vector.extract_strided_slice %218 {offsets = [0, 0, 8], sizes = [2, 8, 8], strides = [1, 1, 1]} : vector<2x8x32xf32> to vector<2x8x8xf32>
    %256 = arith.truncf %255 : vector<2x8x8xf32> to vector<2x8x8xbf16>
    %257 = vector.extract_strided_slice %220 {offsets = [0, 0, 8], sizes = [2, 8, 8], strides = [1, 1, 1]} : vector<2x8x32xf32> to vector<2x8x8xf32>
    %258 = arith.truncf %257 : vector<2x8x8xf32> to vector<2x8x8xbf16>
    "tpu.trace_start"() <{level = 10 : i32, message = "bqd,bkd->bqk"}> : () -> ()
    %cst_108 = arith.constant dense<0.000000e+00> : vector<2x8x8xf32>
    %259 = tpu.matmul %256, %258, %cst_108 {dimension_numbers = #tpu.dot_dimension_numbers<[2], [2], [1], [1], [0, 0, 0, 1, 1, 1], [0], [0]>} : vector<2x8x8xbf16>, vector<2x8x8xbf16>, vector<2x8x8xf32> -> vector<2x8x8xf32>
    "tpu.trace_stop"() : () -> ()
    %260 = vector.broadcast %2 : vector<2x1x8xf32> to vector<2x8x8xf32>
    %261 = arith.addf %259, %260 : vector<2x8x8xf32>
    %cst_109 = arith.constant dense<0xFF800000> : vector<2x8xf32>
    %262 = vector.multi_reduction <maximumf>, %261, %cst_109 [2] : vector<2x8x8xf32> to vector<2x8xf32>
    %263 = vector.shape_cast %262 : vector<2x8xf32> to vector<2x8x1xf32>
    %264 = vector.broadcast %263 : vector<2x8x1xf32> to vector<2x8x8xf32>
    %265 = arith.subf %261, %264 : vector<2x8x8xf32>
    %266 = math.exp %265 : vector<2x8x8xf32>
    %cst_110 = arith.constant dense<0.000000e+00> : vector<2x8xf32>
    %267 = vector.multi_reduction <add>, %266, %cst_110 [2] : vector<2x8x8xf32> to vector<2x8xf32>
    %268 = vector.shape_cast %267 : vector<2x8xf32> to vector<2x8x1xf32>
    %269 = tpu.reciprocal %268 {approx = true} : vector<2x8x1xf32> -> vector<2x8x1xf32>
    %270 = vector.broadcast %269 : vector<2x8x1xf32> to vector<2x8x8xf32>
    %271 = arith.mulf %266, %270 : vector<2x8x8xf32>
    %272 = arith.truncf %271 : vector<2x8x8xf32> to vector<2x8x8xbf16>
    %273 = vector.extract_strided_slice %222 {offsets = [0, 0, 8], sizes = [2, 8, 8], strides = [1, 1, 1]} : vector<2x8x32xf32> to vector<2x8x8xf32>
    %274 = arith.truncf %273 : vector<2x8x8xf32> to vector<2x8x8xbf16>
    "tpu.trace_start"() <{level = 10 : i32, message = "bqk,bkd->bqd"}> : () -> ()
    %cst_111 = arith.constant dense<0.000000e+00> : vector<2x8x8xf32>
    %275 = tpu.matmul %272, %274, %cst_111 {dimension_numbers = #tpu.dot_dimension_numbers<[2], [1], [1], [2], [0, 0, 0, 1, 1, 2], [0], [0]>} : vector<2x8x8xbf16>, vector<2x8x8xbf16>, vector<2x8x8xf32> -> vector<2x8x8xf32>
    "tpu.trace_stop"() : () -> ()
    %276 = vector.shape_cast %275 : vector<2x8x8xf32> to vector<16x8xf32>
    %277 = arith.truncf %276 : vector<16x8xf32> to vector<16x8xbf16>
    %278 = vector.extract_strided_slice %224 {offsets = [8, 0], sizes = [8, 32], strides = [1, 1]} : vector<32x32xf32> to vector<8x32xf32>
    %279 = arith.truncf %278 : vector<8x32xf32> to vector<8x32xbf16>
    %cst_112 = arith.constant dense<0.000000e+00> : vector<16x32xf32>
    %280 = tpu.matmul %277, %279, %cst_112 {dimension_numbers = #tpu.dot_dimension_numbers<[1], [0], [0], [1], [0, 0, 1, 1], [], []>} : vector<16x8xbf16>, vector<8x32xbf16>, vector<16x32xf32> -> vector<16x32xf32>
    %281 = arith.addf %254, %280 : vector<16x32xf32>
    %282 = vector.extract_strided_slice %218 {offsets = [0, 0, 16], sizes = [2, 8, 8], strides = [1, 1, 1]} : vector<2x8x32xf32> to vector<2x8x8xf32>
    %283 = arith.truncf %282 : vector<2x8x8xf32> to vector<2x8x8xbf16>
    %284 = vector.extract_strided_slice %220 {offsets = [0, 0, 16], sizes = [2, 8, 8], strides = [1, 1, 1]} : vector<2x8x32xf32> to vector<2x8x8xf32>
    %285 = arith.truncf %284 : vector<2x8x8xf32> to vector<2x8x8xbf16>
    "tpu.trace_start"() <{level = 10 : i32, message = "bqd,bkd->bqk"}> : () -> ()
    %cst_113 = arith.constant dense<0.000000e+00> : vector<2x8x8xf32>
    %286 = tpu.matmul %283, %285, %cst_113 {dimension_numbers = #tpu.dot_dimension_numbers<[2], [2], [1], [1], [0, 0, 0, 1, 1, 1], [0], [0]>} : vector<2x8x8xbf16>, vector<2x8x8xbf16>, vector<2x8x8xf32> -> vector<2x8x8xf32>
    "tpu.trace_stop"() : () -> ()
    %287 = vector.broadcast %2 : vector<2x1x8xf32> to vector<2x8x8xf32>
    %288 = arith.addf %286, %287 : vector<2x8x8xf32>
    %cst_114 = arith.constant dense<0xFF800000> : vector<2x8xf32>
    %289 = vector.multi_reduction <maximumf>, %288, %cst_114 [2] : vector<2x8x8xf32> to vector<2x8xf32>
    %290 = vector.shape_cast %289 : vector<2x8xf32> to vector<2x8x1xf32>
    %291 = vector.broadcast %290 : vector<2x8x1xf32> to vector<2x8x8xf32>
    %292 = arith.subf %288, %291 : vector<2x8x8xf32>
    %293 = math.exp %292 : vector<2x8x8xf32>
    %cst_115 = arith.constant dense<0.000000e+00> : vector<2x8xf32>
    %294 = vector.multi_reduction <add>, %293, %cst_115 [2] : vector<2x8x8xf32> to vector<2x8xf32>
    %295 = vector.shape_cast %294 : vector<2x8xf32> to vector<2x8x1xf32>
    %296 = tpu.reciprocal %295 {approx = true} : vector<2x8x1xf32> -> vector<2x8x1xf32>
    %297 = vector.broadcast %296 : vector<2x8x1xf32> to vector<2x8x8xf32>
    %298 = arith.mulf %293, %297 : vector<2x8x8xf32>
    %299 = arith.truncf %298 : vector<2x8x8xf32> to vector<2x8x8xbf16>
    %300 = vector.extract_strided_slice %222 {offsets = [0, 0, 16], sizes = [2, 8, 8], strides = [1, 1, 1]} : vector<2x8x32xf32> to vector<2x8x8xf32>
    %301 = arith.truncf %300 : vector<2x8x8xf32> to vector<2x8x8xbf16>
    "tpu.trace_start"() <{level = 10 : i32, message = "bqk,bkd->bqd"}> : () -> ()
    %cst_116 = arith.constant dense<0.000000e+00> : vector<2x8x8xf32>
    %302 = tpu.matmul %299, %301, %cst_116 {dimension_numbers = #tpu.dot_dimension_numbers<[2], [1], [1], [2], [0, 0, 0, 1, 1, 2], [0], [0]>} : vector<2x8x8xbf16>, vector<2x8x8xbf16>, vector<2x8x8xf32> -> vector<2x8x8xf32>
    "tpu.trace_stop"() : () -> ()
    %303 = vector.shape_cast %302 : vector<2x8x8xf32> to vector<16x8xf32>
    %304 = arith.truncf %303 : vector<16x8xf32> to vector<16x8xbf16>
    %305 = vector.extract_strided_slice %224 {offsets = [16, 0], sizes = [8, 32], strides = [1, 1]} : vector<32x32xf32> to vector<8x32xf32>
    %306 = arith.truncf %305 : vector<8x32xf32> to vector<8x32xbf16>
    %cst_117 = arith.constant dense<0.000000e+00> : vector<16x32xf32>
    %307 = tpu.matmul %304, %306, %cst_117 {dimension_numbers = #tpu.dot_dimension_numbers<[1], [0], [0], [1], [0, 0, 1, 1], [], []>} : vector<16x8xbf16>, vector<8x32xbf16>, vector<16x32xf32> -> vector<16x32xf32>
    %308 = arith.addf %281, %307 : vector<16x32xf32>
    %309 = vector.extract_strided_slice %218 {offsets = [0, 0, 24], sizes = [2, 8, 8], strides = [1, 1, 1]} : vector<2x8x32xf32> to vector<2x8x8xf32>
    %310 = arith.truncf %309 : vector<2x8x8xf32> to vector<2x8x8xbf16>
    %311 = vector.extract_strided_slice %220 {offsets = [0, 0, 24], sizes = [2, 8, 8], strides = [1, 1, 1]} : vector<2x8x32xf32> to vector<2x8x8xf32>
    %312 = arith.truncf %311 : vector<2x8x8xf32> to vector<2x8x8xbf16>
    "tpu.trace_start"() <{level = 10 : i32, message = "bqd,bkd->bqk"}> : () -> ()
    %cst_118 = arith.constant dense<0.000000e+00> : vector<2x8x8xf32>
    %313 = tpu.matmul %310, %312, %cst_118 {dimension_numbers = #tpu.dot_dimension_numbers<[2], [2], [1], [1], [0, 0, 0, 1, 1, 1], [0], [0]>} : vector<2x8x8xbf16>, vector<2x8x8xbf16>, vector<2x8x8xf32> -> vector<2x8x8xf32>
    "tpu.trace_stop"() : () -> ()
    %314 = vector.broadcast %2 : vector<2x1x8xf32> to vector<2x8x8xf32>
    %315 = arith.addf %313, %314 : vector<2x8x8xf32>
    %cst_119 = arith.constant dense<0xFF800000> : vector<2x8xf32>
    %316 = vector.multi_reduction <maximumf>, %315, %cst_119 [2] : vector<2x8x8xf32> to vector<2x8xf32>
    %317 = vector.shape_cast %316 : vector<2x8xf32> to vector<2x8x1xf32>
    %318 = vector.broadcast %317 : vector<2x8x1xf32> to vector<2x8x8xf32>
    %319 = arith.subf %315, %318 : vector<2x8x8xf32>
    %320 = math.exp %319 : vector<2x8x8xf32>
    %cst_120 = arith.constant dense<0.000000e+00> : vector<2x8xf32>
    %321 = vector.multi_reduction <add>, %320, %cst_120 [2] : vector<2x8x8xf32> to vector<2x8xf32>
    %322 = vector.shape_cast %321 : vector<2x8xf32> to vector<2x8x1xf32>
    %323 = tpu.reciprocal %322 {approx = true} : vector<2x8x1xf32> -> vector<2x8x1xf32>
    %324 = vector.broadcast %323 : vector<2x8x1xf32> to vector<2x8x8xf32>
    %325 = arith.mulf %320, %324 : vector<2x8x8xf32>
    %326 = arith.truncf %325 : vector<2x8x8xf32> to vector<2x8x8xbf16>
    %327 = vector.extract_strided_slice %222 {offsets = [0, 0, 24], sizes = [2, 8, 8], strides = [1, 1, 1]} : vector<2x8x32xf32> to vector<2x8x8xf32>
    %328 = arith.truncf %327 : vector<2x8x8xf32> to vector<2x8x8xbf16>
    "tpu.trace_start"() <{level = 10 : i32, message = "bqk,bkd->bqd"}> : () -> ()
    %cst_121 = arith.constant dense<0.000000e+00> : vector<2x8x8xf32>
    %329 = tpu.matmul %326, %328, %cst_121 {dimension_numbers = #tpu.dot_dimension_numbers<[2], [1], [1], [2], [0, 0, 0, 1, 1, 2], [0], [0]>} : vector<2x8x8xbf16>, vector<2x8x8xbf16>, vector<2x8x8xf32> -> vector<2x8x8xf32>
    "tpu.trace_stop"() : () -> ()
    %330 = vector.shape_cast %329 : vector<2x8x8xf32> to vector<16x8xf32>
    %331 = arith.truncf %330 : vector<16x8xf32> to vector<16x8xbf16>
    %332 = vector.extract_strided_slice %224 {offsets = [24, 0], sizes = [8, 32], strides = [1, 1]} : vector<32x32xf32> to vector<8x32xf32>
    %333 = arith.truncf %332 : vector<8x32xf32> to vector<8x32xbf16>
    %cst_122 = arith.constant dense<0.000000e+00> : vector<16x32xf32>
    %334 = tpu.matmul %331, %333, %cst_122 {dimension_numbers = #tpu.dot_dimension_numbers<[1], [0], [0], [1], [0, 0, 1, 1], [], []>} : vector<16x8xbf16>, vector<8x32xbf16>, vector<16x32xf32> -> vector<16x32xf32>
    %335 = arith.addf %308, %334 : vector<16x32xf32>
    %336 = vector.broadcast %226 : vector<1x32xf32> to vector<16x32xf32>
    %337 = arith.addf %335, %336 : vector<16x32xf32>
    %338 = arith.addf %207, %337 : vector<16x32xf32>
    %c0_123 = arith.constant 0 : index
    %c1_124 = arith.constant 1 : index
    %c0_125 = arith.constant 0 : index
    %c0_126 = arith.constant 0 : index
    %339 = vector.load %arg11[%c0_123, %c1_124, %c0_125, %c0_126] : memref<2x2x1x32xf32, #tpu.memory_space<vmem>>, vector<1x1x1x32xf32>
    %340 = vector.shape_cast %339 : vector<1x1x1x32xf32> to vector<1x32xf32>
    %c0_127 = arith.constant 0 : index
    %c1_128 = arith.constant 1 : index
    %c0_129 = arith.constant 0 : index
    %c0_130 = arith.constant 0 : index
    %341 = vector.load %arg12[%c0_127, %c1_128, %c0_129, %c0_130] : memref<2x2x1x32xf32, #tpu.memory_space<vmem>>, vector<1x1x1x32xf32>
    %342 = vector.shape_cast %341 : vector<1x1x1x32xf32> to vector<1x32xf32>
    %cst_131 = arith.constant dense<0.000000e+00> : vector<16xf32>
    %343 = vector.multi_reduction <add>, %338, %cst_131 [1] : vector<16x32xf32> to vector<16xf32>
    %344 = vector.shape_cast %343 : vector<16xf32> to vector<16x1xf32>
    %cst_132 = arith.constant 3.200000e+01 : f32
    %345 = vector.broadcast %cst_132 : f32 to vector<16x1xf32>
    %346 = arith.divf %344, %345 : vector<16x1xf32>
    %347 = vector.broadcast %346 : vector<16x1xf32> to vector<16x32xf32>
    %348 = arith.subf %338, %347 : vector<16x32xf32>
    %349 = arith.mulf %348, %348 : vector<16x32xf32>
    %cst_133 = arith.constant dense<0.000000e+00> : vector<16xf32>
    %350 = vector.multi_reduction <add>, %349, %cst_133 [1] : vector<16x32xf32> to vector<16xf32>
    %351 = vector.shape_cast %350 : vector<16xf32> to vector<16x1xf32>
    %cst_134 = arith.constant 3.200000e+01 : f32
    %352 = vector.broadcast %cst_134 : f32 to vector<16x1xf32>
    %353 = arith.divf %351, %352 : vector<16x1xf32>
    %354 = vector.broadcast %346 : vector<16x1xf32> to vector<16x32xf32>
    %355 = arith.subf %338, %354 : vector<16x32xf32>
    %cst_135 = arith.constant 9.99999974E-6 : f32
    %356 = vector.broadcast %cst_135 : f32 to vector<16x1xf32>
    %357 = arith.addf %353, %356 : vector<16x1xf32>
    %358 = math.rsqrt %357 : vector<16x1xf32>
    %359 = vector.broadcast %358 : vector<16x1xf32> to vector<16x32xf32>
    %360 = arith.mulf %355, %359 : vector<16x32xf32>
    %361 = vector.broadcast %340 : vector<1x32xf32> to vector<16x32xf32>
    %362 = arith.mulf %360, %361 : vector<16x32xf32>
    %363 = vector.broadcast %342 : vector<1x32xf32> to vector<16x32xf32>
    %364 = arith.addf %362, %363 : vector<16x32xf32>
    %365 = arith.truncf %364 : vector<16x32xf32> to vector<16x32xbf16>
    %c0_136 = arith.constant 0 : index
    %c1_137 = arith.constant 1 : index
    %c0_138 = arith.constant 0 : index
    %c0_139 = arith.constant 0 : index
    %366 = vector.load %arg13[%c0_136, %c1_137, %c0_138, %c0_139] : memref<2x2x32x64xf32, #tpu.memory_space<vmem>>, vector<1x1x32x64xf32>
    %367 = vector.shape_cast %366 : vector<1x1x32x64xf32> to vector<32x64xf32>
    %368 = arith.truncf %367 : vector<32x64xf32> to vector<32x64xbf16>
    %cst_140 = arith.constant dense<0.000000e+00> : vector<16x64xf32>
    %369 = tpu.matmul %365, %368, %cst_140 {dimension_numbers = #tpu.dot_dimension_numbers<[1], [0], [0], [1], [0, 0, 1, 1], [], []>} : vector<16x32xbf16>, vector<32x64xbf16>, vector<16x64xf32> -> vector<16x64xf32>
    %c0_141 = arith.constant 0 : index
    %c1_142 = arith.constant 1 : index
    %c0_143 = arith.constant 0 : index
    %c0_144 = arith.constant 0 : index
    %370 = vector.load %arg14[%c0_141, %c1_142, %c0_143, %c0_144] : memref<2x2x1x64xf32, #tpu.memory_space<vmem>>, vector<1x1x1x64xf32>
    %371 = vector.shape_cast %370 : vector<1x1x1x64xf32> to vector<1x64xf32>
    %372 = vector.broadcast %371 : vector<1x64xf32> to vector<16x64xf32>
    %373 = arith.addf %369, %372 : vector<16x64xf32>
    %cst_145 = arith.constant 0.000000e+00 : f32
    %374 = vector.broadcast %cst_145 : f32 to vector<16x64xf32>
    %375 = arith.maximumf %373, %374 : vector<16x64xf32>
    %376 = arith.truncf %375 : vector<16x64xf32> to vector<16x64xbf16>
    %c0_146 = arith.constant 0 : index
    %c1_147 = arith.constant 1 : index
    %c0_148 = arith.constant 0 : index
    %c0_149 = arith.constant 0 : index
    %377 = vector.load %arg15[%c0_146, %c1_147, %c0_148, %c0_149] : memref<2x2x64x32xf32, #tpu.memory_space<vmem>>, vector<1x1x64x32xf32>
    %378 = vector.shape_cast %377 : vector<1x1x64x32xf32> to vector<64x32xf32>
    %379 = arith.truncf %378 : vector<64x32xf32> to vector<64x32xbf16>
    %cst_150 = arith.constant dense<0.000000e+00> : vector<16x32xf32>
    %380 = tpu.matmul %376, %379, %cst_150 {dimension_numbers = #tpu.dot_dimension_numbers<[1], [0], [0], [1], [0, 0, 1, 1], [], []>} : vector<16x64xbf16>, vector<64x32xbf16>, vector<16x32xf32> -> vector<16x32xf32>
    %c0_151 = arith.constant 0 : index
    %c1_152 = arith.constant 1 : index
    %c0_153 = arith.constant 0 : index
    %c0_154 = arith.constant 0 : index
    %381 = vector.load %arg16[%c0_151, %c1_152, %c0_153, %c0_154] : memref<2x2x1x32xf32, #tpu.memory_space<vmem>>, vector<1x1x1x32xf32>
    %382 = vector.shape_cast %381 : vector<1x1x1x32xf32> to vector<1x32xf32>
    %383 = vector.broadcast %382 : vector<1x32xf32> to vector<16x32xf32>
    %384 = arith.addf %380, %383 : vector<16x32xf32>
    %385 = arith.addf %364, %384 : vector<16x32xf32>
    %c0_155 = arith.constant 0 : index
    %c1_156 = arith.constant 1 : index
    %c0_157 = arith.constant 0 : index
    %c0_158 = arith.constant 0 : index
    %386 = vector.load %arg17[%c0_155, %c1_156, %c0_157, %c0_158] : memref<2x2x1x32xf32, #tpu.memory_space<vmem>>, vector<1x1x1x32xf32>
    %387 = vector.shape_cast %386 : vector<1x1x1x32xf32> to vector<1x32xf32>
    %c0_159 = arith.constant 0 : index
    %c1_160 = arith.constant 1 : index
    %c0_161 = arith.constant 0 : index
    %c0_162 = arith.constant 0 : index
    %388 = vector.load %arg18[%c0_159, %c1_160, %c0_161, %c0_162] : memref<2x2x1x32xf32, #tpu.memory_space<vmem>>, vector<1x1x1x32xf32>
    %389 = vector.shape_cast %388 : vector<1x1x1x32xf32> to vector<1x32xf32>
    %cst_163 = arith.constant dense<0.000000e+00> : vector<16xf32>
    %390 = vector.multi_reduction <add>, %385, %cst_163 [1] : vector<16x32xf32> to vector<16xf32>
    %391 = vector.shape_cast %390 : vector<16xf32> to vector<16x1xf32>
    %cst_164 = arith.constant 3.200000e+01 : f32
    %392 = vector.broadcast %cst_164 : f32 to vector<16x1xf32>
    %393 = arith.divf %391, %392 : vector<16x1xf32>
    %394 = vector.broadcast %393 : vector<16x1xf32> to vector<16x32xf32>
    %395 = arith.subf %385, %394 : vector<16x32xf32>
    %396 = arith.mulf %395, %395 : vector<16x32xf32>
    %cst_165 = arith.constant dense<0.000000e+00> : vector<16xf32>
    %397 = vector.multi_reduction <add>, %396, %cst_165 [1] : vector<16x32xf32> to vector<16xf32>
    %398 = vector.shape_cast %397 : vector<16xf32> to vector<16x1xf32>
    %cst_166 = arith.constant 3.200000e+01 : f32
    %399 = vector.broadcast %cst_166 : f32 to vector<16x1xf32>
    %400 = arith.divf %398, %399 : vector<16x1xf32>
    %401 = vector.broadcast %393 : vector<16x1xf32> to vector<16x32xf32>
    %402 = arith.subf %385, %401 : vector<16x32xf32>
    %cst_167 = arith.constant 9.99999974E-6 : f32
    %403 = vector.broadcast %cst_167 : f32 to vector<16x1xf32>
    %404 = arith.addf %400, %403 : vector<16x1xf32>
    %405 = math.rsqrt %404 : vector<16x1xf32>
    %406 = vector.broadcast %405 : vector<16x1xf32> to vector<16x32xf32>
    %407 = arith.mulf %402, %406 : vector<16x32xf32>
    %408 = vector.broadcast %387 : vector<1x32xf32> to vector<16x32xf32>
    %409 = arith.mulf %407, %408 : vector<16x32xf32>
    %410 = vector.broadcast %389 : vector<1x32xf32> to vector<16x32xf32>
    %411 = arith.addf %409, %410 : vector<16x32xf32>
    %412 = vector.shape_cast %411 : vector<16x32xf32> to vector<2x8x32xf32>
    %c0_168 = arith.constant 0 : index
    %c0_169 = arith.constant 0 : index
    %c0_170 = arith.constant 0 : index
    %413 = vector.load %arg1[%c0_168, %c0_169, %c0_170] : memref<2x8x32xf32, #tpu.memory_space<vmem>>, vector<2x8x32xf32>
    %c0_171 = arith.constant 0 : index
    %c0_172 = arith.constant 0 : index
    %414 = vector.load %arg4[%c0_171, %c0_172] : memref<2x8xf32, #tpu.memory_space<vmem>>, vector<2x8xf32>
    %415 = vector.shape_cast %414 : vector<2x8xf32> to vector<2x1x8xf32>
    %416 = vector.shape_cast %413 : vector<2x8x32xf32> to vector<16x32xf32>
    %417 = arith.truncf %416 : vector<16x32xf32> to vector<16x32xbf16>
    %c1_173 = arith.constant 1 : index
    %c0_174 = arith.constant 0 : index
    %c0_175 = arith.constant 0 : index
    %c0_176 = arith.constant 0 : index
    %418 = vector.load %arg7[%c1_173, %c0_174, %c0_175, %c0_176] : memref<2x2x32x96xf32, #tpu.memory_space<vmem>>, vector<1x1x32x96xf32>
    %419 = vector.shape_cast %418 : vector<1x1x32x96xf32> to vector<32x96xf32>
    %420 = arith.truncf %419 : vector<32x96xf32> to vector<32x96xbf16>
    %cst_177 = arith.constant dense<0.000000e+00> : vector<16x96xf32>
    %421 = tpu.matmul %417, %420, %cst_177 {dimension_numbers = #tpu.dot_dimension_numbers<[1], [0], [0], [1], [0, 0, 1, 1], [], []>} : vector<16x32xbf16>, vector<32x96xbf16>, vector<16x96xf32> -> vector<16x96xf32>
    %c1_178 = arith.constant 1 : index
    %c0_179 = arith.constant 0 : index
    %c0_180 = arith.constant 0 : index
    %c0_181 = arith.constant 0 : index
    %422 = vector.load %arg8[%c1_178, %c0_179, %c0_180, %c0_181] : memref<2x2x1x96xf32, #tpu.memory_space<vmem>>, vector<1x1x1x96xf32>
    %423 = vector.shape_cast %422 : vector<1x1x1x96xf32> to vector<1x96xf32>
    %424 = vector.broadcast %423 : vector<1x96xf32> to vector<16x96xf32>
    %425 = arith.addf %421, %424 : vector<16x96xf32>
    %426 = vector.extract_strided_slice %425 {offsets = [0, 0], sizes = [16, 32], strides = [1, 1]} : vector<16x96xf32> to vector<16x32xf32>
    %427 = vector.shape_cast %426 : vector<16x32xf32> to vector<2x8x32xf32>
    %428 = vector.extract_strided_slice %425 {offsets = [0, 32], sizes = [16, 32], strides = [1, 1]} : vector<16x96xf32> to vector<16x32xf32>
    %429 = vector.shape_cast %428 : vector<16x32xf32> to vector<2x8x32xf32>
    %430 = vector.extract_strided_slice %425 {offsets = [0, 64], sizes = [16, 32], strides = [1, 1]} : vector<16x96xf32> to vector<16x32xf32>
    %431 = vector.shape_cast %430 : vector<16x32xf32> to vector<2x8x32xf32>
    %c1_182 = arith.constant 1 : index
    %c0_183 = arith.constant 0 : index
    %c0_184 = arith.constant 0 : index
    %c0_185 = arith.constant 0 : index
    %432 = vector.load %arg9[%c1_182, %c0_183, %c0_184, %c0_185] : memref<2x2x32x32xf32, #tpu.memory_space<vmem>>, vector<1x1x32x32xf32>
    %433 = vector.shape_cast %432 : vector<1x1x32x32xf32> to vector<32x32xf32>
    %c1_186 = arith.constant 1 : index
    %c0_187 = arith.constant 0 : index
    %c0_188 = arith.constant 0 : index
    %c0_189 = arith.constant 0 : index
    %434 = vector.load %arg10[%c1_186, %c0_187, %c0_188, %c0_189] : memref<2x2x1x32xf32, #tpu.memory_space<vmem>>, vector<1x1x1x32xf32>
    %435 = vector.shape_cast %434 : vector<1x1x1x32xf32> to vector<1x32xf32>
    %cst_190 = arith.constant 0.000000e+00 : f32
    %436 = vector.broadcast %cst_190 : f32 to vector<16x32xf32>
    %437 = vector.extract_strided_slice %427 {offsets = [0, 0, 0], sizes = [2, 8, 8], strides = [1, 1, 1]} : vector<2x8x32xf32> to vector<2x8x8xf32>
    %438 = arith.truncf %437 : vector<2x8x8xf32> to vector<2x8x8xbf16>
    %439 = vector.extract_strided_slice %429 {offsets = [0, 0, 0], sizes = [2, 8, 8], strides = [1, 1, 1]} : vector<2x8x32xf32> to vector<2x8x8xf32>
    %440 = arith.truncf %439 : vector<2x8x8xf32> to vector<2x8x8xbf16>
    "tpu.trace_start"() <{level = 10 : i32, message = "bqd,bkd->bqk"}> : () -> ()
    %cst_191 = arith.constant dense<0.000000e+00> : vector<2x8x8xf32>
    %441 = tpu.matmul %438, %440, %cst_191 {dimension_numbers = #tpu.dot_dimension_numbers<[2], [2], [1], [1], [0, 0, 0, 1, 1, 1], [0], [0]>} : vector<2x8x8xbf16>, vector<2x8x8xbf16>, vector<2x8x8xf32> -> vector<2x8x8xf32>
    "tpu.trace_stop"() : () -> ()
    %442 = vector.broadcast %415 : vector<2x1x8xf32> to vector<2x8x8xf32>
    %443 = arith.addf %441, %442 : vector<2x8x8xf32>
    %cst_192 = arith.constant dense<0xFF800000> : vector<2x8xf32>
    %444 = vector.multi_reduction <maximumf>, %443, %cst_192 [2] : vector<2x8x8xf32> to vector<2x8xf32>
    %445 = vector.shape_cast %444 : vector<2x8xf32> to vector<2x8x1xf32>
    %446 = vector.broadcast %445 : vector<2x8x1xf32> to vector<2x8x8xf32>
    %447 = arith.subf %443, %446 : vector<2x8x8xf32>
    %448 = math.exp %447 : vector<2x8x8xf32>
    %cst_193 = arith.constant dense<0.000000e+00> : vector<2x8xf32>
    %449 = vector.multi_reduction <add>, %448, %cst_193 [2] : vector<2x8x8xf32> to vector<2x8xf32>
    %450 = vector.shape_cast %449 : vector<2x8xf32> to vector<2x8x1xf32>
    %451 = tpu.reciprocal %450 {approx = true} : vector<2x8x1xf32> -> vector<2x8x1xf32>
    %452 = vector.broadcast %451 : vector<2x8x1xf32> to vector<2x8x8xf32>
    %453 = arith.mulf %448, %452 : vector<2x8x8xf32>
    %454 = arith.truncf %453 : vector<2x8x8xf32> to vector<2x8x8xbf16>
    %455 = vector.extract_strided_slice %431 {offsets = [0, 0, 0], sizes = [2, 8, 8], strides = [1, 1, 1]} : vector<2x8x32xf32> to vector<2x8x8xf32>
    %456 = arith.truncf %455 : vector<2x8x8xf32> to vector<2x8x8xbf16>
    "tpu.trace_start"() <{level = 10 : i32, message = "bqk,bkd->bqd"}> : () -> ()
    %cst_194 = arith.constant dense<0.000000e+00> : vector<2x8x8xf32>
    %457 = tpu.matmul %454, %456, %cst_194 {dimension_numbers = #tpu.dot_dimension_numbers<[2], [1], [1], [2], [0, 0, 0, 1, 1, 2], [0], [0]>} : vector<2x8x8xbf16>, vector<2x8x8xbf16>, vector<2x8x8xf32> -> vector<2x8x8xf32>
    "tpu.trace_stop"() : () -> ()
    %458 = vector.shape_cast %457 : vector<2x8x8xf32> to vector<16x8xf32>
    %459 = arith.truncf %458 : vector<16x8xf32> to vector<16x8xbf16>
    %460 = vector.extract_strided_slice %433 {offsets = [0, 0], sizes = [8, 32], strides = [1, 1]} : vector<32x32xf32> to vector<8x32xf32>
    %461 = arith.truncf %460 : vector<8x32xf32> to vector<8x32xbf16>
    %cst_195 = arith.constant dense<0.000000e+00> : vector<16x32xf32>
    %462 = tpu.matmul %459, %461, %cst_195 {dimension_numbers = #tpu.dot_dimension_numbers<[1], [0], [0], [1], [0, 0, 1, 1], [], []>} : vector<16x8xbf16>, vector<8x32xbf16>, vector<16x32xf32> -> vector<16x32xf32>
    %463 = arith.addf %436, %462 : vector<16x32xf32>
    %464 = vector.extract_strided_slice %427 {offsets = [0, 0, 8], sizes = [2, 8, 8], strides = [1, 1, 1]} : vector<2x8x32xf32> to vector<2x8x8xf32>
    %465 = arith.truncf %464 : vector<2x8x8xf32> to vector<2x8x8xbf16>
    %466 = vector.extract_strided_slice %429 {offsets = [0, 0, 8], sizes = [2, 8, 8], strides = [1, 1, 1]} : vector<2x8x32xf32> to vector<2x8x8xf32>
    %467 = arith.truncf %466 : vector<2x8x8xf32> to vector<2x8x8xbf16>
    "tpu.trace_start"() <{level = 10 : i32, message = "bqd,bkd->bqk"}> : () -> ()
    %cst_196 = arith.constant dense<0.000000e+00> : vector<2x8x8xf32>
    %468 = tpu.matmul %465, %467, %cst_196 {dimension_numbers = #tpu.dot_dimension_numbers<[2], [2], [1], [1], [0, 0, 0, 1, 1, 1], [0], [0]>} : vector<2x8x8xbf16>, vector<2x8x8xbf16>, vector<2x8x8xf32> -> vector<2x8x8xf32>
    "tpu.trace_stop"() : () -> ()
    %469 = vector.broadcast %415 : vector<2x1x8xf32> to vector<2x8x8xf32>
    %470 = arith.addf %468, %469 : vector<2x8x8xf32>
    %cst_197 = arith.constant dense<0xFF800000> : vector<2x8xf32>
    %471 = vector.multi_reduction <maximumf>, %470, %cst_197 [2] : vector<2x8x8xf32> to vector<2x8xf32>
    %472 = vector.shape_cast %471 : vector<2x8xf32> to vector<2x8x1xf32>
    %473 = vector.broadcast %472 : vector<2x8x1xf32> to vector<2x8x8xf32>
    %474 = arith.subf %470, %473 : vector<2x8x8xf32>
    %475 = math.exp %474 : vector<2x8x8xf32>
    %cst_198 = arith.constant dense<0.000000e+00> : vector<2x8xf32>
    %476 = vector.multi_reduction <add>, %475, %cst_198 [2] : vector<2x8x8xf32> to vector<2x8xf32>
    %477 = vector.shape_cast %476 : vector<2x8xf32> to vector<2x8x1xf32>
    %478 = tpu.reciprocal %477 {approx = true} : vector<2x8x1xf32> -> vector<2x8x1xf32>
    %479 = vector.broadcast %478 : vector<2x8x1xf32> to vector<2x8x8xf32>
    %480 = arith.mulf %475, %479 : vector<2x8x8xf32>
    %481 = arith.truncf %480 : vector<2x8x8xf32> to vector<2x8x8xbf16>
    %482 = vector.extract_strided_slice %431 {offsets = [0, 0, 8], sizes = [2, 8, 8], strides = [1, 1, 1]} : vector<2x8x32xf32> to vector<2x8x8xf32>
    %483 = arith.truncf %482 : vector<2x8x8xf32> to vector<2x8x8xbf16>
    "tpu.trace_start"() <{level = 10 : i32, message = "bqk,bkd->bqd"}> : () -> ()
    %cst_199 = arith.constant dense<0.000000e+00> : vector<2x8x8xf32>
    %484 = tpu.matmul %481, %483, %cst_199 {dimension_numbers = #tpu.dot_dimension_numbers<[2], [1], [1], [2], [0, 0, 0, 1, 1, 2], [0], [0]>} : vector<2x8x8xbf16>, vector<2x8x8xbf16>, vector<2x8x8xf32> -> vector<2x8x8xf32>
    "tpu.trace_stop"() : () -> ()
    %485 = vector.shape_cast %484 : vector<2x8x8xf32> to vector<16x8xf32>
    %486 = arith.truncf %485 : vector<16x8xf32> to vector<16x8xbf16>
    %487 = vector.extract_strided_slice %433 {offsets = [8, 0], sizes = [8, 32], strides = [1, 1]} : vector<32x32xf32> to vector<8x32xf32>
    %488 = arith.truncf %487 : vector<8x32xf32> to vector<8x32xbf16>
    %cst_200 = arith.constant dense<0.000000e+00> : vector<16x32xf32>
    %489 = tpu.matmul %486, %488, %cst_200 {dimension_numbers = #tpu.dot_dimension_numbers<[1], [0], [0], [1], [0, 0, 1, 1], [], []>} : vector<16x8xbf16>, vector<8x32xbf16>, vector<16x32xf32> -> vector<16x32xf32>
    %490 = arith.addf %463, %489 : vector<16x32xf32>
    %491 = vector.extract_strided_slice %427 {offsets = [0, 0, 16], sizes = [2, 8, 8], strides = [1, 1, 1]} : vector<2x8x32xf32> to vector<2x8x8xf32>
    %492 = arith.truncf %491 : vector<2x8x8xf32> to vector<2x8x8xbf16>
    %493 = vector.extract_strided_slice %429 {offsets = [0, 0, 16], sizes = [2, 8, 8], strides = [1, 1, 1]} : vector<2x8x32xf32> to vector<2x8x8xf32>
    %494 = arith.truncf %493 : vector<2x8x8xf32> to vector<2x8x8xbf16>
    "tpu.trace_start"() <{level = 10 : i32, message = "bqd,bkd->bqk"}> : () -> ()
    %cst_201 = arith.constant dense<0.000000e+00> : vector<2x8x8xf32>
    %495 = tpu.matmul %492, %494, %cst_201 {dimension_numbers = #tpu.dot_dimension_numbers<[2], [2], [1], [1], [0, 0, 0, 1, 1, 1], [0], [0]>} : vector<2x8x8xbf16>, vector<2x8x8xbf16>, vector<2x8x8xf32> -> vector<2x8x8xf32>
    "tpu.trace_stop"() : () -> ()
    %496 = vector.broadcast %415 : vector<2x1x8xf32> to vector<2x8x8xf32>
    %497 = arith.addf %495, %496 : vector<2x8x8xf32>
    %cst_202 = arith.constant dense<0xFF800000> : vector<2x8xf32>
    %498 = vector.multi_reduction <maximumf>, %497, %cst_202 [2] : vector<2x8x8xf32> to vector<2x8xf32>
    %499 = vector.shape_cast %498 : vector<2x8xf32> to vector<2x8x1xf32>
    %500 = vector.broadcast %499 : vector<2x8x1xf32> to vector<2x8x8xf32>
    %501 = arith.subf %497, %500 : vector<2x8x8xf32>
    %502 = math.exp %501 : vector<2x8x8xf32>
    %cst_203 = arith.constant dense<0.000000e+00> : vector<2x8xf32>
    %503 = vector.multi_reduction <add>, %502, %cst_203 [2] : vector<2x8x8xf32> to vector<2x8xf32>
    %504 = vector.shape_cast %503 : vector<2x8xf32> to vector<2x8x1xf32>
    %505 = tpu.reciprocal %504 {approx = true} : vector<2x8x1xf32> -> vector<2x8x1xf32>
    %506 = vector.broadcast %505 : vector<2x8x1xf32> to vector<2x8x8xf32>
    %507 = arith.mulf %502, %506 : vector<2x8x8xf32>
    %508 = arith.truncf %507 : vector<2x8x8xf32> to vector<2x8x8xbf16>
    %509 = vector.extract_strided_slice %431 {offsets = [0, 0, 16], sizes = [2, 8, 8], strides = [1, 1, 1]} : vector<2x8x32xf32> to vector<2x8x8xf32>
    %510 = arith.truncf %509 : vector<2x8x8xf32> to vector<2x8x8xbf16>
    "tpu.trace_start"() <{level = 10 : i32, message = "bqk,bkd->bqd"}> : () -> ()
    %cst_204 = arith.constant dense<0.000000e+00> : vector<2x8x8xf32>
    %511 = tpu.matmul %508, %510, %cst_204 {dimension_numbers = #tpu.dot_dimension_numbers<[2], [1], [1], [2], [0, 0, 0, 1, 1, 2], [0], [0]>} : vector<2x8x8xbf16>, vector<2x8x8xbf16>, vector<2x8x8xf32> -> vector<2x8x8xf32>
    "tpu.trace_stop"() : () -> ()
    %512 = vector.shape_cast %511 : vector<2x8x8xf32> to vector<16x8xf32>
    %513 = arith.truncf %512 : vector<16x8xf32> to vector<16x8xbf16>
    %514 = vector.extract_strided_slice %433 {offsets = [16, 0], sizes = [8, 32], strides = [1, 1]} : vector<32x32xf32> to vector<8x32xf32>
    %515 = arith.truncf %514 : vector<8x32xf32> to vector<8x32xbf16>
    %cst_205 = arith.constant dense<0.000000e+00> : vector<16x32xf32>
    %516 = tpu.matmul %513, %515, %cst_205 {dimension_numbers = #tpu.dot_dimension_numbers<[1], [0], [0], [1], [0, 0, 1, 1], [], []>} : vector<16x8xbf16>, vector<8x32xbf16>, vector<16x32xf32> -> vector<16x32xf32>
    %517 = arith.addf %490, %516 : vector<16x32xf32>
    %518 = vector.extract_strided_slice %427 {offsets = [0, 0, 24], sizes = [2, 8, 8], strides = [1, 1, 1]} : vector<2x8x32xf32> to vector<2x8x8xf32>
    %519 = arith.truncf %518 : vector<2x8x8xf32> to vector<2x8x8xbf16>
    %520 = vector.extract_strided_slice %429 {offsets = [0, 0, 24], sizes = [2, 8, 8], strides = [1, 1, 1]} : vector<2x8x32xf32> to vector<2x8x8xf32>
    %521 = arith.truncf %520 : vector<2x8x8xf32> to vector<2x8x8xbf16>
    "tpu.trace_start"() <{level = 10 : i32, message = "bqd,bkd->bqk"}> : () -> ()
    %cst_206 = arith.constant dense<0.000000e+00> : vector<2x8x8xf32>
    %522 = tpu.matmul %519, %521, %cst_206 {dimension_numbers = #tpu.dot_dimension_numbers<[2], [2], [1], [1], [0, 0, 0, 1, 1, 1], [0], [0]>} : vector<2x8x8xbf16>, vector<2x8x8xbf16>, vector<2x8x8xf32> -> vector<2x8x8xf32>
    "tpu.trace_stop"() : () -> ()
    %523 = vector.broadcast %415 : vector<2x1x8xf32> to vector<2x8x8xf32>
    %524 = arith.addf %522, %523 : vector<2x8x8xf32>
    %cst_207 = arith.constant dense<0xFF800000> : vector<2x8xf32>
    %525 = vector.multi_reduction <maximumf>, %524, %cst_207 [2] : vector<2x8x8xf32> to vector<2x8xf32>
    %526 = vector.shape_cast %525 : vector<2x8xf32> to vector<2x8x1xf32>
    %527 = vector.broadcast %526 : vector<2x8x1xf32> to vector<2x8x8xf32>
    %528 = arith.subf %524, %527 : vector<2x8x8xf32>
    %529 = math.exp %528 : vector<2x8x8xf32>
    %cst_208 = arith.constant dense<0.000000e+00> : vector<2x8xf32>
    %530 = vector.multi_reduction <add>, %529, %cst_208 [2] : vector<2x8x8xf32> to vector<2x8xf32>
    %531 = vector.shape_cast %530 : vector<2x8xf32> to vector<2x8x1xf32>
    %532 = tpu.reciprocal %531 {approx = true} : vector<2x8x1xf32> -> vector<2x8x1xf32>
    %533 = vector.broadcast %532 : vector<2x8x1xf32> to vector<2x8x8xf32>
    %534 = arith.mulf %529, %533 : vector<2x8x8xf32>
    %535 = arith.truncf %534 : vector<2x8x8xf32> to vector<2x8x8xbf16>
    %536 = vector.extract_strided_slice %431 {offsets = [0, 0, 24], sizes = [2, 8, 8], strides = [1, 1, 1]} : vector<2x8x32xf32> to vector<2x8x8xf32>
    %537 = arith.truncf %536 : vector<2x8x8xf32> to vector<2x8x8xbf16>
    "tpu.trace_start"() <{level = 10 : i32, message = "bqk,bkd->bqd"}> : () -> ()
    %cst_209 = arith.constant dense<0.000000e+00> : vector<2x8x8xf32>
    %538 = tpu.matmul %535, %537, %cst_209 {dimension_numbers = #tpu.dot_dimension_numbers<[2], [1], [1], [2], [0, 0, 0, 1, 1, 2], [0], [0]>} : vector<2x8x8xbf16>, vector<2x8x8xbf16>, vector<2x8x8xf32> -> vector<2x8x8xf32>
    "tpu.trace_stop"() : () -> ()
    %539 = vector.shape_cast %538 : vector<2x8x8xf32> to vector<16x8xf32>
    %540 = arith.truncf %539 : vector<16x8xf32> to vector<16x8xbf16>
    %541 = vector.extract_strided_slice %433 {offsets = [24, 0], sizes = [8, 32], strides = [1, 1]} : vector<32x32xf32> to vector<8x32xf32>
    %542 = arith.truncf %541 : vector<8x32xf32> to vector<8x32xbf16>
    %cst_210 = arith.constant dense<0.000000e+00> : vector<16x32xf32>
    %543 = tpu.matmul %540, %542, %cst_210 {dimension_numbers = #tpu.dot_dimension_numbers<[1], [0], [0], [1], [0, 0, 1, 1], [], []>} : vector<16x8xbf16>, vector<8x32xbf16>, vector<16x32xf32> -> vector<16x32xf32>
    %544 = arith.addf %517, %543 : vector<16x32xf32>
    %545 = vector.broadcast %435 : vector<1x32xf32> to vector<16x32xf32>
    %546 = arith.addf %544, %545 : vector<16x32xf32>
    %547 = arith.addf %416, %546 : vector<16x32xf32>
    %c1_211 = arith.constant 1 : index
    %c0_212 = arith.constant 0 : index
    %c0_213 = arith.constant 0 : index
    %c0_214 = arith.constant 0 : index
    %548 = vector.load %arg11[%c1_211, %c0_212, %c0_213, %c0_214] : memref<2x2x1x32xf32, #tpu.memory_space<vmem>>, vector<1x1x1x32xf32>
    %549 = vector.shape_cast %548 : vector<1x1x1x32xf32> to vector<1x32xf32>
    %c1_215 = arith.constant 1 : index
    %c0_216 = arith.constant 0 : index
    %c0_217 = arith.constant 0 : index
    %c0_218 = arith.constant 0 : index
    %550 = vector.load %arg12[%c1_215, %c0_216, %c0_217, %c0_218] : memref<2x2x1x32xf32, #tpu.memory_space<vmem>>, vector<1x1x1x32xf32>
    %551 = vector.shape_cast %550 : vector<1x1x1x32xf32> to vector<1x32xf32>
    %cst_219 = arith.constant dense<0.000000e+00> : vector<16xf32>
    %552 = vector.multi_reduction <add>, %547, %cst_219 [1] : vector<16x32xf32> to vector<16xf32>
    %553 = vector.shape_cast %552 : vector<16xf32> to vector<16x1xf32>
    %cst_220 = arith.constant 3.200000e+01 : f32
    %554 = vector.broadcast %cst_220 : f32 to vector<16x1xf32>
    %555 = arith.divf %553, %554 : vector<16x1xf32>
    %556 = vector.broadcast %555 : vector<16x1xf32> to vector<16x32xf32>
    %557 = arith.subf %547, %556 : vector<16x32xf32>
    %558 = arith.mulf %557, %557 : vector<16x32xf32>
    %cst_221 = arith.constant dense<0.000000e+00> : vector<16xf32>
    %559 = vector.multi_reduction <add>, %558, %cst_221 [1] : vector<16x32xf32> to vector<16xf32>
    %560 = vector.shape_cast %559 : vector<16xf32> to vector<16x1xf32>
    %cst_222 = arith.constant 3.200000e+01 : f32
    %561 = vector.broadcast %cst_222 : f32 to vector<16x1xf32>
    %562 = arith.divf %560, %561 : vector<16x1xf32>
    %563 = vector.broadcast %555 : vector<16x1xf32> to vector<16x32xf32>
    %564 = arith.subf %547, %563 : vector<16x32xf32>
    %cst_223 = arith.constant 9.99999974E-6 : f32
    %565 = vector.broadcast %cst_223 : f32 to vector<16x1xf32>
    %566 = arith.addf %562, %565 : vector<16x1xf32>
    %567 = math.rsqrt %566 : vector<16x1xf32>
    %568 = vector.broadcast %567 : vector<16x1xf32> to vector<16x32xf32>
    %569 = arith.mulf %564, %568 : vector<16x32xf32>
    %570 = vector.broadcast %549 : vector<1x32xf32> to vector<16x32xf32>
    %571 = arith.mulf %569, %570 : vector<16x32xf32>
    %572 = vector.broadcast %551 : vector<1x32xf32> to vector<16x32xf32>
    %573 = arith.addf %571, %572 : vector<16x32xf32>
    %574 = arith.truncf %573 : vector<16x32xf32> to vector<16x32xbf16>
    %c1_224 = arith.constant 1 : index
    %c0_225 = arith.constant 0 : index
    %c0_226 = arith.constant 0 : index
    %c0_227 = arith.constant 0 : index
    %575 = vector.load %arg13[%c1_224, %c0_225, %c0_226, %c0_227] : memref<2x2x32x64xf32, #tpu.memory_space<vmem>>, vector<1x1x32x64xf32>
    %576 = vector.shape_cast %575 : vector<1x1x32x64xf32> to vector<32x64xf32>
    %577 = arith.truncf %576 : vector<32x64xf32> to vector<32x64xbf16>
    %cst_228 = arith.constant dense<0.000000e+00> : vector<16x64xf32>
    %578 = tpu.matmul %574, %577, %cst_228 {dimension_numbers = #tpu.dot_dimension_numbers<[1], [0], [0], [1], [0, 0, 1, 1], [], []>} : vector<16x32xbf16>, vector<32x64xbf16>, vector<16x64xf32> -> vector<16x64xf32>
    %c1_229 = arith.constant 1 : index
    %c0_230 = arith.constant 0 : index
    %c0_231 = arith.constant 0 : index
    %c0_232 = arith.constant 0 : index
    %579 = vector.load %arg14[%c1_229, %c0_230, %c0_231, %c0_232] : memref<2x2x1x64xf32, #tpu.memory_space<vmem>>, vector<1x1x1x64xf32>
    %580 = vector.shape_cast %579 : vector<1x1x1x64xf32> to vector<1x64xf32>
    %581 = vector.broadcast %580 : vector<1x64xf32> to vector<16x64xf32>
    %582 = arith.addf %578, %581 : vector<16x64xf32>
    %cst_233 = arith.constant 0.000000e+00 : f32
    %583 = vector.broadcast %cst_233 : f32 to vector<16x64xf32>
    %584 = arith.maximumf %582, %583 : vector<16x64xf32>
    %585 = arith.truncf %584 : vector<16x64xf32> to vector<16x64xbf16>
    %c1_234 = arith.constant 1 : index
    %c0_235 = arith.constant 0 : index
    %c0_236 = arith.constant 0 : index
    %c0_237 = arith.constant 0 : index
    %586 = vector.load %arg15[%c1_234, %c0_235, %c0_236, %c0_237] : memref<2x2x64x32xf32, #tpu.memory_space<vmem>>, vector<1x1x64x32xf32>
    %587 = vector.shape_cast %586 : vector<1x1x64x32xf32> to vector<64x32xf32>
    %588 = arith.truncf %587 : vector<64x32xf32> to vector<64x32xbf16>
    %cst_238 = arith.constant dense<0.000000e+00> : vector<16x32xf32>
    %589 = tpu.matmul %585, %588, %cst_238 {dimension_numbers = #tpu.dot_dimension_numbers<[1], [0], [0], [1], [0, 0, 1, 1], [], []>} : vector<16x64xbf16>, vector<64x32xbf16>, vector<16x32xf32> -> vector<16x32xf32>
    %c1_239 = arith.constant 1 : index
    %c0_240 = arith.constant 0 : index
    %c0_241 = arith.constant 0 : index
    %c0_242 = arith.constant 0 : index
    %590 = vector.load %arg16[%c1_239, %c0_240, %c0_241, %c0_242] : memref<2x2x1x32xf32, #tpu.memory_space<vmem>>, vector<1x1x1x32xf32>
    %591 = vector.shape_cast %590 : vector<1x1x1x32xf32> to vector<1x32xf32>
    %592 = vector.broadcast %591 : vector<1x32xf32> to vector<16x32xf32>
    %593 = arith.addf %589, %592 : vector<16x32xf32>
    %594 = arith.addf %573, %593 : vector<16x32xf32>
    %c1_243 = arith.constant 1 : index
    %c0_244 = arith.constant 0 : index
    %c0_245 = arith.constant 0 : index
    %c0_246 = arith.constant 0 : index
    %595 = vector.load %arg17[%c1_243, %c0_244, %c0_245, %c0_246] : memref<2x2x1x32xf32, #tpu.memory_space<vmem>>, vector<1x1x1x32xf32>
    %596 = vector.shape_cast %595 : vector<1x1x1x32xf32> to vector<1x32xf32>
    %c1_247 = arith.constant 1 : index
    %c0_248 = arith.constant 0 : index
    %c0_249 = arith.constant 0 : index
    %c0_250 = arith.constant 0 : index
    %597 = vector.load %arg18[%c1_247, %c0_248, %c0_249, %c0_250] : memref<2x2x1x32xf32, #tpu.memory_space<vmem>>, vector<1x1x1x32xf32>
    %598 = vector.shape_cast %597 : vector<1x1x1x32xf32> to vector<1x32xf32>
    %cst_251 = arith.constant dense<0.000000e+00> : vector<16xf32>
    %599 = vector.multi_reduction <add>, %594, %cst_251 [1] : vector<16x32xf32> to vector<16xf32>
    %600 = vector.shape_cast %599 : vector<16xf32> to vector<16x1xf32>
    %cst_252 = arith.constant 3.200000e+01 : f32
    %601 = vector.broadcast %cst_252 : f32 to vector<16x1xf32>
    %602 = arith.divf %600, %601 : vector<16x1xf32>
    %603 = vector.broadcast %602 : vector<16x1xf32> to vector<16x32xf32>
    %604 = arith.subf %594, %603 : vector<16x32xf32>
    %605 = arith.mulf %604, %604 : vector<16x32xf32>
    %cst_253 = arith.constant dense<0.000000e+00> : vector<16xf32>
    %606 = vector.multi_reduction <add>, %605, %cst_253 [1] : vector<16x32xf32> to vector<16xf32>
    %607 = vector.shape_cast %606 : vector<16xf32> to vector<16x1xf32>
    %cst_254 = arith.constant 3.200000e+01 : f32
    %608 = vector.broadcast %cst_254 : f32 to vector<16x1xf32>
    %609 = arith.divf %607, %608 : vector<16x1xf32>
    %610 = vector.broadcast %602 : vector<16x1xf32> to vector<16x32xf32>
    %611 = arith.subf %594, %610 : vector<16x32xf32>
    %cst_255 = arith.constant 9.99999974E-6 : f32
    %612 = vector.broadcast %cst_255 : f32 to vector<16x1xf32>
    %613 = arith.addf %609, %612 : vector<16x1xf32>
    %614 = math.rsqrt %613 : vector<16x1xf32>
    %615 = vector.broadcast %614 : vector<16x1xf32> to vector<16x32xf32>
    %616 = arith.mulf %611, %615 : vector<16x32xf32>
    %617 = vector.broadcast %596 : vector<1x32xf32> to vector<16x32xf32>
    %618 = arith.mulf %616, %617 : vector<16x32xf32>
    %619 = vector.broadcast %598 : vector<1x32xf32> to vector<16x32xf32>
    %620 = arith.addf %618, %619 : vector<16x32xf32>
    %621 = arith.truncf %620 : vector<16x32xf32> to vector<16x32xbf16>
    %c1_256 = arith.constant 1 : index
    %c1_257 = arith.constant 1 : index
    %c0_258 = arith.constant 0 : index
    %c0_259 = arith.constant 0 : index
    %622 = vector.load %arg7[%c1_256, %c1_257, %c0_258, %c0_259] : memref<2x2x32x96xf32, #tpu.memory_space<vmem>>, vector<1x1x32x96xf32>
    %623 = vector.shape_cast %622 : vector<1x1x32x96xf32> to vector<32x96xf32>
    %624 = arith.truncf %623 : vector<32x96xf32> to vector<32x96xbf16>
    %cst_260 = arith.constant dense<0.000000e+00> : vector<16x96xf32>
    %625 = tpu.matmul %621, %624, %cst_260 {dimension_numbers = #tpu.dot_dimension_numbers<[1], [0], [0], [1], [0, 0, 1, 1], [], []>} : vector<16x32xbf16>, vector<32x96xbf16>, vector<16x96xf32> -> vector<16x96xf32>
    %c1_261 = arith.constant 1 : index
    %c1_262 = arith.constant 1 : index
    %c0_263 = arith.constant 0 : index
    %c0_264 = arith.constant 0 : index
    %626 = vector.load %arg8[%c1_261, %c1_262, %c0_263, %c0_264] : memref<2x2x1x96xf32, #tpu.memory_space<vmem>>, vector<1x1x1x96xf32>
    %627 = vector.shape_cast %626 : vector<1x1x1x96xf32> to vector<1x96xf32>
    %628 = vector.broadcast %627 : vector<1x96xf32> to vector<16x96xf32>
    %629 = arith.addf %625, %628 : vector<16x96xf32>
    %630 = vector.extract_strided_slice %629 {offsets = [0, 0], sizes = [16, 32], strides = [1, 1]} : vector<16x96xf32> to vector<16x32xf32>
    %631 = vector.shape_cast %630 : vector<16x32xf32> to vector<2x8x32xf32>
    %632 = vector.extract_strided_slice %629 {offsets = [0, 32], sizes = [16, 32], strides = [1, 1]} : vector<16x96xf32> to vector<16x32xf32>
    %633 = vector.shape_cast %632 : vector<16x32xf32> to vector<2x8x32xf32>
    %634 = vector.extract_strided_slice %629 {offsets = [0, 64], sizes = [16, 32], strides = [1, 1]} : vector<16x96xf32> to vector<16x32xf32>
    %635 = vector.shape_cast %634 : vector<16x32xf32> to vector<2x8x32xf32>
    %c1_265 = arith.constant 1 : index
    %c1_266 = arith.constant 1 : index
    %c0_267 = arith.constant 0 : index
    %c0_268 = arith.constant 0 : index
    %636 = vector.load %arg9[%c1_265, %c1_266, %c0_267, %c0_268] : memref<2x2x32x32xf32, #tpu.memory_space<vmem>>, vector<1x1x32x32xf32>
    %637 = vector.shape_cast %636 : vector<1x1x32x32xf32> to vector<32x32xf32>
    %c1_269 = arith.constant 1 : index
    %c1_270 = arith.constant 1 : index
    %c0_271 = arith.constant 0 : index
    %c0_272 = arith.constant 0 : index
    %638 = vector.load %arg10[%c1_269, %c1_270, %c0_271, %c0_272] : memref<2x2x1x32xf32, #tpu.memory_space<vmem>>, vector<1x1x1x32xf32>
    %639 = vector.shape_cast %638 : vector<1x1x1x32xf32> to vector<1x32xf32>
    %cst_273 = arith.constant 0.000000e+00 : f32
    %640 = vector.broadcast %cst_273 : f32 to vector<16x32xf32>
    %641 = vector.extract_strided_slice %631 {offsets = [0, 0, 0], sizes = [2, 8, 8], strides = [1, 1, 1]} : vector<2x8x32xf32> to vector<2x8x8xf32>
    %642 = arith.truncf %641 : vector<2x8x8xf32> to vector<2x8x8xbf16>
    %643 = vector.extract_strided_slice %633 {offsets = [0, 0, 0], sizes = [2, 8, 8], strides = [1, 1, 1]} : vector<2x8x32xf32> to vector<2x8x8xf32>
    %644 = arith.truncf %643 : vector<2x8x8xf32> to vector<2x8x8xbf16>
    "tpu.trace_start"() <{level = 10 : i32, message = "bqd,bkd->bqk"}> : () -> ()
    %cst_274 = arith.constant dense<0.000000e+00> : vector<2x8x8xf32>
    %645 = tpu.matmul %642, %644, %cst_274 {dimension_numbers = #tpu.dot_dimension_numbers<[2], [2], [1], [1], [0, 0, 0, 1, 1, 1], [0], [0]>} : vector<2x8x8xbf16>, vector<2x8x8xbf16>, vector<2x8x8xf32> -> vector<2x8x8xf32>
    "tpu.trace_stop"() : () -> ()
    %646 = vector.broadcast %415 : vector<2x1x8xf32> to vector<2x8x8xf32>
    %647 = arith.addf %645, %646 : vector<2x8x8xf32>
    %cst_275 = arith.constant dense<0xFF800000> : vector<2x8xf32>
    %648 = vector.multi_reduction <maximumf>, %647, %cst_275 [2] : vector<2x8x8xf32> to vector<2x8xf32>
    %649 = vector.shape_cast %648 : vector<2x8xf32> to vector<2x8x1xf32>
    %650 = vector.broadcast %649 : vector<2x8x1xf32> to vector<2x8x8xf32>
    %651 = arith.subf %647, %650 : vector<2x8x8xf32>
    %652 = math.exp %651 : vector<2x8x8xf32>
    %cst_276 = arith.constant dense<0.000000e+00> : vector<2x8xf32>
    %653 = vector.multi_reduction <add>, %652, %cst_276 [2] : vector<2x8x8xf32> to vector<2x8xf32>
    %654 = vector.shape_cast %653 : vector<2x8xf32> to vector<2x8x1xf32>
    %655 = tpu.reciprocal %654 {approx = true} : vector<2x8x1xf32> -> vector<2x8x1xf32>
    %656 = vector.broadcast %655 : vector<2x8x1xf32> to vector<2x8x8xf32>
    %657 = arith.mulf %652, %656 : vector<2x8x8xf32>
    %658 = arith.truncf %657 : vector<2x8x8xf32> to vector<2x8x8xbf16>
    %659 = vector.extract_strided_slice %635 {offsets = [0, 0, 0], sizes = [2, 8, 8], strides = [1, 1, 1]} : vector<2x8x32xf32> to vector<2x8x8xf32>
    %660 = arith.truncf %659 : vector<2x8x8xf32> to vector<2x8x8xbf16>
    "tpu.trace_start"() <{level = 10 : i32, message = "bqk,bkd->bqd"}> : () -> ()
    %cst_277 = arith.constant dense<0.000000e+00> : vector<2x8x8xf32>
    %661 = tpu.matmul %658, %660, %cst_277 {dimension_numbers = #tpu.dot_dimension_numbers<[2], [1], [1], [2], [0, 0, 0, 1, 1, 2], [0], [0]>} : vector<2x8x8xbf16>, vector<2x8x8xbf16>, vector<2x8x8xf32> -> vector<2x8x8xf32>
    "tpu.trace_stop"() : () -> ()
    %662 = vector.shape_cast %661 : vector<2x8x8xf32> to vector<16x8xf32>
    %663 = arith.truncf %662 : vector<16x8xf32> to vector<16x8xbf16>
    %664 = vector.extract_strided_slice %637 {offsets = [0, 0], sizes = [8, 32], strides = [1, 1]} : vector<32x32xf32> to vector<8x32xf32>
    %665 = arith.truncf %664 : vector<8x32xf32> to vector<8x32xbf16>
    %cst_278 = arith.constant dense<0.000000e+00> : vector<16x32xf32>
    %666 = tpu.matmul %663, %665, %cst_278 {dimension_numbers = #tpu.dot_dimension_numbers<[1], [0], [0], [1], [0, 0, 1, 1], [], []>} : vector<16x8xbf16>, vector<8x32xbf16>, vector<16x32xf32> -> vector<16x32xf32>
    %667 = arith.addf %640, %666 : vector<16x32xf32>
    %668 = vector.extract_strided_slice %631 {offsets = [0, 0, 8], sizes = [2, 8, 8], strides = [1, 1, 1]} : vector<2x8x32xf32> to vector<2x8x8xf32>
    %669 = arith.truncf %668 : vector<2x8x8xf32> to vector<2x8x8xbf16>
    %670 = vector.extract_strided_slice %633 {offsets = [0, 0, 8], sizes = [2, 8, 8], strides = [1, 1, 1]} : vector<2x8x32xf32> to vector<2x8x8xf32>
    %671 = arith.truncf %670 : vector<2x8x8xf32> to vector<2x8x8xbf16>
    "tpu.trace_start"() <{level = 10 : i32, message = "bqd,bkd->bqk"}> : () -> ()
    %cst_279 = arith.constant dense<0.000000e+00> : vector<2x8x8xf32>
    %672 = tpu.matmul %669, %671, %cst_279 {dimension_numbers = #tpu.dot_dimension_numbers<[2], [2], [1], [1], [0, 0, 0, 1, 1, 1], [0], [0]>} : vector<2x8x8xbf16>, vector<2x8x8xbf16>, vector<2x8x8xf32> -> vector<2x8x8xf32>
    "tpu.trace_stop"() : () -> ()
    %673 = vector.broadcast %415 : vector<2x1x8xf32> to vector<2x8x8xf32>
    %674 = arith.addf %672, %673 : vector<2x8x8xf32>
    %cst_280 = arith.constant dense<0xFF800000> : vector<2x8xf32>
    %675 = vector.multi_reduction <maximumf>, %674, %cst_280 [2] : vector<2x8x8xf32> to vector<2x8xf32>
    %676 = vector.shape_cast %675 : vector<2x8xf32> to vector<2x8x1xf32>
    %677 = vector.broadcast %676 : vector<2x8x1xf32> to vector<2x8x8xf32>
    %678 = arith.subf %674, %677 : vector<2x8x8xf32>
    %679 = math.exp %678 : vector<2x8x8xf32>
    %cst_281 = arith.constant dense<0.000000e+00> : vector<2x8xf32>
    %680 = vector.multi_reduction <add>, %679, %cst_281 [2] : vector<2x8x8xf32> to vector<2x8xf32>
    %681 = vector.shape_cast %680 : vector<2x8xf32> to vector<2x8x1xf32>
    %682 = tpu.reciprocal %681 {approx = true} : vector<2x8x1xf32> -> vector<2x8x1xf32>
    %683 = vector.broadcast %682 : vector<2x8x1xf32> to vector<2x8x8xf32>
    %684 = arith.mulf %679, %683 : vector<2x8x8xf32>
    %685 = arith.truncf %684 : vector<2x8x8xf32> to vector<2x8x8xbf16>
    %686 = vector.extract_strided_slice %635 {offsets = [0, 0, 8], sizes = [2, 8, 8], strides = [1, 1, 1]} : vector<2x8x32xf32> to vector<2x8x8xf32>
    %687 = arith.truncf %686 : vector<2x8x8xf32> to vector<2x8x8xbf16>
    "tpu.trace_start"() <{level = 10 : i32, message = "bqk,bkd->bqd"}> : () -> ()
    %cst_282 = arith.constant dense<0.000000e+00> : vector<2x8x8xf32>
    %688 = tpu.matmul %685, %687, %cst_282 {dimension_numbers = #tpu.dot_dimension_numbers<[2], [1], [1], [2], [0, 0, 0, 1, 1, 2], [0], [0]>} : vector<2x8x8xbf16>, vector<2x8x8xbf16>, vector<2x8x8xf32> -> vector<2x8x8xf32>
    "tpu.trace_stop"() : () -> ()
    %689 = vector.shape_cast %688 : vector<2x8x8xf32> to vector<16x8xf32>
    %690 = arith.truncf %689 : vector<16x8xf32> to vector<16x8xbf16>
    %691 = vector.extract_strided_slice %637 {offsets = [8, 0], sizes = [8, 32], strides = [1, 1]} : vector<32x32xf32> to vector<8x32xf32>
    %692 = arith.truncf %691 : vector<8x32xf32> to vector<8x32xbf16>
    %cst_283 = arith.constant dense<0.000000e+00> : vector<16x32xf32>
    %693 = tpu.matmul %690, %692, %cst_283 {dimension_numbers = #tpu.dot_dimension_numbers<[1], [0], [0], [1], [0, 0, 1, 1], [], []>} : vector<16x8xbf16>, vector<8x32xbf16>, vector<16x32xf32> -> vector<16x32xf32>
    %694 = arith.addf %667, %693 : vector<16x32xf32>
    %695 = vector.extract_strided_slice %631 {offsets = [0, 0, 16], sizes = [2, 8, 8], strides = [1, 1, 1]} : vector<2x8x32xf32> to vector<2x8x8xf32>
    %696 = arith.truncf %695 : vector<2x8x8xf32> to vector<2x8x8xbf16>
    %697 = vector.extract_strided_slice %633 {offsets = [0, 0, 16], sizes = [2, 8, 8], strides = [1, 1, 1]} : vector<2x8x32xf32> to vector<2x8x8xf32>
    %698 = arith.truncf %697 : vector<2x8x8xf32> to vector<2x8x8xbf16>
    "tpu.trace_start"() <{level = 10 : i32, message = "bqd,bkd->bqk"}> : () -> ()
    %cst_284 = arith.constant dense<0.000000e+00> : vector<2x8x8xf32>
    %699 = tpu.matmul %696, %698, %cst_284 {dimension_numbers = #tpu.dot_dimension_numbers<[2], [2], [1], [1], [0, 0, 0, 1, 1, 1], [0], [0]>} : vector<2x8x8xbf16>, vector<2x8x8xbf16>, vector<2x8x8xf32> -> vector<2x8x8xf32>
    "tpu.trace_stop"() : () -> ()
    %700 = vector.broadcast %415 : vector<2x1x8xf32> to vector<2x8x8xf32>
    %701 = arith.addf %699, %700 : vector<2x8x8xf32>
    %cst_285 = arith.constant dense<0xFF800000> : vector<2x8xf32>
    %702 = vector.multi_reduction <maximumf>, %701, %cst_285 [2] : vector<2x8x8xf32> to vector<2x8xf32>
    %703 = vector.shape_cast %702 : vector<2x8xf32> to vector<2x8x1xf32>
    %704 = vector.broadcast %703 : vector<2x8x1xf32> to vector<2x8x8xf32>
    %705 = arith.subf %701, %704 : vector<2x8x8xf32>
    %706 = math.exp %705 : vector<2x8x8xf32>
    %cst_286 = arith.constant dense<0.000000e+00> : vector<2x8xf32>
    %707 = vector.multi_reduction <add>, %706, %cst_286 [2] : vector<2x8x8xf32> to vector<2x8xf32>
    %708 = vector.shape_cast %707 : vector<2x8xf32> to vector<2x8x1xf32>
    %709 = tpu.reciprocal %708 {approx = true} : vector<2x8x1xf32> -> vector<2x8x1xf32>
    %710 = vector.broadcast %709 : vector<2x8x1xf32> to vector<2x8x8xf32>
    %711 = arith.mulf %706, %710 : vector<2x8x8xf32>
    %712 = arith.truncf %711 : vector<2x8x8xf32> to vector<2x8x8xbf16>
    %713 = vector.extract_strided_slice %635 {offsets = [0, 0, 16], sizes = [2, 8, 8], strides = [1, 1, 1]} : vector<2x8x32xf32> to vector<2x8x8xf32>
    %714 = arith.truncf %713 : vector<2x8x8xf32> to vector<2x8x8xbf16>
    "tpu.trace_start"() <{level = 10 : i32, message = "bqk,bkd->bqd"}> : () -> ()
    %cst_287 = arith.constant dense<0.000000e+00> : vector<2x8x8xf32>
    %715 = tpu.matmul %712, %714, %cst_287 {dimension_numbers = #tpu.dot_dimension_numbers<[2], [1], [1], [2], [0, 0, 0, 1, 1, 2], [0], [0]>} : vector<2x8x8xbf16>, vector<2x8x8xbf16>, vector<2x8x8xf32> -> vector<2x8x8xf32>
    "tpu.trace_stop"() : () -> ()
    %716 = vector.shape_cast %715 : vector<2x8x8xf32> to vector<16x8xf32>
    %717 = arith.truncf %716 : vector<16x8xf32> to vector<16x8xbf16>
    %718 = vector.extract_strided_slice %637 {offsets = [16, 0], sizes = [8, 32], strides = [1, 1]} : vector<32x32xf32> to vector<8x32xf32>
    %719 = arith.truncf %718 : vector<8x32xf32> to vector<8x32xbf16>
    %cst_288 = arith.constant dense<0.000000e+00> : vector<16x32xf32>
    %720 = tpu.matmul %717, %719, %cst_288 {dimension_numbers = #tpu.dot_dimension_numbers<[1], [0], [0], [1], [0, 0, 1, 1], [], []>} : vector<16x8xbf16>, vector<8x32xbf16>, vector<16x32xf32> -> vector<16x32xf32>
    %721 = arith.addf %694, %720 : vector<16x32xf32>
    %722 = vector.extract_strided_slice %631 {offsets = [0, 0, 24], sizes = [2, 8, 8], strides = [1, 1, 1]} : vector<2x8x32xf32> to vector<2x8x8xf32>
    %723 = arith.truncf %722 : vector<2x8x8xf32> to vector<2x8x8xbf16>
    %724 = vector.extract_strided_slice %633 {offsets = [0, 0, 24], sizes = [2, 8, 8], strides = [1, 1, 1]} : vector<2x8x32xf32> to vector<2x8x8xf32>
    %725 = arith.truncf %724 : vector<2x8x8xf32> to vector<2x8x8xbf16>
    "tpu.trace_start"() <{level = 10 : i32, message = "bqd,bkd->bqk"}> : () -> ()
    %cst_289 = arith.constant dense<0.000000e+00> : vector<2x8x8xf32>
    %726 = tpu.matmul %723, %725, %cst_289 {dimension_numbers = #tpu.dot_dimension_numbers<[2], [2], [1], [1], [0, 0, 0, 1, 1, 1], [0], [0]>} : vector<2x8x8xbf16>, vector<2x8x8xbf16>, vector<2x8x8xf32> -> vector<2x8x8xf32>
    "tpu.trace_stop"() : () -> ()
    %727 = vector.broadcast %415 : vector<2x1x8xf32> to vector<2x8x8xf32>
    %728 = arith.addf %726, %727 : vector<2x8x8xf32>
    %cst_290 = arith.constant dense<0xFF800000> : vector<2x8xf32>
    %729 = vector.multi_reduction <maximumf>, %728, %cst_290 [2] : vector<2x8x8xf32> to vector<2x8xf32>
    %730 = vector.shape_cast %729 : vector<2x8xf32> to vector<2x8x1xf32>
    %731 = vector.broadcast %730 : vector<2x8x1xf32> to vector<2x8x8xf32>
    %732 = arith.subf %728, %731 : vector<2x8x8xf32>
    %733 = math.exp %732 : vector<2x8x8xf32>
    %cst_291 = arith.constant dense<0.000000e+00> : vector<2x8xf32>
    %734 = vector.multi_reduction <add>, %733, %cst_291 [2] : vector<2x8x8xf32> to vector<2x8xf32>
    %735 = vector.shape_cast %734 : vector<2x8xf32> to vector<2x8x1xf32>
    %736 = tpu.reciprocal %735 {approx = true} : vector<2x8x1xf32> -> vector<2x8x1xf32>
    %737 = vector.broadcast %736 : vector<2x8x1xf32> to vector<2x8x8xf32>
    %738 = arith.mulf %733, %737 : vector<2x8x8xf32>
    %739 = arith.truncf %738 : vector<2x8x8xf32> to vector<2x8x8xbf16>
    %740 = vector.extract_strided_slice %635 {offsets = [0, 0, 24], sizes = [2, 8, 8], strides = [1, 1, 1]} : vector<2x8x32xf32> to vector<2x8x8xf32>
    %741 = arith.truncf %740 : vector<2x8x8xf32> to vector<2x8x8xbf16>
    "tpu.trace_start"() <{level = 10 : i32, message = "bqk,bkd->bqd"}> : () -> ()
    %cst_292 = arith.constant dense<0.000000e+00> : vector<2x8x8xf32>
    %742 = tpu.matmul %739, %741, %cst_292 {dimension_numbers = #tpu.dot_dimension_numbers<[2], [1], [1], [2], [0, 0, 0, 1, 1, 2], [0], [0]>} : vector<2x8x8xbf16>, vector<2x8x8xbf16>, vector<2x8x8xf32> -> vector<2x8x8xf32>
    "tpu.trace_stop"() : () -> ()
    %743 = vector.shape_cast %742 : vector<2x8x8xf32> to vector<16x8xf32>
    %744 = arith.truncf %743 : vector<16x8xf32> to vector<16x8xbf16>
    %745 = vector.extract_strided_slice %637 {offsets = [24, 0], sizes = [8, 32], strides = [1, 1]} : vector<32x32xf32> to vector<8x32xf32>
    %746 = arith.truncf %745 : vector<8x32xf32> to vector<8x32xbf16>
    %cst_293 = arith.constant dense<0.000000e+00> : vector<16x32xf32>
    %747 = tpu.matmul %744, %746, %cst_293 {dimension_numbers = #tpu.dot_dimension_numbers<[1], [0], [0], [1], [0, 0, 1, 1], [], []>} : vector<16x8xbf16>, vector<8x32xbf16>, vector<16x32xf32> -> vector<16x32xf32>
    %748 = arith.addf %721, %747 : vector<16x32xf32>
    %749 = vector.broadcast %639 : vector<1x32xf32> to vector<16x32xf32>
    %750 = arith.addf %748, %749 : vector<16x32xf32>
    %751 = arith.addf %620, %750 : vector<16x32xf32>
    %c1_294 = arith.constant 1 : index
    %c1_295 = arith.constant 1 : index
    %c0_296 = arith.constant 0 : index
    %c0_297 = arith.constant 0 : index
    %752 = vector.load %arg11[%c1_294, %c1_295, %c0_296, %c0_297] : memref<2x2x1x32xf32, #tpu.memory_space<vmem>>, vector<1x1x1x32xf32>
    %753 = vector.shape_cast %752 : vector<1x1x1x32xf32> to vector<1x32xf32>
    %c1_298 = arith.constant 1 : index
    %c1_299 = arith.constant 1 : index
    %c0_300 = arith.constant 0 : index
    %c0_301 = arith.constant 0 : index
    %754 = vector.load %arg12[%c1_298, %c1_299, %c0_300, %c0_301] : memref<2x2x1x32xf32, #tpu.memory_space<vmem>>, vector<1x1x1x32xf32>
    %755 = vector.shape_cast %754 : vector<1x1x1x32xf32> to vector<1x32xf32>
    %cst_302 = arith.constant dense<0.000000e+00> : vector<16xf32>
    %756 = vector.multi_reduction <add>, %751, %cst_302 [1] : vector<16x32xf32> to vector<16xf32>
    %757 = vector.shape_cast %756 : vector<16xf32> to vector<16x1xf32>
    %cst_303 = arith.constant 3.200000e+01 : f32
    %758 = vector.broadcast %cst_303 : f32 to vector<16x1xf32>
    %759 = arith.divf %757, %758 : vector<16x1xf32>
    %760 = vector.broadcast %759 : vector<16x1xf32> to vector<16x32xf32>
    %761 = arith.subf %751, %760 : vector<16x32xf32>
    %762 = arith.mulf %761, %761 : vector<16x32xf32>
    %cst_304 = arith.constant dense<0.000000e+00> : vector<16xf32>
    %763 = vector.multi_reduction <add>, %762, %cst_304 [1] : vector<16x32xf32> to vector<16xf32>
    %764 = vector.shape_cast %763 : vector<16xf32> to vector<16x1xf32>
    %cst_305 = arith.constant 3.200000e+01 : f32
    %765 = vector.broadcast %cst_305 : f32 to vector<16x1xf32>
    %766 = arith.divf %764, %765 : vector<16x1xf32>
    %767 = vector.broadcast %759 : vector<16x1xf32> to vector<16x32xf32>
    %768 = arith.subf %751, %767 : vector<16x32xf32>
    %cst_306 = arith.constant 9.99999974E-6 : f32
    %769 = vector.broadcast %cst_306 : f32 to vector<16x1xf32>
    %770 = arith.addf %766, %769 : vector<16x1xf32>
    %771 = math.rsqrt %770 : vector<16x1xf32>
    %772 = vector.broadcast %771 : vector<16x1xf32> to vector<16x32xf32>
    %773 = arith.mulf %768, %772 : vector<16x32xf32>
    %774 = vector.broadcast %753 : vector<1x32xf32> to vector<16x32xf32>
    %775 = arith.mulf %773, %774 : vector<16x32xf32>
    %776 = vector.broadcast %755 : vector<1x32xf32> to vector<16x32xf32>
    %777 = arith.addf %775, %776 : vector<16x32xf32>
    %778 = arith.truncf %777 : vector<16x32xf32> to vector<16x32xbf16>
    %c1_307 = arith.constant 1 : index
    %c1_308 = arith.constant 1 : index
    %c0_309 = arith.constant 0 : index
    %c0_310 = arith.constant 0 : index
    %779 = vector.load %arg13[%c1_307, %c1_308, %c0_309, %c0_310] : memref<2x2x32x64xf32, #tpu.memory_space<vmem>>, vector<1x1x32x64xf32>
    %780 = vector.shape_cast %779 : vector<1x1x32x64xf32> to vector<32x64xf32>
    %781 = arith.truncf %780 : vector<32x64xf32> to vector<32x64xbf16>
    %cst_311 = arith.constant dense<0.000000e+00> : vector<16x64xf32>
    %782 = tpu.matmul %778, %781, %cst_311 {dimension_numbers = #tpu.dot_dimension_numbers<[1], [0], [0], [1], [0, 0, 1, 1], [], []>} : vector<16x32xbf16>, vector<32x64xbf16>, vector<16x64xf32> -> vector<16x64xf32>
    %c1_312 = arith.constant 1 : index
    %c1_313 = arith.constant 1 : index
    %c0_314 = arith.constant 0 : index
    %c0_315 = arith.constant 0 : index
    %783 = vector.load %arg14[%c1_312, %c1_313, %c0_314, %c0_315] : memref<2x2x1x64xf32, #tpu.memory_space<vmem>>, vector<1x1x1x64xf32>
    %784 = vector.shape_cast %783 : vector<1x1x1x64xf32> to vector<1x64xf32>
    %785 = vector.broadcast %784 : vector<1x64xf32> to vector<16x64xf32>
    %786 = arith.addf %782, %785 : vector<16x64xf32>
    %cst_316 = arith.constant 0.000000e+00 : f32
    %787 = vector.broadcast %cst_316 : f32 to vector<16x64xf32>
    %788 = arith.maximumf %786, %787 : vector<16x64xf32>
    %789 = arith.truncf %788 : vector<16x64xf32> to vector<16x64xbf16>
    %c1_317 = arith.constant 1 : index
    %c1_318 = arith.constant 1 : index
    %c0_319 = arith.constant 0 : index
    %c0_320 = arith.constant 0 : index
    %790 = vector.load %arg15[%c1_317, %c1_318, %c0_319, %c0_320] : memref<2x2x64x32xf32, #tpu.memory_space<vmem>>, vector<1x1x64x32xf32>
    %791 = vector.shape_cast %790 : vector<1x1x64x32xf32> to vector<64x32xf32>
    %792 = arith.truncf %791 : vector<64x32xf32> to vector<64x32xbf16>
    %cst_321 = arith.constant dense<0.000000e+00> : vector<16x32xf32>
    %793 = tpu.matmul %789, %792, %cst_321 {dimension_numbers = #tpu.dot_dimension_numbers<[1], [0], [0], [1], [0, 0, 1, 1], [], []>} : vector<16x64xbf16>, vector<64x32xbf16>, vector<16x32xf32> -> vector<16x32xf32>
    %c1_322 = arith.constant 1 : index
    %c1_323 = arith.constant 1 : index
    %c0_324 = arith.constant 0 : index
    %c0_325 = arith.constant 0 : index
    %794 = vector.load %arg16[%c1_322, %c1_323, %c0_324, %c0_325] : memref<2x2x1x32xf32, #tpu.memory_space<vmem>>, vector<1x1x1x32xf32>
    %795 = vector.shape_cast %794 : vector<1x1x1x32xf32> to vector<1x32xf32>
    %796 = vector.broadcast %795 : vector<1x32xf32> to vector<16x32xf32>
    %797 = arith.addf %793, %796 : vector<16x32xf32>
    %798 = arith.addf %777, %797 : vector<16x32xf32>
    %c1_326 = arith.constant 1 : index
    %c1_327 = arith.constant 1 : index
    %c0_328 = arith.constant 0 : index
    %c0_329 = arith.constant 0 : index
    %799 = vector.load %arg17[%c1_326, %c1_327, %c0_328, %c0_329] : memref<2x2x1x32xf32, #tpu.memory_space<vmem>>, vector<1x1x1x32xf32>
    %800 = vector.shape_cast %799 : vector<1x1x1x32xf32> to vector<1x32xf32>
    %c1_330 = arith.constant 1 : index
    %c1_331 = arith.constant 1 : index
    %c0_332 = arith.constant 0 : index
    %c0_333 = arith.constant 0 : index
    %801 = vector.load %arg18[%c1_330, %c1_331, %c0_332, %c0_333] : memref<2x2x1x32xf32, #tpu.memory_space<vmem>>, vector<1x1x1x32xf32>
    %802 = vector.shape_cast %801 : vector<1x1x1x32xf32> to vector<1x32xf32>
    %cst_334 = arith.constant dense<0.000000e+00> : vector<16xf32>
    %803 = vector.multi_reduction <add>, %798, %cst_334 [1] : vector<16x32xf32> to vector<16xf32>
    %804 = vector.shape_cast %803 : vector<16xf32> to vector<16x1xf32>
    %cst_335 = arith.constant 3.200000e+01 : f32
    %805 = vector.broadcast %cst_335 : f32 to vector<16x1xf32>
    %806 = arith.divf %804, %805 : vector<16x1xf32>
    %807 = vector.broadcast %806 : vector<16x1xf32> to vector<16x32xf32>
    %808 = arith.subf %798, %807 : vector<16x32xf32>
    %809 = arith.mulf %808, %808 : vector<16x32xf32>
    %cst_336 = arith.constant dense<0.000000e+00> : vector<16xf32>
    %810 = vector.multi_reduction <add>, %809, %cst_336 [1] : vector<16x32xf32> to vector<16xf32>
    %811 = vector.shape_cast %810 : vector<16xf32> to vector<16x1xf32>
    %cst_337 = arith.constant 3.200000e+01 : f32
    %812 = vector.broadcast %cst_337 : f32 to vector<16x1xf32>
    %813 = arith.divf %811, %812 : vector<16x1xf32>
    %814 = vector.broadcast %806 : vector<16x1xf32> to vector<16x32xf32>
    %815 = arith.subf %798, %814 : vector<16x32xf32>
    %cst_338 = arith.constant 9.99999974E-6 : f32
    %816 = vector.broadcast %cst_338 : f32 to vector<16x1xf32>
    %817 = arith.addf %813, %816 : vector<16x1xf32>
    %818 = math.rsqrt %817 : vector<16x1xf32>
    %819 = vector.broadcast %818 : vector<16x1xf32> to vector<16x32xf32>
    %820 = arith.mulf %815, %819 : vector<16x32xf32>
    %821 = vector.broadcast %800 : vector<1x32xf32> to vector<16x32xf32>
    %822 = arith.mulf %820, %821 : vector<16x32xf32>
    %823 = vector.broadcast %802 : vector<1x32xf32> to vector<16x32xf32>
    %824 = arith.addf %822, %823 : vector<16x32xf32>
    %825 = vector.shape_cast %824 : vector<16x32xf32> to vector<2x8x32xf32>
    %826 = vector.shape_cast %412 : vector<2x8x32xf32> to vector<16x32xf32>
    %827 = arith.truncf %826 : vector<16x32xf32> to vector<16x32xbf16>
    %c0_339 = arith.constant 0 : index
    %c0_340 = arith.constant 0 : index
    %828 = vector.load %arg39[%c0_339, %c0_340] : memref<32x32xf32, #tpu.memory_space<vmem>>, vector<32x32xf32>
    %829 = arith.truncf %828 : vector<32x32xf32> to vector<32x32xbf16>
    %cst_341 = arith.constant dense<0.000000e+00> : vector<16x32xf32>
    %830 = tpu.matmul %827, %829, %cst_341 {dimension_numbers = #tpu.dot_dimension_numbers<[1], [0], [0], [1], [0, 0, 1, 1], [], []>} : vector<16x32xbf16>, vector<32x32xbf16>, vector<16x32xf32> -> vector<16x32xf32>
    %831 = vector.shape_cast %825 : vector<2x8x32xf32> to vector<16x32xf32>
    %832 = arith.truncf %831 : vector<16x32xf32> to vector<16x32xbf16>
    %c0_342 = arith.constant 0 : index
    %c0_343 = arith.constant 0 : index
    %833 = vector.load %arg40[%c0_342, %c0_343] : memref<32x32xf32, #tpu.memory_space<vmem>>, vector<32x32xf32>
    %834 = arith.truncf %833 : vector<32x32xf32> to vector<32x32xbf16>
    %cst_344 = arith.constant dense<0.000000e+00> : vector<16x32xf32>
    %835 = tpu.matmul %832, %834, %cst_344 {dimension_numbers = #tpu.dot_dimension_numbers<[1], [0], [0], [1], [0, 0, 1, 1], [], []>} : vector<16x32xbf16>, vector<32x32xbf16>, vector<16x32xf32> -> vector<16x32xf32>
    %836 = arith.addf %830, %835 : vector<16x32xf32>
    %c0_345 = arith.constant 0 : index
    %c0_346 = arith.constant 0 : index
    %837 = vector.load %arg41[%c0_345, %c0_346] : memref<1x32xf32, #tpu.memory_space<vmem>>, vector<1x32xf32>
    %838 = vector.broadcast %837 : vector<1x32xf32> to vector<16x32xf32>
    %839 = arith.addf %836, %838 : vector<16x32xf32>
    %c0_347 = arith.constant 0 : index
    %c0_348 = arith.constant 0 : index
    %840 = vector.load %arg6[%c0_347, %c0_348] : memref<2x8xf32, #tpu.memory_space<vmem>>, vector<2x8xf32>
    %841 = vector.shape_cast %840 : vector<2x8xf32> to vector<2x1x8xf32>
    %c0_349 = arith.constant 0 : index
    %c0_350 = arith.constant 0 : index
    %c0_351 = arith.constant 0 : index
    %842 = vector.load %arg2[%c0_349, %c0_350, %c0_351] : memref<2x8x32xf32, #tpu.memory_space<vmem>>, vector<2x8x32xf32>
    %843 = vector.shape_cast %842 : vector<2x8x32xf32> to vector<16x32xf32>
    %844 = tpu.iota {dimensions = array<i32: 0>} : vector<8x8xi32>
    %845 = tpu.iota {dimensions = array<i32: 1>} : vector<8x8xi32>
    %846 = arith.cmpi sgt, %845, %844 : vector<8x8xi32>
    %cst_352 = arith.constant -1.000000e+09 : f32
    %cst_353 = arith.constant 0.000000e+00 : f32
    %847 = vector.broadcast %cst_352 : f32 to vector<8x8xf32>
    %848 = vector.broadcast %cst_353 : f32 to vector<8x8xf32>
    %849 = arith.select %846, %847, %848 : vector<8x8xi1>, vector<8x8xf32>
    %850 = vector.shape_cast %849 : vector<8x8xf32> to vector<1x8x8xf32>
    %c0_354 = arith.constant 0 : index
    %c0_355 = arith.constant 0 : index
    %851 = vector.load %arg5[%c0_354, %c0_355] : memref<2x8xf32, #tpu.memory_space<vmem>>, vector<2x8xf32>
    %852 = vector.shape_cast %851 : vector<2x8xf32> to vector<2x1x8xf32>
    %853 = vector.broadcast %850 : vector<1x8x8xf32> to vector<2x8x8xf32>
    %854 = vector.broadcast %852 : vector<2x1x8xf32> to vector<2x8x8xf32>
    %855 = arith.addf %853, %854 : vector<2x8x8xf32>
    %856 = arith.truncf %843 : vector<16x32xf32> to vector<16x32xbf16>
    %c0_356 = arith.constant 0 : index
    %c0_357 = arith.constant 0 : index
    %c0_358 = arith.constant 0 : index
    %857 = vector.load %arg19[%c0_356, %c0_357, %c0_358] : memref<2x32x96xf32, #tpu.memory_space<vmem>>, vector<1x32x96xf32>
    %858 = vector.shape_cast %857 : vector<1x32x96xf32> to vector<32x96xf32>
    %859 = arith.truncf %858 : vector<32x96xf32> to vector<32x96xbf16>
    %cst_359 = arith.constant dense<0.000000e+00> : vector<16x96xf32>
    %860 = tpu.matmul %856, %859, %cst_359 {dimension_numbers = #tpu.dot_dimension_numbers<[1], [0], [0], [1], [0, 0, 1, 1], [], []>} : vector<16x32xbf16>, vector<32x96xbf16>, vector<16x96xf32> -> vector<16x96xf32>
    %c0_360 = arith.constant 0 : index
    %c0_361 = arith.constant 0 : index
    %c0_362 = arith.constant 0 : index
    %861 = vector.load %arg20[%c0_360, %c0_361, %c0_362] : memref<2x1x96xf32, #tpu.memory_space<vmem>>, vector<1x1x96xf32>
    %862 = vector.shape_cast %861 : vector<1x1x96xf32> to vector<1x96xf32>
    %863 = vector.broadcast %862 : vector<1x96xf32> to vector<16x96xf32>
    %864 = arith.addf %860, %863 : vector<16x96xf32>
    %865 = vector.extract_strided_slice %864 {offsets = [0, 0], sizes = [16, 32], strides = [1, 1]} : vector<16x96xf32> to vector<16x32xf32>
    %866 = vector.shape_cast %865 : vector<16x32xf32> to vector<2x8x32xf32>
    %867 = vector.extract_strided_slice %864 {offsets = [0, 32], sizes = [16, 32], strides = [1, 1]} : vector<16x96xf32> to vector<16x32xf32>
    %868 = vector.shape_cast %867 : vector<16x32xf32> to vector<2x8x32xf32>
    %869 = vector.extract_strided_slice %864 {offsets = [0, 64], sizes = [16, 32], strides = [1, 1]} : vector<16x96xf32> to vector<16x32xf32>
    %870 = vector.shape_cast %869 : vector<16x32xf32> to vector<2x8x32xf32>
    %c0_363 = arith.constant 0 : index
    %c0_364 = arith.constant 0 : index
    %c0_365 = arith.constant 0 : index
    %871 = vector.load %arg21[%c0_363, %c0_364, %c0_365] : memref<2x32x32xf32, #tpu.memory_space<vmem>>, vector<1x32x32xf32>
    %872 = vector.shape_cast %871 : vector<1x32x32xf32> to vector<32x32xf32>
    %c0_366 = arith.constant 0 : index
    %c0_367 = arith.constant 0 : index
    %c0_368 = arith.constant 0 : index
    %873 = vector.load %arg22[%c0_366, %c0_367, %c0_368] : memref<2x1x32xf32, #tpu.memory_space<vmem>>, vector<1x1x32xf32>
    %874 = vector.shape_cast %873 : vector<1x1x32xf32> to vector<1x32xf32>
    %cst_369 = arith.constant 0.000000e+00 : f32
    %875 = vector.broadcast %cst_369 : f32 to vector<16x32xf32>
    %876 = vector.extract_strided_slice %866 {offsets = [0, 0, 0], sizes = [2, 8, 8], strides = [1, 1, 1]} : vector<2x8x32xf32> to vector<2x8x8xf32>
    %877 = arith.truncf %876 : vector<2x8x8xf32> to vector<2x8x8xbf16>
    %878 = vector.extract_strided_slice %868 {offsets = [0, 0, 0], sizes = [2, 8, 8], strides = [1, 1, 1]} : vector<2x8x32xf32> to vector<2x8x8xf32>
    %879 = arith.truncf %878 : vector<2x8x8xf32> to vector<2x8x8xbf16>
    "tpu.trace_start"() <{level = 10 : i32, message = "bqd,bkd->bqk"}> : () -> ()
    %cst_370 = arith.constant dense<0.000000e+00> : vector<2x8x8xf32>
    %880 = tpu.matmul %877, %879, %cst_370 {dimension_numbers = #tpu.dot_dimension_numbers<[2], [2], [1], [1], [0, 0, 0, 1, 1, 1], [0], [0]>} : vector<2x8x8xbf16>, vector<2x8x8xbf16>, vector<2x8x8xf32> -> vector<2x8x8xf32>
    "tpu.trace_stop"() : () -> ()
    %881 = arith.addf %880, %855 : vector<2x8x8xf32>
    %cst_371 = arith.constant dense<0xFF800000> : vector<2x8xf32>
    %882 = vector.multi_reduction <maximumf>, %881, %cst_371 [2] : vector<2x8x8xf32> to vector<2x8xf32>
    %883 = vector.shape_cast %882 : vector<2x8xf32> to vector<2x8x1xf32>
    %884 = vector.broadcast %883 : vector<2x8x1xf32> to vector<2x8x8xf32>
    %885 = arith.subf %881, %884 : vector<2x8x8xf32>
    %886 = math.exp %885 : vector<2x8x8xf32>
    %cst_372 = arith.constant dense<0.000000e+00> : vector<2x8xf32>
    %887 = vector.multi_reduction <add>, %886, %cst_372 [2] : vector<2x8x8xf32> to vector<2x8xf32>
    %888 = vector.shape_cast %887 : vector<2x8xf32> to vector<2x8x1xf32>
    %889 = tpu.reciprocal %888 {approx = true} : vector<2x8x1xf32> -> vector<2x8x1xf32>
    %890 = vector.broadcast %889 : vector<2x8x1xf32> to vector<2x8x8xf32>
    %891 = arith.mulf %886, %890 : vector<2x8x8xf32>
    %892 = arith.truncf %891 : vector<2x8x8xf32> to vector<2x8x8xbf16>
    %893 = vector.extract_strided_slice %870 {offsets = [0, 0, 0], sizes = [2, 8, 8], strides = [1, 1, 1]} : vector<2x8x32xf32> to vector<2x8x8xf32>
    %894 = arith.truncf %893 : vector<2x8x8xf32> to vector<2x8x8xbf16>
    "tpu.trace_start"() <{level = 10 : i32, message = "bqk,bkd->bqd"}> : () -> ()
    %cst_373 = arith.constant dense<0.000000e+00> : vector<2x8x8xf32>
    %895 = tpu.matmul %892, %894, %cst_373 {dimension_numbers = #tpu.dot_dimension_numbers<[2], [1], [1], [2], [0, 0, 0, 1, 1, 2], [0], [0]>} : vector<2x8x8xbf16>, vector<2x8x8xbf16>, vector<2x8x8xf32> -> vector<2x8x8xf32>
    "tpu.trace_stop"() : () -> ()
    %896 = vector.shape_cast %895 : vector<2x8x8xf32> to vector<16x8xf32>
    %897 = arith.truncf %896 : vector<16x8xf32> to vector<16x8xbf16>
    %898 = vector.extract_strided_slice %872 {offsets = [0, 0], sizes = [8, 32], strides = [1, 1]} : vector<32x32xf32> to vector<8x32xf32>
    %899 = arith.truncf %898 : vector<8x32xf32> to vector<8x32xbf16>
    %cst_374 = arith.constant dense<0.000000e+00> : vector<16x32xf32>
    %900 = tpu.matmul %897, %899, %cst_374 {dimension_numbers = #tpu.dot_dimension_numbers<[1], [0], [0], [1], [0, 0, 1, 1], [], []>} : vector<16x8xbf16>, vector<8x32xbf16>, vector<16x32xf32> -> vector<16x32xf32>
    %901 = arith.addf %875, %900 : vector<16x32xf32>
    %902 = vector.extract_strided_slice %866 {offsets = [0, 0, 8], sizes = [2, 8, 8], strides = [1, 1, 1]} : vector<2x8x32xf32> to vector<2x8x8xf32>
    %903 = arith.truncf %902 : vector<2x8x8xf32> to vector<2x8x8xbf16>
    %904 = vector.extract_strided_slice %868 {offsets = [0, 0, 8], sizes = [2, 8, 8], strides = [1, 1, 1]} : vector<2x8x32xf32> to vector<2x8x8xf32>
    %905 = arith.truncf %904 : vector<2x8x8xf32> to vector<2x8x8xbf16>
    "tpu.trace_start"() <{level = 10 : i32, message = "bqd,bkd->bqk"}> : () -> ()
    %cst_375 = arith.constant dense<0.000000e+00> : vector<2x8x8xf32>
    %906 = tpu.matmul %903, %905, %cst_375 {dimension_numbers = #tpu.dot_dimension_numbers<[2], [2], [1], [1], [0, 0, 0, 1, 1, 1], [0], [0]>} : vector<2x8x8xbf16>, vector<2x8x8xbf16>, vector<2x8x8xf32> -> vector<2x8x8xf32>
    "tpu.trace_stop"() : () -> ()
    %907 = arith.addf %906, %855 : vector<2x8x8xf32>
    %cst_376 = arith.constant dense<0xFF800000> : vector<2x8xf32>
    %908 = vector.multi_reduction <maximumf>, %907, %cst_376 [2] : vector<2x8x8xf32> to vector<2x8xf32>
    %909 = vector.shape_cast %908 : vector<2x8xf32> to vector<2x8x1xf32>
    %910 = vector.broadcast %909 : vector<2x8x1xf32> to vector<2x8x8xf32>
    %911 = arith.subf %907, %910 : vector<2x8x8xf32>
    %912 = math.exp %911 : vector<2x8x8xf32>
    %cst_377 = arith.constant dense<0.000000e+00> : vector<2x8xf32>
    %913 = vector.multi_reduction <add>, %912, %cst_377 [2] : vector<2x8x8xf32> to vector<2x8xf32>
    %914 = vector.shape_cast %913 : vector<2x8xf32> to vector<2x8x1xf32>
    %915 = tpu.reciprocal %914 {approx = true} : vector<2x8x1xf32> -> vector<2x8x1xf32>
    %916 = vector.broadcast %915 : vector<2x8x1xf32> to vector<2x8x8xf32>
    %917 = arith.mulf %912, %916 : vector<2x8x8xf32>
    %918 = arith.truncf %917 : vector<2x8x8xf32> to vector<2x8x8xbf16>
    %919 = vector.extract_strided_slice %870 {offsets = [0, 0, 8], sizes = [2, 8, 8], strides = [1, 1, 1]} : vector<2x8x32xf32> to vector<2x8x8xf32>
    %920 = arith.truncf %919 : vector<2x8x8xf32> to vector<2x8x8xbf16>
    "tpu.trace_start"() <{level = 10 : i32, message = "bqk,bkd->bqd"}> : () -> ()
    %cst_378 = arith.constant dense<0.000000e+00> : vector<2x8x8xf32>
    %921 = tpu.matmul %918, %920, %cst_378 {dimension_numbers = #tpu.dot_dimension_numbers<[2], [1], [1], [2], [0, 0, 0, 1, 1, 2], [0], [0]>} : vector<2x8x8xbf16>, vector<2x8x8xbf16>, vector<2x8x8xf32> -> vector<2x8x8xf32>
    "tpu.trace_stop"() : () -> ()
    %922 = vector.shape_cast %921 : vector<2x8x8xf32> to vector<16x8xf32>
    %923 = arith.truncf %922 : vector<16x8xf32> to vector<16x8xbf16>
    %924 = vector.extract_strided_slice %872 {offsets = [8, 0], sizes = [8, 32], strides = [1, 1]} : vector<32x32xf32> to vector<8x32xf32>
    %925 = arith.truncf %924 : vector<8x32xf32> to vector<8x32xbf16>
    %cst_379 = arith.constant dense<0.000000e+00> : vector<16x32xf32>
    %926 = tpu.matmul %923, %925, %cst_379 {dimension_numbers = #tpu.dot_dimension_numbers<[1], [0], [0], [1], [0, 0, 1, 1], [], []>} : vector<16x8xbf16>, vector<8x32xbf16>, vector<16x32xf32> -> vector<16x32xf32>
    %927 = arith.addf %901, %926 : vector<16x32xf32>
    %928 = vector.extract_strided_slice %866 {offsets = [0, 0, 16], sizes = [2, 8, 8], strides = [1, 1, 1]} : vector<2x8x32xf32> to vector<2x8x8xf32>
    %929 = arith.truncf %928 : vector<2x8x8xf32> to vector<2x8x8xbf16>
    %930 = vector.extract_strided_slice %868 {offsets = [0, 0, 16], sizes = [2, 8, 8], strides = [1, 1, 1]} : vector<2x8x32xf32> to vector<2x8x8xf32>
    %931 = arith.truncf %930 : vector<2x8x8xf32> to vector<2x8x8xbf16>
    "tpu.trace_start"() <{level = 10 : i32, message = "bqd,bkd->bqk"}> : () -> ()
    %cst_380 = arith.constant dense<0.000000e+00> : vector<2x8x8xf32>
    %932 = tpu.matmul %929, %931, %cst_380 {dimension_numbers = #tpu.dot_dimension_numbers<[2], [2], [1], [1], [0, 0, 0, 1, 1, 1], [0], [0]>} : vector<2x8x8xbf16>, vector<2x8x8xbf16>, vector<2x8x8xf32> -> vector<2x8x8xf32>
    "tpu.trace_stop"() : () -> ()
    %933 = arith.addf %932, %855 : vector<2x8x8xf32>
    %cst_381 = arith.constant dense<0xFF800000> : vector<2x8xf32>
    %934 = vector.multi_reduction <maximumf>, %933, %cst_381 [2] : vector<2x8x8xf32> to vector<2x8xf32>
    %935 = vector.shape_cast %934 : vector<2x8xf32> to vector<2x8x1xf32>
    %936 = vector.broadcast %935 : vector<2x8x1xf32> to vector<2x8x8xf32>
    %937 = arith.subf %933, %936 : vector<2x8x8xf32>
    %938 = math.exp %937 : vector<2x8x8xf32>
    %cst_382 = arith.constant dense<0.000000e+00> : vector<2x8xf32>
    %939 = vector.multi_reduction <add>, %938, %cst_382 [2] : vector<2x8x8xf32> to vector<2x8xf32>
    %940 = vector.shape_cast %939 : vector<2x8xf32> to vector<2x8x1xf32>
    %941 = tpu.reciprocal %940 {approx = true} : vector<2x8x1xf32> -> vector<2x8x1xf32>
    %942 = vector.broadcast %941 : vector<2x8x1xf32> to vector<2x8x8xf32>
    %943 = arith.mulf %938, %942 : vector<2x8x8xf32>
    %944 = arith.truncf %943 : vector<2x8x8xf32> to vector<2x8x8xbf16>
    %945 = vector.extract_strided_slice %870 {offsets = [0, 0, 16], sizes = [2, 8, 8], strides = [1, 1, 1]} : vector<2x8x32xf32> to vector<2x8x8xf32>
    %946 = arith.truncf %945 : vector<2x8x8xf32> to vector<2x8x8xbf16>
    "tpu.trace_start"() <{level = 10 : i32, message = "bqk,bkd->bqd"}> : () -> ()
    %cst_383 = arith.constant dense<0.000000e+00> : vector<2x8x8xf32>
    %947 = tpu.matmul %944, %946, %cst_383 {dimension_numbers = #tpu.dot_dimension_numbers<[2], [1], [1], [2], [0, 0, 0, 1, 1, 2], [0], [0]>} : vector<2x8x8xbf16>, vector<2x8x8xbf16>, vector<2x8x8xf32> -> vector<2x8x8xf32>
    "tpu.trace_stop"() : () -> ()
    %948 = vector.shape_cast %947 : vector<2x8x8xf32> to vector<16x8xf32>
    %949 = arith.truncf %948 : vector<16x8xf32> to vector<16x8xbf16>
    %950 = vector.extract_strided_slice %872 {offsets = [16, 0], sizes = [8, 32], strides = [1, 1]} : vector<32x32xf32> to vector<8x32xf32>
    %951 = arith.truncf %950 : vector<8x32xf32> to vector<8x32xbf16>
    %cst_384 = arith.constant dense<0.000000e+00> : vector<16x32xf32>
    %952 = tpu.matmul %949, %951, %cst_384 {dimension_numbers = #tpu.dot_dimension_numbers<[1], [0], [0], [1], [0, 0, 1, 1], [], []>} : vector<16x8xbf16>, vector<8x32xbf16>, vector<16x32xf32> -> vector<16x32xf32>
    %953 = arith.addf %927, %952 : vector<16x32xf32>
    %954 = vector.extract_strided_slice %866 {offsets = [0, 0, 24], sizes = [2, 8, 8], strides = [1, 1, 1]} : vector<2x8x32xf32> to vector<2x8x8xf32>
    %955 = arith.truncf %954 : vector<2x8x8xf32> to vector<2x8x8xbf16>
    %956 = vector.extract_strided_slice %868 {offsets = [0, 0, 24], sizes = [2, 8, 8], strides = [1, 1, 1]} : vector<2x8x32xf32> to vector<2x8x8xf32>
    %957 = arith.truncf %956 : vector<2x8x8xf32> to vector<2x8x8xbf16>
    "tpu.trace_start"() <{level = 10 : i32, message = "bqd,bkd->bqk"}> : () -> ()
    %cst_385 = arith.constant dense<0.000000e+00> : vector<2x8x8xf32>
    %958 = tpu.matmul %955, %957, %cst_385 {dimension_numbers = #tpu.dot_dimension_numbers<[2], [2], [1], [1], [0, 0, 0, 1, 1, 1], [0], [0]>} : vector<2x8x8xbf16>, vector<2x8x8xbf16>, vector<2x8x8xf32> -> vector<2x8x8xf32>
    "tpu.trace_stop"() : () -> ()
    %959 = arith.addf %958, %855 : vector<2x8x8xf32>
    %cst_386 = arith.constant dense<0xFF800000> : vector<2x8xf32>
    %960 = vector.multi_reduction <maximumf>, %959, %cst_386 [2] : vector<2x8x8xf32> to vector<2x8xf32>
    %961 = vector.shape_cast %960 : vector<2x8xf32> to vector<2x8x1xf32>
    %962 = vector.broadcast %961 : vector<2x8x1xf32> to vector<2x8x8xf32>
    %963 = arith.subf %959, %962 : vector<2x8x8xf32>
    %964 = math.exp %963 : vector<2x8x8xf32>
    %cst_387 = arith.constant dense<0.000000e+00> : vector<2x8xf32>
    %965 = vector.multi_reduction <add>, %964, %cst_387 [2] : vector<2x8x8xf32> to vector<2x8xf32>
    %966 = vector.shape_cast %965 : vector<2x8xf32> to vector<2x8x1xf32>
    %967 = tpu.reciprocal %966 {approx = true} : vector<2x8x1xf32> -> vector<2x8x1xf32>
    %968 = vector.broadcast %967 : vector<2x8x1xf32> to vector<2x8x8xf32>
    %969 = arith.mulf %964, %968 : vector<2x8x8xf32>
    %970 = arith.truncf %969 : vector<2x8x8xf32> to vector<2x8x8xbf16>
    %971 = vector.extract_strided_slice %870 {offsets = [0, 0, 24], sizes = [2, 8, 8], strides = [1, 1, 1]} : vector<2x8x32xf32> to vector<2x8x8xf32>
    %972 = arith.truncf %971 : vector<2x8x8xf32> to vector<2x8x8xbf16>
    "tpu.trace_start"() <{level = 10 : i32, message = "bqk,bkd->bqd"}> : () -> ()
    %cst_388 = arith.constant dense<0.000000e+00> : vector<2x8x8xf32>
    %973 = tpu.matmul %970, %972, %cst_388 {dimension_numbers = #tpu.dot_dimension_numbers<[2], [1], [1], [2], [0, 0, 0, 1, 1, 2], [0], [0]>} : vector<2x8x8xbf16>, vector<2x8x8xbf16>, vector<2x8x8xf32> -> vector<2x8x8xf32>
    "tpu.trace_stop"() : () -> ()
    %974 = vector.shape_cast %973 : vector<2x8x8xf32> to vector<16x8xf32>
    %975 = arith.truncf %974 : vector<16x8xf32> to vector<16x8xbf16>
    %976 = vector.extract_strided_slice %872 {offsets = [24, 0], sizes = [8, 32], strides = [1, 1]} : vector<32x32xf32> to vector<8x32xf32>
    %977 = arith.truncf %976 : vector<8x32xf32> to vector<8x32xbf16>
    %cst_389 = arith.constant dense<0.000000e+00> : vector<16x32xf32>
    %978 = tpu.matmul %975, %977, %cst_389 {dimension_numbers = #tpu.dot_dimension_numbers<[1], [0], [0], [1], [0, 0, 1, 1], [], []>} : vector<16x8xbf16>, vector<8x32xbf16>, vector<16x32xf32> -> vector<16x32xf32>
    %979 = arith.addf %953, %978 : vector<16x32xf32>
    %980 = vector.broadcast %874 : vector<1x32xf32> to vector<16x32xf32>
    %981 = arith.addf %979, %980 : vector<16x32xf32>
    %982 = arith.addf %843, %981 : vector<16x32xf32>
    %c0_390 = arith.constant 0 : index
    %c0_391 = arith.constant 0 : index
    %c0_392 = arith.constant 0 : index
    %983 = vector.load %arg23[%c0_390, %c0_391, %c0_392] : memref<2x1x32xf32, #tpu.memory_space<vmem>>, vector<1x1x32xf32>
    %984 = vector.shape_cast %983 : vector<1x1x32xf32> to vector<1x32xf32>
    %c0_393 = arith.constant 0 : index
    %c0_394 = arith.constant 0 : index
    %c0_395 = arith.constant 0 : index
    %985 = vector.load %arg24[%c0_393, %c0_394, %c0_395] : memref<2x1x32xf32, #tpu.memory_space<vmem>>, vector<1x1x32xf32>
    %986 = vector.shape_cast %985 : vector<1x1x32xf32> to vector<1x32xf32>
    %cst_396 = arith.constant dense<0.000000e+00> : vector<16xf32>
    %987 = vector.multi_reduction <add>, %982, %cst_396 [1] : vector<16x32xf32> to vector<16xf32>
    %988 = vector.shape_cast %987 : vector<16xf32> to vector<16x1xf32>
    %cst_397 = arith.constant 3.200000e+01 : f32
    %989 = vector.broadcast %cst_397 : f32 to vector<16x1xf32>
    %990 = arith.divf %988, %989 : vector<16x1xf32>
    %991 = vector.broadcast %990 : vector<16x1xf32> to vector<16x32xf32>
    %992 = arith.subf %982, %991 : vector<16x32xf32>
    %993 = arith.mulf %992, %992 : vector<16x32xf32>
    %cst_398 = arith.constant dense<0.000000e+00> : vector<16xf32>
    %994 = vector.multi_reduction <add>, %993, %cst_398 [1] : vector<16x32xf32> to vector<16xf32>
    %995 = vector.shape_cast %994 : vector<16xf32> to vector<16x1xf32>
    %cst_399 = arith.constant 3.200000e+01 : f32
    %996 = vector.broadcast %cst_399 : f32 to vector<16x1xf32>
    %997 = arith.divf %995, %996 : vector<16x1xf32>
    %998 = vector.broadcast %990 : vector<16x1xf32> to vector<16x32xf32>
    %999 = arith.subf %982, %998 : vector<16x32xf32>
    %cst_400 = arith.constant 9.99999974E-6 : f32
    %1000 = vector.broadcast %cst_400 : f32 to vector<16x1xf32>
    %1001 = arith.addf %997, %1000 : vector<16x1xf32>
    %1002 = math.rsqrt %1001 : vector<16x1xf32>
    %1003 = vector.broadcast %1002 : vector<16x1xf32> to vector<16x32xf32>
    %1004 = arith.mulf %999, %1003 : vector<16x32xf32>
    %1005 = vector.broadcast %984 : vector<1x32xf32> to vector<16x32xf32>
    %1006 = arith.mulf %1004, %1005 : vector<16x32xf32>
    %1007 = vector.broadcast %986 : vector<1x32xf32> to vector<16x32xf32>
    %1008 = arith.addf %1006, %1007 : vector<16x32xf32>
    %1009 = arith.truncf %1008 : vector<16x32xf32> to vector<16x32xbf16>
    %c0_401 = arith.constant 0 : index
    %c0_402 = arith.constant 0 : index
    %c0_403 = arith.constant 0 : index
    %1010 = vector.load %arg25[%c0_401, %c0_402, %c0_403] : memref<2x32x32xf32, #tpu.memory_space<vmem>>, vector<1x32x32xf32>
    %1011 = vector.shape_cast %1010 : vector<1x32x32xf32> to vector<32x32xf32>
    %1012 = arith.truncf %1011 : vector<32x32xf32> to vector<32x32xbf16>
    %cst_404 = arith.constant dense<0.000000e+00> : vector<16x32xf32>
    %1013 = tpu.matmul %1009, %1012, %cst_404 {dimension_numbers = #tpu.dot_dimension_numbers<[1], [0], [0], [1], [0, 0, 1, 1], [], []>} : vector<16x32xbf16>, vector<32x32xbf16>, vector<16x32xf32> -> vector<16x32xf32>
    %c0_405 = arith.constant 0 : index
    %c0_406 = arith.constant 0 : index
    %c0_407 = arith.constant 0 : index
    %1014 = vector.load %arg26[%c0_405, %c0_406, %c0_407] : memref<2x1x32xf32, #tpu.memory_space<vmem>>, vector<1x1x32xf32>
    %1015 = vector.shape_cast %1014 : vector<1x1x32xf32> to vector<1x32xf32>
    %1016 = vector.broadcast %1015 : vector<1x32xf32> to vector<16x32xf32>
    %1017 = arith.addf %1013, %1016 : vector<16x32xf32>
    %1018 = arith.truncf %839 : vector<16x32xf32> to vector<16x32xbf16>
    %c0_408 = arith.constant 0 : index
    %c0_409 = arith.constant 0 : index
    %c0_410 = arith.constant 0 : index
    %1019 = vector.load %arg27[%c0_408, %c0_409, %c0_410] : memref<2x32x64xf32, #tpu.memory_space<vmem>>, vector<1x32x64xf32>
    %1020 = vector.shape_cast %1019 : vector<1x32x64xf32> to vector<32x64xf32>
    %1021 = arith.truncf %1020 : vector<32x64xf32> to vector<32x64xbf16>
    %cst_411 = arith.constant dense<0.000000e+00> : vector<16x64xf32>
    %1022 = tpu.matmul %1018, %1021, %cst_411 {dimension_numbers = #tpu.dot_dimension_numbers<[1], [0], [0], [1], [0, 0, 1, 1], [], []>} : vector<16x32xbf16>, vector<32x64xbf16>, vector<16x64xf32> -> vector<16x64xf32>
    %c0_412 = arith.constant 0 : index
    %c0_413 = arith.constant 0 : index
    %c0_414 = arith.constant 0 : index
    %1023 = vector.load %arg28[%c0_412, %c0_413, %c0_414] : memref<2x1x64xf32, #tpu.memory_space<vmem>>, vector<1x1x64xf32>
    %1024 = vector.shape_cast %1023 : vector<1x1x64xf32> to vector<1x64xf32>
    %1025 = vector.broadcast %1024 : vector<1x64xf32> to vector<16x64xf32>
    %1026 = arith.addf %1022, %1025 : vector<16x64xf32>
    %1027 = vector.shape_cast %1017 : vector<16x32xf32> to vector<2x8x32xf32>
    %1028 = vector.extract_strided_slice %1026 {offsets = [0, 0], sizes = [16, 32], strides = [1, 1]} : vector<16x64xf32> to vector<16x32xf32>
    %1029 = vector.shape_cast %1028 : vector<16x32xf32> to vector<2x8x32xf32>
    %1030 = vector.extract_strided_slice %1026 {offsets = [0, 32], sizes = [16, 32], strides = [1, 1]} : vector<16x64xf32> to vector<16x32xf32>
    %1031 = vector.shape_cast %1030 : vector<16x32xf32> to vector<2x8x32xf32>
    %c0_415 = arith.constant 0 : index
    %c0_416 = arith.constant 0 : index
    %c0_417 = arith.constant 0 : index
    %1032 = vector.load %arg29[%c0_415, %c0_416, %c0_417] : memref<2x32x32xf32, #tpu.memory_space<vmem>>, vector<1x32x32xf32>
    %1033 = vector.shape_cast %1032 : vector<1x32x32xf32> to vector<32x32xf32>
    %c0_418 = arith.constant 0 : index
    %c0_419 = arith.constant 0 : index
    %c0_420 = arith.constant 0 : index
    %1034 = vector.load %arg30[%c0_418, %c0_419, %c0_420] : memref<2x1x32xf32, #tpu.memory_space<vmem>>, vector<1x1x32xf32>
    %1035 = vector.shape_cast %1034 : vector<1x1x32xf32> to vector<1x32xf32>
    %cst_421 = arith.constant 0.000000e+00 : f32
    %1036 = vector.broadcast %cst_421 : f32 to vector<16x32xf32>
    %1037 = vector.extract_strided_slice %1027 {offsets = [0, 0, 0], sizes = [2, 8, 8], strides = [1, 1, 1]} : vector<2x8x32xf32> to vector<2x8x8xf32>
    %1038 = arith.truncf %1037 : vector<2x8x8xf32> to vector<2x8x8xbf16>
    %1039 = vector.extract_strided_slice %1029 {offsets = [0, 0, 0], sizes = [2, 8, 8], strides = [1, 1, 1]} : vector<2x8x32xf32> to vector<2x8x8xf32>
    %1040 = arith.truncf %1039 : vector<2x8x8xf32> to vector<2x8x8xbf16>
    "tpu.trace_start"() <{level = 10 : i32, message = "bqd,bkd->bqk"}> : () -> ()
    %cst_422 = arith.constant dense<0.000000e+00> : vector<2x8x8xf32>
    %1041 = tpu.matmul %1038, %1040, %cst_422 {dimension_numbers = #tpu.dot_dimension_numbers<[2], [2], [1], [1], [0, 0, 0, 1, 1, 1], [0], [0]>} : vector<2x8x8xbf16>, vector<2x8x8xbf16>, vector<2x8x8xf32> -> vector<2x8x8xf32>
    "tpu.trace_stop"() : () -> ()
    %1042 = vector.broadcast %841 : vector<2x1x8xf32> to vector<2x8x8xf32>
    %1043 = arith.addf %1041, %1042 : vector<2x8x8xf32>
    %cst_423 = arith.constant dense<0xFF800000> : vector<2x8xf32>
    %1044 = vector.multi_reduction <maximumf>, %1043, %cst_423 [2] : vector<2x8x8xf32> to vector<2x8xf32>
    %1045 = vector.shape_cast %1044 : vector<2x8xf32> to vector<2x8x1xf32>
    %1046 = vector.broadcast %1045 : vector<2x8x1xf32> to vector<2x8x8xf32>
    %1047 = arith.subf %1043, %1046 : vector<2x8x8xf32>
    %1048 = math.exp %1047 : vector<2x8x8xf32>
    %cst_424 = arith.constant dense<0.000000e+00> : vector<2x8xf32>
    %1049 = vector.multi_reduction <add>, %1048, %cst_424 [2] : vector<2x8x8xf32> to vector<2x8xf32>
    %1050 = vector.shape_cast %1049 : vector<2x8xf32> to vector<2x8x1xf32>
    %1051 = tpu.reciprocal %1050 {approx = true} : vector<2x8x1xf32> -> vector<2x8x1xf32>
    %1052 = vector.broadcast %1051 : vector<2x8x1xf32> to vector<2x8x8xf32>
    %1053 = arith.mulf %1048, %1052 : vector<2x8x8xf32>
    %1054 = arith.truncf %1053 : vector<2x8x8xf32> to vector<2x8x8xbf16>
    %1055 = vector.extract_strided_slice %1031 {offsets = [0, 0, 0], sizes = [2, 8, 8], strides = [1, 1, 1]} : vector<2x8x32xf32> to vector<2x8x8xf32>
    %1056 = arith.truncf %1055 : vector<2x8x8xf32> to vector<2x8x8xbf16>
    "tpu.trace_start"() <{level = 10 : i32, message = "bqk,bkd->bqd"}> : () -> ()
    %cst_425 = arith.constant dense<0.000000e+00> : vector<2x8x8xf32>
    %1057 = tpu.matmul %1054, %1056, %cst_425 {dimension_numbers = #tpu.dot_dimension_numbers<[2], [1], [1], [2], [0, 0, 0, 1, 1, 2], [0], [0]>} : vector<2x8x8xbf16>, vector<2x8x8xbf16>, vector<2x8x8xf32> -> vector<2x8x8xf32>
    "tpu.trace_stop"() : () -> ()
    %1058 = vector.shape_cast %1057 : vector<2x8x8xf32> to vector<16x8xf32>
    %1059 = arith.truncf %1058 : vector<16x8xf32> to vector<16x8xbf16>
    %1060 = vector.extract_strided_slice %1033 {offsets = [0, 0], sizes = [8, 32], strides = [1, 1]} : vector<32x32xf32> to vector<8x32xf32>
    %1061 = arith.truncf %1060 : vector<8x32xf32> to vector<8x32xbf16>
    %cst_426 = arith.constant dense<0.000000e+00> : vector<16x32xf32>
    %1062 = tpu.matmul %1059, %1061, %cst_426 {dimension_numbers = #tpu.dot_dimension_numbers<[1], [0], [0], [1], [0, 0, 1, 1], [], []>} : vector<16x8xbf16>, vector<8x32xbf16>, vector<16x32xf32> -> vector<16x32xf32>
    %1063 = arith.addf %1036, %1062 : vector<16x32xf32>
    %1064 = vector.extract_strided_slice %1027 {offsets = [0, 0, 8], sizes = [2, 8, 8], strides = [1, 1, 1]} : vector<2x8x32xf32> to vector<2x8x8xf32>
    %1065 = arith.truncf %1064 : vector<2x8x8xf32> to vector<2x8x8xbf16>
    %1066 = vector.extract_strided_slice %1029 {offsets = [0, 0, 8], sizes = [2, 8, 8], strides = [1, 1, 1]} : vector<2x8x32xf32> to vector<2x8x8xf32>
    %1067 = arith.truncf %1066 : vector<2x8x8xf32> to vector<2x8x8xbf16>
    "tpu.trace_start"() <{level = 10 : i32, message = "bqd,bkd->bqk"}> : () -> ()
    %cst_427 = arith.constant dense<0.000000e+00> : vector<2x8x8xf32>
    %1068 = tpu.matmul %1065, %1067, %cst_427 {dimension_numbers = #tpu.dot_dimension_numbers<[2], [2], [1], [1], [0, 0, 0, 1, 1, 1], [0], [0]>} : vector<2x8x8xbf16>, vector<2x8x8xbf16>, vector<2x8x8xf32> -> vector<2x8x8xf32>
    "tpu.trace_stop"() : () -> ()
    %1069 = vector.broadcast %841 : vector<2x1x8xf32> to vector<2x8x8xf32>
    %1070 = arith.addf %1068, %1069 : vector<2x8x8xf32>
    %cst_428 = arith.constant dense<0xFF800000> : vector<2x8xf32>
    %1071 = vector.multi_reduction <maximumf>, %1070, %cst_428 [2] : vector<2x8x8xf32> to vector<2x8xf32>
    %1072 = vector.shape_cast %1071 : vector<2x8xf32> to vector<2x8x1xf32>
    %1073 = vector.broadcast %1072 : vector<2x8x1xf32> to vector<2x8x8xf32>
    %1074 = arith.subf %1070, %1073 : vector<2x8x8xf32>
    %1075 = math.exp %1074 : vector<2x8x8xf32>
    %cst_429 = arith.constant dense<0.000000e+00> : vector<2x8xf32>
    %1076 = vector.multi_reduction <add>, %1075, %cst_429 [2] : vector<2x8x8xf32> to vector<2x8xf32>
    %1077 = vector.shape_cast %1076 : vector<2x8xf32> to vector<2x8x1xf32>
    %1078 = tpu.reciprocal %1077 {approx = true} : vector<2x8x1xf32> -> vector<2x8x1xf32>
    %1079 = vector.broadcast %1078 : vector<2x8x1xf32> to vector<2x8x8xf32>
    %1080 = arith.mulf %1075, %1079 : vector<2x8x8xf32>
    %1081 = arith.truncf %1080 : vector<2x8x8xf32> to vector<2x8x8xbf16>
    %1082 = vector.extract_strided_slice %1031 {offsets = [0, 0, 8], sizes = [2, 8, 8], strides = [1, 1, 1]} : vector<2x8x32xf32> to vector<2x8x8xf32>
    %1083 = arith.truncf %1082 : vector<2x8x8xf32> to vector<2x8x8xbf16>
    "tpu.trace_start"() <{level = 10 : i32, message = "bqk,bkd->bqd"}> : () -> ()
    %cst_430 = arith.constant dense<0.000000e+00> : vector<2x8x8xf32>
    %1084 = tpu.matmul %1081, %1083, %cst_430 {dimension_numbers = #tpu.dot_dimension_numbers<[2], [1], [1], [2], [0, 0, 0, 1, 1, 2], [0], [0]>} : vector<2x8x8xbf16>, vector<2x8x8xbf16>, vector<2x8x8xf32> -> vector<2x8x8xf32>
    "tpu.trace_stop"() : () -> ()
    %1085 = vector.shape_cast %1084 : vector<2x8x8xf32> to vector<16x8xf32>
    %1086 = arith.truncf %1085 : vector<16x8xf32> to vector<16x8xbf16>
    %1087 = vector.extract_strided_slice %1033 {offsets = [8, 0], sizes = [8, 32], strides = [1, 1]} : vector<32x32xf32> to vector<8x32xf32>
    %1088 = arith.truncf %1087 : vector<8x32xf32> to vector<8x32xbf16>
    %cst_431 = arith.constant dense<0.000000e+00> : vector<16x32xf32>
    %1089 = tpu.matmul %1086, %1088, %cst_431 {dimension_numbers = #tpu.dot_dimension_numbers<[1], [0], [0], [1], [0, 0, 1, 1], [], []>} : vector<16x8xbf16>, vector<8x32xbf16>, vector<16x32xf32> -> vector<16x32xf32>
    %1090 = arith.addf %1063, %1089 : vector<16x32xf32>
    %1091 = vector.extract_strided_slice %1027 {offsets = [0, 0, 16], sizes = [2, 8, 8], strides = [1, 1, 1]} : vector<2x8x32xf32> to vector<2x8x8xf32>
    %1092 = arith.truncf %1091 : vector<2x8x8xf32> to vector<2x8x8xbf16>
    %1093 = vector.extract_strided_slice %1029 {offsets = [0, 0, 16], sizes = [2, 8, 8], strides = [1, 1, 1]} : vector<2x8x32xf32> to vector<2x8x8xf32>
    %1094 = arith.truncf %1093 : vector<2x8x8xf32> to vector<2x8x8xbf16>
    "tpu.trace_start"() <{level = 10 : i32, message = "bqd,bkd->bqk"}> : () -> ()
    %cst_432 = arith.constant dense<0.000000e+00> : vector<2x8x8xf32>
    %1095 = tpu.matmul %1092, %1094, %cst_432 {dimension_numbers = #tpu.dot_dimension_numbers<[2], [2], [1], [1], [0, 0, 0, 1, 1, 1], [0], [0]>} : vector<2x8x8xbf16>, vector<2x8x8xbf16>, vector<2x8x8xf32> -> vector<2x8x8xf32>
    "tpu.trace_stop"() : () -> ()
    %1096 = vector.broadcast %841 : vector<2x1x8xf32> to vector<2x8x8xf32>
    %1097 = arith.addf %1095, %1096 : vector<2x8x8xf32>
    %cst_433 = arith.constant dense<0xFF800000> : vector<2x8xf32>
    %1098 = vector.multi_reduction <maximumf>, %1097, %cst_433 [2] : vector<2x8x8xf32> to vector<2x8xf32>
    %1099 = vector.shape_cast %1098 : vector<2x8xf32> to vector<2x8x1xf32>
    %1100 = vector.broadcast %1099 : vector<2x8x1xf32> to vector<2x8x8xf32>
    %1101 = arith.subf %1097, %1100 : vector<2x8x8xf32>
    %1102 = math.exp %1101 : vector<2x8x8xf32>
    %cst_434 = arith.constant dense<0.000000e+00> : vector<2x8xf32>
    %1103 = vector.multi_reduction <add>, %1102, %cst_434 [2] : vector<2x8x8xf32> to vector<2x8xf32>
    %1104 = vector.shape_cast %1103 : vector<2x8xf32> to vector<2x8x1xf32>
    %1105 = tpu.reciprocal %1104 {approx = true} : vector<2x8x1xf32> -> vector<2x8x1xf32>
    %1106 = vector.broadcast %1105 : vector<2x8x1xf32> to vector<2x8x8xf32>
    %1107 = arith.mulf %1102, %1106 : vector<2x8x8xf32>
    %1108 = arith.truncf %1107 : vector<2x8x8xf32> to vector<2x8x8xbf16>
    %1109 = vector.extract_strided_slice %1031 {offsets = [0, 0, 16], sizes = [2, 8, 8], strides = [1, 1, 1]} : vector<2x8x32xf32> to vector<2x8x8xf32>
    %1110 = arith.truncf %1109 : vector<2x8x8xf32> to vector<2x8x8xbf16>
    "tpu.trace_start"() <{level = 10 : i32, message = "bqk,bkd->bqd"}> : () -> ()
    %cst_435 = arith.constant dense<0.000000e+00> : vector<2x8x8xf32>
    %1111 = tpu.matmul %1108, %1110, %cst_435 {dimension_numbers = #tpu.dot_dimension_numbers<[2], [1], [1], [2], [0, 0, 0, 1, 1, 2], [0], [0]>} : vector<2x8x8xbf16>, vector<2x8x8xbf16>, vector<2x8x8xf32> -> vector<2x8x8xf32>
    "tpu.trace_stop"() : () -> ()
    %1112 = vector.shape_cast %1111 : vector<2x8x8xf32> to vector<16x8xf32>
    %1113 = arith.truncf %1112 : vector<16x8xf32> to vector<16x8xbf16>
    %1114 = vector.extract_strided_slice %1033 {offsets = [16, 0], sizes = [8, 32], strides = [1, 1]} : vector<32x32xf32> to vector<8x32xf32>
    %1115 = arith.truncf %1114 : vector<8x32xf32> to vector<8x32xbf16>
    %cst_436 = arith.constant dense<0.000000e+00> : vector<16x32xf32>
    %1116 = tpu.matmul %1113, %1115, %cst_436 {dimension_numbers = #tpu.dot_dimension_numbers<[1], [0], [0], [1], [0, 0, 1, 1], [], []>} : vector<16x8xbf16>, vector<8x32xbf16>, vector<16x32xf32> -> vector<16x32xf32>
    %1117 = arith.addf %1090, %1116 : vector<16x32xf32>
    %1118 = vector.extract_strided_slice %1027 {offsets = [0, 0, 24], sizes = [2, 8, 8], strides = [1, 1, 1]} : vector<2x8x32xf32> to vector<2x8x8xf32>
    %1119 = arith.truncf %1118 : vector<2x8x8xf32> to vector<2x8x8xbf16>
    %1120 = vector.extract_strided_slice %1029 {offsets = [0, 0, 24], sizes = [2, 8, 8], strides = [1, 1, 1]} : vector<2x8x32xf32> to vector<2x8x8xf32>
    %1121 = arith.truncf %1120 : vector<2x8x8xf32> to vector<2x8x8xbf16>
    "tpu.trace_start"() <{level = 10 : i32, message = "bqd,bkd->bqk"}> : () -> ()
    %cst_437 = arith.constant dense<0.000000e+00> : vector<2x8x8xf32>
    %1122 = tpu.matmul %1119, %1121, %cst_437 {dimension_numbers = #tpu.dot_dimension_numbers<[2], [2], [1], [1], [0, 0, 0, 1, 1, 1], [0], [0]>} : vector<2x8x8xbf16>, vector<2x8x8xbf16>, vector<2x8x8xf32> -> vector<2x8x8xf32>
    "tpu.trace_stop"() : () -> ()
    %1123 = vector.broadcast %841 : vector<2x1x8xf32> to vector<2x8x8xf32>
    %1124 = arith.addf %1122, %1123 : vector<2x8x8xf32>
    %cst_438 = arith.constant dense<0xFF800000> : vector<2x8xf32>
    %1125 = vector.multi_reduction <maximumf>, %1124, %cst_438 [2] : vector<2x8x8xf32> to vector<2x8xf32>
    %1126 = vector.shape_cast %1125 : vector<2x8xf32> to vector<2x8x1xf32>
    %1127 = vector.broadcast %1126 : vector<2x8x1xf32> to vector<2x8x8xf32>
    %1128 = arith.subf %1124, %1127 : vector<2x8x8xf32>
    %1129 = math.exp %1128 : vector<2x8x8xf32>
    %cst_439 = arith.constant dense<0.000000e+00> : vector<2x8xf32>
    %1130 = vector.multi_reduction <add>, %1129, %cst_439 [2] : vector<2x8x8xf32> to vector<2x8xf32>
    %1131 = vector.shape_cast %1130 : vector<2x8xf32> to vector<2x8x1xf32>
    %1132 = tpu.reciprocal %1131 {approx = true} : vector<2x8x1xf32> -> vector<2x8x1xf32>
    %1133 = vector.broadcast %1132 : vector<2x8x1xf32> to vector<2x8x8xf32>
    %1134 = arith.mulf %1129, %1133 : vector<2x8x8xf32>
    %1135 = arith.truncf %1134 : vector<2x8x8xf32> to vector<2x8x8xbf16>
    %1136 = vector.extract_strided_slice %1031 {offsets = [0, 0, 24], sizes = [2, 8, 8], strides = [1, 1, 1]} : vector<2x8x32xf32> to vector<2x8x8xf32>
    %1137 = arith.truncf %1136 : vector<2x8x8xf32> to vector<2x8x8xbf16>
    "tpu.trace_start"() <{level = 10 : i32, message = "bqk,bkd->bqd"}> : () -> ()
    %cst_440 = arith.constant dense<0.000000e+00> : vector<2x8x8xf32>
    %1138 = tpu.matmul %1135, %1137, %cst_440 {dimension_numbers = #tpu.dot_dimension_numbers<[2], [1], [1], [2], [0, 0, 0, 1, 1, 2], [0], [0]>} : vector<2x8x8xbf16>, vector<2x8x8xbf16>, vector<2x8x8xf32> -> vector<2x8x8xf32>
    "tpu.trace_stop"() : () -> ()
    %1139 = vector.shape_cast %1138 : vector<2x8x8xf32> to vector<16x8xf32>
    %1140 = arith.truncf %1139 : vector<16x8xf32> to vector<16x8xbf16>
    %1141 = vector.extract_strided_slice %1033 {offsets = [24, 0], sizes = [8, 32], strides = [1, 1]} : vector<32x32xf32> to vector<8x32xf32>
    %1142 = arith.truncf %1141 : vector<8x32xf32> to vector<8x32xbf16>
    %cst_441 = arith.constant dense<0.000000e+00> : vector<16x32xf32>
    %1143 = tpu.matmul %1140, %1142, %cst_441 {dimension_numbers = #tpu.dot_dimension_numbers<[1], [0], [0], [1], [0, 0, 1, 1], [], []>} : vector<16x8xbf16>, vector<8x32xbf16>, vector<16x32xf32> -> vector<16x32xf32>
    %1144 = arith.addf %1117, %1143 : vector<16x32xf32>
    %1145 = vector.broadcast %1035 : vector<1x32xf32> to vector<16x32xf32>
    %1146 = arith.addf %1144, %1145 : vector<16x32xf32>
    %1147 = arith.addf %1008, %1146 : vector<16x32xf32>
    %c0_442 = arith.constant 0 : index
    %c0_443 = arith.constant 0 : index
    %c0_444 = arith.constant 0 : index
    %1148 = vector.load %arg31[%c0_442, %c0_443, %c0_444] : memref<2x1x32xf32, #tpu.memory_space<vmem>>, vector<1x1x32xf32>
    %1149 = vector.shape_cast %1148 : vector<1x1x32xf32> to vector<1x32xf32>
    %c0_445 = arith.constant 0 : index
    %c0_446 = arith.constant 0 : index
    %c0_447 = arith.constant 0 : index
    %1150 = vector.load %arg32[%c0_445, %c0_446, %c0_447] : memref<2x1x32xf32, #tpu.memory_space<vmem>>, vector<1x1x32xf32>
    %1151 = vector.shape_cast %1150 : vector<1x1x32xf32> to vector<1x32xf32>
    %cst_448 = arith.constant dense<0.000000e+00> : vector<16xf32>
    %1152 = vector.multi_reduction <add>, %1147, %cst_448 [1] : vector<16x32xf32> to vector<16xf32>
    %1153 = vector.shape_cast %1152 : vector<16xf32> to vector<16x1xf32>
    %cst_449 = arith.constant 3.200000e+01 : f32
    %1154 = vector.broadcast %cst_449 : f32 to vector<16x1xf32>
    %1155 = arith.divf %1153, %1154 : vector<16x1xf32>
    %1156 = vector.broadcast %1155 : vector<16x1xf32> to vector<16x32xf32>
    %1157 = arith.subf %1147, %1156 : vector<16x32xf32>
    %1158 = arith.mulf %1157, %1157 : vector<16x32xf32>
    %cst_450 = arith.constant dense<0.000000e+00> : vector<16xf32>
    %1159 = vector.multi_reduction <add>, %1158, %cst_450 [1] : vector<16x32xf32> to vector<16xf32>
    %1160 = vector.shape_cast %1159 : vector<16xf32> to vector<16x1xf32>
    %cst_451 = arith.constant 3.200000e+01 : f32
    %1161 = vector.broadcast %cst_451 : f32 to vector<16x1xf32>
    %1162 = arith.divf %1160, %1161 : vector<16x1xf32>
    %1163 = vector.broadcast %1155 : vector<16x1xf32> to vector<16x32xf32>
    %1164 = arith.subf %1147, %1163 : vector<16x32xf32>
    %cst_452 = arith.constant 9.99999974E-6 : f32
    %1165 = vector.broadcast %cst_452 : f32 to vector<16x1xf32>
    %1166 = arith.addf %1162, %1165 : vector<16x1xf32>
    %1167 = math.rsqrt %1166 : vector<16x1xf32>
    %1168 = vector.broadcast %1167 : vector<16x1xf32> to vector<16x32xf32>
    %1169 = arith.mulf %1164, %1168 : vector<16x32xf32>
    %1170 = vector.broadcast %1149 : vector<1x32xf32> to vector<16x32xf32>
    %1171 = arith.mulf %1169, %1170 : vector<16x32xf32>
    %1172 = vector.broadcast %1151 : vector<1x32xf32> to vector<16x32xf32>
    %1173 = arith.addf %1171, %1172 : vector<16x32xf32>
    %1174 = arith.truncf %1173 : vector<16x32xf32> to vector<16x32xbf16>
    %c0_453 = arith.constant 0 : index
    %c0_454 = arith.constant 0 : index
    %c0_455 = arith.constant 0 : index
    %1175 = vector.load %arg33[%c0_453, %c0_454, %c0_455] : memref<2x32x64xf32, #tpu.memory_space<vmem>>, vector<1x32x64xf32>
    %1176 = vector.shape_cast %1175 : vector<1x32x64xf32> to vector<32x64xf32>
    %1177 = arith.truncf %1176 : vector<32x64xf32> to vector<32x64xbf16>
    %cst_456 = arith.constant dense<0.000000e+00> : vector<16x64xf32>
    %1178 = tpu.matmul %1174, %1177, %cst_456 {dimension_numbers = #tpu.dot_dimension_numbers<[1], [0], [0], [1], [0, 0, 1, 1], [], []>} : vector<16x32xbf16>, vector<32x64xbf16>, vector<16x64xf32> -> vector<16x64xf32>
    %c0_457 = arith.constant 0 : index
    %c0_458 = arith.constant 0 : index
    %c0_459 = arith.constant 0 : index
    %1179 = vector.load %arg34[%c0_457, %c0_458, %c0_459] : memref<2x1x64xf32, #tpu.memory_space<vmem>>, vector<1x1x64xf32>
    %1180 = vector.shape_cast %1179 : vector<1x1x64xf32> to vector<1x64xf32>
    %1181 = vector.broadcast %1180 : vector<1x64xf32> to vector<16x64xf32>
    %1182 = arith.addf %1178, %1181 : vector<16x64xf32>
    %cst_460 = arith.constant 0.000000e+00 : f32
    %1183 = vector.broadcast %cst_460 : f32 to vector<16x64xf32>
    %1184 = arith.maximumf %1182, %1183 : vector<16x64xf32>
    %1185 = arith.truncf %1184 : vector<16x64xf32> to vector<16x64xbf16>
    %c0_461 = arith.constant 0 : index
    %c0_462 = arith.constant 0 : index
    %c0_463 = arith.constant 0 : index
    %1186 = vector.load %arg35[%c0_461, %c0_462, %c0_463] : memref<2x64x32xf32, #tpu.memory_space<vmem>>, vector<1x64x32xf32>
    %1187 = vector.shape_cast %1186 : vector<1x64x32xf32> to vector<64x32xf32>
    %1188 = arith.truncf %1187 : vector<64x32xf32> to vector<64x32xbf16>
    %cst_464 = arith.constant dense<0.000000e+00> : vector<16x32xf32>
    %1189 = tpu.matmul %1185, %1188, %cst_464 {dimension_numbers = #tpu.dot_dimension_numbers<[1], [0], [0], [1], [0, 0, 1, 1], [], []>} : vector<16x64xbf16>, vector<64x32xbf16>, vector<16x32xf32> -> vector<16x32xf32>
    %c0_465 = arith.constant 0 : index
    %c0_466 = arith.constant 0 : index
    %c0_467 = arith.constant 0 : index
    %1190 = vector.load %arg36[%c0_465, %c0_466, %c0_467] : memref<2x1x32xf32, #tpu.memory_space<vmem>>, vector<1x1x32xf32>
    %1191 = vector.shape_cast %1190 : vector<1x1x32xf32> to vector<1x32xf32>
    %1192 = vector.broadcast %1191 : vector<1x32xf32> to vector<16x32xf32>
    %1193 = arith.addf %1189, %1192 : vector<16x32xf32>
    %1194 = arith.addf %1173, %1193 : vector<16x32xf32>
    %c0_468 = arith.constant 0 : index
    %c0_469 = arith.constant 0 : index
    %c0_470 = arith.constant 0 : index
    %1195 = vector.load %arg37[%c0_468, %c0_469, %c0_470] : memref<2x1x32xf32, #tpu.memory_space<vmem>>, vector<1x1x32xf32>
    %1196 = vector.shape_cast %1195 : vector<1x1x32xf32> to vector<1x32xf32>
    %c0_471 = arith.constant 0 : index
    %c0_472 = arith.constant 0 : index
    %c0_473 = arith.constant 0 : index
    %1197 = vector.load %arg38[%c0_471, %c0_472, %c0_473] : memref<2x1x32xf32, #tpu.memory_space<vmem>>, vector<1x1x32xf32>
    %1198 = vector.shape_cast %1197 : vector<1x1x32xf32> to vector<1x32xf32>
    %cst_474 = arith.constant dense<0.000000e+00> : vector<16xf32>
    %1199 = vector.multi_reduction <add>, %1194, %cst_474 [1] : vector<16x32xf32> to vector<16xf32>
    %1200 = vector.shape_cast %1199 : vector<16xf32> to vector<16x1xf32>
    %cst_475 = arith.constant 3.200000e+01 : f32
    %1201 = vector.broadcast %cst_475 : f32 to vector<16x1xf32>
    %1202 = arith.divf %1200, %1201 : vector<16x1xf32>
    %1203 = vector.broadcast %1202 : vector<16x1xf32> to vector<16x32xf32>
    %1204 = arith.subf %1194, %1203 : vector<16x32xf32>
    %1205 = arith.mulf %1204, %1204 : vector<16x32xf32>
    %cst_476 = arith.constant dense<0.000000e+00> : vector<16xf32>
    %1206 = vector.multi_reduction <add>, %1205, %cst_476 [1] : vector<16x32xf32> to vector<16xf32>
    %1207 = vector.shape_cast %1206 : vector<16xf32> to vector<16x1xf32>
    %cst_477 = arith.constant 3.200000e+01 : f32
    %1208 = vector.broadcast %cst_477 : f32 to vector<16x1xf32>
    %1209 = arith.divf %1207, %1208 : vector<16x1xf32>
    %1210 = vector.broadcast %1202 : vector<16x1xf32> to vector<16x32xf32>
    %1211 = arith.subf %1194, %1210 : vector<16x32xf32>
    %cst_478 = arith.constant 9.99999974E-6 : f32
    %1212 = vector.broadcast %cst_478 : f32 to vector<16x1xf32>
    %1213 = arith.addf %1209, %1212 : vector<16x1xf32>
    %1214 = math.rsqrt %1213 : vector<16x1xf32>
    %1215 = vector.broadcast %1214 : vector<16x1xf32> to vector<16x32xf32>
    %1216 = arith.mulf %1211, %1215 : vector<16x32xf32>
    %1217 = vector.broadcast %1196 : vector<1x32xf32> to vector<16x32xf32>
    %1218 = arith.mulf %1216, %1217 : vector<16x32xf32>
    %1219 = vector.broadcast %1198 : vector<1x32xf32> to vector<16x32xf32>
    %1220 = arith.addf %1218, %1219 : vector<16x32xf32>
    %1221 = arith.truncf %1220 : vector<16x32xf32> to vector<16x32xbf16>
    %c1_479 = arith.constant 1 : index
    %c0_480 = arith.constant 0 : index
    %c0_481 = arith.constant 0 : index
    %1222 = vector.load %arg19[%c1_479, %c0_480, %c0_481] : memref<2x32x96xf32, #tpu.memory_space<vmem>>, vector<1x32x96xf32>
    %1223 = vector.shape_cast %1222 : vector<1x32x96xf32> to vector<32x96xf32>
    %1224 = arith.truncf %1223 : vector<32x96xf32> to vector<32x96xbf16>
    %cst_482 = arith.constant dense<0.000000e+00> : vector<16x96xf32>
    %1225 = tpu.matmul %1221, %1224, %cst_482 {dimension_numbers = #tpu.dot_dimension_numbers<[1], [0], [0], [1], [0, 0, 1, 1], [], []>} : vector<16x32xbf16>, vector<32x96xbf16>, vector<16x96xf32> -> vector<16x96xf32>
    %c1_483 = arith.constant 1 : index
    %c0_484 = arith.constant 0 : index
    %c0_485 = arith.constant 0 : index
    %1226 = vector.load %arg20[%c1_483, %c0_484, %c0_485] : memref<2x1x96xf32, #tpu.memory_space<vmem>>, vector<1x1x96xf32>
    %1227 = vector.shape_cast %1226 : vector<1x1x96xf32> to vector<1x96xf32>
    %1228 = vector.broadcast %1227 : vector<1x96xf32> to vector<16x96xf32>
    %1229 = arith.addf %1225, %1228 : vector<16x96xf32>
    %1230 = vector.extract_strided_slice %1229 {offsets = [0, 0], sizes = [16, 32], strides = [1, 1]} : vector<16x96xf32> to vector<16x32xf32>
    %1231 = vector.shape_cast %1230 : vector<16x32xf32> to vector<2x8x32xf32>
    %1232 = vector.extract_strided_slice %1229 {offsets = [0, 32], sizes = [16, 32], strides = [1, 1]} : vector<16x96xf32> to vector<16x32xf32>
    %1233 = vector.shape_cast %1232 : vector<16x32xf32> to vector<2x8x32xf32>
    %1234 = vector.extract_strided_slice %1229 {offsets = [0, 64], sizes = [16, 32], strides = [1, 1]} : vector<16x96xf32> to vector<16x32xf32>
    %1235 = vector.shape_cast %1234 : vector<16x32xf32> to vector<2x8x32xf32>
    %c1_486 = arith.constant 1 : index
    %c0_487 = arith.constant 0 : index
    %c0_488 = arith.constant 0 : index
    %1236 = vector.load %arg21[%c1_486, %c0_487, %c0_488] : memref<2x32x32xf32, #tpu.memory_space<vmem>>, vector<1x32x32xf32>
    %1237 = vector.shape_cast %1236 : vector<1x32x32xf32> to vector<32x32xf32>
    %c1_489 = arith.constant 1 : index
    %c0_490 = arith.constant 0 : index
    %c0_491 = arith.constant 0 : index
    %1238 = vector.load %arg22[%c1_489, %c0_490, %c0_491] : memref<2x1x32xf32, #tpu.memory_space<vmem>>, vector<1x1x32xf32>
    %1239 = vector.shape_cast %1238 : vector<1x1x32xf32> to vector<1x32xf32>
    %cst_492 = arith.constant 0.000000e+00 : f32
    %1240 = vector.broadcast %cst_492 : f32 to vector<16x32xf32>
    %1241 = vector.extract_strided_slice %1231 {offsets = [0, 0, 0], sizes = [2, 8, 8], strides = [1, 1, 1]} : vector<2x8x32xf32> to vector<2x8x8xf32>
    %1242 = arith.truncf %1241 : vector<2x8x8xf32> to vector<2x8x8xbf16>
    %1243 = vector.extract_strided_slice %1233 {offsets = [0, 0, 0], sizes = [2, 8, 8], strides = [1, 1, 1]} : vector<2x8x32xf32> to vector<2x8x8xf32>
    %1244 = arith.truncf %1243 : vector<2x8x8xf32> to vector<2x8x8xbf16>
    "tpu.trace_start"() <{level = 10 : i32, message = "bqd,bkd->bqk"}> : () -> ()
    %cst_493 = arith.constant dense<0.000000e+00> : vector<2x8x8xf32>
    %1245 = tpu.matmul %1242, %1244, %cst_493 {dimension_numbers = #tpu.dot_dimension_numbers<[2], [2], [1], [1], [0, 0, 0, 1, 1, 1], [0], [0]>} : vector<2x8x8xbf16>, vector<2x8x8xbf16>, vector<2x8x8xf32> -> vector<2x8x8xf32>
    "tpu.trace_stop"() : () -> ()
    %1246 = arith.addf %1245, %855 : vector<2x8x8xf32>
    %cst_494 = arith.constant dense<0xFF800000> : vector<2x8xf32>
    %1247 = vector.multi_reduction <maximumf>, %1246, %cst_494 [2] : vector<2x8x8xf32> to vector<2x8xf32>
    %1248 = vector.shape_cast %1247 : vector<2x8xf32> to vector<2x8x1xf32>
    %1249 = vector.broadcast %1248 : vector<2x8x1xf32> to vector<2x8x8xf32>
    %1250 = arith.subf %1246, %1249 : vector<2x8x8xf32>
    %1251 = math.exp %1250 : vector<2x8x8xf32>
    %cst_495 = arith.constant dense<0.000000e+00> : vector<2x8xf32>
    %1252 = vector.multi_reduction <add>, %1251, %cst_495 [2] : vector<2x8x8xf32> to vector<2x8xf32>
    %1253 = vector.shape_cast %1252 : vector<2x8xf32> to vector<2x8x1xf32>
    %1254 = tpu.reciprocal %1253 {approx = true} : vector<2x8x1xf32> -> vector<2x8x1xf32>
    %1255 = vector.broadcast %1254 : vector<2x8x1xf32> to vector<2x8x8xf32>
    %1256 = arith.mulf %1251, %1255 : vector<2x8x8xf32>
    %1257 = arith.truncf %1256 : vector<2x8x8xf32> to vector<2x8x8xbf16>
    %1258 = vector.extract_strided_slice %1235 {offsets = [0, 0, 0], sizes = [2, 8, 8], strides = [1, 1, 1]} : vector<2x8x32xf32> to vector<2x8x8xf32>
    %1259 = arith.truncf %1258 : vector<2x8x8xf32> to vector<2x8x8xbf16>
    "tpu.trace_start"() <{level = 10 : i32, message = "bqk,bkd->bqd"}> : () -> ()
    %cst_496 = arith.constant dense<0.000000e+00> : vector<2x8x8xf32>
    %1260 = tpu.matmul %1257, %1259, %cst_496 {dimension_numbers = #tpu.dot_dimension_numbers<[2], [1], [1], [2], [0, 0, 0, 1, 1, 2], [0], [0]>} : vector<2x8x8xbf16>, vector<2x8x8xbf16>, vector<2x8x8xf32> -> vector<2x8x8xf32>
    "tpu.trace_stop"() : () -> ()
    %1261 = vector.shape_cast %1260 : vector<2x8x8xf32> to vector<16x8xf32>
    %1262 = arith.truncf %1261 : vector<16x8xf32> to vector<16x8xbf16>
    %1263 = vector.extract_strided_slice %1237 {offsets = [0, 0], sizes = [8, 32], strides = [1, 1]} : vector<32x32xf32> to vector<8x32xf32>
    %1264 = arith.truncf %1263 : vector<8x32xf32> to vector<8x32xbf16>
    %cst_497 = arith.constant dense<0.000000e+00> : vector<16x32xf32>
    %1265 = tpu.matmul %1262, %1264, %cst_497 {dimension_numbers = #tpu.dot_dimension_numbers<[1], [0], [0], [1], [0, 0, 1, 1], [], []>} : vector<16x8xbf16>, vector<8x32xbf16>, vector<16x32xf32> -> vector<16x32xf32>
    %1266 = arith.addf %1240, %1265 : vector<16x32xf32>
    %1267 = vector.extract_strided_slice %1231 {offsets = [0, 0, 8], sizes = [2, 8, 8], strides = [1, 1, 1]} : vector<2x8x32xf32> to vector<2x8x8xf32>
    %1268 = arith.truncf %1267 : vector<2x8x8xf32> to vector<2x8x8xbf16>
    %1269 = vector.extract_strided_slice %1233 {offsets = [0, 0, 8], sizes = [2, 8, 8], strides = [1, 1, 1]} : vector<2x8x32xf32> to vector<2x8x8xf32>
    %1270 = arith.truncf %1269 : vector<2x8x8xf32> to vector<2x8x8xbf16>
    "tpu.trace_start"() <{level = 10 : i32, message = "bqd,bkd->bqk"}> : () -> ()
    %cst_498 = arith.constant dense<0.000000e+00> : vector<2x8x8xf32>
    %1271 = tpu.matmul %1268, %1270, %cst_498 {dimension_numbers = #tpu.dot_dimension_numbers<[2], [2], [1], [1], [0, 0, 0, 1, 1, 1], [0], [0]>} : vector<2x8x8xbf16>, vector<2x8x8xbf16>, vector<2x8x8xf32> -> vector<2x8x8xf32>
    "tpu.trace_stop"() : () -> ()
    %1272 = arith.addf %1271, %855 : vector<2x8x8xf32>
    %cst_499 = arith.constant dense<0xFF800000> : vector<2x8xf32>
    %1273 = vector.multi_reduction <maximumf>, %1272, %cst_499 [2] : vector<2x8x8xf32> to vector<2x8xf32>
    %1274 = vector.shape_cast %1273 : vector<2x8xf32> to vector<2x8x1xf32>
    %1275 = vector.broadcast %1274 : vector<2x8x1xf32> to vector<2x8x8xf32>
    %1276 = arith.subf %1272, %1275 : vector<2x8x8xf32>
    %1277 = math.exp %1276 : vector<2x8x8xf32>
    %cst_500 = arith.constant dense<0.000000e+00> : vector<2x8xf32>
    %1278 = vector.multi_reduction <add>, %1277, %cst_500 [2] : vector<2x8x8xf32> to vector<2x8xf32>
    %1279 = vector.shape_cast %1278 : vector<2x8xf32> to vector<2x8x1xf32>
    %1280 = tpu.reciprocal %1279 {approx = true} : vector<2x8x1xf32> -> vector<2x8x1xf32>
    %1281 = vector.broadcast %1280 : vector<2x8x1xf32> to vector<2x8x8xf32>
    %1282 = arith.mulf %1277, %1281 : vector<2x8x8xf32>
    %1283 = arith.truncf %1282 : vector<2x8x8xf32> to vector<2x8x8xbf16>
    %1284 = vector.extract_strided_slice %1235 {offsets = [0, 0, 8], sizes = [2, 8, 8], strides = [1, 1, 1]} : vector<2x8x32xf32> to vector<2x8x8xf32>
    %1285 = arith.truncf %1284 : vector<2x8x8xf32> to vector<2x8x8xbf16>
    "tpu.trace_start"() <{level = 10 : i32, message = "bqk,bkd->bqd"}> : () -> ()
    %cst_501 = arith.constant dense<0.000000e+00> : vector<2x8x8xf32>
    %1286 = tpu.matmul %1283, %1285, %cst_501 {dimension_numbers = #tpu.dot_dimension_numbers<[2], [1], [1], [2], [0, 0, 0, 1, 1, 2], [0], [0]>} : vector<2x8x8xbf16>, vector<2x8x8xbf16>, vector<2x8x8xf32> -> vector<2x8x8xf32>
    "tpu.trace_stop"() : () -> ()
    %1287 = vector.shape_cast %1286 : vector<2x8x8xf32> to vector<16x8xf32>
    %1288 = arith.truncf %1287 : vector<16x8xf32> to vector<16x8xbf16>
    %1289 = vector.extract_strided_slice %1237 {offsets = [8, 0], sizes = [8, 32], strides = [1, 1]} : vector<32x32xf32> to vector<8x32xf32>
    %1290 = arith.truncf %1289 : vector<8x32xf32> to vector<8x32xbf16>
    %cst_502 = arith.constant dense<0.000000e+00> : vector<16x32xf32>
    %1291 = tpu.matmul %1288, %1290, %cst_502 {dimension_numbers = #tpu.dot_dimension_numbers<[1], [0], [0], [1], [0, 0, 1, 1], [], []>} : vector<16x8xbf16>, vector<8x32xbf16>, vector<16x32xf32> -> vector<16x32xf32>
    %1292 = arith.addf %1266, %1291 : vector<16x32xf32>
    %1293 = vector.extract_strided_slice %1231 {offsets = [0, 0, 16], sizes = [2, 8, 8], strides = [1, 1, 1]} : vector<2x8x32xf32> to vector<2x8x8xf32>
    %1294 = arith.truncf %1293 : vector<2x8x8xf32> to vector<2x8x8xbf16>
    %1295 = vector.extract_strided_slice %1233 {offsets = [0, 0, 16], sizes = [2, 8, 8], strides = [1, 1, 1]} : vector<2x8x32xf32> to vector<2x8x8xf32>
    %1296 = arith.truncf %1295 : vector<2x8x8xf32> to vector<2x8x8xbf16>
    "tpu.trace_start"() <{level = 10 : i32, message = "bqd,bkd->bqk"}> : () -> ()
    %cst_503 = arith.constant dense<0.000000e+00> : vector<2x8x8xf32>
    %1297 = tpu.matmul %1294, %1296, %cst_503 {dimension_numbers = #tpu.dot_dimension_numbers<[2], [2], [1], [1], [0, 0, 0, 1, 1, 1], [0], [0]>} : vector<2x8x8xbf16>, vector<2x8x8xbf16>, vector<2x8x8xf32> -> vector<2x8x8xf32>
    "tpu.trace_stop"() : () -> ()
    %1298 = arith.addf %1297, %855 : vector<2x8x8xf32>
    %cst_504 = arith.constant dense<0xFF800000> : vector<2x8xf32>
    %1299 = vector.multi_reduction <maximumf>, %1298, %cst_504 [2] : vector<2x8x8xf32> to vector<2x8xf32>
    %1300 = vector.shape_cast %1299 : vector<2x8xf32> to vector<2x8x1xf32>
    %1301 = vector.broadcast %1300 : vector<2x8x1xf32> to vector<2x8x8xf32>
    %1302 = arith.subf %1298, %1301 : vector<2x8x8xf32>
    %1303 = math.exp %1302 : vector<2x8x8xf32>
    %cst_505 = arith.constant dense<0.000000e+00> : vector<2x8xf32>
    %1304 = vector.multi_reduction <add>, %1303, %cst_505 [2] : vector<2x8x8xf32> to vector<2x8xf32>
    %1305 = vector.shape_cast %1304 : vector<2x8xf32> to vector<2x8x1xf32>
    %1306 = tpu.reciprocal %1305 {approx = true} : vector<2x8x1xf32> -> vector<2x8x1xf32>
    %1307 = vector.broadcast %1306 : vector<2x8x1xf32> to vector<2x8x8xf32>
    %1308 = arith.mulf %1303, %1307 : vector<2x8x8xf32>
    %1309 = arith.truncf %1308 : vector<2x8x8xf32> to vector<2x8x8xbf16>
    %1310 = vector.extract_strided_slice %1235 {offsets = [0, 0, 16], sizes = [2, 8, 8], strides = [1, 1, 1]} : vector<2x8x32xf32> to vector<2x8x8xf32>
    %1311 = arith.truncf %1310 : vector<2x8x8xf32> to vector<2x8x8xbf16>
    "tpu.trace_start"() <{level = 10 : i32, message = "bqk,bkd->bqd"}> : () -> ()
    %cst_506 = arith.constant dense<0.000000e+00> : vector<2x8x8xf32>
    %1312 = tpu.matmul %1309, %1311, %cst_506 {dimension_numbers = #tpu.dot_dimension_numbers<[2], [1], [1], [2], [0, 0, 0, 1, 1, 2], [0], [0]>} : vector<2x8x8xbf16>, vector<2x8x8xbf16>, vector<2x8x8xf32> -> vector<2x8x8xf32>
    "tpu.trace_stop"() : () -> ()
    %1313 = vector.shape_cast %1312 : vector<2x8x8xf32> to vector<16x8xf32>
    %1314 = arith.truncf %1313 : vector<16x8xf32> to vector<16x8xbf16>
    %1315 = vector.extract_strided_slice %1237 {offsets = [16, 0], sizes = [8, 32], strides = [1, 1]} : vector<32x32xf32> to vector<8x32xf32>
    %1316 = arith.truncf %1315 : vector<8x32xf32> to vector<8x32xbf16>
    %cst_507 = arith.constant dense<0.000000e+00> : vector<16x32xf32>
    %1317 = tpu.matmul %1314, %1316, %cst_507 {dimension_numbers = #tpu.dot_dimension_numbers<[1], [0], [0], [1], [0, 0, 1, 1], [], []>} : vector<16x8xbf16>, vector<8x32xbf16>, vector<16x32xf32> -> vector<16x32xf32>
    %1318 = arith.addf %1292, %1317 : vector<16x32xf32>
    %1319 = vector.extract_strided_slice %1231 {offsets = [0, 0, 24], sizes = [2, 8, 8], strides = [1, 1, 1]} : vector<2x8x32xf32> to vector<2x8x8xf32>
    %1320 = arith.truncf %1319 : vector<2x8x8xf32> to vector<2x8x8xbf16>
    %1321 = vector.extract_strided_slice %1233 {offsets = [0, 0, 24], sizes = [2, 8, 8], strides = [1, 1, 1]} : vector<2x8x32xf32> to vector<2x8x8xf32>
    %1322 = arith.truncf %1321 : vector<2x8x8xf32> to vector<2x8x8xbf16>
    "tpu.trace_start"() <{level = 10 : i32, message = "bqd,bkd->bqk"}> : () -> ()
    %cst_508 = arith.constant dense<0.000000e+00> : vector<2x8x8xf32>
    %1323 = tpu.matmul %1320, %1322, %cst_508 {dimension_numbers = #tpu.dot_dimension_numbers<[2], [2], [1], [1], [0, 0, 0, 1, 1, 1], [0], [0]>} : vector<2x8x8xbf16>, vector<2x8x8xbf16>, vector<2x8x8xf32> -> vector<2x8x8xf32>
    "tpu.trace_stop"() : () -> ()
    %1324 = arith.addf %1323, %855 : vector<2x8x8xf32>
    %cst_509 = arith.constant dense<0xFF800000> : vector<2x8xf32>
    %1325 = vector.multi_reduction <maximumf>, %1324, %cst_509 [2] : vector<2x8x8xf32> to vector<2x8xf32>
    %1326 = vector.shape_cast %1325 : vector<2x8xf32> to vector<2x8x1xf32>
    %1327 = vector.broadcast %1326 : vector<2x8x1xf32> to vector<2x8x8xf32>
    %1328 = arith.subf %1324, %1327 : vector<2x8x8xf32>
    %1329 = math.exp %1328 : vector<2x8x8xf32>
    %cst_510 = arith.constant dense<0.000000e+00> : vector<2x8xf32>
    %1330 = vector.multi_reduction <add>, %1329, %cst_510 [2] : vector<2x8x8xf32> to vector<2x8xf32>
    %1331 = vector.shape_cast %1330 : vector<2x8xf32> to vector<2x8x1xf32>
    %1332 = tpu.reciprocal %1331 {approx = true} : vector<2x8x1xf32> -> vector<2x8x1xf32>
    %1333 = vector.broadcast %1332 : vector<2x8x1xf32> to vector<2x8x8xf32>
    %1334 = arith.mulf %1329, %1333 : vector<2x8x8xf32>
    %1335 = arith.truncf %1334 : vector<2x8x8xf32> to vector<2x8x8xbf16>
    %1336 = vector.extract_strided_slice %1235 {offsets = [0, 0, 24], sizes = [2, 8, 8], strides = [1, 1, 1]} : vector<2x8x32xf32> to vector<2x8x8xf32>
    %1337 = arith.truncf %1336 : vector<2x8x8xf32> to vector<2x8x8xbf16>
    "tpu.trace_start"() <{level = 10 : i32, message = "bqk,bkd->bqd"}> : () -> ()
    %cst_511 = arith.constant dense<0.000000e+00> : vector<2x8x8xf32>
    %1338 = tpu.matmul %1335, %1337, %cst_511 {dimension_numbers = #tpu.dot_dimension_numbers<[2], [1], [1], [2], [0, 0, 0, 1, 1, 2], [0], [0]>} : vector<2x8x8xbf16>, vector<2x8x8xbf16>, vector<2x8x8xf32> -> vector<2x8x8xf32>
    "tpu.trace_stop"() : () -> ()
    %1339 = vector.shape_cast %1338 : vector<2x8x8xf32> to vector<16x8xf32>
    %1340 = arith.truncf %1339 : vector<16x8xf32> to vector<16x8xbf16>
    %1341 = vector.extract_strided_slice %1237 {offsets = [24, 0], sizes = [8, 32], strides = [1, 1]} : vector<32x32xf32> to vector<8x32xf32>
    %1342 = arith.truncf %1341 : vector<8x32xf32> to vector<8x32xbf16>
    %cst_512 = arith.constant dense<0.000000e+00> : vector<16x32xf32>
    %1343 = tpu.matmul %1340, %1342, %cst_512 {dimension_numbers = #tpu.dot_dimension_numbers<[1], [0], [0], [1], [0, 0, 1, 1], [], []>} : vector<16x8xbf16>, vector<8x32xbf16>, vector<16x32xf32> -> vector<16x32xf32>
    %1344 = arith.addf %1318, %1343 : vector<16x32xf32>
    %1345 = vector.broadcast %1239 : vector<1x32xf32> to vector<16x32xf32>
    %1346 = arith.addf %1344, %1345 : vector<16x32xf32>
    %1347 = arith.addf %1220, %1346 : vector<16x32xf32>
    %c1_513 = arith.constant 1 : index
    %c0_514 = arith.constant 0 : index
    %c0_515 = arith.constant 0 : index
    %1348 = vector.load %arg23[%c1_513, %c0_514, %c0_515] : memref<2x1x32xf32, #tpu.memory_space<vmem>>, vector<1x1x32xf32>
    %1349 = vector.shape_cast %1348 : vector<1x1x32xf32> to vector<1x32xf32>
    %c1_516 = arith.constant 1 : index
    %c0_517 = arith.constant 0 : index
    %c0_518 = arith.constant 0 : index
    %1350 = vector.load %arg24[%c1_516, %c0_517, %c0_518] : memref<2x1x32xf32, #tpu.memory_space<vmem>>, vector<1x1x32xf32>
    %1351 = vector.shape_cast %1350 : vector<1x1x32xf32> to vector<1x32xf32>
    %cst_519 = arith.constant dense<0.000000e+00> : vector<16xf32>
    %1352 = vector.multi_reduction <add>, %1347, %cst_519 [1] : vector<16x32xf32> to vector<16xf32>
    %1353 = vector.shape_cast %1352 : vector<16xf32> to vector<16x1xf32>
    %cst_520 = arith.constant 3.200000e+01 : f32
    %1354 = vector.broadcast %cst_520 : f32 to vector<16x1xf32>
    %1355 = arith.divf %1353, %1354 : vector<16x1xf32>
    %1356 = vector.broadcast %1355 : vector<16x1xf32> to vector<16x32xf32>
    %1357 = arith.subf %1347, %1356 : vector<16x32xf32>
    %1358 = arith.mulf %1357, %1357 : vector<16x32xf32>
    %cst_521 = arith.constant dense<0.000000e+00> : vector<16xf32>
    %1359 = vector.multi_reduction <add>, %1358, %cst_521 [1] : vector<16x32xf32> to vector<16xf32>
    %1360 = vector.shape_cast %1359 : vector<16xf32> to vector<16x1xf32>
    %cst_522 = arith.constant 3.200000e+01 : f32
    %1361 = vector.broadcast %cst_522 : f32 to vector<16x1xf32>
    %1362 = arith.divf %1360, %1361 : vector<16x1xf32>
    %1363 = vector.broadcast %1355 : vector<16x1xf32> to vector<16x32xf32>
    %1364 = arith.subf %1347, %1363 : vector<16x32xf32>
    %cst_523 = arith.constant 9.99999974E-6 : f32
    %1365 = vector.broadcast %cst_523 : f32 to vector<16x1xf32>
    %1366 = arith.addf %1362, %1365 : vector<16x1xf32>
    %1367 = math.rsqrt %1366 : vector<16x1xf32>
    %1368 = vector.broadcast %1367 : vector<16x1xf32> to vector<16x32xf32>
    %1369 = arith.mulf %1364, %1368 : vector<16x32xf32>
    %1370 = vector.broadcast %1349 : vector<1x32xf32> to vector<16x32xf32>
    %1371 = arith.mulf %1369, %1370 : vector<16x32xf32>
    %1372 = vector.broadcast %1351 : vector<1x32xf32> to vector<16x32xf32>
    %1373 = arith.addf %1371, %1372 : vector<16x32xf32>
    %1374 = arith.truncf %1373 : vector<16x32xf32> to vector<16x32xbf16>
    %c1_524 = arith.constant 1 : index
    %c0_525 = arith.constant 0 : index
    %c0_526 = arith.constant 0 : index
    %1375 = vector.load %arg25[%c1_524, %c0_525, %c0_526] : memref<2x32x32xf32, #tpu.memory_space<vmem>>, vector<1x32x32xf32>
    %1376 = vector.shape_cast %1375 : vector<1x32x32xf32> to vector<32x32xf32>
    %1377 = arith.truncf %1376 : vector<32x32xf32> to vector<32x32xbf16>
    %cst_527 = arith.constant dense<0.000000e+00> : vector<16x32xf32>
    %1378 = tpu.matmul %1374, %1377, %cst_527 {dimension_numbers = #tpu.dot_dimension_numbers<[1], [0], [0], [1], [0, 0, 1, 1], [], []>} : vector<16x32xbf16>, vector<32x32xbf16>, vector<16x32xf32> -> vector<16x32xf32>
    %c1_528 = arith.constant 1 : index
    %c0_529 = arith.constant 0 : index
    %c0_530 = arith.constant 0 : index
    %1379 = vector.load %arg26[%c1_528, %c0_529, %c0_530] : memref<2x1x32xf32, #tpu.memory_space<vmem>>, vector<1x1x32xf32>
    %1380 = vector.shape_cast %1379 : vector<1x1x32xf32> to vector<1x32xf32>
    %1381 = vector.broadcast %1380 : vector<1x32xf32> to vector<16x32xf32>
    %1382 = arith.addf %1378, %1381 : vector<16x32xf32>
    %1383 = arith.truncf %839 : vector<16x32xf32> to vector<16x32xbf16>
    %c1_531 = arith.constant 1 : index
    %c0_532 = arith.constant 0 : index
    %c0_533 = arith.constant 0 : index
    %1384 = vector.load %arg27[%c1_531, %c0_532, %c0_533] : memref<2x32x64xf32, #tpu.memory_space<vmem>>, vector<1x32x64xf32>
    %1385 = vector.shape_cast %1384 : vector<1x32x64xf32> to vector<32x64xf32>
    %1386 = arith.truncf %1385 : vector<32x64xf32> to vector<32x64xbf16>
    %cst_534 = arith.constant dense<0.000000e+00> : vector<16x64xf32>
    %1387 = tpu.matmul %1383, %1386, %cst_534 {dimension_numbers = #tpu.dot_dimension_numbers<[1], [0], [0], [1], [0, 0, 1, 1], [], []>} : vector<16x32xbf16>, vector<32x64xbf16>, vector<16x64xf32> -> vector<16x64xf32>
    %c1_535 = arith.constant 1 : index
    %c0_536 = arith.constant 0 : index
    %c0_537 = arith.constant 0 : index
    %1388 = vector.load %arg28[%c1_535, %c0_536, %c0_537] : memref<2x1x64xf32, #tpu.memory_space<vmem>>, vector<1x1x64xf32>
    %1389 = vector.shape_cast %1388 : vector<1x1x64xf32> to vector<1x64xf32>
    %1390 = vector.broadcast %1389 : vector<1x64xf32> to vector<16x64xf32>
    %1391 = arith.addf %1387, %1390 : vector<16x64xf32>
    %1392 = vector.shape_cast %1382 : vector<16x32xf32> to vector<2x8x32xf32>
    %1393 = vector.extract_strided_slice %1391 {offsets = [0, 0], sizes = [16, 32], strides = [1, 1]} : vector<16x64xf32> to vector<16x32xf32>
    %1394 = vector.shape_cast %1393 : vector<16x32xf32> to vector<2x8x32xf32>
    %1395 = vector.extract_strided_slice %1391 {offsets = [0, 32], sizes = [16, 32], strides = [1, 1]} : vector<16x64xf32> to vector<16x32xf32>
    %1396 = vector.shape_cast %1395 : vector<16x32xf32> to vector<2x8x32xf32>
    %c1_538 = arith.constant 1 : index
    %c0_539 = arith.constant 0 : index
    %c0_540 = arith.constant 0 : index
    %1397 = vector.load %arg29[%c1_538, %c0_539, %c0_540] : memref<2x32x32xf32, #tpu.memory_space<vmem>>, vector<1x32x32xf32>
    %1398 = vector.shape_cast %1397 : vector<1x32x32xf32> to vector<32x32xf32>
    %c1_541 = arith.constant 1 : index
    %c0_542 = arith.constant 0 : index
    %c0_543 = arith.constant 0 : index
    %1399 = vector.load %arg30[%c1_541, %c0_542, %c0_543] : memref<2x1x32xf32, #tpu.memory_space<vmem>>, vector<1x1x32xf32>
    %1400 = vector.shape_cast %1399 : vector<1x1x32xf32> to vector<1x32xf32>
    %cst_544 = arith.constant 0.000000e+00 : f32
    %1401 = vector.broadcast %cst_544 : f32 to vector<16x32xf32>
    %1402 = vector.extract_strided_slice %1392 {offsets = [0, 0, 0], sizes = [2, 8, 8], strides = [1, 1, 1]} : vector<2x8x32xf32> to vector<2x8x8xf32>
    %1403 = arith.truncf %1402 : vector<2x8x8xf32> to vector<2x8x8xbf16>
    %1404 = vector.extract_strided_slice %1394 {offsets = [0, 0, 0], sizes = [2, 8, 8], strides = [1, 1, 1]} : vector<2x8x32xf32> to vector<2x8x8xf32>
    %1405 = arith.truncf %1404 : vector<2x8x8xf32> to vector<2x8x8xbf16>
    "tpu.trace_start"() <{level = 10 : i32, message = "bqd,bkd->bqk"}> : () -> ()
    %cst_545 = arith.constant dense<0.000000e+00> : vector<2x8x8xf32>
    %1406 = tpu.matmul %1403, %1405, %cst_545 {dimension_numbers = #tpu.dot_dimension_numbers<[2], [2], [1], [1], [0, 0, 0, 1, 1, 1], [0], [0]>} : vector<2x8x8xbf16>, vector<2x8x8xbf16>, vector<2x8x8xf32> -> vector<2x8x8xf32>
    "tpu.trace_stop"() : () -> ()
    %1407 = vector.broadcast %841 : vector<2x1x8xf32> to vector<2x8x8xf32>
    %1408 = arith.addf %1406, %1407 : vector<2x8x8xf32>
    %cst_546 = arith.constant dense<0xFF800000> : vector<2x8xf32>
    %1409 = vector.multi_reduction <maximumf>, %1408, %cst_546 [2] : vector<2x8x8xf32> to vector<2x8xf32>
    %1410 = vector.shape_cast %1409 : vector<2x8xf32> to vector<2x8x1xf32>
    %1411 = vector.broadcast %1410 : vector<2x8x1xf32> to vector<2x8x8xf32>
    %1412 = arith.subf %1408, %1411 : vector<2x8x8xf32>
    %1413 = math.exp %1412 : vector<2x8x8xf32>
    %cst_547 = arith.constant dense<0.000000e+00> : vector<2x8xf32>
    %1414 = vector.multi_reduction <add>, %1413, %cst_547 [2] : vector<2x8x8xf32> to vector<2x8xf32>
    %1415 = vector.shape_cast %1414 : vector<2x8xf32> to vector<2x8x1xf32>
    %1416 = tpu.reciprocal %1415 {approx = true} : vector<2x8x1xf32> -> vector<2x8x1xf32>
    %1417 = vector.broadcast %1416 : vector<2x8x1xf32> to vector<2x8x8xf32>
    %1418 = arith.mulf %1413, %1417 : vector<2x8x8xf32>
    %1419 = arith.truncf %1418 : vector<2x8x8xf32> to vector<2x8x8xbf16>
    %1420 = vector.extract_strided_slice %1396 {offsets = [0, 0, 0], sizes = [2, 8, 8], strides = [1, 1, 1]} : vector<2x8x32xf32> to vector<2x8x8xf32>
    %1421 = arith.truncf %1420 : vector<2x8x8xf32> to vector<2x8x8xbf16>
    "tpu.trace_start"() <{level = 10 : i32, message = "bqk,bkd->bqd"}> : () -> ()
    %cst_548 = arith.constant dense<0.000000e+00> : vector<2x8x8xf32>
    %1422 = tpu.matmul %1419, %1421, %cst_548 {dimension_numbers = #tpu.dot_dimension_numbers<[2], [1], [1], [2], [0, 0, 0, 1, 1, 2], [0], [0]>} : vector<2x8x8xbf16>, vector<2x8x8xbf16>, vector<2x8x8xf32> -> vector<2x8x8xf32>
    "tpu.trace_stop"() : () -> ()
    %1423 = vector.shape_cast %1422 : vector<2x8x8xf32> to vector<16x8xf32>
    %1424 = arith.truncf %1423 : vector<16x8xf32> to vector<16x8xbf16>
    %1425 = vector.extract_strided_slice %1398 {offsets = [0, 0], sizes = [8, 32], strides = [1, 1]} : vector<32x32xf32> to vector<8x32xf32>
    %1426 = arith.truncf %1425 : vector<8x32xf32> to vector<8x32xbf16>
    %cst_549 = arith.constant dense<0.000000e+00> : vector<16x32xf32>
    %1427 = tpu.matmul %1424, %1426, %cst_549 {dimension_numbers = #tpu.dot_dimension_numbers<[1], [0], [0], [1], [0, 0, 1, 1], [], []>} : vector<16x8xbf16>, vector<8x32xbf16>, vector<16x32xf32> -> vector<16x32xf32>
    %1428 = arith.addf %1401, %1427 : vector<16x32xf32>
    %1429 = vector.extract_strided_slice %1392 {offsets = [0, 0, 8], sizes = [2, 8, 8], strides = [1, 1, 1]} : vector<2x8x32xf32> to vector<2x8x8xf32>
    %1430 = arith.truncf %1429 : vector<2x8x8xf32> to vector<2x8x8xbf16>
    %1431 = vector.extract_strided_slice %1394 {offsets = [0, 0, 8], sizes = [2, 8, 8], strides = [1, 1, 1]} : vector<2x8x32xf32> to vector<2x8x8xf32>
    %1432 = arith.truncf %1431 : vector<2x8x8xf32> to vector<2x8x8xbf16>
    "tpu.trace_start"() <{level = 10 : i32, message = "bqd,bkd->bqk"}> : () -> ()
    %cst_550 = arith.constant dense<0.000000e+00> : vector<2x8x8xf32>
    %1433 = tpu.matmul %1430, %1432, %cst_550 {dimension_numbers = #tpu.dot_dimension_numbers<[2], [2], [1], [1], [0, 0, 0, 1, 1, 1], [0], [0]>} : vector<2x8x8xbf16>, vector<2x8x8xbf16>, vector<2x8x8xf32> -> vector<2x8x8xf32>
    "tpu.trace_stop"() : () -> ()
    %1434 = vector.broadcast %841 : vector<2x1x8xf32> to vector<2x8x8xf32>
    %1435 = arith.addf %1433, %1434 : vector<2x8x8xf32>
    %cst_551 = arith.constant dense<0xFF800000> : vector<2x8xf32>
    %1436 = vector.multi_reduction <maximumf>, %1435, %cst_551 [2] : vector<2x8x8xf32> to vector<2x8xf32>
    %1437 = vector.shape_cast %1436 : vector<2x8xf32> to vector<2x8x1xf32>
    %1438 = vector.broadcast %1437 : vector<2x8x1xf32> to vector<2x8x8xf32>
    %1439 = arith.subf %1435, %1438 : vector<2x8x8xf32>
    %1440 = math.exp %1439 : vector<2x8x8xf32>
    %cst_552 = arith.constant dense<0.000000e+00> : vector<2x8xf32>
    %1441 = vector.multi_reduction <add>, %1440, %cst_552 [2] : vector<2x8x8xf32> to vector<2x8xf32>
    %1442 = vector.shape_cast %1441 : vector<2x8xf32> to vector<2x8x1xf32>
    %1443 = tpu.reciprocal %1442 {approx = true} : vector<2x8x1xf32> -> vector<2x8x1xf32>
    %1444 = vector.broadcast %1443 : vector<2x8x1xf32> to vector<2x8x8xf32>
    %1445 = arith.mulf %1440, %1444 : vector<2x8x8xf32>
    %1446 = arith.truncf %1445 : vector<2x8x8xf32> to vector<2x8x8xbf16>
    %1447 = vector.extract_strided_slice %1396 {offsets = [0, 0, 8], sizes = [2, 8, 8], strides = [1, 1, 1]} : vector<2x8x32xf32> to vector<2x8x8xf32>
    %1448 = arith.truncf %1447 : vector<2x8x8xf32> to vector<2x8x8xbf16>
    "tpu.trace_start"() <{level = 10 : i32, message = "bqk,bkd->bqd"}> : () -> ()
    %cst_553 = arith.constant dense<0.000000e+00> : vector<2x8x8xf32>
    %1449 = tpu.matmul %1446, %1448, %cst_553 {dimension_numbers = #tpu.dot_dimension_numbers<[2], [1], [1], [2], [0, 0, 0, 1, 1, 2], [0], [0]>} : vector<2x8x8xbf16>, vector<2x8x8xbf16>, vector<2x8x8xf32> -> vector<2x8x8xf32>
    "tpu.trace_stop"() : () -> ()
    %1450 = vector.shape_cast %1449 : vector<2x8x8xf32> to vector<16x8xf32>
    %1451 = arith.truncf %1450 : vector<16x8xf32> to vector<16x8xbf16>
    %1452 = vector.extract_strided_slice %1398 {offsets = [8, 0], sizes = [8, 32], strides = [1, 1]} : vector<32x32xf32> to vector<8x32xf32>
    %1453 = arith.truncf %1452 : vector<8x32xf32> to vector<8x32xbf16>
    %cst_554 = arith.constant dense<0.000000e+00> : vector<16x32xf32>
    %1454 = tpu.matmul %1451, %1453, %cst_554 {dimension_numbers = #tpu.dot_dimension_numbers<[1], [0], [0], [1], [0, 0, 1, 1], [], []>} : vector<16x8xbf16>, vector<8x32xbf16>, vector<16x32xf32> -> vector<16x32xf32>
    %1455 = arith.addf %1428, %1454 : vector<16x32xf32>
    %1456 = vector.extract_strided_slice %1392 {offsets = [0, 0, 16], sizes = [2, 8, 8], strides = [1, 1, 1]} : vector<2x8x32xf32> to vector<2x8x8xf32>
    %1457 = arith.truncf %1456 : vector<2x8x8xf32> to vector<2x8x8xbf16>
    %1458 = vector.extract_strided_slice %1394 {offsets = [0, 0, 16], sizes = [2, 8, 8], strides = [1, 1, 1]} : vector<2x8x32xf32> to vector<2x8x8xf32>
    %1459 = arith.truncf %1458 : vector<2x8x8xf32> to vector<2x8x8xbf16>
    "tpu.trace_start"() <{level = 10 : i32, message = "bqd,bkd->bqk"}> : () -> ()
    %cst_555 = arith.constant dense<0.000000e+00> : vector<2x8x8xf32>
    %1460 = tpu.matmul %1457, %1459, %cst_555 {dimension_numbers = #tpu.dot_dimension_numbers<[2], [2], [1], [1], [0, 0, 0, 1, 1, 1], [0], [0]>} : vector<2x8x8xbf16>, vector<2x8x8xbf16>, vector<2x8x8xf32> -> vector<2x8x8xf32>
    "tpu.trace_stop"() : () -> ()
    %1461 = vector.broadcast %841 : vector<2x1x8xf32> to vector<2x8x8xf32>
    %1462 = arith.addf %1460, %1461 : vector<2x8x8xf32>
    %cst_556 = arith.constant dense<0xFF800000> : vector<2x8xf32>
    %1463 = vector.multi_reduction <maximumf>, %1462, %cst_556 [2] : vector<2x8x8xf32> to vector<2x8xf32>
    %1464 = vector.shape_cast %1463 : vector<2x8xf32> to vector<2x8x1xf32>
    %1465 = vector.broadcast %1464 : vector<2x8x1xf32> to vector<2x8x8xf32>
    %1466 = arith.subf %1462, %1465 : vector<2x8x8xf32>
    %1467 = math.exp %1466 : vector<2x8x8xf32>
    %cst_557 = arith.constant dense<0.000000e+00> : vector<2x8xf32>
    %1468 = vector.multi_reduction <add>, %1467, %cst_557 [2] : vector<2x8x8xf32> to vector<2x8xf32>
    %1469 = vector.shape_cast %1468 : vector<2x8xf32> to vector<2x8x1xf32>
    %1470 = tpu.reciprocal %1469 {approx = true} : vector<2x8x1xf32> -> vector<2x8x1xf32>
    %1471 = vector.broadcast %1470 : vector<2x8x1xf32> to vector<2x8x8xf32>
    %1472 = arith.mulf %1467, %1471 : vector<2x8x8xf32>
    %1473 = arith.truncf %1472 : vector<2x8x8xf32> to vector<2x8x8xbf16>
    %1474 = vector.extract_strided_slice %1396 {offsets = [0, 0, 16], sizes = [2, 8, 8], strides = [1, 1, 1]} : vector<2x8x32xf32> to vector<2x8x8xf32>
    %1475 = arith.truncf %1474 : vector<2x8x8xf32> to vector<2x8x8xbf16>
    "tpu.trace_start"() <{level = 10 : i32, message = "bqk,bkd->bqd"}> : () -> ()
    %cst_558 = arith.constant dense<0.000000e+00> : vector<2x8x8xf32>
    %1476 = tpu.matmul %1473, %1475, %cst_558 {dimension_numbers = #tpu.dot_dimension_numbers<[2], [1], [1], [2], [0, 0, 0, 1, 1, 2], [0], [0]>} : vector<2x8x8xbf16>, vector<2x8x8xbf16>, vector<2x8x8xf32> -> vector<2x8x8xf32>
    "tpu.trace_stop"() : () -> ()
    %1477 = vector.shape_cast %1476 : vector<2x8x8xf32> to vector<16x8xf32>
    %1478 = arith.truncf %1477 : vector<16x8xf32> to vector<16x8xbf16>
    %1479 = vector.extract_strided_slice %1398 {offsets = [16, 0], sizes = [8, 32], strides = [1, 1]} : vector<32x32xf32> to vector<8x32xf32>
    %1480 = arith.truncf %1479 : vector<8x32xf32> to vector<8x32xbf16>
    %cst_559 = arith.constant dense<0.000000e+00> : vector<16x32xf32>
    %1481 = tpu.matmul %1478, %1480, %cst_559 {dimension_numbers = #tpu.dot_dimension_numbers<[1], [0], [0], [1], [0, 0, 1, 1], [], []>} : vector<16x8xbf16>, vector<8x32xbf16>, vector<16x32xf32> -> vector<16x32xf32>
    %1482 = arith.addf %1455, %1481 : vector<16x32xf32>
    %1483 = vector.extract_strided_slice %1392 {offsets = [0, 0, 24], sizes = [2, 8, 8], strides = [1, 1, 1]} : vector<2x8x32xf32> to vector<2x8x8xf32>
    %1484 = arith.truncf %1483 : vector<2x8x8xf32> to vector<2x8x8xbf16>
    %1485 = vector.extract_strided_slice %1394 {offsets = [0, 0, 24], sizes = [2, 8, 8], strides = [1, 1, 1]} : vector<2x8x32xf32> to vector<2x8x8xf32>
    %1486 = arith.truncf %1485 : vector<2x8x8xf32> to vector<2x8x8xbf16>
    "tpu.trace_start"() <{level = 10 : i32, message = "bqd,bkd->bqk"}> : () -> ()
    %cst_560 = arith.constant dense<0.000000e+00> : vector<2x8x8xf32>
    %1487 = tpu.matmul %1484, %1486, %cst_560 {dimension_numbers = #tpu.dot_dimension_numbers<[2], [2], [1], [1], [0, 0, 0, 1, 1, 1], [0], [0]>} : vector<2x8x8xbf16>, vector<2x8x8xbf16>, vector<2x8x8xf32> -> vector<2x8x8xf32>
    "tpu.trace_stop"() : () -> ()
    %1488 = vector.broadcast %841 : vector<2x1x8xf32> to vector<2x8x8xf32>
    %1489 = arith.addf %1487, %1488 : vector<2x8x8xf32>
    %cst_561 = arith.constant dense<0xFF800000> : vector<2x8xf32>
    %1490 = vector.multi_reduction <maximumf>, %1489, %cst_561 [2] : vector<2x8x8xf32> to vector<2x8xf32>
    %1491 = vector.shape_cast %1490 : vector<2x8xf32> to vector<2x8x1xf32>
    %1492 = vector.broadcast %1491 : vector<2x8x1xf32> to vector<2x8x8xf32>
    %1493 = arith.subf %1489, %1492 : vector<2x8x8xf32>
    %1494 = math.exp %1493 : vector<2x8x8xf32>
    %cst_562 = arith.constant dense<0.000000e+00> : vector<2x8xf32>
    %1495 = vector.multi_reduction <add>, %1494, %cst_562 [2] : vector<2x8x8xf32> to vector<2x8xf32>
    %1496 = vector.shape_cast %1495 : vector<2x8xf32> to vector<2x8x1xf32>
    %1497 = tpu.reciprocal %1496 {approx = true} : vector<2x8x1xf32> -> vector<2x8x1xf32>
    %1498 = vector.broadcast %1497 : vector<2x8x1xf32> to vector<2x8x8xf32>
    %1499 = arith.mulf %1494, %1498 : vector<2x8x8xf32>
    %1500 = arith.truncf %1499 : vector<2x8x8xf32> to vector<2x8x8xbf16>
    %1501 = vector.extract_strided_slice %1396 {offsets = [0, 0, 24], sizes = [2, 8, 8], strides = [1, 1, 1]} : vector<2x8x32xf32> to vector<2x8x8xf32>
    %1502 = arith.truncf %1501 : vector<2x8x8xf32> to vector<2x8x8xbf16>
    "tpu.trace_start"() <{level = 10 : i32, message = "bqk,bkd->bqd"}> : () -> ()
    %cst_563 = arith.constant dense<0.000000e+00> : vector<2x8x8xf32>
    %1503 = tpu.matmul %1500, %1502, %cst_563 {dimension_numbers = #tpu.dot_dimension_numbers<[2], [1], [1], [2], [0, 0, 0, 1, 1, 2], [0], [0]>} : vector<2x8x8xbf16>, vector<2x8x8xbf16>, vector<2x8x8xf32> -> vector<2x8x8xf32>
    "tpu.trace_stop"() : () -> ()
    %1504 = vector.shape_cast %1503 : vector<2x8x8xf32> to vector<16x8xf32>
    %1505 = arith.truncf %1504 : vector<16x8xf32> to vector<16x8xbf16>
    %1506 = vector.extract_strided_slice %1398 {offsets = [24, 0], sizes = [8, 32], strides = [1, 1]} : vector<32x32xf32> to vector<8x32xf32>
    %1507 = arith.truncf %1506 : vector<8x32xf32> to vector<8x32xbf16>
    %cst_564 = arith.constant dense<0.000000e+00> : vector<16x32xf32>
    %1508 = tpu.matmul %1505, %1507, %cst_564 {dimension_numbers = #tpu.dot_dimension_numbers<[1], [0], [0], [1], [0, 0, 1, 1], [], []>} : vector<16x8xbf16>, vector<8x32xbf16>, vector<16x32xf32> -> vector<16x32xf32>
    %1509 = arith.addf %1482, %1508 : vector<16x32xf32>
    %1510 = vector.broadcast %1400 : vector<1x32xf32> to vector<16x32xf32>
    %1511 = arith.addf %1509, %1510 : vector<16x32xf32>
    %1512 = arith.addf %1373, %1511 : vector<16x32xf32>
    %c1_565 = arith.constant 1 : index
    %c0_566 = arith.constant 0 : index
    %c0_567 = arith.constant 0 : index
    %1513 = vector.load %arg31[%c1_565, %c0_566, %c0_567] : memref<2x1x32xf32, #tpu.memory_space<vmem>>, vector<1x1x32xf32>
    %1514 = vector.shape_cast %1513 : vector<1x1x32xf32> to vector<1x32xf32>
    %c1_568 = arith.constant 1 : index
    %c0_569 = arith.constant 0 : index
    %c0_570 = arith.constant 0 : index
    %1515 = vector.load %arg32[%c1_568, %c0_569, %c0_570] : memref<2x1x32xf32, #tpu.memory_space<vmem>>, vector<1x1x32xf32>
    %1516 = vector.shape_cast %1515 : vector<1x1x32xf32> to vector<1x32xf32>
    %cst_571 = arith.constant dense<0.000000e+00> : vector<16xf32>
    %1517 = vector.multi_reduction <add>, %1512, %cst_571 [1] : vector<16x32xf32> to vector<16xf32>
    %1518 = vector.shape_cast %1517 : vector<16xf32> to vector<16x1xf32>
    %cst_572 = arith.constant 3.200000e+01 : f32
    %1519 = vector.broadcast %cst_572 : f32 to vector<16x1xf32>
    %1520 = arith.divf %1518, %1519 : vector<16x1xf32>
    %1521 = vector.broadcast %1520 : vector<16x1xf32> to vector<16x32xf32>
    %1522 = arith.subf %1512, %1521 : vector<16x32xf32>
    %1523 = arith.mulf %1522, %1522 : vector<16x32xf32>
    %cst_573 = arith.constant dense<0.000000e+00> : vector<16xf32>
    %1524 = vector.multi_reduction <add>, %1523, %cst_573 [1] : vector<16x32xf32> to vector<16xf32>
    %1525 = vector.shape_cast %1524 : vector<16xf32> to vector<16x1xf32>
    %cst_574 = arith.constant 3.200000e+01 : f32
    %1526 = vector.broadcast %cst_574 : f32 to vector<16x1xf32>
    %1527 = arith.divf %1525, %1526 : vector<16x1xf32>
    %1528 = vector.broadcast %1520 : vector<16x1xf32> to vector<16x32xf32>
    %1529 = arith.subf %1512, %1528 : vector<16x32xf32>
    %cst_575 = arith.constant 9.99999974E-6 : f32
    %1530 = vector.broadcast %cst_575 : f32 to vector<16x1xf32>
    %1531 = arith.addf %1527, %1530 : vector<16x1xf32>
    %1532 = math.rsqrt %1531 : vector<16x1xf32>
    %1533 = vector.broadcast %1532 : vector<16x1xf32> to vector<16x32xf32>
    %1534 = arith.mulf %1529, %1533 : vector<16x32xf32>
    %1535 = vector.broadcast %1514 : vector<1x32xf32> to vector<16x32xf32>
    %1536 = arith.mulf %1534, %1535 : vector<16x32xf32>
    %1537 = vector.broadcast %1516 : vector<1x32xf32> to vector<16x32xf32>
    %1538 = arith.addf %1536, %1537 : vector<16x32xf32>
    %1539 = arith.truncf %1538 : vector<16x32xf32> to vector<16x32xbf16>
    %c1_576 = arith.constant 1 : index
    %c0_577 = arith.constant 0 : index
    %c0_578 = arith.constant 0 : index
    %1540 = vector.load %arg33[%c1_576, %c0_577, %c0_578] : memref<2x32x64xf32, #tpu.memory_space<vmem>>, vector<1x32x64xf32>
    %1541 = vector.shape_cast %1540 : vector<1x32x64xf32> to vector<32x64xf32>
    %1542 = arith.truncf %1541 : vector<32x64xf32> to vector<32x64xbf16>
    %cst_579 = arith.constant dense<0.000000e+00> : vector<16x64xf32>
    %1543 = tpu.matmul %1539, %1542, %cst_579 {dimension_numbers = #tpu.dot_dimension_numbers<[1], [0], [0], [1], [0, 0, 1, 1], [], []>} : vector<16x32xbf16>, vector<32x64xbf16>, vector<16x64xf32> -> vector<16x64xf32>
    %c1_580 = arith.constant 1 : index
    %c0_581 = arith.constant 0 : index
    %c0_582 = arith.constant 0 : index
    %1544 = vector.load %arg34[%c1_580, %c0_581, %c0_582] : memref<2x1x64xf32, #tpu.memory_space<vmem>>, vector<1x1x64xf32>
    %1545 = vector.shape_cast %1544 : vector<1x1x64xf32> to vector<1x64xf32>
    %1546 = vector.broadcast %1545 : vector<1x64xf32> to vector<16x64xf32>
    %1547 = arith.addf %1543, %1546 : vector<16x64xf32>
    %cst_583 = arith.constant 0.000000e+00 : f32
    %1548 = vector.broadcast %cst_583 : f32 to vector<16x64xf32>
    %1549 = arith.maximumf %1547, %1548 : vector<16x64xf32>
    %1550 = arith.truncf %1549 : vector<16x64xf32> to vector<16x64xbf16>
    %c1_584 = arith.constant 1 : index
    %c0_585 = arith.constant 0 : index
    %c0_586 = arith.constant 0 : index
    %1551 = vector.load %arg35[%c1_584, %c0_585, %c0_586] : memref<2x64x32xf32, #tpu.memory_space<vmem>>, vector<1x64x32xf32>
    %1552 = vector.shape_cast %1551 : vector<1x64x32xf32> to vector<64x32xf32>
    %1553 = arith.truncf %1552 : vector<64x32xf32> to vector<64x32xbf16>
    %cst_587 = arith.constant dense<0.000000e+00> : vector<16x32xf32>
    %1554 = tpu.matmul %1550, %1553, %cst_587 {dimension_numbers = #tpu.dot_dimension_numbers<[1], [0], [0], [1], [0, 0, 1, 1], [], []>} : vector<16x64xbf16>, vector<64x32xbf16>, vector<16x32xf32> -> vector<16x32xf32>
    %c1_588 = arith.constant 1 : index
    %c0_589 = arith.constant 0 : index
    %c0_590 = arith.constant 0 : index
    %1555 = vector.load %arg36[%c1_588, %c0_589, %c0_590] : memref<2x1x32xf32, #tpu.memory_space<vmem>>, vector<1x1x32xf32>
    %1556 = vector.shape_cast %1555 : vector<1x1x32xf32> to vector<1x32xf32>
    %1557 = vector.broadcast %1556 : vector<1x32xf32> to vector<16x32xf32>
    %1558 = arith.addf %1554, %1557 : vector<16x32xf32>
    %1559 = arith.addf %1538, %1558 : vector<16x32xf32>
    %c1_591 = arith.constant 1 : index
    %c0_592 = arith.constant 0 : index
    %c0_593 = arith.constant 0 : index
    %1560 = vector.load %arg37[%c1_591, %c0_592, %c0_593] : memref<2x1x32xf32, #tpu.memory_space<vmem>>, vector<1x1x32xf32>
    %1561 = vector.shape_cast %1560 : vector<1x1x32xf32> to vector<1x32xf32>
    %c1_594 = arith.constant 1 : index
    %c0_595 = arith.constant 0 : index
    %c0_596 = arith.constant 0 : index
    %1562 = vector.load %arg38[%c1_594, %c0_595, %c0_596] : memref<2x1x32xf32, #tpu.memory_space<vmem>>, vector<1x1x32xf32>
    %1563 = vector.shape_cast %1562 : vector<1x1x32xf32> to vector<1x32xf32>
    %cst_597 = arith.constant dense<0.000000e+00> : vector<16xf32>
    %1564 = vector.multi_reduction <add>, %1559, %cst_597 [1] : vector<16x32xf32> to vector<16xf32>
    %1565 = vector.shape_cast %1564 : vector<16xf32> to vector<16x1xf32>
    %cst_598 = arith.constant 3.200000e+01 : f32
    %1566 = vector.broadcast %cst_598 : f32 to vector<16x1xf32>
    %1567 = arith.divf %1565, %1566 : vector<16x1xf32>
    %1568 = vector.broadcast %1567 : vector<16x1xf32> to vector<16x32xf32>
    %1569 = arith.subf %1559, %1568 : vector<16x32xf32>
    %1570 = arith.mulf %1569, %1569 : vector<16x32xf32>
    %cst_599 = arith.constant dense<0.000000e+00> : vector<16xf32>
    %1571 = vector.multi_reduction <add>, %1570, %cst_599 [1] : vector<16x32xf32> to vector<16xf32>
    %1572 = vector.shape_cast %1571 : vector<16xf32> to vector<16x1xf32>
    %cst_600 = arith.constant 3.200000e+01 : f32
    %1573 = vector.broadcast %cst_600 : f32 to vector<16x1xf32>
    %1574 = arith.divf %1572, %1573 : vector<16x1xf32>
    %1575 = vector.broadcast %1567 : vector<16x1xf32> to vector<16x32xf32>
    %1576 = arith.subf %1559, %1575 : vector<16x32xf32>
    %cst_601 = arith.constant 9.99999974E-6 : f32
    %1577 = vector.broadcast %cst_601 : f32 to vector<16x1xf32>
    %1578 = arith.addf %1574, %1577 : vector<16x1xf32>
    %1579 = math.rsqrt %1578 : vector<16x1xf32>
    %1580 = vector.broadcast %1579 : vector<16x1xf32> to vector<16x32xf32>
    %1581 = arith.mulf %1576, %1580 : vector<16x32xf32>
    %1582 = vector.broadcast %1561 : vector<1x32xf32> to vector<16x32xf32>
    %1583 = arith.mulf %1581, %1582 : vector<16x32xf32>
    %1584 = vector.broadcast %1563 : vector<1x32xf32> to vector<16x32xf32>
    %1585 = arith.addf %1583, %1584 : vector<16x32xf32>
    %1586 = arith.truncf %1585 : vector<16x32xf32> to vector<16x32xbf16>
    %c0_602 = arith.constant 0 : index
    %c0_603 = arith.constant 0 : index
    %1587 = vector.load %arg42[%c0_602, %c0_603] : memref<32x128xf32, #tpu.memory_space<vmem>>, vector<32x128xf32>
    %1588 = arith.truncf %1587 : vector<32x128xf32> to vector<32x128xbf16>
    %cst_604 = arith.constant dense<0.000000e+00> : vector<16x128xf32>
    %1589 = tpu.matmul %1586, %1588, %cst_604 {dimension_numbers = #tpu.dot_dimension_numbers<[1], [0], [0], [1], [0, 0, 1, 1], [], []>} : vector<16x32xbf16>, vector<32x128xbf16>, vector<16x128xf32> -> vector<16x128xf32>
    %c0_605 = arith.constant 0 : index
    %c0_606 = arith.constant 0 : index
    %1590 = vector.load %arg43[%c0_605, %c0_606] : memref<1x128xf32, #tpu.memory_space<vmem>>, vector<1x128xf32>
    %1591 = vector.broadcast %1590 : vector<1x128xf32> to vector<16x128xf32>
    %1592 = arith.addf %1589, %1591 : vector<16x128xf32>
    %1593 = vector.shape_cast %1592 : vector<16x128xf32> to vector<2x8x128xf32>
    %c0_607 = arith.constant 0 : index
    %c0_608 = arith.constant 0 : index
    %c0_609 = arith.constant 0 : index
    %1594 = vector.load %arg44[%c0_607, %c0_608, %c0_609] : memref<2x8x128xf32, #tpu.memory_space<vmem>>, vector<2x8x128xf32>
    tpu.vector_store %arg44[%c0_607, %c0_608, %c0_609], %1593 {strides = array<i32>} : memref<2x8x128xf32, #tpu.memory_space<vmem>>, vector<2x8x128xf32>,
    return
  }
}

</mosaic_0001>

<bundles_post_ra>
// kernel: _lambda_.1
= control target key start
LH: loop header
LB: loop body
LE: loop exit
PB: predicated region body
PF: predicated region fallthrough
CT: control target
= control target key end

     0   :  { %s7125_s6 = smov 1   ;;  %s7126_s10 = smov 2   ;;  %s8897_s0 = inlined_call_operand.smem [shape: u32[45], index: -1, kind: input, shape index: {}] }
   0x1   :  { %s7193_s5 = sld [smem:[%s8897_s0]]   ;;  %s7127_s14 = smov 3  }
   0x2   :  { %s7198_s9 = sld [smem:[%s8897_s0 + %s7125_s6]]   ;;  %s7128_s18 = smov 4  }
   0x3   :  { %s7203_s13 = sld [smem:[%s8897_s0 + %s7126_s10]]   ;;  %s7129_s22 = smov 5  }
   0x4   :  { %s7208_s17 = sld [smem:[%s8897_s0 + %s7127_s14]]   ;;  %s7130_s26 = smov 6  }
   0x5   :  { %s7213_s21 = sld [smem:[%s8897_s0 + %s7128_s18]]   ;;  %s7131_s30 = smov 7  }
   0x6   :  { %s7218_s25 = sld [smem:[%s8897_s0 + %s7129_s22]]   ;;  %s7132_s4 = smov 8  }
   0x7   :  { %s7223_s29 = sld [smem:[%s8897_s0 + %s7130_s26]]   ;;  %s7133_s10 = smov 9  }
   0x8   :  { %8928 = sst [smem:[#allocation5_spill]] %s7198_s9  ;;  %s7134_s15 = smov 10  }
   0x9   :  { %8929 = sst [smem:[#allocation6_spill]] %s7203_s13  ;;  %s7135_s20 = smov 11  }
   0xa   :  { %s7228_s3 = sld [smem:[%s8897_s0 + %s7131_s30]]   ;;  %s7136_s26 = smov 12  }
   0xb   :  { %8930 = sst [smem:[#allocation7_spill]] %s7213_s21  ;;  %s7137_s1 = smov 13  }
   0xc   :  { %8931 = sst [smem:[#allocation8_spill]] %s7218_s25  ;;  %s7138_s7 = smov 14  }
   0xd   :  { %8932 = sst [smem:[#allocation9_spill]] %s7223_s29  ;;  %s7140_s22 = smov 16  }
   0xe   :  { %s7233_s8 = sld [smem:[%s8897_s0 + %s7132_s4]]   ;;  %s7141_s28 = smov 17  }
   0xf   :  { %s7238_s14 = sld [smem:[%s8897_s0 + %s7133_s10]]  }
  0x10   :  { %s7243_s19 = sld [smem:[%s8897_s0 + %s7134_s15]]   ;;  %s7139_s15 = smov 15  }
  0x11   :  { %s7248_s24 = sld [smem:[%s8897_s0 + %s7135_s20]]  }
  0x12   :  { %s7253_s30 = sld [smem:[%s8897_s0 + %s7136_s26]]  }
  0x13   :  { %s7258_s6 = sld [smem:[%s8897_s0 + %s7137_s1]]  }
  0x14   :  { %s7263_s12 = sld [smem:[%s8897_s0 + %s7138_s7]]   ;;  %s7142_s7 = smov 18  }
  0x15   :  { %s7268_s20 = sld [smem:[%s8897_s0 + %s7139_s15]]   ;;  %s7143_s15 = smov 19  }
  0x16   :  { %s7273_s27 = sld [smem:[%s8897_s0 + %s7140_s22]]   ;;  %s7144_s22 = smov 20  }
  0x17   :  { %s7278_s4 = sld [smem:[%s8897_s0 + %s7141_s28]]   ;;  %s7145_s28 = smov 21  }
  0x18   :  { %s7283_s29 = sld [smem:[%s8897_s0 + %s7142_s7]]   ;;  %s7146_s7 = smov 22  }
  0x19   :  { %s7288_s25 = sld [smem:[%s8897_s0 + %s7143_s15]]   ;;  %s7147_s15 = smov 23  }
  0x1a   :  { %s7293_s13 = sld [smem:[%s8897_s0 + %s7144_s22]]   ;;  %s7148_s22 = smov 24  }
  0x1b   :  { %s7298_s21 = sld [smem:[%s8897_s0 + %s7145_s28]]   ;;  %s7149_s28 = smov 25  }
  0x1c   :  { %s7303_s9 = sld [smem:[%s8897_s0 + %s7146_s7]]   ;;  %s7150_s7 = smov 26  }
  0x1f   :  { %8933 = sst [smem:[#allocation10_spill]] %s7288_s25 }
  0x20   :  { %8934 = sst [smem:[#allocation11_spill]] %s7293_s13 }
  0x21   :  { %8935 = sst [smem:[#allocation12_spill]] %s7298_s21 }
  0x22   :  { %8936 = sst [smem:[#allocation13_spill]] %s7303_s9 }
  0x23   :  { %s7308_s25 = sld [smem:[%s8897_s0 + %s7147_s15]]   ;;  %s7151_s15 = smov 27  }
  0x24   :  { %s7313_s13 = sld [smem:[%s8897_s0 + %s7148_s22]]   ;;  %s7152_s22 = smov 28  }
  0x25   :  { %s7318_s21 = sld [smem:[%s8897_s0 + %s7149_s28]]   ;;  %s7153_s28 = smov 29  }
  0x26   :  { %s7323_s9 = sld [smem:[%s8897_s0 + %s7150_s7]]   ;;  %s7154_s7 = smov 30  }
  0x29   :  { %8937 = sst [smem:[#allocation14_spill]] %s7308_s25 }
  0x2a   :  { %8938 = sst [smem:[#allocation15_spill]] %s7313_s13 }
  0x2b   :  { %8939 = sst [smem:[#allocation16_spill]] %s7318_s21 }
  0x2c   :  { %8940 = sst [smem:[#allocation17_spill]] %s7323_s9 }
  0x2d   :  { %s7328_s25 = sld [smem:[%s8897_s0 + %s7151_s15]]   ;;  %s7155_s15 = smov 31  }
  0x2e   :  { %s7333_s13 = sld [smem:[%s8897_s0 + %s7152_s22]]   ;;  %s7156_s22 = smov 32  }
  0x2f   :  { %s7338_s21 = sld [smem:[%s8897_s0 + %s7153_s28]]   ;;  %s7157_s28 = smov 33  }
  0x30   :  { %s7343_s9 = sld [smem:[%s8897_s0 + %s7154_s7]]   ;;  %s7158_s7 = smov 34  }
  0x33   :  { %8941 = sst [smem:[#allocation18_spill]] %s7328_s25 }
  0x34   :  { %8942 = sst [smem:[#allocation19_spill]] %s7333_s13 }
  0x35   :  { %8943 = sst [smem:[#allocation20_spill]] %s7338_s21 }
  0x36   :  { %8944 = sst [smem:[#allocation21_spill]] %s7343_s9 }
  0x37   :  { %s7348_s25 = sld [smem:[%s8897_s0 + %s7155_s15]]   ;;  %s7159_s15 = smov 35  }
  0x38   :  { %s7353_s13 = sld [smem:[%s8897_s0 + %s7156_s22]]   ;;  %s7160_s22 = smov 36  }
  0x39   :  { %s7358_s21 = sld [smem:[%s8897_s0 + %s7157_s28]]   ;;  %s7161_s28 = smov 37  }
  0x3a   :  { %s7363_s9 = sld [smem:[%s8897_s0 + %s7158_s7]]   ;;  %s7162_s7 = smov 38  }
  0x3d   :  { %8945 = sst [smem:[#allocation22_spill]] %s7348_s25 }
  0x3e   :  { %8946 = sst [smem:[#allocation23_spill]] %s7353_s13 }
  0x3f   :  { %8947 = sst [smem:[#allocation24_spill]] %s7358_s21 }
  0x40   :  { %8948 = sst [smem:[#allocation25_spill]] %s7363_s9 }
  0x41   :  { %s7368_s25 = sld [smem:[%s8897_s0 + %s7159_s15]]   ;;  %s7163_s15 = smov 39  }
  0x42   :  { %s7373_s13 = sld [smem:[%s8897_s0 + %s7160_s22]]   ;;  %s7164_s22 = smov 40  }
  0x43   :  { %s7378_s21 = sld [smem:[%s8897_s0 + %s7161_s28]]   ;;  %s7165_s28 = smov 41  }
  0x44   :  { %s7383_s9 = sld [smem:[%s8897_s0 + %s7162_s7]]   ;;  %s7166_s7 = smov 42  }
  0x47   :  { %8949 = sst [smem:[#allocation26_spill]] %s7368_s25 }
  0x48   :  { %8950 = sst [smem:[#allocation27_spill]] %s7373_s13 }
  0x49   :  { %8951 = sst [smem:[#allocation28_spill]] %s7378_s21 }
  0x4a   :  { %8952 = sst [smem:[#allocation29_spill]] %s7383_s9 }
  0x4b   :  { %s7388_s25 = sld [smem:[%s8897_s0 + %s7163_s15]]   ;;  %s7167_s15 = smov 43  }
  0x4c   :  { %s7393_s13 = sld [smem:[%s8897_s0 + %s7164_s22]]   ;;  %s7168_s22 = smov 44  }
  0x4d   :  { %s7398_s21 = sld [smem:[%s8897_s0 + %s7165_s28]]  }
  0x4e   :  { %s7403_s9 = sld [smem:[%s8897_s0 + %s7166_s7]]  }
  0x51   :  { %8953 = sst [smem:[#allocation30_spill]] %s7388_s25 }
  0x52   :  { %8954 = sst [smem:[#allocation31_spill]] %s7393_s13 }
  0x53   :  { %s7408_s25 = sld [smem:[%s8897_s0 + %s7167_s15]]  }
  0x54   :  { %s7413_s13 = sld [smem:[%s8897_s0 + %s7168_s22]]  }
  0x55   :  { %v192_v0 = vld [vmem:[%s7228_s3 + $0x10] sm:$0xff]  ;;  %v193_v1 = vld [vmem:[%s7228_s3 + $0x18] sm:$0xff]  ;;  %v190_v2 = vld [vmem:[%s7228_s3] sm:$0xff]  ;;  %vm200_vm0 = vcmask 261120  }
  0x56   :  { %v195_v3 = vpack.c.bf16 %v193_v1, %v192_v0  ;;  %v191_v4 = vld [vmem:[%s7228_s3 + $0x8] sm:$0xff]  ;;  %v7420_v5 = vld [vmem:[%s7193_s5] sm:$0xff] }
  0x57   :  { %v7423_v6 = vld [vmem:[%s7193_s5 + $0x8] sm:$0xff]  ;;  %v194_v7 = vpack.c.bf16 %v191_v4, %v190_v2 }
  0x58   :  { %210 = vmatpush.bf16.msra.mxu0 %v195_v3  ;;  %v189_v8 = vpack.c.bf16 %v7423_v6, %v7420_v5 }
  0x5c   :  { %211 = vmatpush.bf16.msra.mxu0 %v194_v7 }
  0x5f   :  { %6351 = vmatmul.msk.bf16.vlgmr.msra.gmra.mxu0 %vm200_vm0, %v189_v8 }
  0x60   :  { %94 = vsyncpa [#allocation3], 0  ;;  %v6725_v9 = vld [vmem:[%s7233_s8] ss:$0 sm:$0xff]  ;;  %s7169_s0 = smov 96   ;;  %s7170_s5 = smov 88  }
  0x61   :  { %s7171_s28 = smov 120   ;;  %s7172_s1 = smov 56   ;;  %vm234_vm1 = vcmask 64512   ;;  %vm307_vm2 = vcmask 1043456   ;;  %v186_v32 = vld [vmem:[%s7208_s17] sm:$0x3] }
  0x62   :  { %v7457_v33 = vperm.slane %v186_v32, 0  ;;  %v188_v40 = vrot.slane %v186_v32, 1  ;;  %s7173_s17 = smov 80   ;;  %s7174_s2 = smov 64   ;;  %vm890_vm10 = vcmask 523264  }
  0x63   :  { %s7175_s7 = smov 112   ;;  %s7176_s10 = smov 48  }
  0x64   :  { %v7463_v43 = vperm.slane %v188_v40, 0  ;;  %s8926_s11 = smov 72   ;;  %s8924_s15 = smov 104  }
  0x65   :  { %s8922_s16 = smov 40   ;;  %s8955_s18 = sld [smem:[#allocation5_spill]] }
  0x66   :  { %s8956_s22 = sld [smem:[#allocation7_spill]] }
  0x67   :  { %s8970_s23 = sld [smem:[#allocation17_spill]] }
  0x68   :  { %s8971_s26 = sld [smem:[#allocation9_spill]] }
  0xdc   :  { %v213_v10 = vpop.f32.mrf.mxu0 }
  0xdd   :  { %v214_v11 = vadd.f32 %v6725_v9, %v213_v10 }
  0xdf   :  { %v223_v12 = vpack.c.bf16 %v214_v11, %v214_v11 }
  0xe1   :  { %v230_v13 = vunpack.c.l.b16 %v223_v12 }
  0xe3   :  { %v7429_v14 = vpack.c.b16 %v230_v13, %v230_v13 }
  0xe4   :  { %v215_v15 = vpop.f32.mrf.mxu0 }
  0xe5   :  { %v216_v16 = vadd.f32 %v6725_v9, %v215_v15  ;;  %232 = vrot.lane.b32.xlu1 %v7429_v14, %s7169_s0  ;;  %349 = vrot.lane.b32.xlu0 %v7429_v14, %s7170_s5 }
  0xe7   :  { %v224_v17 = vpack.c.bf16 %v216_v16, %v216_v16 }
  0xe9   :  { %v255_v18 = vunpack.c.l.b16 %v224_v17 }
  0xeb   :  { %v7435_v19 = vpack.c.b16 %v255_v18, %v255_v18 }
  0xed   :  { %372 = vrot.lane.b32.xlu2 %v7435_v19, %s7170_s5  ;;  %257 = vrot.lane.b32.xlu1 %v7435_v19, %s7169_s0 }
  0xee   :  { %347 = vrot.lane.b32.xlu0 %v7429_v14, %s7171_s28 }
  0xf5   :  { %370 = vrot.lane.b32.xlu2 %v7435_v19, %s7171_s28 }
  0xfd   :  { %417 = vrot.lane.b32.xlu2 %v7429_v14, %s7172_s1 }
 0x147   :  { %v373_v20 = vpop.permute.xlu2 %372 }
 0x148   :  { %v378_v26 = vsel %vm234_vm1, %v373_v20, 0 }
 0x14f   :  { %v371_v21 = vpop.permute.xlu2 %370 }
 0x157   :  { %v233_v22 = vpop.permute.xlu1 %232  ;;  %v350_v23 = vpop.permute.xlu0 %349 }
 0x158   :  { %v239_v24 = vsel %vm234_vm1, %v233_v22, 0  ;;  %v355_v25 = vsel %vm234_vm1, %v350_v23, 0  ;;  %v418_v27 = vpop.permute.xlu2 %417 }
 0x159   :  { %248 = vmatpush.bf16.xpose.msra.mxu1 %v239_v24  ;;  %364 = vmatpush.bf16.xpose.msrb.mxu0 %v355_v25  ;;  %v423_v31 = vsel %vm307_vm2, %v418_v27, 0 }
 0x15f   :  { %v258_v28 = vpop.permute.xlu1 %257 }
 0x160   :  { %v348_v29 = vpop.permute.xlu0 %347  ;;  %6352 = vmatmul.msk.bf16.vlgmr.msra.gmra.mxu1 %vm234_vm1, %v223_v12  ;;  %v263_v30 = vsel %vm234_vm1, %v258_v28, 0 }
 0x161   :  { %387 = vmatpush.bf16.xpose.msrb.mxu1 %v378_v26  ;;  %6356 = vmatmul.msk.bf16.vlgmr.msrb.gmra.mxu0 %vm234_vm1, %v348_v29 }
 0x162   :  { %272 = vmatpush.bf16.xpose.msra.mxu2 %v263_v30 }
 0x169   :  { %6353 = vmatmul.msk.bf16.vlgmr.msra.gmra.mxu2 %vm234_vm1, %v224_v17  ;;  %v219_v17 = vld [vmem:[%s7238_s14 + $0x8] sm:$0xff] }
 0x16a   :  { %432 = vmatpush.bf16.msrb.mxu2 %v423_v31  ;;  %v460_v18 = vpack.c.bf16 %v219_v17, %v219_v17 }
 0x16c   :  { %v465_v20 = vsel %vm307_vm2, %v460_v18, 0 }
 0x16d   :  { %474 = vmatpush.bf16.msra.mxu0 %v465_v20 }
 0x170   :  { %6357 = vmatmul.msk.bf16.vlgmr.msrb.gmra.mxu1 %vm234_vm1, %v371_v21 }
 0x1dd   :  { %v250_v34 = vpop.f32.mrf.mxu1 }
 0x1de   :  { %v251_v35 = vadd.f32 %v250_v34, %v7457_v33  ;;  %v366_v36 = vpop.f32.mrf.mxu0 }
 0x1df   :  { %v367_v37 = vadd.f32 %v366_v36, %v7457_v33 }
 0x1e0   :  { %v278_v38 = vsel %vm234_vm1, %v251_v35, -inf }
 0x1e1   :  { %279 = vmax.xlane.f32.xlu2 %v278_v38  ;;  %v393_v39 = vsel %vm234_vm1, %v367_v37, -inf }
 0x1e2   :  { %394 = vmax.xlane.f32.xlu0 %v393_v39 }
 0x1e5   :  { %v252_v41 = vpop.f32.mrf.mxu1 }
 0x1e6   :  { %v368_v42 = vpop.f32.mrf.mxu0 }
 0x1ec   :  { %v274_v44 = vpop.f32.mrf.mxu2 }
 0x1ed   :  { %v275_v45 = vadd.f32 %v274_v44, %v7463_v43  ;;  %v389_v46 = vpop.f32.mrf.mxu1 }
 0x1ee   :  { %v390_v48 = vadd.f32 %v389_v46, %v7463_v43 }
 0x1ef   :  { %v281_v47 = vsel %vm234_vm1, %v275_v45, -inf }
 0x1f0   :  { %282 = vmax.xlane.f32.xlu2 %v281_v47  ;;  %v396_v51 = vsel %vm234_vm1, %v390_v48, -inf }
 0x1f4   :  { %v276_v49 = vpop.f32.mrf.mxu2 }
 0x1f5   :  { %v391_v50 = vpop.f32.mrf.mxu1 }
 0x1f6   :  { %503 = vrot.lane.b32.xlu0 %v7429_v14, %s7173_s17 }
 0x1f8   :  { %397 = vmax.xlane.f32.xlu2 %v396_v51 }
 0x210   :  { %302 = vrot.lane.b32.xlu2 %v7429_v14, %s7174_s2 }
 0x218   :  { %324 = vrot.lane.b32.xlu2 %v7435_v19, %s7174_s2 }
 0x254   :  { %v280_v52 = vpop.xlane.xlu2 %279 }
 0x255   :  { %v284_v53 = vsub.f32 %v251_v35, %v280_v52  ;;  %v395_v54 = vpop.xlane.xlu0 %394 }
 0x256   :  { %v399_v55 = vsub.f32 %v367_v37, %v395_v54 }
 0x257   :  { %v286_v56 = vmul.f32 1.442695, %v284_v53 }
 0x258   :  { %v401_v57 = vmul.f32 1.442695, %v399_v55 }
 0x259   :  { %6785 = vpow2.f32 %v286_v56 }
 0x25a   :  { %6787 = vpow2.f32 %v401_v57  ;;  %v218_v57 = vld [vmem:[%s7238_s14] sm:$0xff] }
 0x25f   :  { %v6786_v58 = vpop.eup %6785 }
 0x260   :  { %v6788_v59 = vpop.eup %6787  ;;  %v290_v60 = vsel %vm234_vm1, %v6786_v58, 0.0 }
 0x261   :  { %291 = vadd.xlane.f32.xlu0 %v290_v60  ;;  %v405_v61 = vsel %vm234_vm1, %v6788_v59, 0.0 }
 0x262   :  { %406 = vadd.xlane.f32.xlu1 %v405_v61 }
 0x263   :  { %v283_v62 = vpop.xlane.xlu2 %282 }
 0x264   :  { %v285_v12 = vsub.f32 %v275_v45, %v283_v62 }
 0x266   :  { %v288_v13 = vmul.f32 1.442695, %v285_v12 }
 0x268   :  { %v504_v63 = vpop.permute.xlu0 %503 }
 0x269   :  { %v509_v0 = vsel %vm234_vm1, %v504_v63, 0 }
 0x26a   :  { %518 = vmatpush.bf16.xpose.msra.mxu2 %v509_v0 }
 0x26b   :  { %v398_v1 = vpop.xlane.xlu2 %397 }
 0x26c   :  { %v400_v2 = vsub.f32 %v390_v48, %v398_v1 }
 0x26e   :  { %v403_v3 = vmul.f32 1.442695, %v400_v2 }
 0x270   :  { %6789 = vpow2.f32 %v403_v3 }
 0x271   :  { %6791 = vpow2.f32 %v288_v13 }
 0x273   :  { %v303_v4 = vpop.permute.xlu2 %302 }
 0x274   :  { %v309_v7 = vsel %vm307_vm2, %v303_v4, 0 }
 0x275   :  { %318 = vmatpush.bf16.msra.mxu3 %v309_v7  ;;  %438 = vrot.lane.b32.xlu0 %v7435_v19, %s7172_s1 }
 0x276   :  { %v6790_v8 = vpop.eup %6789 }
 0x277   :  { %v408_v9 = vsel %vm234_vm1, %v6790_v8, 0.0  ;;  %v6792_v15 = vpop.eup %6791 }
 0x278   :  { %409 = vadd.xlane.f32.xlu2 %v408_v9  ;;  %v293_v16 = vsel %vm234_vm1, %v6792_v15, 0.0 }
 0x27b   :  { %v325_v10 = vpop.permute.xlu2 %324  ;;  %501 = vrot.lane.b32.xlu1 %v7429_v14, %s7175_s7 }
 0x27c   :  { %v330_v11 = vsel %vm307_vm2, %v325_v10, 0 }
 0x27d   :  { %339 = vmatpush.bf16.msrb.mxu3 %v330_v11  ;;  %524 = vrot.lane.b32.xlu0 %v7435_v19, %s7175_s7 }
 0x290   :  { %571 = vrot.lane.b32.xlu2 %v7429_v14, %s7176_s10 }
 0x298   :  { %639 = vrot.lane.b32.xlu2 %v7429_v14, %s8926_s11 }
 0x2a0   :  { %662 = vrot.lane.b32.xlu2 %v7435_v19, %s8926_s11 }
 0x2a5   :  { %294 = vadd.xlane.f32.xlu1 %v293_v16 }
 0x2be   :  { %526 = vrot.lane.b32.xlu1 %v7435_v19, %s7173_s17 }
 0x2d4   :  { %v292_v21 = vpop.xlane.xlu0 %291 }
 0x2d5   :  { %v407_v22 = vpop.xlane.xlu1 %406  ;;  %6793 = vrcp.f32 %v292_v21 }
 0x2d6   :  { %6795 = vrcp.f32 %v407_v22 }
 0x2db   :  { %v6794_v23 = vpop.eup %6793 }
 0x2dc   :  { %v6796_v24 = vpop.eup %6795  ;;  %v298_v25 = vmul.f32 %v6794_v23, %v6786_v58  ;;  %v346_v58 = vpack.c.bf16 %v218_v57, %v218_v57 }
 0x2dd   :  { %v413_v26 = vmul.f32 %v6796_v24, %v6788_v59 }
 0x2de   :  { %v300_v27 = vpack.c.bf16 %v298_v25, %v298_v25  ;;  %v485_v59 = vsel %vm307_vm2, %v346_v58, 0 }
 0x2df   :  { %v415_v28 = vpack.c.bf16 %v413_v26, %v413_v26  ;;  %494 = vmatpush.bf16.msra.mxu1 %v485_v59 }
 0x2e0   :  { %6354 = vmatmul.msk.bf16.vlgmr.msra.gmra.mxu3 %vm234_vm1, %v300_v27 }
 0x2e1   :  { %6358 = vmatmul.msk.bf16.vlgmr.msrb.gmra.mxu2 %vm234_vm1, %v415_v28 }
 0x2e7   :  { %v439_v29 = vpop.permute.xlu0 %438 }
 0x2e8   :  { %v444_v30 = vsel %vm307_vm2, %v439_v29, 0 }
 0x2e9   :  { %453 = vmatpush.bf16.msra.mxu3 %v444_v30 }
 0x2eb   :  { %v410_v31 = vpop.xlane.xlu2 %409 }
 0x2ed   :  { %v502_v32 = vpop.permute.xlu1 %501 }
 0x2ef   :  { %v525_v48 = vpop.permute.xlu0 %524 }
 0x2f1   :  { %6362 = vmatmul.msk.bf16.vlgmr.msra.gmra.mxu2 %vm234_vm1, %v502_v32 }
 0x2f3   :  { %v572_v34 = vpop.permute.xlu2 %571 }
 0x2f4   :  { %v577_v35 = vsel %vm307_vm2, %v572_v34, 0 }
 0x2f5   :  { %586 = vmatpush.bf16.msrb.mxu0 %v577_v35 }
 0x2fb   :  { %v640_v44 = vpop.permute.xlu2 %639 }
 0x2fc   :  { %v645_v47 = vsel %vm234_vm1, %v640_v44, 0 }
 0x303   :  { %v663_v63 = vpop.permute.xlu2 %662 }
 0x304   :  { %v668_v2 = vsel %vm234_vm1, %v663_v63, 0 }
 0x318   :  { %v295_v36 = vpop.xlane.xlu1 %294 }
 0x319   :  { %6797 = vrcp.f32 %v295_v36 }
 0x31a   :  { %6799 = vrcp.f32 %v410_v31 }
 0x31f   :  { %v6798_v37 = vpop.eup %6797 }
 0x320   :  { %v299_v38 = vmul.f32 %v6798_v37, %v6792_v15  ;;  %v6800_v40 = vpop.eup %6799  ;;  %v220_v37 = vld [vmem:[%s7238_s14 + $0x10] sm:$0xff] }
 0x321   :  { %v414_v41 = vmul.f32 %v6800_v40, %v6790_v8 }
 0x322   :  { %v301_v39 = vpack.c.bf16 %v299_v38, %v299_v38  ;;  %v614_v38 = vpack.c.bf16 %v220_v37, %v220_v37 }
 0x323   :  { %v416_v46 = vpack.c.bf16 %v414_v41, %v414_v41 }
 0x324   :  { %6355 = vmatmul.msk.bf16.vlgmr.msrb.gmra.mxu3 %vm234_vm1, %v301_v39  ;;  %v619_v39 = vsel %vm307_vm2, %v614_v38, 0 }
 0x325   :  { %628 = vmatpush.bf16.msrb.mxu2 %v619_v39 }
 0x330   :  { %v527_v42 = vpop.permute.xlu1 %526 }
 0x331   :  { %v532_v45 = vsel %vm234_vm1, %v527_v42, 0 }
 0x332   :  { %541 = vmatpush.bf16.xpose.msrb.mxu3 %v532_v45 }
 0x334   :  { %6359 = vmatmul.msk.bf16.vlgmr.msra.gmra.mxu3 %vm234_vm1, %v416_v46 }
 0x33a   :  { %654 = vmatpush.bf16.xpose.msra.mxu3 %v645_v47 }
 0x344   :  { %6363 = vmatmul.msk.bf16.vlgmr.msrb.gmra.mxu3 %vm234_vm1, %v525_v48 }
 0x363   :  { %v320_v49 = vpop.f32.mrf.mxu3 }
 0x364   :  { %v434_v50 = vpop.f32.mrf.mxu2 }
 0x36b   :  { %v322_v51 = vpop.f32.mrf.mxu3 }
 0x36c   :  { %v436_v52 = vpop.f32.mrf.mxu2 }
 0x374   :  { %v520_v53 = vpop.f32.mrf.mxu2 }
 0x375   :  { %v521_v54 = vadd.f32 %v520_v53, %v7457_v33 }
 0x377   :  { %v547_v55 = vsel %vm234_vm1, %v521_v54, -inf }
 0x378   :  { %548 = vmax.xlane.f32.xlu0 %v547_v55 }
 0x37c   :  { %v522_v56 = vpop.f32.mrf.mxu2 }
 0x38c   :  { %637 = vrot.lane.b32.xlu0 %v7429_v14, %s8924_s15 }
 0x3a7   :  { %v341_v60 = vpop.f32.mrf.mxu3 }
 0x3a8   :  { %v345_v61 = vpack.c.bf16 %v341_v60, %v320_v49 }
 0x3aa   :  { %6361 = vmatmul.msk.bf16.vlgmr.msra.gmra.mxu1 %vm234_vm1, %v345_v61 }
 0x3af   :  { %v343_v62 = vpop.f32.mrf.mxu3 }
 0x3b7   :  { %v455_v0 = vpop.f32.mrf.mxu3 }
 0x3b8   :  { %v459_v1 = vpack.c.bf16 %v455_v0, %v434_v50 }
 0x3ba   :  { %6360 = vmatmul.msk.bf16.vlgmr.msra.gmra.mxu0 %vm234_vm1, %v459_v1 }
 0x3bb   :  { %677 = vmatpush.bf16.xpose.msra.mxu0 %v668_v2 }
 0x3bf   :  { %v457_v3 = vpop.f32.mrf.mxu3 }
 0x3c7   :  { %v543_v4 = vpop.f32.mrf.mxu3 }
 0x3c8   :  { %v544_v7 = vadd.f32 %v543_v4, %v7463_v43 }
 0x3ca   :  { %v550_v8 = vsel %vm234_vm1, %v544_v7, -inf }
 0x3cb   :  { %551 = vmax.xlane.f32.xlu2 %v550_v8 }
 0x3cf   :  { %v545_v9 = vpop.f32.mrf.mxu3 }
 0x3eb   :  { %v549_v10 = vpop.xlane.xlu0 %548 }
 0x3ec   :  { %v553_v11 = vsub.f32 %v521_v54, %v549_v10 }
 0x3ee   :  { %v555_v12 = vmul.f32 1.442695, %v553_v11 }
 0x3f0   :  { %6801 = vpow2.f32 %v555_v12 }
 0x3f6   :  { %v6802_v13 = vpop.eup %6801 }
 0x3f7   :  { %v559_v15 = vsel %vm234_vm1, %v6802_v13, 0.0 }
 0x3f8   :  { %560 = vadd.xlane.f32.xlu1 %v559_v15 }
 0x3fe   :  { %v638_v16 = vpop.permute.xlu0 %637 }
 0x3ff   :  { %6367 = vmatmul.msk.bf16.vlgmr.msra.gmra.mxu3 %vm234_vm1, %v638_v16 }
 0x411   :  { %660 = vrot.lane.b32.xlu1 %v7435_v19, %s8924_s15 }
 0x419   :  { %592 = vrot.lane.b32.xlu1 %v7435_v19, %s7176_s10 }
 0x427   :  { %v496_v17 = vpop.f32.mrf.mxu1 }
 0x42f   :  { %v498_v59 = vpop.f32.mrf.mxu1 }
 0x437   :  { %v476_v18 = vpop.f32.mrf.mxu0 }
 0x438   :  { %v7525_v20 = vadd.f32 %v496_v17, %v476_v18 }
 0x43e   :  { %v552_v21 = vpop.xlane.xlu2 %551 }
 0x43f   :  { %v554_v22 = vsub.f32 %v544_v7, %v552_v21  ;;  %v478_v47 = vpop.f32.mrf.mxu0 }
 0x441   :  { %v557_v23 = vmul.f32 1.442695, %v554_v22 }
 0x443   :  { %6803 = vpow2.f32 %v557_v23 }
 0x449   :  { %v6804_v24 = vpop.eup %6803 }
 0x44a   :  { %v562_v25 = vsel %vm234_vm1, %v6804_v24, 0.0 }
 0x44b   :  { %563 = vadd.xlane.f32.xlu0 %v562_v25 }
 0x45f   :  { %728 = vrot.lane.b32.xlu0 %v7435_v19, %s8922_s16 }
 0x46b   :  { %v561_v26 = vpop.xlane.xlu1 %560 }
 0x46c   :  { %6805 = vrcp.f32 %v561_v26 }
 0x472   :  { %v6806_v27 = vpop.eup %6805 }
 0x473   :  { %v567_v28 = vmul.f32 %v6806_v27, %v6802_v13 }
 0x475   :  { %v569_v29 = vpack.c.bf16 %v567_v28, %v567_v28  ;;  %v6726_v28 = vld [vmem:[%s7243_s19] ss:$0 sm:$0xff] }
 0x477   :  { %6364 = vmatmul.msk.bf16.vlgmr.msrb.gmra.mxu0 %vm234_vm1, %v569_v29 }
 0x482   :  { %v656_v30 = vpop.f32.mrf.mxu3 }
 0x483   :  { %v657_v31 = vadd.f32 %v656_v30, %v7457_v33  ;;  %v661_v32 = vpop.permute.xlu1 %660 }
 0x485   :  { %v683_v34 = vsel %vm234_vm1, %v657_v31, -inf }
 0x486   :  { %684 = vmax.xlane.f32.xlu2 %v683_v34 }
 0x487   :  { %6368 = vmatmul.msk.bf16.vlgmr.msra.gmra.mxu0 %vm234_vm1, %v661_v32  ;;  %v499_v32 = vadd.f32 %v498_v59, %v478_v47 }
 0x48a   :  { %v658_v35 = vpop.f32.mrf.mxu3 }
 0x48b   :  { %v593_v36 = vpop.permute.xlu1 %592 }
 0x48c   :  { %v598_v19 = vsel %vm307_vm2, %v593_v36, 0 }
 0x48d   :  { %607 = vmatpush.bf16.msrb.mxu1 %v598_v19 }
 0x4be   :  { %v564_v40 = vpop.xlane.xlu0 %563 }
 0x4bf   :  { %6807 = vrcp.f32 %v564_v40 }
 0x4c5   :  { %v6808_v41 = vpop.eup %6807 }
 0x4c6   :  { %v568_v42 = vmul.f32 %v6808_v41, %v6804_v24  ;;  %v7180_v41 = vmov 32.0  }
 0x4c8   :  { %v570_v44 = vpack.c.bf16 %v568_v42, %v568_v42 }
 0x4ca   :  { %6365 = vmatmul.msk.bf16.vlgmr.msrb.gmra.mxu1 %vm234_vm1, %v570_v44 }
 0x4d1   :  { %v729_v45 = vpop.permute.xlu0 %728 }
 0x4d2   :  { %v734_v46 = vsel %vm307_vm2, %v729_v45, 0 }
 0x4d3   :  { %743 = vmatpush.bf16.msra.mxu2 %v734_v46 }
 0x4f4   :  { %v588_v48 = vpop.f32.mrf.mxu0 }
 0x4f9   :  { %v685_v49 = vpop.xlane.xlu2 %684 }
 0x4fa   :  { %v689_v50 = vsub.f32 %v657_v31, %v685_v49 }
 0x4fc   :  { %v691_v51 = vmul.f32 1.442695, %v689_v50  ;;  %v590_v52 = vpop.f32.mrf.mxu0 }
 0x4fe   :  { %6809 = vpow2.f32 %v691_v51 }
 0x504   :  { %v6810_v53 = vpop.eup %6809  ;;  %v679_v54 = vpop.f32.mrf.mxu0 }
 0x505   :  { %v680_v55 = vadd.f32 %v679_v54, %v7463_v43  ;;  %v695_v56 = vsel %vm234_vm1, %v6810_v53, 0.0 }
 0x506   :  { %696 = vadd.xlane.f32.xlu2 %v695_v56 }
 0x507   :  { %v686_v57 = vsel %vm234_vm1, %v680_v55, -inf }
 0x508   :  { %687 = vmax.xlane.f32.xlu1 %v686_v57  ;;  %v846_v57 = vld [vmem:[%s7258_s6 + $0x10] sm:$0xff] }
 0x50c   :  { %v681_v58 = vpop.f32.mrf.mxu0 }
 0x50d   :  { %v847_v58 = vld [vmem:[%s7258_s6 + $0x18] sm:$0xff] }
 0x50e   :  { %v849_v59 = vpack.c.bf16 %v847_v58, %v846_v57 }
 0x510   :  { %863 = vmatpush.bf16.msrb.mxu0 %v849_v59 }
 0x547   :  { %v609_v60 = vpop.f32.mrf.mxu1 }
 0x548   :  { %v613_v61 = vpack.c.bf16 %v609_v60, %v588_v48 }
 0x54a   :  { %6366 = vmatmul.msk.bf16.vlgmr.msrb.gmra.mxu2 %vm234_vm1, %v613_v61 }
 0x54f   :  { %v611_v62 = vpop.f32.mrf.mxu1 }
 0x550   :  { %v844_v62 = vld [vmem:[%s7258_s6] sm:$0xff] }
 0x579   :  { %v697_v8 = vpop.xlane.xlu2 %696 }
 0x57b   :  { %v688_v63 = vpop.xlane.xlu1 %687 }
 0x57c   :  { %v690_v0 = vsub.f32 %v680_v55, %v688_v63  ;;  %v845_v63 = vld [vmem:[%s7258_s6 + $0x8] sm:$0xff] }
 0x57e   :  { %v693_v1 = vmul.f32 1.442695, %v690_v0  ;;  %v848_v0 = vpack.c.bf16 %v845_v63, %v844_v62 }
 0x580   :  { %6811 = vpow2.f32 %v693_v1  ;;  %864 = vmatpush.bf16.msrb.mxu0 %v848_v0 }
 0x581   :  { %6813 = vrcp.f32 %v697_v8 }
 0x586   :  { %v6812_v2 = vpop.eup %6811 }
 0x587   :  { %v698_v3 = vsel %vm234_vm1, %v6812_v2, 0.0  ;;  %v6814_v10 = vpop.eup %6813 }
 0x588   :  { %699 = vadd.xlane.f32.xlu2 %v698_v3  ;;  %v703_v12 = vmul.f32 %v6814_v10, %v6810_v53 }
 0x58a   :  { %v705_v18 = vpack.c.bf16 %v703_v12, %v703_v12 }
 0x5a0   :  { %707 = vrot.lane.b32.xlu2 %v7429_v14, %s8922_s16  ;;  %v221_v14 = vld [vmem:[%s7238_s14 + $0x18] sm:$0xff] }
 0x5cd   :  { %v630_v4 = vpop.f32.mrf.mxu2 }
 0x5ce   :  { %v635_v7 = vadd.f32 %v630_v4, %v7525_v20  ;;  %v750_v20 = vpack.c.bf16 %v221_v14, %v221_v14 }
 0x5d0   :  { %v755_v21 = vsel %vm307_vm2, %v750_v20, 0  ;;  %v6727_v20 = vld [vmem:[%s7248_s24] ss:$0 sm:$0xff] }
 0x5d1   :  { %764 = vmatpush.bf16.msrb.mxu3 %v755_v21 }
 0x5d5   :  { %v632_v22 = vpop.f32.mrf.mxu2 }
 0x5d6   :  { %v636_v35 = vadd.f32 %v632_v22, %v499_v32  ;;  %v881_v32 = vld [vmem:[%s7268_s20 + $0x38] sm:$0xff] }
 0x5fb   :  { %v700_v9 = vpop.xlane.xlu2 %699 }
 0x5fc   :  { %6815 = vrcp.f32 %v700_v9 }
 0x5fd   :  { %6817 = vrcp.f32 %v7180_v41  ;;  %v875_v41 = vld [vmem:[%s7268_s20 + $0x8] sm:$0xff] }
 0x602   :  { %v6816_v11 = vpop.eup %6815 }
 0x603   :  { %v704_v13 = vmul.f32 %v6816_v11, %v6812_v2  ;;  %v708_v15 = vpop.permute.xlu2 %707  ;;  %v6818_v42 = vpop.eup %6817 }
 0x604   :  { %v713_v16 = vsel %vm307_vm2, %v708_v15, 0  ;;  %v789_v44 = vmul.f32 32.0, %v6818_v42  ;;  %vm793_vm3 = vweird.f32 %v6818_v42 }
 0x605   :  { %v706_v17 = vpack.c.bf16 %v704_v13, %v704_v13  ;;  %722 = vmatpush.bf16.msra.mxu1 %v713_v16 }
 0x606   :  { %v790_v45 = vsub.f32 1.0, %v789_v44 }
 0x607   :  { %6370 = vmatmul.msk.bf16.vlgmr.msra.gmra.mxu2 %vm234_vm1, %v706_v17 }
 0x608   :  { %6369 = vmatmul.msk.bf16.vlgmr.msra.gmra.mxu1 %vm234_vm1, %v705_v18  ;;  %v791_v46 = vmul.f32 %v6818_v42, %v790_v45  ;;  %v6729_v45 = vld [vmem:[%s7263_s12] ss:$0 sm:$0xff] }
 0x685   :  { %v724_v23 = vpop.f32.mrf.mxu1 }
 0x68a   :  { %v745_v24 = vpop.f32.mrf.mxu2 }
 0x68b   :  { %v749_v25 = vpack.c.bf16 %v745_v24, %v724_v23 }
 0x68d   :  { %v726_v26 = vpop.f32.mrf.mxu1  ;;  %6371 = vmatmul.msk.bf16.vlgmr.msrb.gmra.mxu3 %vm234_vm1, %v749_v25 }
 0x68e   :  { %v6728_v26 = vld [vmem:[%s7253_s30] ss:$0 sm:$0xff] }
 0x692   :  { %v747_v27 = vpop.f32.mrf.mxu2 }
 0x710   :  { %v766_v29 = vpop.f32.mrf.mxu3 }
 0x711   :  { %v771_v30 = vadd.f32 %v766_v29, %v635_v7 }
 0x713   :  { %v776_v31 = vadd.f32 %v6726_v28, %v771_v30 }
 0x715   :  { %v778_v34 = vadd.f32 %v776_v31, %v7420_v5  ;;  %v792_v5 = vadd.f32 %v6818_v42, %v791_v46  ;;  %v880_v31 = vld [vmem:[%s7268_s20 + $0x30] sm:$0xff] }
 0x717   :  { %v782_v36 = vsel %vm200_vm0, %v778_v34, 0.0  ;;  %v7558_v47 = vsel %vm793_vm3, %v6818_v42, %v792_v5 }
 0x718   :  { %783 = vadd.xlane.f32.xlu1 %v782_v36  ;;  %v768_v19 = vpop.f32.mrf.mxu3  ;;  %v879_v36 = vld [vmem:[%s7268_s20 + $0x28] sm:$0xff] }
 0x719   :  { %v772_v37 = vadd.f32 %v768_v19, %v636_v35  ;;  %v878_v35 = vld [vmem:[%s7268_s20 + $0x20] sm:$0xff] }
 0x71a   :  { %v884_v19 = vpack.c.bf16 %v879_v36, %v878_v35 }
 0x71b   :  { %v777_v38 = vadd.f32 %v6726_v28, %v772_v37  ;;  %v876_v37 = vld [vmem:[%s7268_s20 + $0x10] sm:$0xff] }
 0x71d   :  { %v779_v39 = vadd.f32 %v777_v38, %v7423_v6  ;;  %v877_v38 = vld [vmem:[%s7268_s20 + $0x18] sm:$0xff] }
 0x71f   :  { %v785_v40 = vsel %vm200_vm0, %v779_v39, 0.0 }
 0x720   :  { %786 = vadd.xlane.f32.xlu0 %v785_v40  ;;  %v874_v40 = vld [vmem:[%s7268_s20] sm:$0xff] }
 0x721   :  { %v882_v42 = vpack.c.bf16 %v875_v41, %v874_v40 }
 0x78b   :  { %v784_v48 = vpop.xlane.xlu1 %783 }
 0x78c   :  { %v795_v49 = vmul.f32 %v7558_v47, %v784_v48 }
 0x78e   :  { %v797_v50 = vsub.f32 %v778_v34, %v795_v49  ;;  %v885_v34 = vpack.c.bf16 %v881_v32, %v880_v31 }
 0x790   :  { %v799_v6 = vmul.f32 %v797_v50, %v797_v50  ;;  %898 = vmatpush.bf16.msrb.mxu1 %v885_v34  ;;  %v6731_v34 = vld [vmem:[%s7278_s4] ss:$0 sm:$0xff] }
 0x792   :  { %v801_v51 = vsel %vm200_vm0, %v799_v6, 0.0 }
 0x793   :  { %802 = vadd.xlane.f32.xlu1 %v801_v51  ;;  %v787_v52 = vpop.xlane.xlu0 %786  ;;  %v6730_v51 = vld [vmem:[%s7273_s27] ss:$0 sm:$0xff] }
 0x794   :  { %v796_v53 = vmul.f32 %v7558_v47, %v787_v52  ;;  %899 = vmatpush.bf16.msrb.mxu1 %v884_v19 }
 0x796   :  { %v798_v54 = vsub.f32 %v779_v39, %v796_v53  ;;  %v883_v39 = vpack.c.bf16 %v877_v38, %v876_v37 }
 0x798   :  { %v800_v55 = vmul.f32 %v798_v54, %v798_v54  ;;  %900 = vmatpush.bf16.msrb.mxu1 %v883_v39  ;;  %v6732_v39 = vld [vmem:[%s7283_s29] ss:$0 sm:$0xff] }
 0x79a   :  { %v804_v56 = vsel %vm200_vm0, %v800_v55, 0.0 }
 0x79b   :  { %805 = vadd.xlane.f32.xlu1 %v804_v56 }
 0x79c   :  { %901 = vmatpush.bf16.msrb.mxu1 %v882_v42 }
 0x806   :  { %v803_v60 = vpop.xlane.xlu1 %802 }
 0x807   :  { %v807_v61 = vmul.f32 %v803_v60, %v7558_v47 }
 0x809   :  { %v809_v1 = vadd.f32 1e-05, %v807_v61 }
 0x80b   :  { %6819 = vrsqrt.f32 %v809_v1  ;;  %vm817_vm5 = vweird.f32 %v809_v1 }
 0x80e   :  { %v806_v2 = vpop.xlane.xlu1 %805 }
 0x80f   :  { %v808_v3 = vmul.f32 %v806_v2, %v7558_v47 }
 0x811   :  { %v6820_v4 = vpop.eup %6819  ;;  %v810_v7 = vadd.f32 1e-05, %v808_v3 }
 0x812   :  { %v812_v8 = vmul.f32 %v6820_v4, %v809_v1  ;;  %vm818_vm4 = vweird.f32 %v6820_v4 }
 0x813   :  { %6821 = vrsqrt.f32 %v810_v7  ;;  %vm819_vm6 = vmor %vm817_vm5, %vm818_vm4  ;;  %vm827_vm8 = vweird.f32 %v810_v7 }
 0x814   :  { %v813_v9 = vmul.f32 %v6820_v4, %v812_v8  ;;  %v6376_v8 = vld [vmem:[%s7228_s3 + $0x30] sm:$0xff] }
 0x816   :  { %v814_v10 = vmul.f32 0.5, %v813_v9  ;;  %v6377_v9 = vld [vmem:[%s7228_s3 + $0x38] sm:$0xff] }
 0x818   :  { %v815_v11 = vsub.f32 1.5, %v814_v10  ;;  %v973_v10 = vpack.c.bf16 %v6377_v9, %v6376_v8 }
 0x819   :  { %v6822_v12 = vpop.eup %6821 }
 0x81a   :  { %v816_v13 = vmul.f32 %v6820_v4, %v815_v11  ;;  %v822_v15 = vmul.f32 %v6822_v12, %v810_v7  ;;  %vm828_vm7 = vweird.f32 %v6822_v12  ;;  %988 = vmatpush.bf16.msrb.mxu2 %v973_v10 }
 0x81b   :  { %vm829_vm9 = vmor %vm827_vm8, %vm828_vm7 }
 0x81c   :  { %v823_v16 = vmul.f32 %v6822_v12, %v822_v15  ;;  %v820_v17 = vsel %vm819_vm6, %v6820_v4, %v816_v13  ;;  %v6374_v13 = vld [vmem:[%s7228_s3 + $0x20] sm:$0xff]  ;;  %v6375_v15 = vld [vmem:[%s7228_s3 + $0x28] sm:$0xff] }
 0x81d   :  { %v831_v21 = vmul.f32 %v820_v17, %v797_v50 }
 0x81e   :  { %v824_v18 = vmul.f32 0.5, %v823_v16  ;;  %v972_v16 = vpack.c.bf16 %v6375_v15, %v6374_v13 }
 0x81f   :  { %v836_v24 = vmul.f32 %v6727_v20, %v831_v21 }
 0x820   :  { %v825_v14 = vsub.f32 1.5, %v824_v18  ;;  %989 = vmatpush.bf16.msrb.mxu2 %v972_v16 }
 0x821   :  { %v841_v28 = vadd.f32 %v6728_v26, %v836_v24 }
 0x822   :  { %v826_v22 = vmul.f32 %v6822_v12, %v825_v14 }
 0x824   :  { %v830_v23 = vsel %vm829_vm9, %v6822_v12, %v826_v22 }
 0x825   :  { %v832_v25 = vmul.f32 %v830_v23, %v798_v54 }
 0x827   :  { %v837_v27 = vmul.f32 %v6727_v20, %v832_v25 }
 0x829   :  { %v842_v29 = vadd.f32 %v6728_v26, %v837_v27 }
 0x82b   :  { %v843_v30 = vpack.c.bf16 %v842_v29, %v841_v28 }
 0x82d   :  { %6372 = vmatmul.msk.bf16.vlgmr.msrb.gmra.mxu0 %vm200_vm0, %v843_v30 }
 0x8aa   :  { %v866_v44 = vpop.f32.mrf.mxu0 }
 0x8ab   :  { %v867_v46 = vadd.f32 %v6729_v45, %v866_v44 }
 0x8ad   :  { %v871_v49 = vmax.f32 %v867_v46, 0.0 }
 0x8b2   :  { %v868_v5 = vpop.f32.mrf.mxu0 }
 0x8b3   :  { %v869_v48 = vadd.f32 %v6729_v45, %v868_v5  ;;  %v6733_v45 = vld [vmem:[%s7233_s8 + $0x1] ss:$0 sm:$0xff] }
 0x8b5   :  { %v872_v50 = vmax.f32 %v869_v48, 0.0 }
 0x8b7   :  { %v873_v6 = vpack.c.bf16 %v872_v50, %v871_v49 }
 0x8b9   :  { %6373 = vmatmul.msk.bf16.vlgmr.msrb.gmra.mxu1 %vm890_vm10, %v873_v6 }
 0x936   :  { %v903_v52 = vpop.f32.mrf.mxu1 }
 0x937   :  { %v904_v53 = vadd.f32 %v6730_v51, %v903_v52 }
 0x939   :  { %v908_v54 = vadd.f32 %v904_v53, %v841_v28 }
 0x93b   :  { %v912_v55 = vsel %vm200_vm0, %v908_v54, 0.0 }
 0x93c   :  { %913 = vadd.xlane.f32.xlu2 %v912_v55 }
 0x93e   :  { %v905_v56 = vpop.f32.mrf.mxu1 }
 0x93f   :  { %v906_v57 = vadd.f32 %v6730_v51, %v905_v56 }
 0x941   :  { %v909_v58 = vadd.f32 %v906_v57, %v842_v29 }
 0x943   :  { %v915_v59 = vsel %vm200_vm0, %v909_v58, 0.0 }
 0x944   :  { %916 = vadd.xlane.f32.xlu1 %v915_v59 }
 0x9af   :  { %v914_v60 = vpop.xlane.xlu2 %913 }
 0x9b0   :  { %v918_v61 = vmul.f32 %v914_v60, %v7558_v47 }
 0x9b2   :  { %v920_v62 = vsub.f32 %v908_v54, %v918_v61 }
 0x9b4   :  { %v922_v63 = vmul.f32 %v920_v62, %v920_v62 }
 0x9b6   :  { %v924_v0 = vsel %vm200_vm0, %v922_v63, 0.0 }
 0x9b7   :  { %v917_v1 = vpop.xlane.xlu1 %916  ;;  %925 = vadd.xlane.f32.xlu1 %v924_v0 }
 0x9b8   :  { %v919_v2 = vmul.f32 %v917_v1, %v7558_v47 }
 0x9ba   :  { %v921_v3 = vsub.f32 %v909_v58, %v919_v2 }
 0x9bc   :  { %v923_v4 = vmul.f32 %v921_v3, %v921_v3 }
 0x9be   :  { %v927_v7 = vsel %vm200_vm0, %v923_v4, 0.0 }
 0x9bf   :  { %928 = vadd.xlane.f32.xlu1 %v927_v7 }
 0xa2a   :  { %v926_v11 = vpop.xlane.xlu1 %925 }
 0xa2b   :  { %v930_v12 = vmul.f32 %v926_v11, %v7558_v47 }
 0xa2d   :  { %v932_v17 = vadd.f32 1e-05, %v930_v12 }
 0xa2f   :  { %6823 = vrsqrt.f32 %v932_v17  ;;  %vm940_vm12 = vweird.f32 %v932_v17 }
 0xa32   :  { %v929_v18 = vpop.xlane.xlu1 %928 }
 0xa33   :  { %v931_v14 = vmul.f32 %v929_v18, %v7558_v47 }
 0xa35   :  { %v6824_v20 = vpop.eup %6823  ;;  %v933_v21 = vadd.f32 1e-05, %v931_v14 }
 0xa36   :  { %v935_v22 = vmul.f32 %v6824_v20, %v932_v17  ;;  %vm941_vm11 = vweird.f32 %v6824_v20 }
 0xa37   :  { %6825 = vrsqrt.f32 %v933_v21  ;;  %vm942_vm13 = vmor %vm940_vm12, %vm941_vm11  ;;  %vm950_vm15 = vweird.f32 %v933_v21 }
 0xa38   :  { %v936_v23 = vmul.f32 %v6824_v20, %v935_v22 }
 0xa3a   :  { %v937_v24 = vmul.f32 0.5, %v936_v23 }
 0xa3c   :  { %v938_v25 = vsub.f32 1.5, %v937_v24 }
 0xa3d   :  { %v6826_v26 = vpop.eup %6825 }
 0xa3e   :  { %v939_v27 = vmul.f32 %v6824_v20, %v938_v25  ;;  %v945_v28 = vmul.f32 %v6826_v26, %v933_v21  ;;  %vm951_vm14 = vweird.f32 %v6826_v26 }
 0xa3f   :  { %vm952_vm3 = vmor %vm950_vm15, %vm951_vm14 }
 0xa40   :  { %v946_v29 = vmul.f32 %v6826_v26, %v945_v28  ;;  %v943_v30 = vsel %vm942_vm13, %v6824_v20, %v939_v27 }
 0xa41   :  { %v954_v35 = vmul.f32 %v943_v30, %v920_v62 }
 0xa42   :  { %v947_v31 = vmul.f32 0.5, %v946_v29 }
 0xa43   :  { %v959_v37 = vmul.f32 %v6731_v34, %v954_v35 }
 0xa44   :  { %v948_v32 = vsub.f32 1.5, %v947_v31 }
 0xa45   :  { %v7598_v41 = vadd.f32 %v6732_v39, %v959_v37 }
 0xa46   :  { %v949_v36 = vmul.f32 %v6826_v26, %v948_v32 }
 0xa48   :  { %v953_v19 = vsel %vm952_vm3, %v6826_v26, %v949_v36 }
 0xa49   :  { %v955_v38 = vmul.f32 %v953_v19, %v921_v3 }
 0xa4b   :  { %v960_v40 = vmul.f32 %v6731_v34, %v955_v38 }
 0xa4d   :  { %v7600_v42 = vadd.f32 %v6732_v39, %v960_v40 }
 0xa4f   :  { %v966_v44 = vpack.c.bf16 %v7600_v42, %v7598_v41 }
 0xa51   :  { %6379 = vmatmul.msk.bf16.vlgmr.msrb.gmra.mxu2 %vm200_vm0, %v966_v44 }
 0xad4   :  { %v991_v46 = vpop.f32.mrf.mxu2 }
 0xad5   :  { %v992_v5 = vadd.f32 %v6733_v45, %v991_v46 }
 0xad7   :  { %v1003_v48 = vpack.c.bf16 %v992_v5, %v992_v5 }
 0xad9   :  { %v1006_v49 = vunpack.c.l.b16 %v1003_v48 }
 0xadb   :  { %v7606_v50 = vpack.c.b16 %v1006_v49, %v1006_v49 }
 0xadc   :  { %v993_v6 = vpop.f32.mrf.mxu2 }
 0xadd   :  { %v994_v51 = vadd.f32 %v6733_v45, %v993_v6  ;;  %1121 = vrot.lane.b32.xlu2 %v7606_v50, %s7171_s28  ;;  %1123 = vrot.lane.b32.xlu1 %v7606_v50, %s7170_s5 }
 0xade   :  { %1008 = vrot.lane.b32.xlu0 %v7606_v50, %s7169_s0 }
 0xadf   :  { %v1004_v52 = vpack.c.bf16 %v994_v51, %v994_v51 }
 0xae1   :  { %v1030_v53 = vunpack.c.l.b16 %v1004_v52 }
 0xae3   :  { %v7614_v54 = vpack.c.b16 %v1030_v53, %v1030_v53 }
 0xae5   :  { %1146 = vrot.lane.b32.xlu1 %v7614_v54, %s7170_s5 }
 0xae6   :  { %1032 = vrot.lane.b32.xlu0 %v7614_v54, %s7169_s0 }
 0xaee   :  { %1144 = vrot.lane.b32.xlu0 %v7614_v54, %s7171_s28 }
 0xaf6   :  { %1191 = vrot.lane.b32.xlu0 %v7606_v50, %s7172_s1 }
 0xb37   :  { %v1122_v63 = vpop.permute.xlu2 %1121 }
 0xb4f   :  { %v1124_v55 = vpop.permute.xlu1 %1123 }
 0xb50   :  { %v1129_v56 = vsel %vm234_vm1, %v1124_v55, 0  ;;  %v1009_v57 = vpop.permute.xlu0 %1008 }
 0xb51   :  { %v1014_v58 = vsel %vm234_vm1, %v1009_v57, 0 }
 0xb52   :  { %1023 = vmatpush.bf16.xpose.msra.mxu3 %v1014_v58 }
 0xb57   :  { %v1147_v59 = vpop.permute.xlu1 %1146 }
 0xb58   :  { %v1152_v60 = vsel %vm234_vm1, %v1147_v59, 0  ;;  %v1033_v61 = vpop.permute.xlu0 %1032 }
 0xb59   :  { %v1038_v62 = vsel %vm234_vm1, %v1033_v61, 0  ;;  %6385 = vmatmul.msk.bf16.vlgmr.msra.gmra.mxu3 %vm234_vm1, %v1003_v48  ;;  %v6381_v61 = vld [vmem:[%s7238_s14 + $0x28] sm:$0xff] }
 0xb5a   :  { %1138 = vmatpush.bf16.xpose.msrb.mxu3 %v1129_v56  ;;  %1047 = vmatpush.bf16.xpose.msra.mxu0 %v1038_v62  ;;  %v1234_v62 = vpack.c.bf16 %v6381_v61, %v6381_v61 }
 0xb60   :  { %v1145_v0 = vpop.permute.xlu0 %1144 }
 0xb61   :  { %6386 = vmatmul.msk.bf16.vlgmr.msra.gmra.mxu0 %vm234_vm1, %v1004_v52 }
 0xb62   :  { %1161 = vmatpush.bf16.xpose.msrb.mxu0 %v1152_v60 }
 0xb68   :  { %v1192_v26 = vpop.permute.xlu0 %1191 }
 0xb69   :  { %6389 = vmatmul.msk.bf16.vlgmr.msrb.gmra.mxu3 %vm234_vm1, %v1122_v63  ;;  %v1197_v29 = vsel %vm307_vm2, %v1192_v26, 0 }
 0xb71   :  { %6390 = vmatmul.msk.bf16.vlgmr.msrb.gmra.mxu0 %vm234_vm1, %v1145_v0  ;;  %v1239_v0 = vsel %vm307_vm2, %v1234_v62, 0 }
 0xb72   :  { %1248 = vmatpush.bf16.msra.mxu3 %v1239_v0 }
 0xbdc   :  { %v1025_v1 = vpop.f32.mrf.mxu3 }
 0xbdd   :  { %v1026_v2 = vadd.f32 %v1025_v1, %v7457_v33 }
 0xbde   :  { %v1049_v3 = vpop.f32.mrf.mxu0 }
 0xbdf   :  { %v1053_v4 = vsel %vm234_vm1, %v1026_v2, -inf  ;;  %v1050_v16 = vadd.f32 %v1049_v3, %v7463_v43 }
 0xbe0   :  { %1054 = vmax.xlane.f32.xlu1 %v1053_v4 }
 0xbe1   :  { %v1056_v17 = vsel %vm234_vm1, %v1050_v16, -inf }
 0xbe4   :  { %v1027_v7 = vpop.f32.mrf.mxu3 }
 0xbe6   :  { %v1051_v8 = vpop.f32.mrf.mxu0 }
 0xbec   :  { %v1140_v9 = vpop.f32.mrf.mxu3 }
 0xbed   :  { %v1141_v10 = vadd.f32 %v1140_v9, %v7457_v33 }
 0xbee   :  { %v1163_v11 = vpop.f32.mrf.mxu0 }
 0xbef   :  { %v1167_v12 = vsel %vm234_vm1, %v1141_v10, -inf  ;;  %v1164_v32 = vadd.f32 %v1163_v11, %v7463_v43 }
 0xbf0   :  { %1168 = vmax.xlane.f32.xlu2 %v1167_v12 }
 0xbf1   :  { %v1170_v34 = vsel %vm234_vm1, %v1164_v32, -inf }
 0xbf4   :  { %v1142_v13 = vpop.f32.mrf.mxu3 }
 0xbf6   :  { %v1165_v15 = vpop.f32.mrf.mxu0 }
 0xc08   :  { %1077 = vrot.lane.b32.xlu2 %v7606_v50, %s7174_s2 }
 0xc31   :  { %1057 = vmax.xlane.f32.xlu2 %v1056_v17 }
 0xc49   :  { %1098 = vrot.lane.b32.xlu2 %v7614_v54, %s7174_s2 }
 0xc51   :  { %1298 = vrot.lane.b32.xlu2 %v7614_v54, %s7175_s7 }
 0xc53   :  { %v1055_v18 = vpop.xlane.xlu1 %1054 }
 0xc54   :  { %v1059_v14 = vsub.f32 %v1026_v2, %v1055_v18 }
 0xc56   :  { %v1061_v20 = vmul.f32 1.442695, %v1059_v14 }
 0xc58   :  { %6827 = vpow2.f32 %v1061_v20  ;;  %v6380_v20 = vld [vmem:[%s7238_s14 + $0x20] sm:$0xff] }
 0xc5e   :  { %v6828_v21 = vpop.eup %6827 }
 0xc5f   :  { %v1065_v22 = vsel %vm234_vm1, %v6828_v21, 0.0 }
 0xc60   :  { %1066 = vadd.xlane.f32.xlu0 %v1065_v22 }
 0xc63   :  { %v1169_v23 = vpop.xlane.xlu2 %1168 }
 0xc64   :  { %v1173_v24 = vsub.f32 %v1141_v10, %v1169_v23 }
 0xc66   :  { %v1175_v25 = vmul.f32 1.442695, %v1173_v24 }
 0xc68   :  { %6829 = vpow2.f32 %v1175_v25 }
 0xc6b   :  { %v1078_v27 = vpop.permute.xlu2 %1077 }
 0xc6c   :  { %v1083_v28 = vsel %vm307_vm2, %v1078_v27, 0 }
 0xc6d   :  { %1092 = vmatpush.bf16.msra.mxu1 %v1083_v28 }
 0xc6e   :  { %v6830_v30 = vpop.eup %6829 }
 0xc6f   :  { %v1179_v31 = vsel %vm234_vm1, %v6830_v30, 0.0 }
 0xc70   :  { %1180 = vadd.xlane.f32.xlu1 %v1179_v31 }
 0xc71   :  { %1206 = vmatpush.bf16.msrb.mxu1 %v1197_v29 }
 0xc74   :  { %1275 = vrot.lane.b32.xlu0 %v7606_v50, %s7175_s7 }
 0xc89   :  { %1277 = vrot.lane.b32.xlu1 %v7606_v50, %s7173_s17 }
 0xc9e   :  { %1171 = vmax.xlane.f32.xlu0 %v1170_v34 }
 0xca4   :  { %v1058_v35 = vpop.xlane.xlu2 %1057 }
 0xca5   :  { %v1060_v36 = vsub.f32 %v1050_v16, %v1058_v35 }
 0xca7   :  { %v1063_v19 = vmul.f32 1.442695, %v1060_v36 }
 0xca9   :  { %6831 = vpow2.f32 %v1063_v19 }
 0xcac   :  { %v1099_v37 = vpop.permute.xlu2 %1098 }
 0xcad   :  { %v1104_v38 = vsel %vm307_vm2, %v1099_v37, 0 }
 0xcae   :  { %1113 = vmatpush.bf16.msra.mxu2 %v1104_v38 }
 0xcaf   :  { %v6832_v39 = vpop.eup %6831 }
 0xcb0   :  { %v1068_v40 = vsel %vm234_vm1, %v6832_v39, 0.0 }
 0xcb3   :  { %1069 = vadd.xlane.f32.xlu1 %v1068_v40 }
 0xccc   :  { %1212 = vrot.lane.b32.xlu1 %v7614_v54, %s7172_s1 }
 0xcd3   :  { %v1067_v44 = vpop.xlane.xlu0 %1066 }
 0xcd4   :  { %6833 = vrcp.f32 %v1067_v44  ;;  %1345 = vrot.lane.b32.xlu1 %v7606_v50, %s7176_s10 }
 0xcda   :  { %v6834_v45 = vpop.eup %6833 }
 0xcdb   :  { %v1073_v46 = vmul.f32 %v6834_v45, %v6828_v21  ;;  %v1120_v21 = vpack.c.bf16 %v6380_v20, %v6380_v20 }
 0xcdc   :  { %1413 = vrot.lane.b32.xlu1 %v7606_v50, %s8926_s11 }
 0xcdd   :  { %v1075_v5 = vpack.c.bf16 %v1073_v46, %v1073_v46  ;;  %v1259_v22 = vsel %vm307_vm2, %v1120_v21, 0 }
 0xcde   :  { %1268 = vmatpush.bf16.msra.mxu0 %v1259_v22 }
 0xcdf   :  { %6387 = vmatmul.msk.bf16.vlgmr.msra.gmra.mxu1 %vm234_vm1, %v1075_v5 }
 0xce3   :  { %v1181_v48 = vpop.xlane.xlu1 %1180 }
 0xce4   :  { %6835 = vrcp.f32 %v1181_v48  ;;  %1436 = vrot.lane.b32.xlu1 %v7614_v54, %s8926_s11 }
 0xce6   :  { %v1276_v55 = vpop.permute.xlu0 %1275 }
 0xcea   :  { %v6836_v49 = vpop.eup %6835 }
 0xceb   :  { %v1187_v6 = vmul.f32 %v6836_v49, %v6830_v30  ;;  %v1299_v30 = vpop.permute.xlu2 %1298 }
 0xcec   :  { %1411 = vrot.lane.b32.xlu1 %v7606_v50, %s8924_s15 }
 0xced   :  { %v1189_v51 = vpack.c.bf16 %v1187_v6, %v1187_v6 }
 0xcef   :  { %6391 = vmatmul.msk.bf16.vlgmr.msrb.gmra.mxu1 %vm234_vm1, %v1189_v51 }
 0xcf4   :  { %1434 = vrot.lane.b32.xlu1 %v7614_v54, %s8924_s15 }
 0xcfb   :  { %v1278_v52 = vpop.permute.xlu1 %1277 }
 0xcfc   :  { %v1283_v53 = vsel %vm234_vm1, %v1278_v52, 0 }
 0xcfd   :  { %1292 = vmatpush.bf16.xpose.msra.mxu1 %v1283_v53 }
 0xd04   :  { %6395 = vmatmul.msk.bf16.vlgmr.msra.gmra.mxu1 %vm234_vm1, %v1276_v55 }
 0xd11   :  { %v1172_v56 = vpop.xlane.xlu0 %1171 }
 0xd12   :  { %v1174_v57 = vsub.f32 %v1164_v32, %v1172_v56 }
 0xd14   :  { %v1177_v58 = vmul.f32 1.442695, %v1174_v57 }
 0xd16   :  { %6837 = vpow2.f32 %v1177_v58 }
 0xd1c   :  { %v6838_v59 = vpop.eup %6837 }
 0xd1d   :  { %v1182_v60 = vsel %vm234_vm1, %v6838_v59, 0.0 }
 0xd1e   :  { %1183 = vadd.xlane.f32.xlu0 %v1182_v60 }
 0xd26   :  { %v1070_v63 = vpop.xlane.xlu1 %1069 }
 0xd27   :  { %6839 = vrcp.f32 %v1070_v63 }
 0xd2d   :  { %v6840_v1 = vpop.eup %6839 }
 0xd2e   :  { %v1074_v2 = vmul.f32 %v6840_v1, %v6832_v39 }
 0xd30   :  { %v1076_v3 = vpack.c.bf16 %v1074_v2, %v1074_v2 }
 0xd32   :  { %6388 = vmatmul.msk.bf16.vlgmr.msra.gmra.mxu2 %vm234_vm1, %v1076_v3  ;;  %1300 = vrot.lane.b32.xlu0 %v7614_v54, %s7173_s17 }
 0xd3e   :  { %v1213_v4 = vpop.permute.xlu1 %1212 }
 0xd3f   :  { %v1218_v7 = vsel %vm307_vm2, %v1213_v4, 0 }
 0xd40   :  { %1227 = vmatpush.bf16.msrb.mxu2 %v1218_v7 }
 0xd46   :  { %v1346_v8 = vpop.permute.xlu1 %1345 }
 0xd47   :  { %v1351_v9 = vsel %vm307_vm2, %v1346_v8, 0 }
 0xd48   :  { %1360 = vmatpush.bf16.msrb.mxu3 %v1351_v9 }
 0xd4e   :  { %v1414_v26 = vpop.permute.xlu1 %1413 }
 0xd4f   :  { %v1419_v29 = vsel %vm234_vm1, %v1414_v26, 0 }
 0xd56   :  { %v1437_v31 = vpop.permute.xlu1 %1436 }
 0xd57   :  { %v1442_v46 = vsel %vm234_vm1, %v1437_v31, 0 }
 0xd5c   :  { %v1094_v10 = vpop.f32.mrf.mxu1 }
 0xd5e   :  { %v1412_v35 = vpop.permute.xlu1 %1411 }
 0xd64   :  { %v1096_v11 = vpop.f32.mrf.mxu1 }
 0xd66   :  { %v1435_v63 = vpop.permute.xlu1 %1434 }
 0xd6c   :  { %v1208_v12 = vpop.f32.mrf.mxu1 }
 0xd74   :  { %v1210_v13 = vpop.f32.mrf.mxu1 }
 0xd81   :  { %v1294_v15 = vpop.f32.mrf.mxu1 }
 0xd82   :  { %v1295_v16 = vadd.f32 %v1294_v15, %v7457_v33 }
 0xd84   :  { %v1321_v17 = vsel %vm234_vm1, %v1295_v16, -inf }
 0xd85   :  { %1322 = vmax.xlane.f32.xlu2 %v1321_v17  ;;  %v6382_v17 = vld [vmem:[%s7238_s14 + $0x30] sm:$0xff] }
 0xd89   :  { %v1296_v18 = vpop.f32.mrf.mxu1 }
 0xd8a   :  { %v1388_v18 = vpack.c.bf16 %v6382_v17, %v6382_v17 }
 0xd8c   :  { %v1393_v20 = vsel %vm307_vm2, %v1388_v18, 0  ;;  %v6735_v18 = vld [vmem:[%s7243_s19 + $0x1] ss:$0 sm:$0xff] }
 0xd8d   :  { %1402 = vmatpush.bf16.msrb.mxu1 %v1393_v20 }
 0xd91   :  { %v1184_v14 = vpop.xlane.xlu0 %1183 }
 0xd92   :  { %6841 = vrcp.f32 %v1184_v14 }
 0xd98   :  { %v6842_v23 = vpop.eup %6841 }
 0xd99   :  { %v1188_v24 = vmul.f32 %v6842_v23, %v6838_v59 }
 0xd9b   :  { %v1190_v25 = vpack.c.bf16 %v1188_v24, %v1188_v24 }
 0xd9d   :  { %6392 = vmatmul.msk.bf16.vlgmr.msrb.gmra.mxu2 %vm234_vm1, %v1190_v25 }
 0xda4   :  { %v1301_v27 = vpop.permute.xlu0 %1300 }
 0xda5   :  { %v1306_v28 = vsel %vm234_vm1, %v1301_v27, 0 }
 0xda6   :  { %1315 = vmatpush.bf16.xpose.msra.mxu2 %v1306_v28 }
 0xdad   :  { %6396 = vmatmul.msk.bf16.vlgmr.msra.gmra.mxu2 %vm234_vm1, %v1299_v30 }
 0xdae   :  { %1428 = vmatpush.bf16.xpose.msrb.mxu2 %v1419_v29 }
 0xdb5   :  { %v1115_v32 = vpop.f32.mrf.mxu2 }
 0xdb6   :  { %v1119_v34 = vpack.c.bf16 %v1115_v32, %v1094_v10 }
 0xdb8   :  { %6394 = vmatmul.msk.bf16.vlgmr.msra.gmra.mxu0 %vm234_vm1, %v1119_v34 }
 0xdbd   :  { %v1117_v36 = vpop.f32.mrf.mxu2  ;;  %6400 = vmatmul.msk.bf16.vlgmr.msrb.gmra.mxu2 %vm234_vm1, %v1412_v35 }
 0xdf8   :  { %v1323_v19 = vpop.xlane.xlu2 %1322 }
 0xdf9   :  { %v1327_v37 = vsub.f32 %v1295_v16, %v1323_v19 }
 0xdfb   :  { %v1329_v38 = vmul.f32 1.442695, %v1327_v37 }
 0xdfd   :  { %6843 = vpow2.f32 %v1329_v38 }
 0xe03   :  { %v6844_v39 = vpop.eup %6843 }
 0xe04   :  { %v1333_v40 = vsel %vm234_vm1, %v6844_v39, 0.0 }
 0xe05   :  { %1334 = vadd.xlane.f32.xlu0 %v1333_v40 }
 0xe19   :  { %1366 = vrot.lane.b32.xlu0 %v7614_v54, %s7176_s10 }
 0xe20   :  { %v1229_v44 = vpop.f32.mrf.mxu2 }
 0xe21   :  { %v1233_v45 = vpack.c.bf16 %v1229_v44, %v1208_v12 }
 0xe23   :  { %6393 = vmatmul.msk.bf16.vlgmr.msra.gmra.mxu3 %vm234_vm1, %v1233_v45 }
 0xe24   :  { %1451 = vmatpush.bf16.xpose.msra.mxu3 %v1442_v46 }
 0xe28   :  { %v1231_v5 = vpop.f32.mrf.mxu2 }
 0xe30   :  { %v1317_v48 = vpop.f32.mrf.mxu2 }
 0xe31   :  { %v1318_v49 = vadd.f32 %v1317_v48, %v7463_v43  ;;  %v6427_v48 = vld [vmem:[%s7228_s3 + $0x50] sm:$0xff] }
 0xe33   :  { %v1324_v6 = vsel %vm234_vm1, %v1318_v49, -inf }
 0xe34   :  { %1325 = vmax.xlane.f32.xlu2 %v1324_v6 }
 0xe35   :  { %v1270_v35 = vpop.f32.mrf.mxu0 }
 0xe38   :  { %v1319_v51 = vpop.f32.mrf.mxu2 }
 0xe3d   :  { %v1272_v38 = vpop.f32.mrf.mxu0 }
 0xe40   :  { %v1430_v52 = vpop.f32.mrf.mxu2 }
 0xe41   :  { %v1431_v53 = vadd.f32 %v1430_v52, %v7457_v33  ;;  %v6425_v52 = vld [vmem:[%s7228_s3 + $0x40] sm:$0xff] }
 0xe43   :  { %v1457_v55 = vsel %vm234_vm1, %v1431_v53, -inf }
 0xe44   :  { %1458 = vmax.xlane.f32.xlu2 %v1457_v55 }
 0xe48   :  { %v1432_v56 = vpop.f32.mrf.mxu2 }
 0xe78   :  { %v1335_v57 = vpop.xlane.xlu0 %1334 }
 0xe79   :  { %6845 = vrcp.f32 %v1335_v57  ;;  %v7728_v57 = vld [vmem:[%s8955_s18] sm:$0xff] }
 0xe7f   :  { %v6846_v58 = vpop.eup %6845 }
 0xe80   :  { %v1341_v59 = vmul.f32 %v6846_v58, %v6844_v39  ;;  %v7731_v58 = vld [vmem:[%s8955_s18 + $0x8] sm:$0xff]  ;;  %s8972_s18 = sld [smem:[#allocation20_spill]] }
 0xe82   :  { %v1343_v60 = vpack.c.bf16 %v1341_v59, %v1341_v59  ;;  %v1745_v59 = vpack.c.bf16 %v7731_v58, %v7728_v57 }
 0xe84   :  { %6397 = vmatmul.msk.bf16.vlgmr.msrb.gmra.mxu3 %vm234_vm1, %v1343_v60 }
 0xe8b   :  { %v1367_v61 = vpop.permute.xlu0 %1366 }
 0xe8c   :  { %v1372_v62 = vsel %vm307_vm2, %v1367_v61, 0 }
 0xe8d   :  { %1381 = vmatpush.bf16.msrb.mxu0 %v1372_v62 }
 0xe94   :  { %6401 = vmatmul.msk.bf16.vlgmr.msra.gmra.mxu3 %vm234_vm1, %v1435_v63 }
 0xea6   :  { %v7705_v4 = vpop.f32.mrf.mxu3 }
 0xea7   :  { %v1326_v0 = vpop.xlane.xlu2 %1325  ;;  %v1271_v61 = vadd.f32 %v1270_v35, %v7705_v4  ;;  %v6407_v35 = vld [vmem:[%s7258_s6 + $0x20] sm:$0xff] }
 0xea8   :  { %v1328_v33 = vsub.f32 %v1318_v49, %v1326_v0  ;;  %v6428_v49 = vld [vmem:[%s7228_s3 + $0x58] sm:$0xff] }
 0xea9   :  { %v1752_v51 = vpack.c.bf16 %v6428_v49, %v6427_v48  ;;  %v6383_v0 = vld [vmem:[%s7238_s14 + $0x38] sm:$0xff] }
 0xeaa   :  { %v1331_v1 = vmul.f32 1.442695, %v1328_v33  ;;  %v1524_v33 = vpack.c.bf16 %v6383_v0, %v6383_v0  ;;  %v6420_v0 = vld [vmem:[%s7268_s20 + $0x78] sm:$0xff] }
 0xeac   :  { %6847 = vpow2.f32 %v1331_v1  ;;  %v1529_v1 = vsel %vm307_vm2, %v1524_v33, 0 }
 0xead   :  { %1538 = vmatpush.bf16.msra.mxu2 %v1529_v1  ;;  %v6417_v1 = vld [vmem:[%s7268_s20 + $0x60] sm:$0xff] }
 0xeae   :  { %v7707_v7 = vpop.f32.mrf.mxu3 }
 0xeb2   :  { %v6848_v2 = vpop.eup %6847 }
 0xeb3   :  { %v1336_v3 = vsel %vm234_vm1, %v6848_v2, 0.0 }
 0xeb4   :  { %1337 = vadd.xlane.f32.xlu1 %v1336_v3 }
 0xeb7   :  { %v1459_v9 = vpop.xlane.xlu2 %1458 }
 0xeb8   :  { %v1463_v11 = vsub.f32 %v1431_v53, %v1459_v9  ;;  %v6426_v53 = vld [vmem:[%s7228_s3 + $0x48] sm:$0xff] }
 0xeb9   :  { %v1751_v55 = vpack.c.bf16 %v6426_v53, %v6425_v52  ;;  %v7780_v52 = vld [vmem:[%s8956_s22] sm:$0x3]  ;;  %s8973_s22 = sld [smem:[#allocation21_spill]] }
 0xeba   :  { %v1465_v12 = vmul.f32 1.442695, %v1463_v11 }
 0xebc   :  { %6849 = vpow2.f32 %v1465_v12 }
 0xec2   :  { %v6850_v14 = vpop.eup %6849 }
 0xec3   :  { %v1469_v21 = vsel %vm234_vm1, %v6850_v14, 0.0 }
 0xecd   :  { %1502 = vrot.lane.b32.xlu1 %v7614_v54, %s8922_s16 }
 0xf07   :  { %v1362_v8 = vpop.f32.mrf.mxu3 }
 0xf0f   :  { %v1364_v10 = vpop.f32.mrf.mxu3 }
 0xf10   :  { %v6734_v10 = vld [vmem:[%s7233_s8 + $0x2] ss:$0 sm:$0xff] }
 0xf17   :  { %v1453_v13 = vpop.f32.mrf.mxu3 }
 0xf18   :  { %v1454_v15 = vadd.f32 %v1453_v13, %v7463_v43 }
 0xf1a   :  { %v1460_v16 = vsel %vm234_vm1, %v1454_v15, -inf }
 0xf1b   :  { %1461 = vmax.xlane.f32.xlu2 %v1460_v16 }
 0xf1f   :  { %v1455_v54 = vpop.f32.mrf.mxu3 }
 0xf23   :  { %1470 = vadd.xlane.f32.xlu2 %v1469_v21  ;;  %v1273_v21 = vadd.f32 %v1272_v38, %v7707_v7 }
 0xf27   :  { %v1338_v22 = vpop.xlane.xlu1 %1337 }
 0xf28   :  { %6851 = vrcp.f32 %v1338_v22 }
 0xf2e   :  { %v6852_v23 = vpop.eup %6851 }
 0xf2f   :  { %v1342_v24 = vmul.f32 %v6852_v23, %v6848_v2 }
 0xf31   :  { %v1344_v25 = vpack.c.bf16 %v1342_v24, %v1342_v24 }
 0xf33   :  { %6398 = vmatmul.msk.bf16.vlgmr.msrb.gmra.mxu0 %vm234_vm1, %v1344_v25 }
 0xf3b   :  { %1481 = vrot.lane.b32.xlu2 %v7606_v50, %s8922_s16 }
 0xf3f   :  { %v1503_v43 = vpop.permute.xlu1 %1502 }
 0xf40   :  { %v1508_v26 = vsel %vm307_vm2, %v1503_v43, 0 }
 0xf41   :  { %1517 = vmatpush.bf16.msra.mxu1 %v1508_v26 }
 0xf8e   :  { %v1462_v27 = vpop.xlane.xlu2 %1461 }
 0xf8f   :  { %v1464_v28 = vsub.f32 %v1454_v15, %v1462_v27 }
 0xf91   :  { %v1467_v29 = vmul.f32 1.442695, %v1464_v28 }
 0xf93   :  { %6853 = vpow2.f32 %v1467_v29 }
 0xf96   :  { %v1471_v30 = vpop.xlane.xlu2 %1470 }
 0xf97   :  { %6855 = vrcp.f32 %v1471_v30 }
 0xf99   :  { %v6854_v31 = vpop.eup %6853 }
 0xf9a   :  { %v1472_v32 = vsel %vm234_vm1, %v6854_v31, 0.0 }
 0xf9b   :  { %1473 = vadd.xlane.f32.xlu0 %v1472_v32  ;;  %v6410_v32 = vld [vmem:[%s7258_s6 + $0x38] sm:$0xff] }
 0xf9d   :  { %v6856_v34 = vpop.eup %6855 }
 0xf9e   :  { %v1477_v36 = vmul.f32 %v6856_v34, %v6850_v14  ;;  %v1482_v50 = vpop.permute.xlu2 %1481 }
 0xf9f   :  { %v1487_v19 = vsel %vm307_vm2, %v1482_v50, 0 }
 0xfa0   :  { %v1479_v37 = vpack.c.bf16 %v1477_v36, %v1477_v36  ;;  %1496 = vmatpush.bf16.msra.mxu0 %v1487_v19  ;;  %v6408_v36 = vld [vmem:[%s7258_s6 + $0x28] sm:$0xff] }
 0xfa1   :  { %v1618_v50 = vpack.c.bf16 %v6408_v36, %v6407_v35  ;;  %v6736_v36 = vld [vmem:[%s7248_s24 + $0x1] ss:$0 sm:$0xff] }
 0xfa3   :  { %6402 = vmatmul.msk.bf16.vlgmr.msra.gmra.mxu0 %vm234_vm1, %v1479_v37 }
 0xfb0   :  { %v1383_v39 = vpop.f32.mrf.mxu0 }
 0xfb1   :  { %v1387_v40 = vpack.c.bf16 %v1383_v39, %v1362_v8 }
 0xfb3   :  { %6399 = vmatmul.msk.bf16.vlgmr.msrb.gmra.mxu1 %vm234_vm1, %v1387_v40 }
 0xfb4   :  { %1767 = vmatpush.bf16.msrb.mxu1 %v1752_v51 }
 0xfb8   :  { %v1385_v44 = vpop.f32.mrf.mxu0  ;;  %1768 = vmatpush.bf16.msrb.mxu1 %v1751_v55 }
0x100e   :  { %v1474_v45 = vpop.xlane.xlu0 %1473 }
0x100f   :  { %6857 = vrcp.f32 %v1474_v45 }
0x1015   :  { %v6858_v46 = vpop.eup %6857 }
0x1016   :  { %v1478_v5 = vmul.f32 %v6858_v46, %v6854_v31 }
0x1018   :  { %v1480_v6 = vpack.c.bf16 %v1478_v5, %v1478_v5 }
0x101a   :  { %6403 = vmatmul.msk.bf16.vlgmr.msra.gmra.mxu1 %vm234_vm1, %v1480_v6 }
0x1020   :  { %v1498_v56 = vpop.f32.mrf.mxu0 }
0x1028   :  { %v1500_v60 = vpop.f32.mrf.mxu0 }
0x102a   :  { %6430 = vmatmul.msk.bf16.vlgmr.msrb.gmra.mxu1 %vm200_vm0, %v1745_v59 }
0x1030   :  { %v1404_v62 = vpop.f32.mrf.mxu1 }
0x1031   :  { %v1409_v63 = vadd.f32 %v1404_v62, %v1271_v61 }
0x1038   :  { %v1406_v2 = vpop.f32.mrf.mxu1 }
0x1039   :  { %v1410_v23 = vadd.f32 %v1406_v2, %v1273_v21  ;;  %v6418_v2 = vld [vmem:[%s7268_s20 + $0x68] sm:$0xff] }
0x1097   :  { %v1519_v3 = vpop.f32.mrf.mxu1 }
0x1098   :  { %v1523_v8 = vpack.c.bf16 %v1519_v3, %v1498_v56  ;;  %v7787_v56 = vperm.slane %v7780_v52, 0  ;;  %v1656_v3 = vpack.c.bf16 %v6418_v2, %v6417_v1 }
0x109a   :  { %6404 = vmatmul.msk.bf16.vlgmr.msra.gmra.mxu2 %vm234_vm1, %v1523_v8  ;;  %v6415_v8 = vld [vmem:[%s7268_s20 + $0x50] sm:$0xff] }
0x109f   :  { %v1521_v9 = vpop.f32.mrf.mxu1 }
0x10a0   :  { %v6416_v9 = vld [vmem:[%s7268_s20 + $0x58] sm:$0xff] }
0x10a7   :  { %v1770_v11 = vpop.f32.mrf.mxu1 }
0x10a8   :  { %v1771_v12 = vadd.f32 %v6734_v10, %v1770_v11  ;;  %v6413_v11 = vld [vmem:[%s7268_s20 + $0x40] sm:$0xff] }
0x10aa   :  { %v1782_v13 = vpack.c.bf16 %v1771_v12, %v1771_v12  ;;  %v6414_v12 = vld [vmem:[%s7268_s20 + $0x48] sm:$0xff] }
0x10ac   :  { %v1789_v15 = vunpack.c.l.b16 %v1782_v13 }
0x10ae   :  { %v7741_v4 = vpack.c.b16 %v1789_v15, %v1789_v15  ;;  %v1654_v15 = vpack.c.bf16 %v6414_v12, %v6413_v11  ;;  %v1744_v11 = vrot.slane %v7780_v52, 1 }
0x10af   :  { %v1772_v29 = vpop.f32.mrf.mxu1 }
0x10b0   :  { %1791 = vrot.lane.b32.xlu2 %v7741_v4, %s7169_s0  ;;  %1906 = vrot.lane.b32.xlu1 %v7741_v4, %s7170_s5  ;;  %v1773_v7 = vadd.f32 %v6734_v10, %v1772_v29  ;;  %v1655_v10 = vpack.c.bf16 %v6416_v9, %v6415_v8 }
0x10b2   :  { %v7755_v30 = vpack.c.bf16 %v1773_v7, %v1773_v7 }
0x110a   :  { %v1792_v16 = vpop.permute.xlu2 %1791 }
0x110b   :  { %v1797_v17 = vsel %vm234_vm1, %v1792_v16, 0 }
0x110c   :  { %1806 = vmatpush.bf16.xpose.msrb.mxu2 %v1797_v17 }
0x1113   :  { %6436 = vmatmul.msk.bf16.vlgmr.msrb.gmra.mxu2 %vm234_vm1, %v1782_v13 }
0x111d   :  { %v1540_v14 = vpop.f32.mrf.mxu2 }
0x111e   :  { %v1545_v54 = vadd.f32 %v1540_v14, %v1409_v63  ;;  %v6419_v63 = vld [vmem:[%s7268_s20 + $0x70] sm:$0xff] }
0x111f   :  { %v1657_v33 = vpack.c.bf16 %v6420_v0, %v6419_v63 }
0x1120   :  { %v1550_v20 = vadd.f32 %v6735_v18, %v1545_v54 }
0x1121   :  { %1670 = vmatpush.bf16.msrb.mxu0 %v1657_v33 }
0x1122   :  { %v1552_v22 = vadd.f32 %v1550_v20, %v7598_v41  ;;  %v1813_v41 = vunpack.c.l.b16 %v7755_v30  ;;  %v1907_v19 = vpop.permute.xlu1 %1906 }
0x1123   :  { %v1912_v37 = vsel %vm234_vm1, %v1907_v19, 0 }
0x1124   :  { %v1558_v24 = vsel %vm200_vm0, %v1552_v22, 0.0  ;;  %v7758_v31 = vpack.c.b16 %v1813_v41, %v1813_v41  ;;  %1921 = vmatpush.bf16.xpose.msra.mxu2 %v1912_v37 }
0x1125   :  { %v1542_v25 = vpop.f32.mrf.mxu2  ;;  %1559 = vadd.xlane.f32.xlu2 %v1558_v24  ;;  %1671 = vmatpush.bf16.msrb.mxu0 %v1656_v3  ;;  %v6738_v3 = vld [vmem:[%s7263_s12 + $0x1] ss:$0 sm:$0xff] }
0x1126   :  { %v1546_v43 = vadd.f32 %v1542_v25, %v1410_v23 }
0x1128   :  { %v1551_v26 = vadd.f32 %v6735_v18, %v1546_v43 }
0x1129   :  { %1672 = vmatpush.bf16.msrb.mxu0 %v1655_v10 }
0x112a   :  { %v1553_v27 = vadd.f32 %v1551_v26, %v7600_v42  ;;  %v6409_v42 = vld [vmem:[%s7258_s6 + $0x30] sm:$0xff] }
0x112b   :  { %v1619_v34 = vpack.c.bf16 %v6410_v32, %v6409_v42 }
0x112c   :  { %v1561_v28 = vsel %vm200_vm0, %v1553_v27, 0.0 }
0x112d   :  { %1562 = vadd.xlane.f32.xlu0 %v1561_v28  ;;  %1634 = vmatpush.bf16.msrb.mxu3 %v1619_v34 }
0x112e   :  { %1673 = vmatpush.bf16.msrb.mxu0 %v1654_v15 }
0x1131   :  { %1635 = vmatpush.bf16.msrb.mxu3 %v1618_v50 }
0x113d   :  { %1815 = vrot.lane.b32.xlu2 %v7758_v31, %s7169_s0 }
0x1141   :  { %1904 = vrot.lane.b32.xlu0 %v7741_v4, %s7171_s28 }
0x1145   :  { %1927 = vrot.lane.b32.xlu2 %v7758_v31, %s7171_s28 }
0x1196   :  { %v1808_v38 = vpop.f32.mrf.mxu2 }
0x1197   :  { %v1809_v60 = vadd.f32 %v1808_v38, %v7787_v56 }
0x1198   :  { %v1560_v39 = vpop.xlane.xlu2 %1559 }
0x1199   :  { %v1564_v40 = vmul.f32 %v1560_v39, %v7558_v47  ;;  %v1836_v61 = vsel %vm234_vm1, %v1809_v60, -inf }
0x119b   :  { %v7772_v44 = vsub.f32 %v1552_v22, %v1564_v40 }
0x119d   :  { %v1568_v45 = vmul.f32 %v7772_v44, %v7772_v44 }
0x119e   :  { %v1810_v46 = vpop.f32.mrf.mxu2 }
0x119f   :  { %v1570_v5 = vsel %vm200_vm0, %v1568_v45, 0.0  ;;  %v6737_v45 = vld [vmem:[%s7253_s30 + $0x1] ss:$0 sm:$0xff] }
0x11a0   :  { %v1563_v48 = vpop.xlane.xlu0 %1562  ;;  %1571 = vadd.xlane.f32.xlu1 %v1570_v5  ;;  %v1816_v49 = vpop.permute.xlu2 %1815 }
0x11a1   :  { %v1565_v6 = vmul.f32 %v1563_v48, %v7558_v47  ;;  %v1821_v51 = vsel %vm234_vm1, %v1816_v49, 0 }
0x11a2   :  { %1830 = vmatpush.bf16.xpose.msra.mxu3 %v1821_v51 }
0x11a3   :  { %v7782_v53 = vsub.f32 %v1553_v27, %v1565_v6 }
0x11a5   :  { %v1569_v55 = vmul.f32 %v7782_v53, %v7782_v53 }
0x11a7   :  { %v1573_v59 = vsel %vm200_vm0, %v1569_v55, 0.0 }
0x11a8   :  { %1574 = vadd.xlane.f32.xlu0 %v1573_v59 }
0x11b0   :  { %1837 = vmax.xlane.f32.xlu0 %v1836_v61  ;;  %v1928_v61 = vpop.permute.xlu2 %1927 }
0x11b3   :  { %v1905_v62 = vpop.permute.xlu0 %1904 }
0x11b4   :  { %6440 = vmatmul.msk.bf16.vlgmr.msra.gmra.mxu2 %vm234_vm1, %v1905_v62 }
0x11b9   :  { %1929 = vrot.lane.b32.xlu1 %v7758_v31, %s7170_s5 }
0x11c1   :  { %1860 = vrot.lane.b32.xlu1 %v7741_v4, %s7174_s2 }
0x11c9   :  { %1974 = vrot.lane.b32.xlu1 %v7741_v4, %s7172_s1 }
0x11d1   :  { %2058 = vrot.lane.b32.xlu1 %v7741_v4, %s7175_s7 }
0x1213   :  { %v1572_v13 = vpop.xlane.xlu1 %1571 }
0x1214   :  { %v1576_v16 = vmul.f32 %v1572_v13, %v7558_v47 }
0x1216   :  { %v1578_v17 = vadd.f32 1e-05, %v1576_v16 }
0x1218   :  { %6859 = vrsqrt.f32 %v1578_v17  ;;  %vm1586_vm5 = vweird.f32 %v1578_v17 }
0x121b   :  { %v1575_v18 = vpop.xlane.xlu0 %1574 }
0x121c   :  { %v1577_v14 = vmul.f32 %v1575_v18, %v7558_v47 }
0x121e   :  { %v6860_v54 = vpop.eup %6859  ;;  %v1579_v20 = vadd.f32 1e-05, %v1577_v14 }
0x121f   :  { %v1581_v21 = vmul.f32 %v6860_v54, %v1578_v17  ;;  %vm1587_vm4 = vweird.f32 %v6860_v54  ;;  %v7833_v17 = vperm.slane %v1744_v11, 0 }
0x1220   :  { %6861 = vrsqrt.f32 %v1579_v20  ;;  %vm1588_vm6 = vmor %vm1586_vm5, %vm1587_vm4  ;;  %vm1596_vm8 = vweird.f32 %v1579_v20 }
0x1221   :  { %v1582_v22 = vmul.f32 %v6860_v54, %v1581_v21 }
0x1223   :  { %v1583_v23 = vmul.f32 0.5, %v1582_v22  ;;  %v1838_v24 = vpop.xlane.xlu0 %1837 }
0x1224   :  { %v1842_v25 = vsub.f32 %v1809_v60, %v1838_v24 }
0x1225   :  { %v1584_v43 = vsub.f32 1.5, %v1583_v23 }
0x1226   :  { %v6862_v26 = vpop.eup %6861  ;;  %v1844_v27 = vmul.f32 1.442695, %v1842_v25 }
0x1227   :  { %v1585_v28 = vmul.f32 %v6860_v54, %v1584_v43  ;;  %v1591_v29 = vmul.f32 %v6862_v26, %v1579_v20  ;;  %vm1597_vm7 = vweird.f32 %v6862_v26 }
0x1228   :  { %6863 = vpow2.f32 %v1844_v27  ;;  %vm1598_vm9 = vmor %vm1596_vm8, %vm1597_vm7 }
0x1229   :  { %v1592_v7 = vmul.f32 %v6862_v26, %v1591_v29  ;;  %v1589_v41 = vsel %vm1588_vm6, %v6860_v54, %v1585_v28 }
0x122a   :  { %v1600_v50 = vmul.f32 %v1589_v41, %v7772_v44 }
0x122b   :  { %v1593_v42 = vmul.f32 0.5, %v1592_v7  ;;  %v1930_v32 = vpop.permute.xlu1 %1929 }
0x122c   :  { %v1605_v39 = vmul.f32 %v6736_v36, %v1600_v50  ;;  %v1935_v59 = vsel %vm234_vm1, %v1930_v32, 0 }
0x122d   :  { %v1594_v34 = vsub.f32 1.5, %v1593_v42 }
0x122e   :  { %v6864_v35 = vpop.eup %6863  ;;  %v7817_v49 = vadd.f32 %v6737_v45, %v1605_v39 }
0x122f   :  { %v1595_v19 = vmul.f32 %v6862_v26, %v1594_v34  ;;  %v1848_v37 = vsel %vm234_vm1, %v6864_v35, 0.0 }
0x1230   :  { %1849 = vadd.xlane.f32.xlu0 %v1848_v37 }
0x1231   :  { %v1599_v38 = vsel %vm1598_vm9, %v6862_v26, %v1595_v19 }
0x1232   :  { %v1601_v40 = vmul.f32 %v1599_v38, %v7782_v53 }
0x1233   :  { %v1861_v46 = vpop.permute.xlu1 %1860 }
0x1234   :  { %v1606_v5 = vmul.f32 %v6736_v36, %v1601_v40  ;;  %v1866_v48 = vsel %vm307_vm2, %v1861_v46, 0 }
0x1235   :  { %1875 = vmatpush.bf16.msra.mxu0 %v1866_v48 }
0x1236   :  { %v7819_v6 = vadd.f32 %v6737_v45, %v1606_v5 }
0x1237   :  { %v1923_v44 = vpop.f32.mrf.mxu2 }
0x1238   :  { %v1924_v51 = vadd.f32 %v1923_v44, %v7787_v56  ;;  %v1612_v55 = vpack.c.bf16 %v7819_v6, %v7817_v49 }
0x123a   :  { %6412 = vmatmul.msk.bf16.vlgmr.msrb.gmra.mxu3 %vm200_vm0, %v1612_v55  ;;  %v1950_v53 = vsel %vm234_vm1, %v1924_v51, -inf }
0x123b   :  { %1944 = vmatpush.bf16.xpose.msrb.mxu3 %v1935_v59  ;;  %1951 = vmax.xlane.f32.xlu2 %v1950_v53  ;;  %v1975_v13 = vpop.permute.xlu1 %1974 }
0x123c   :  { %v1980_v18 = vsel %vm307_vm2, %v1975_v13, 0 }
0x123f   :  { %v1925_v60 = vpop.f32.mrf.mxu2 }
0x1243   :  { %v2059_v41 = vpop.permute.xlu1 %2058 }
0x124a   :  { %6437 = vmatmul.msk.bf16.vlgmr.msra.gmra.mxu3 %vm234_vm1, %v7755_v30 }
0x125a   :  { %6441 = vmatmul.msk.bf16.vlgmr.msrb.gmra.mxu3 %vm234_vm1, %v1928_v61  ;;  %v6432_v61 = vld [vmem:[%s7238_s14 + $0x48] sm:$0xff] }
0x12a3   :  { %v1850_v15 = vpop.xlane.xlu0 %1849 }
0x12ae   :  { %v1952_v62 = vpop.xlane.xlu2 %1951 }
0x12af   :  { %v1956_v63 = vsub.f32 %v1924_v51, %v1952_v62  ;;  %v2017_v62 = vpack.c.bf16 %v6432_v61, %v6432_v61 }
0x12b1   :  { %v1958_v0 = vmul.f32 1.442695, %v1956_v63  ;;  %v2022_v63 = vsel %vm307_vm2, %v2017_v62, 0 }
0x12b2   :  { %2031 = vmatpush.bf16.msrb.mxu2 %v2022_v63 }
0x12b3   :  { %6865 = vpow2.f32 %v1958_v0 }
0x12b4   :  { %6867 = vrcp.f32 %v1850_v15 }
0x12b9   :  { %v6866_v33 = vpop.eup %6865 }
0x12ba   :  { %v1962_v1 = vsel %vm234_vm1, %v6866_v33, 0.0  ;;  %v6868_v20 = vpop.eup %6867 }
0x12bb   :  { %1963 = vadd.xlane.f32.xlu0 %v1962_v1  ;;  %v1856_v22 = vmul.f32 %v6868_v20, %v6864_v35 }
0x12bd   :  { %v1637_v2 = vpop.f32.mrf.mxu3  ;;  %v1858_v23 = vpack.c.bf16 %v1856_v22, %v1856_v22  ;;  %v6431_v22 = vld [vmem:[%s7238_s14 + $0x40] sm:$0xff] }
0x12be   :  { %v1638_v8 = vadd.f32 %v6738_v3, %v1637_v2 }
0x12c0   :  { %v1642_v12 = vmax.f32 %v1638_v8, 0.0 }
0x12c5   :  { %v1639_v9 = vpop.f32.mrf.mxu3 }
0x12c6   :  { %v1640_v10 = vadd.f32 %v6738_v3, %v1639_v9 }
0x12c8   :  { %v1643_v30 = vmax.f32 %v1640_v10, 0.0 }
0x12ca   :  { %v1644_v16 = vpack.c.bf16 %v1643_v30, %v1642_v12 }
0x12cc   :  { %6422 = vmatmul.msk.bf16.vlgmr.msrb.gmra.mxu0 %vm890_vm10, %v1644_v16 }
0x12cd   :  { %1989 = vmatpush.bf16.msrb.mxu0 %v1980_v18  ;;  %v1832_v14 = vpop.f32.mrf.mxu3 }
0x12ce   :  { %v1833_v54 = vadd.f32 %v1832_v14, %v7833_v17 }
0x12cf   :  { %2060 = vrot.lane.b32.xlu0 %v7741_v4, %s7173_s17 }
0x12d0   :  { %v1839_v52 = vsel %vm234_vm1, %v1833_v54, -inf }
0x12d1   :  { %1840 = vmax.xlane.f32.xlu1 %v1839_v52 }
0x12d5   :  { %v1834_v21 = vpop.f32.mrf.mxu3 }
0x12dc   :  { %6438 = vmatmul.msk.bf16.vlgmr.msra.gmra.mxu0 %vm234_vm1, %v1858_v23  ;;  %v1903_v23 = vpack.c.bf16 %v6431_v22, %v6431_v22 }
0x12dd   :  { %v1946_v24 = vpop.f32.mrf.mxu3 }
0x12de   :  { %v1947_v25 = vadd.f32 %v1946_v24, %v7833_v17  ;;  %v2042_v24 = vsel %vm307_vm2, %v1903_v23, 0 }
0x12df   :  { %2051 = vmatpush.bf16.msra.mxu3 %v2042_v24 }
0x12e0   :  { %v1953_v43 = vsel %vm234_vm1, %v1947_v25, -inf }
0x12e1   :  { %1954 = vmax.xlane.f32.xlu2 %v1953_v43 }
0x12e5   :  { %v1948_v26 = vpop.f32.mrf.mxu3 }
0x12ea   :  { %1995 = vrot.lane.b32.xlu1 %v7758_v31, %s7172_s1 }
0x12f2   :  { %2081 = vrot.lane.b32.xlu1 %v7758_v31, %s7175_s7 }
0x12f9   :  { %1881 = vrot.lane.b32.xlu2 %v7758_v31, %s7174_s2 }
0x132e   :  { %v1964_v27 = vpop.xlane.xlu0 %1963 }
0x132f   :  { %6869 = vrcp.f32 %v1964_v27 }
0x1335   :  { %v6870_v28 = vpop.eup %6869 }
0x1336   :  { %v1970_v29 = vmul.f32 %v6870_v28, %v6866_v33 }
0x1338   :  { %v1972_v7 = vpack.c.bf16 %v1970_v29, %v1970_v29 }
0x133a   :  { %6442 = vmatmul.msk.bf16.vlgmr.msrb.gmra.mxu0 %vm234_vm1, %v1972_v7 }
0x1341   :  { %v2061_v42 = vpop.permute.xlu0 %2060 }
0x1342   :  { %v2066_v32 = vsel %vm234_vm1, %v2061_v42, 0 }
0x1343   :  { %2075 = vmatpush.bf16.xpose.msra.mxu0 %v2066_v32 }
0x1344   :  { %v1841_v34 = vpop.xlane.xlu1 %1840 }
0x1345   :  { %v1843_v35 = vsub.f32 %v1833_v54, %v1841_v34 }
0x1347   :  { %v1846_v36 = vmul.f32 1.442695, %v1843_v35 }
0x1349   :  { %6871 = vpow2.f32 %v1846_v36  ;;  %v7852_v50 = vpop.f32.mrf.mxu0 }
0x134a   :  { %6446 = vmatmul.msk.bf16.vlgmr.msra.gmra.mxu0 %vm234_vm1, %v2059_v41 }
0x134f   :  { %v6872_v19 = vpop.eup %6871 }
0x1350   :  { %v1851_v37 = vsel %vm234_vm1, %v6872_v19, 0.0 }
0x1351   :  { %v7856_v38 = vpop.f32.mrf.mxu0  ;;  %1852 = vadd.xlane.f32.xlu0 %v1851_v37 }
0x1354   :  { %v1955_v39 = vpop.xlane.xlu2 %1954 }
0x1355   :  { %v1957_v40 = vsub.f32 %v1947_v25, %v1955_v39 }
0x1357   :  { %v1960_v45 = vmul.f32 1.442695, %v1957_v40 }
0x1359   :  { %6873 = vpow2.f32 %v1960_v45  ;;  %v7858_v46 = vpop.f32.mrf.mxu0 }
0x135c   :  { %v1996_v5 = vpop.permute.xlu1 %1995  ;;  %v1882_v48 = vpop.permute.xlu2 %1881 }
0x135d   :  { %v2001_v44 = vsel %vm307_vm2, %v1996_v5, 0  ;;  %v1887_v51 = vsel %vm307_vm2, %v1882_v48, 0 }
0x135e   :  { %1896 = vmatpush.bf16.msra.mxu1 %v1887_v51 }
0x135f   :  { %v6874_v55 = vpop.eup %6873 }
0x1360   :  { %v1965_v59 = vsel %vm234_vm1, %v6874_v55, 0.0 }
0x1361   :  { %v1879_v53 = vpop.f32.mrf.mxu0  ;;  %1966 = vadd.xlane.f32.xlu2 %v1965_v59 }
0x1362   :  { %2010 = vmatpush.bf16.msrb.mxu1 %v2001_v44 }
0x1364   :  { %v2082_v21 = vpop.permute.xlu1 %2081 }
0x1365   :  { %2083 = vrot.lane.b32.xlu0 %v7758_v31, %s7173_s17 }
0x1379   :  { %2128 = vrot.lane.b32.xlu2 %v7741_v4, %s7176_s10 }
0x1381   :  { %2196 = vrot.lane.b32.xlu2 %v7741_v4, %s8926_s11 }
0x1389   :  { %2219 = vrot.lane.b32.xlu2 %v7758_v31, %s8926_s11 }
0x13b7   :  { %v1991_v60 = vpop.f32.mrf.mxu0 }
0x13bf   :  { %v1993_v0 = vpop.f32.mrf.mxu0 }
0x13c4   :  { %v1853_v33 = vpop.xlane.xlu0 %1852 }
0x13c5   :  { %6875 = vrcp.f32 %v1853_v33 }
0x13c7   :  { %v2077_v1 = vpop.f32.mrf.mxu0 }
0x13c8   :  { %v2078_v2 = vadd.f32 %v2077_v1, %v7787_v56 }
0x13ca   :  { %v2104_v3 = vsel %vm234_vm1, %v2078_v2, -inf }
0x13cb   :  { %v6876_v8 = vpop.eup %6875  ;;  %2105 = vmax.xlane.f32.xlu0 %v2104_v3 }
0x13cc   :  { %v1857_v9 = vmul.f32 %v6876_v8, %v6872_v19 }
0x13ce   :  { %v1859_v10 = vpack.c.bf16 %v1857_v9, %v1857_v9 }
0x13cf   :  { %v2079_v11 = vpop.f32.mrf.mxu0 }
0x13d0   :  { %6439 = vmatmul.msk.bf16.vlgmr.msra.gmra.mxu1 %vm234_vm1, %v1859_v10 }
0x13d4   :  { %v1967_v12 = vpop.xlane.xlu2 %1966 }
0x13d5   :  { %6877 = vrcp.f32 %v1967_v12 }
0x13d7   :  { %v2084_v30 = vpop.permute.xlu0 %2083 }
0x13d8   :  { %v2089_v13 = vsel %vm234_vm1, %v2084_v30, 0 }
0x13d9   :  { %2098 = vmatpush.bf16.xpose.msra.mxu1 %v2089_v13 }
0x13db   :  { %v6878_v15 = vpop.eup %6877 }
0x13dc   :  { %v1971_v16 = vmul.f32 %v6878_v15, %v6874_v55  ;;  %v2129_v18 = vpop.permute.xlu2 %2128 }
0x13dd   :  { %v2134_v14 = vsel %vm307_vm2, %v2129_v18, 0 }
0x13de   :  { %v1973_v54 = vpack.c.bf16 %v1971_v16, %v1971_v16  ;;  %2143 = vmatpush.bf16.msra.mxu2 %v2134_v14 }
0x13df   :  { %2194 = vrot.lane.b32.xlu0 %v7741_v4, %s8924_s15 }
0x13e0   :  { %6443 = vmatmul.msk.bf16.vlgmr.msrb.gmra.mxu1 %vm234_vm1, %v1973_v54 }
0x13e4   :  { %v2197_v52 = vpop.permute.xlu2 %2196 }
0x13e5   :  { %v2202_v20 = vsel %vm234_vm1, %v2197_v52, 0 }
0x13e6   :  { %2211 = vmatpush.bf16.xpose.msrb.mxu1 %v2202_v20 }
0x13ec   :  { %v2220_v32 = vpop.permute.xlu2 %2219 }
0x13ed   :  { %v2225_v36 = vsel %vm234_vm1, %v2220_v32, 0 }
0x13f0   :  { %6447 = vmatmul.msk.bf16.vlgmr.msra.gmra.mxu1 %vm234_vm1, %v2082_v21 }
0x143e   :  { %v2106_v25 = vpop.xlane.xlu0 %2105 }
0x143f   :  { %v2110_v43 = vsub.f32 %v2078_v2, %v2106_v25  ;;  %v6433_v25 = vld [vmem:[%s7238_s14 + $0x50] sm:$0xff] }
0x1441   :  { %v2112_v26 = vmul.f32 1.442695, %v2110_v43  ;;  %v2171_v43 = vpack.c.bf16 %v6433_v25, %v6433_v25 }
0x1443   :  { %6879 = vpow2.f32 %v2112_v26  ;;  %v2176_v26 = vsel %vm307_vm2, %v2171_v43, 0  ;;  %v6460_v43 = vld [vmem:[%s7258_s6 + $0x50] sm:$0xff] }
0x1444   :  { %2185 = vmatpush.bf16.msrb.mxu0 %v2176_v26  ;;  %v6461_v26 = vld [vmem:[%s7258_s6 + $0x58] sm:$0xff] }
0x1449   :  { %v6880_v27 = vpop.eup %6879 }
0x144a   :  { %v2116_v28 = vsel %vm234_vm1, %v6880_v27, 0.0 }
0x144b   :  { %2117 = vadd.xlane.f32.xlu1 %v2116_v28 }
0x144d   :  { %v1898_v29 = vpop.f32.mrf.mxu1 }
0x144e   :  { %v1902_v7 = vpack.c.bf16 %v1898_v29, %v7858_v46 }
0x1450   :  { %6445 = vmatmul.msk.bf16.vlgmr.msra.gmra.mxu3 %vm234_vm1, %v1902_v7 }
0x1451   :  { %v2195_v41 = vpop.permute.xlu0 %2194 }
0x1452   :  { %6451 = vmatmul.msk.bf16.vlgmr.msrb.gmra.mxu1 %vm234_vm1, %v2195_v41 }
0x1455   :  { %v1900_v42 = vpop.f32.mrf.mxu1 }
0x145d   :  { %v2012_v34 = vpop.f32.mrf.mxu1 }
0x145e   :  { %v2016_v35 = vpack.c.bf16 %v2012_v34, %v1991_v60 }
0x1460   :  { %6444 = vmatmul.msk.bf16.vlgmr.msrb.gmra.mxu2 %vm234_vm1, %v2016_v35 }
0x1461   :  { %2234 = vmatpush.bf16.xpose.msrb.mxu2 %v2225_v36 }
0x1464   :  { %2217 = vrot.lane.b32.xlu1 %v7758_v31, %s8924_s15 }
0x1465   :  { %v2014_v19 = vpop.f32.mrf.mxu1 }
0x146c   :  { %2149 = vrot.lane.b32.xlu1 %v7758_v31, %s7176_s10 }
0x146d   :  { %v2100_v37 = vpop.f32.mrf.mxu1 }
0x146e   :  { %v2101_v39 = vadd.f32 %v2100_v37, %v7833_v17 }
0x1470   :  { %v2107_v40 = vsel %vm234_vm1, %v2101_v39, -inf }
0x1471   :  { %2108 = vmax.xlane.f32.xlu2 %v2107_v40 }
0x1475   :  { %v2102_v45 = vpop.f32.mrf.mxu1 }
0x14be   :  { %v2118_v46 = vpop.xlane.xlu1 %2117 }
0x14bf   :  { %6881 = vrcp.f32 %v2118_v46 }
0x14c5   :  { %v6882_v5 = vpop.eup %6881 }
0x14c6   :  { %v2124_v48 = vmul.f32 %v6882_v5, %v6880_v27 }
0x14c8   :  { %v2126_v44 = vpack.c.bf16 %v2124_v48, %v2124_v48 }
0x14ca   :  { %6448 = vmatmul.msk.bf16.vlgmr.msra.gmra.mxu2 %vm234_vm1, %v2126_v44 }
0x14cf   :  { %v2213_v51 = vpop.f32.mrf.mxu1 }
0x14d0   :  { %v2214_v55 = vadd.f32 %v2213_v51, %v7787_v56 }
0x14d2   :  { %v2240_v59 = vsel %vm234_vm1, %v2214_v55, -inf }
0x14d3   :  { %2241 = vmax.xlane.f32.xlu1 %v2240_v59  ;;  %v2053_v63 = vpop.f32.mrf.mxu3 }
0x14d6   :  { %v2218_v53 = vpop.permute.xlu1 %2217 }
0x14d7   :  { %v2215_v60 = vpop.f32.mrf.mxu1 }
0x14d8   :  { %v6434_v60 = vld [vmem:[%s7238_s14 + $0x58] sm:$0xff] }
0x14da   :  { %6452 = vmatmul.msk.bf16.vlgmr.msrb.gmra.mxu2 %vm234_vm1, %v2218_v53 }
0x14db   :  { %v2055_v19 = vpop.f32.mrf.mxu3 }
0x14de   :  { %v2150_v61 = vpop.permute.xlu1 %2149 }
0x14df   :  { %v2155_v62 = vsel %vm307_vm2, %v2150_v61, 0  ;;  %v2307_v61 = vpack.c.bf16 %v6434_v60, %v6434_v60 }
0x14e0   :  { %2164 = vmatpush.bf16.msrb.mxu3 %v2155_v62 }
0x14e1   :  { %v2312_v62 = vsel %vm307_vm2, %v2307_v61, 0  ;;  %v6742_v61 = vld [vmem:[%s7253_s30 + $0x2] ss:$0 sm:$0xff] }
0x14e2   :  { %2321 = vmatpush.bf16.msra.mxu1 %v2312_v62 }
0x14e3   :  { %v2033_v0 = vpop.f32.mrf.mxu2 }
0x14e4   :  { %v7902_v33 = vadd.f32 %v2053_v63, %v2033_v0  ;;  %v2109_v1 = vpop.xlane.xlu2 %2108 }
0x14e5   :  { %v2111_v2 = vsub.f32 %v2101_v39, %v2109_v1 }
0x14e7   :  { %v2114_v3 = vmul.f32 1.442695, %v2111_v2 }
0x14e9   :  { %6883 = vpow2.f32 %v2114_v3  ;;  %v6740_v3 = vld [vmem:[%s7243_s19 + $0x2] ss:$0 sm:$0xff] }
0x14eb   :  { %v7905_v10 = vpop.f32.mrf.mxu2 }
0x14ef   :  { %v6884_v8 = vpop.eup %6883 }
0x14f0   :  { %v2119_v9 = vsel %vm234_vm1, %v6884_v8, 0.0 }
0x14f1   :  { %2120 = vadd.xlane.f32.xlu0 %v2119_v9 }
0x1546   :  { %v2242_v12 = vpop.xlane.xlu1 %2241 }
0x1547   :  { %v2246_v13 = vsub.f32 %v2214_v55, %v2242_v12  ;;  %v2056_v12 = vadd.f32 %v2055_v19, %v7905_v10 }
0x1549   :  { %v2248_v15 = vmul.f32 1.442695, %v2246_v13 }
0x154b   :  { %6885 = vpow2.f32 %v2248_v15 }
0x154d   :  { %v2145_v11 = vpop.f32.mrf.mxu2 }
0x1551   :  { %v6886_v52 = vpop.eup %6885 }
0x1552   :  { %v2252_v21 = vsel %vm234_vm1, %v6886_v52, 0.0 }
0x1555   :  { %v2147_v30 = vpop.f32.mrf.mxu2 }
0x155d   :  { %v2236_v16 = vpop.f32.mrf.mxu2 }
0x155e   :  { %v2237_v18 = vadd.f32 %v2236_v16, %v7833_v17 }
0x1560   :  { %v2243_v14 = vsel %vm234_vm1, %v2237_v18, -inf }
0x1561   :  { %2244 = vmax.xlane.f32.xlu2 %v2243_v14 }
0x1564   :  { %v2121_v54 = vpop.xlane.xlu0 %2120 }
0x1565   :  { %6887 = vrcp.f32 %v2121_v54  ;;  %v2238_v20 = vpop.f32.mrf.mxu2 }
0x1569   :  { %2253 = vadd.xlane.f32.xlu2 %v2252_v21 }
0x156b   :  { %v6888_v22 = vpop.eup %6887 }
0x156c   :  { %v2125_v23 = vmul.f32 %v6888_v22, %v6884_v8 }
0x156e   :  { %v2127_v24 = vpack.c.bf16 %v2125_v23, %v2125_v23 }
0x1570   :  { %6449 = vmatmul.msk.bf16.vlgmr.msrb.gmra.mxu3 %vm234_vm1, %v2127_v24 }
0x1581   :  { %2264 = vrot.lane.b32.xlu2 %v7741_v4, %s8922_s16 }
0x15d4   :  { %v2245_v27 = vpop.xlane.xlu2 %2244 }
0x15d5   :  { %v2247_v28 = vsub.f32 %v2237_v18, %v2245_v27  ;;  %v2402_v27 = vpack.c.bf16 %v6461_v26, %v6460_v43 }
0x15d7   :  { %v2250_v29 = vmul.f32 1.442695, %v2247_v28  ;;  %2417 = vmatpush.bf16.msra.mxu2 %v2402_v27 }
0x15d9   :  { %6889 = vpow2.f32 %v2250_v29 }
0x15dc   :  { %v2254_v7 = vpop.xlane.xlu2 %2253 }
0x15dd   :  { %6891 = vrcp.f32 %v2254_v7  ;;  %v6458_v7 = vld [vmem:[%s7258_s6 + $0x40] sm:$0xff] }
0x15df   :  { %v6890_v41 = vpop.eup %6889 }
0x15e0   :  { %v2255_v42 = vsel %vm234_vm1, %v6890_v41, 0.0 }
0x15e1   :  { %2256 = vadd.xlane.f32.xlu0 %v2255_v42 }
0x15e3   :  { %v6892_v32 = vpop.eup %6891 }
0x15e4   :  { %v2260_v34 = vmul.f32 %v6892_v32, %v6886_v52  ;;  %v2265_v35 = vpop.permute.xlu2 %2264 }
0x15e5   :  { %v2270_v4 = vsel %vm307_vm2, %v2265_v35, 0 }
0x15e6   :  { %v2262_v36 = vpack.c.bf16 %v2260_v34, %v2260_v34  ;;  %2279 = vmatpush.bf16.msra.mxu3 %v2270_v4 }
0x15e9   :  { %6453 = vmatmul.msk.bf16.vlgmr.msra.gmra.mxu3 %vm234_vm1, %v2262_v36 }
0x15f3   :  { %v2166_v37 = vpop.f32.mrf.mxu3 }
0x15f4   :  { %v2170_v39 = vpack.c.bf16 %v2166_v37, %v2145_v11 }
0x15f5   :  { %2285 = vrot.lane.b32.xlu0 %v7758_v31, %s8922_s16 }
0x15f6   :  { %6450 = vmatmul.msk.bf16.vlgmr.msrb.gmra.mxu0 %vm234_vm1, %v2170_v39 }
0x15fb   :  { %v2168_v40 = vpop.f32.mrf.mxu3 }
0x1654   :  { %v2257_v45 = vpop.xlane.xlu0 %2256 }
0x1655   :  { %6893 = vrcp.f32 %v2257_v45 }
0x165b   :  { %v6894_v46 = vpop.eup %6893 }
0x165c   :  { %v2261_v5 = vmul.f32 %v6894_v46, %v6890_v41  ;;  %v6459_v41 = vld [vmem:[%s7258_s6 + $0x48] sm:$0xff] }
0x165d   :  { %v2401_v32 = vpack.c.bf16 %v6459_v41, %v6458_v7 }
0x165e   :  { %v2263_v51 = vpack.c.bf16 %v2261_v5, %v2261_v5 }
0x165f   :  { %2418 = vmatpush.bf16.msra.mxu2 %v2401_v32 }
0x1667   :  { %v2286_v48 = vpop.permute.xlu0 %2285 }
0x1668   :  { %v2291_v44 = vsel %vm307_vm2, %v2286_v48, 0 }
0x1669   :  { %2300 = vmatpush.bf16.msra.mxu0 %v2291_v44 }
0x166c   :  { %v2281_v55 = vpop.f32.mrf.mxu3  ;;  %6454 = vmatmul.msk.bf16.vlgmr.msra.gmra.mxu0 %vm234_vm1, %v2263_v51 }
0x1673   :  { %v2187_v59 = vpop.f32.mrf.mxu0 }
0x1674   :  { %v2192_v31 = vadd.f32 %v2187_v59, %v7902_v33  ;;  %v2283_v53 = vpop.f32.mrf.mxu3  ;;  %v6741_v59 = vld [vmem:[%s7248_s24 + $0x2] ss:$0 sm:$0xff] }
0x167b   :  { %v2189_v63 = vpop.f32.mrf.mxu0 }
0x167c   :  { %v2193_v30 = vadd.f32 %v2189_v63, %v2056_v12  ;;  %v6468_v12 = vld [vmem:[%s7268_s20 + $0xa0] sm:$0xff] }
0x16e9   :  { %v2302_v0 = vpop.f32.mrf.mxu0 }
0x16ea   :  { %v2306_v1 = vpack.c.bf16 %v2302_v0, %v2281_v55 }
0x16ec   :  { %6455 = vmatmul.msk.bf16.vlgmr.msra.gmra.mxu1 %vm234_vm1, %v2306_v1 }
0x16f1   :  { %v2304_v2 = vpop.f32.mrf.mxu0 }
0x1769   :  { %v2323_v8 = vpop.f32.mrf.mxu1 }
0x176a   :  { %v2328_v9 = vadd.f32 %v2323_v8, %v2192_v31  ;;  %v6470_v8 = vld [vmem:[%s7268_s20 + $0xb0] sm:$0xff] }
0x176c   :  { %v2333_v11 = vadd.f32 %v6740_v3, %v2328_v9  ;;  %v6471_v9 = vld [vmem:[%s7268_s20 + $0xb8] sm:$0xff] }
0x176e   :  { %v2335_v33 = vadd.f32 %v2333_v11, %v7728_v57  ;;  %v2440_v11 = vpack.c.bf16 %v6471_v9, %v6470_v8 }
0x1770   :  { %v2341_v13 = vsel %vm200_vm0, %v2335_v33, 0.0  ;;  %2453 = vmatpush.bf16.msrb.mxu3 %v2440_v11 }
0x1771   :  { %2342 = vadd.xlane.f32.xlu1 %v2341_v13  ;;  %v2325_v15 = vpop.f32.mrf.mxu1  ;;  %v6466_v13 = vld [vmem:[%s7268_s20 + $0x90] sm:$0xff] }
0x1772   :  { %v2329_v16 = vadd.f32 %v2325_v15, %v2193_v30  ;;  %v6467_v15 = vld [vmem:[%s7268_s20 + $0x98] sm:$0xff] }
0x1774   :  { %v2334_v18 = vadd.f32 %v6740_v3, %v2329_v16  ;;  %v2438_v16 = vpack.c.bf16 %v6467_v15, %v6466_v13  ;;  %v6745_v13 = vld [vmem:[%s7278_s4 + $0x2] ss:$0 sm:$0xff] }
0x1776   :  { %v2336_v14 = vadd.f32 %v2334_v18, %v7731_v58  ;;  %v6464_v18 = vld [vmem:[%s7268_s20 + $0x80] sm:$0xff] }
0x1778   :  { %v2344_v54 = vsel %vm200_vm0, %v2336_v14, 0.0 }
0x1779   :  { %2345 = vadd.xlane.f32.xlu1 %v2344_v54 }
0x17e4   :  { %v2343_v52 = vpop.xlane.xlu1 %2342 }
0x17e5   :  { %v2347_v20 = vmul.f32 %v2343_v52, %v7558_v47 }
0x17e7   :  { %v2349_v10 = vsub.f32 %v2335_v33, %v2347_v20  ;;  %v6469_v33 = vld [vmem:[%s7268_s20 + $0xa8] sm:$0xff]  ;;  %v6743_v20 = vld [vmem:[%s7263_s12 + $0x2] ss:$0 sm:$0xff] }
0x17e8   :  { %v2439_v30 = vpack.c.bf16 %v6469_v33, %v6468_v12 }
0x17e9   :  { %v2351_v57 = vmul.f32 %v2349_v10, %v2349_v10 }
0x17ea   :  { %2454 = vmatpush.bf16.msrb.mxu3 %v2439_v30 }
0x17eb   :  { %v2353_v21 = vsel %vm200_vm0, %v2351_v57, 0.0 }
0x17ec   :  { %2354 = vadd.xlane.f32.xlu2 %v2353_v21  ;;  %v2346_v22 = vpop.xlane.xlu1 %2345 }
0x17ed   :  { %v2348_v23 = vmul.f32 %v2346_v22, %v7558_v47 }
0x17ee   :  { %2455 = vmatpush.bf16.msrb.mxu3 %v2438_v16 }
0x17ef   :  { %v2350_v24 = vsub.f32 %v2336_v14, %v2348_v23  ;;  %v6465_v14 = vld [vmem:[%s7268_s20 + $0x88] sm:$0xff] }
0x17f0   :  { %v2437_v54 = vpack.c.bf16 %v6465_v14, %v6464_v18  ;;  %v6746_v14 = vld [vmem:[%s7283_s29 + $0x2] ss:$0 sm:$0xff] }
0x17f1   :  { %v2352_v25 = vmul.f32 %v2350_v24, %v2350_v24 }
0x17f2   :  { %2456 = vmatpush.bf16.msrb.mxu3 %v2437_v54 }
0x17f3   :  { %v2356_v58 = vsel %vm200_vm0, %v2352_v25, 0.0  ;;  %v6744_v25 = vld [vmem:[%s7273_s27 + $0x2] ss:$0 sm:$0xff] }
0x17f4   :  { %2357 = vadd.xlane.f32.xlu0 %v2356_v58 }
0x185f   :  { %v2355_v28 = vpop.xlane.xlu2 %2354 }
0x1860   :  { %v2359_v29 = vmul.f32 %v2355_v28, %v7558_v47 }
0x1862   :  { %v2361_v42 = vadd.f32 1e-05, %v2359_v29 }
0x1864   :  { %6895 = vrsqrt.f32 %v2361_v42  ;;  %vm2369_vm12 = vweird.f32 %v2361_v42 }
0x1867   :  { %v2358_v34 = vpop.xlane.xlu0 %2357 }
0x1868   :  { %v2360_v35 = vmul.f32 %v2358_v34, %v7558_v47 }
0x186a   :  { %v6896_v4 = vpop.eup %6895  ;;  %v2362_v36 = vadd.f32 1e-05, %v2360_v35 }
0x186b   :  { %v2364_v19 = vmul.f32 %v6896_v4, %v2361_v42  ;;  %vm2370_vm11 = vweird.f32 %v6896_v4 }
0x186c   :  { %6897 = vrsqrt.f32 %v2362_v36  ;;  %vm2371_vm13 = vmor %vm2369_vm12, %vm2370_vm11  ;;  %vm2379_vm15 = vweird.f32 %v2362_v36 }
0x186d   :  { %v2365_v37 = vmul.f32 %v6896_v4, %v2364_v19 }
0x186f   :  { %v2366_v39 = vmul.f32 0.5, %v2365_v37 }
0x1871   :  { %v2367_v40 = vsub.f32 1.5, %v2366_v39 }
0x1872   :  { %v6898_v45 = vpop.eup %6897 }
0x1873   :  { %v2368_v46 = vmul.f32 %v6896_v4, %v2367_v40  ;;  %v2374_v5 = vmul.f32 %v6898_v45, %v2362_v36  ;;  %vm2380_vm14 = vweird.f32 %v6898_v45 }
0x1874   :  { %vm2381_vm3 = vmor %vm2379_vm15, %vm2380_vm14 }
0x1875   :  { %v2375_v48 = vmul.f32 %v6898_v45, %v2374_v5  ;;  %v2372_v44 = vsel %vm2371_vm13, %v6896_v4, %v2368_v46  ;;  %v6479_v46 = vld [vmem:[%s7228_s3 + $0x78] sm:$0xff] }
0x1876   :  { %v2383_v31 = vmul.f32 %v2372_v44, %v2349_v10 }
0x1877   :  { %v2376_v51 = vmul.f32 0.5, %v2375_v48 }
0x1878   :  { %v2388_v62 = vmul.f32 %v6741_v59, %v2383_v31 }
0x1879   :  { %v2377_v55 = vsub.f32 1.5, %v2376_v51  ;;  %v6476_v51 = vld [vmem:[%s7228_s3 + $0x60] sm:$0xff] }
0x187a   :  { %v2393_v1 = vadd.f32 %v6742_v61, %v2388_v62 }
0x187b   :  { %v2378_v53 = vmul.f32 %v6898_v45, %v2377_v55  ;;  %v6477_v55 = vld [vmem:[%s7228_s3 + $0x68] sm:$0xff] }
0x187c   :  { %v2529_v31 = vpack.c.bf16 %v6477_v55, %v6476_v51 }
0x187d   :  { %v2382_v60 = vsel %vm2381_vm3, %v6898_v45, %v2378_v53  ;;  %v6478_v45 = vld [vmem:[%s7228_s3 + $0x70] sm:$0xff]  ;;  %s8957_s3 = sld [smem:[#allocation10_spill]] }
0x187e   :  { %v2384_v63 = vmul.f32 %v2382_v60, %v2350_v24  ;;  %v2530_v5 = vpack.c.bf16 %v6479_v46, %v6478_v45 }
0x1880   :  { %v2389_v0 = vmul.f32 %v6741_v59, %v2384_v63  ;;  %2545 = vmatpush.bf16.msrb.mxu0 %v2530_v5 }
0x1882   :  { %v2394_v2 = vadd.f32 %v6742_v61, %v2389_v0 }
0x1884   :  { %v2395_v3 = vpack.c.bf16 %v2394_v2, %v2393_v1  ;;  %2546 = vmatpush.bf16.msrb.mxu0 %v2529_v31 }
0x1886   :  { %6463 = vmatmul.msk.bf16.vlgmr.msra.gmra.mxu2 %vm200_vm0, %v2395_v3 }
0x1909   :  { %v2420_v52 = vpop.f32.mrf.mxu2 }
0x190a   :  { %v2421_v10 = vadd.f32 %v6743_v20, %v2420_v52 }
0x190c   :  { %v2425_v22 = vmax.f32 %v2421_v10, 0.0 }
0x1911   :  { %v2422_v57 = vpop.f32.mrf.mxu2 }
0x1912   :  { %v2423_v21 = vadd.f32 %v6743_v20, %v2422_v57 }
0x1914   :  { %v2426_v23 = vmax.f32 %v2423_v21, 0.0 }
0x1916   :  { %v2427_v24 = vpack.c.bf16 %v2426_v23, %v2425_v22  ;;  %v6747_v22 = vld [vmem:[%s7233_s8 + $0x3] ss:$0 sm:$0xff]  ;;  %s8958_s8 = sld [smem:[#allocation6_spill]] }
0x1918   :  { %6473 = vmatmul.msk.bf16.vlgmr.msrb.gmra.mxu3 %vm890_vm10, %v2427_v24 }
0x199b   :  { %v2458_v58 = vpop.f32.mrf.mxu3 }
0x199c   :  { %v2459_v43 = vadd.f32 %v6744_v25, %v2458_v58 }
0x199e   :  { %v2463_v26 = vadd.f32 %v2459_v43, %v2393_v1 }
0x19a0   :  { %v2469_v27 = vsel %vm200_vm0, %v2463_v26, 0.0 }
0x19a1   :  { %2470 = vadd.xlane.f32.xlu1 %v2469_v27 }
0x19a3   :  { %v2460_v28 = vpop.f32.mrf.mxu3 }
0x19a4   :  { %v2461_v29 = vadd.f32 %v6744_v25, %v2460_v28 }
0x19a6   :  { %v2464_v7 = vadd.f32 %v2461_v29, %v2394_v2 }
0x19a8   :  { %v2472_v41 = vsel %vm200_vm0, %v2464_v7, 0.0 }
0x19a9   :  { %2473 = vadd.xlane.f32.xlu1 %v2472_v41 }
0x1a14   :  { %v2471_v42 = vpop.xlane.xlu1 %2470 }
0x1a15   :  { %v2475_v32 = vmul.f32 %v2471_v42, %v7558_v47 }
0x1a17   :  { %v2477_v34 = vsub.f32 %v2463_v26, %v2475_v32 }
0x1a19   :  { %v2479_v35 = vmul.f32 %v2477_v34, %v2477_v34 }
0x1a1b   :  { %v2481_v4 = vsel %vm200_vm0, %v2479_v35, 0.0 }
0x1a1c   :  { %2482 = vadd.xlane.f32.xlu1 %v2481_v4  ;;  %v2474_v36 = vpop.xlane.xlu1 %2473 }
0x1a1d   :  { %v2476_v19 = vmul.f32 %v2474_v36, %v7558_v47 }
0x1a1f   :  { %v2478_v37 = vsub.f32 %v2464_v7, %v2476_v19 }
0x1a21   :  { %v2480_v39 = vmul.f32 %v2478_v37, %v2478_v37 }
0x1a23   :  { %v2484_v40 = vsel %vm200_vm0, %v2480_v39, 0.0 }
0x1a24   :  { %2485 = vadd.xlane.f32.xlu1 %v2484_v40 }
0x1a8f   :  { %v2483_v48 = vpop.xlane.xlu1 %2482 }
0x1a90   :  { %v2487_v44 = vmul.f32 %v2483_v48, %v7558_v47 }
0x1a92   :  { %v2489_v59 = vadd.f32 1e-05, %v2487_v44 }
0x1a94   :  { %6899 = vrsqrt.f32 %v2489_v59  ;;  %vm2497_vm5 = vweird.f32 %v2489_v59 }
0x1a97   :  { %v2486_v53 = vpop.xlane.xlu1 %2485 }
0x1a98   :  { %v2488_v60 = vmul.f32 %v2486_v53, %v7558_v47 }
0x1a9a   :  { %v6900_v61 = vpop.eup %6899  ;;  %v2490_v62 = vadd.f32 1e-05, %v2488_v60 }
0x1a9b   :  { %v2492_v63 = vmul.f32 %v6900_v61, %v2489_v59  ;;  %vm2498_vm4 = vweird.f32 %v6900_v61 }
0x1a9c   :  { %6901 = vrsqrt.f32 %v2490_v62  ;;  %vm2499_vm6 = vmor %vm2497_vm5, %vm2498_vm4  ;;  %vm2507_vm8 = vweird.f32 %v2490_v62 }
0x1a9d   :  { %v2493_v0 = vmul.f32 %v6900_v61, %v2492_v63 }
0x1a9f   :  { %v2494_v1 = vmul.f32 0.5, %v2493_v0 }
0x1aa1   :  { %v2495_v2 = vsub.f32 1.5, %v2494_v1 }
0x1aa2   :  { %v6902_v3 = vpop.eup %6901 }
0x1aa3   :  { %v2496_v8 = vmul.f32 %v6900_v61, %v2495_v2  ;;  %v2502_v9 = vmul.f32 %v6902_v3, %v2490_v62  ;;  %vm2508_vm7 = vweird.f32 %v6902_v3 }
0x1aa4   :  { %vm2509_vm9 = vmor %vm2507_vm8, %vm2508_vm7 }
0x1aa5   :  { %v2503_v11 = vmul.f32 %v6902_v3, %v2502_v9  ;;  %v2500_v12 = vsel %vm2499_vm6, %v6900_v61, %v2496_v8 }
0x1aa6   :  { %v2511_v15 = vmul.f32 %v2500_v12, %v2477_v34 }
0x1aa7   :  { %v2504_v33 = vmul.f32 0.5, %v2503_v11 }
0x1aa8   :  { %v2516_v54 = vmul.f32 %v6745_v13, %v2511_v15 }
0x1aa9   :  { %v2505_v30 = vsub.f32 1.5, %v2504_v33 }
0x1aaa   :  { %v7971_v10 = vadd.f32 %v6746_v14, %v2516_v54 }
0x1aab   :  { %v2506_v16 = vmul.f32 %v6902_v3, %v2505_v30 }
0x1aad   :  { %v2510_v18 = vsel %vm2509_vm9, %v6902_v3, %v2506_v16 }
0x1aae   :  { %v2512_v52 = vmul.f32 %v2510_v18, %v2478_v37 }
0x1ab0   :  { %v2517_v20 = vmul.f32 %v6745_v13, %v2512_v52 }
0x1ab2   :  { %v7973_v57 = vadd.f32 %v6746_v14, %v2517_v20 }
0x1ab4   :  { %v2523_v21 = vpack.c.bf16 %v7973_v57, %v7971_v10 }
0x1ab6   :  { %6481 = vmatmul.msk.bf16.vlgmr.msrb.gmra.mxu0 %vm200_vm0, %v2523_v21 }
0x1b33   :  { %v2548_v23 = vpop.f32.mrf.mxu0 }
0x1b34   :  { %v2549_v24 = vadd.f32 %v6747_v22, %v2548_v23 }
0x1b36   :  { %v2560_v25 = vpack.c.bf16 %v2549_v24, %v2549_v24 }
0x1b38   :  { %v2563_v58 = vunpack.c.l.b16 %v2560_v25 }
0x1b3a   :  { %v7979_v43 = vpack.c.b16 %v2563_v58, %v2563_v58 }
0x1b3b   :  { %v2550_v26 = vpop.f32.mrf.mxu0 }
0x1b3c   :  { %v2551_v27 = vadd.f32 %v6747_v22, %v2550_v26  ;;  %2678 = vrot.lane.b32.xlu0 %v7979_v43, %s7171_s28  ;;  %2680 = vrot.lane.b32.xlu2 %v7979_v43, %s7170_s5 }
0x1b3d   :  { %2565 = vrot.lane.b32.xlu1 %v7979_v43, %s7169_s0 }
0x1b3e   :  { %v2561_v28 = vpack.c.bf16 %v2551_v27, %v2551_v27 }
0x1b40   :  { %v2587_v29 = vunpack.c.l.b16 %v2561_v28 }
0x1b42   :  { %v7987_v7 = vpack.c.b16 %v2587_v29, %v2587_v29 }
0x1b44   :  { %2703 = vrot.lane.b32.xlu0 %v7987_v7, %s7170_s5  ;;  %2701 = vrot.lane.b32.xlu2 %v7987_v7, %s7171_s28 }
0x1b45   :  { %2589 = vrot.lane.b32.xlu1 %v7987_v7, %s7169_s0 }
0x1b96   :  { %v2681_v41 = vpop.permute.xlu2 %2680 }
0x1b97   :  { %v2686_v35 = vsel %vm234_vm1, %v2681_v41, 0 }
0x1b9e   :  { %v2702_v39 = vpop.permute.xlu2 %2701 }
0x1bae   :  { %v2679_v42 = vpop.permute.xlu0 %2678 }
0x1baf   :  { %v2566_v32 = vpop.permute.xlu1 %2565 }
0x1bb0   :  { %v2571_v34 = vsel %vm234_vm1, %v2566_v32, 0 }
0x1bb1   :  { %2580 = vmatpush.bf16.xpose.msrb.mxu1 %v2571_v34 }
0x1bb6   :  { %v2704_v4 = vpop.permute.xlu0 %2703 }
0x1bb7   :  { %v2709_v36 = vsel %vm234_vm1, %v2704_v4, 0  ;;  %v2590_v19 = vpop.permute.xlu1 %2589 }
0x1bb8   :  { %v2595_v37 = vsel %vm234_vm1, %v2590_v19, 0  ;;  %6487 = vmatmul.msk.bf16.vlgmr.msrb.gmra.mxu1 %vm234_vm1, %v2560_v25 }
0x1bb9   :  { %2695 = vmatpush.bf16.xpose.msra.mxu1 %v2686_v35  ;;  %2604 = vmatpush.bf16.xpose.msrb.mxu2 %v2595_v37 }
0x1bc0   :  { %6488 = vmatmul.msk.bf16.vlgmr.msrb.gmra.mxu2 %vm234_vm1, %v2561_v28 }
0x1bc1   :  { %2718 = vmatpush.bf16.xpose.msra.mxu2 %v2709_v36 }
0x1bc8   :  { %6491 = vmatmul.msk.bf16.vlgmr.msra.gmra.mxu1 %vm234_vm1, %v2679_v42 }
0x1bd0   :  { %6492 = vmatmul.msk.bf16.vlgmr.msra.gmra.mxu2 %vm234_vm1, %v2702_v39 }
0x1c35   :  { %v2582_v40 = vpop.f32.mrf.mxu1 }
0x1c36   :  { %v2583_v45 = vadd.f32 %v2582_v40, %v7787_v56  ;;  %v6483_v40 = vld [vmem:[%s7238_s14 + $0x68] sm:$0xff] }
0x1c38   :  { %v2610_v46 = vsel %vm234_vm1, %v2583_v45, -inf }
0x1c39   :  { %2611 = vmax.xlane.f32.xlu1 %v2610_v46 }
0x1c3d   :  { %v2584_v5 = vpop.f32.mrf.mxu1 }
0x1c43   :  { %v2606_v48 = vpop.f32.mrf.mxu2 }
0x1c44   :  { %v2607_v61 = vadd.f32 %v2606_v48, %v7833_v17 }
0x1c45   :  { %v2697_v44 = vpop.f32.mrf.mxu1 }
0x1c46   :  { %v2698_v51 = vadd.f32 %v2697_v44, %v7787_v56  ;;  %v2613_v62 = vsel %vm234_vm1, %v2607_v61, -inf }
0x1c48   :  { %v2724_v55 = vsel %vm234_vm1, %v2698_v51, -inf }
0x1c49   :  { %2725 = vmax.xlane.f32.xlu0 %v2724_v55 }
0x1c4b   :  { %v2608_v59 = vpop.f32.mrf.mxu2 }
0x1c4d   :  { %v2699_v31 = vpop.f32.mrf.mxu1 }
0x1c52   :  { %2634 = vrot.lane.b32.xlu1 %v7979_v43, %s7174_s2 }
0x1c53   :  { %v2720_v53 = vpop.f32.mrf.mxu2 }
0x1c54   :  { %v2721_v63 = vadd.f32 %v2720_v53, %v7833_v17 }
0x1c56   :  { %v2727_v0 = vsel %vm234_vm1, %v2721_v63, -inf }
0x1c5b   :  { %v2722_v60 = vpop.f32.mrf.mxu2 }
0x1c5d   :  { %2748 = vrot.lane.b32.xlu0 %v7979_v43, %s7172_s1 }
0x1c65   :  { %2832 = vrot.lane.b32.xlu0 %v7979_v43, %s7175_s7 }
0x1c7c   :  { %2614 = vmax.xlane.f32.xlu1 %v2613_v62 }
0x1c8f   :  { %2728 = vmax.xlane.f32.xlu0 %v2727_v0 }
0x1c95   :  { %2655 = vrot.lane.b32.xlu1 %v7987_v7, %s7174_s2 }
0x1c9d   :  { %2855 = vrot.lane.b32.xlu1 %v7987_v7, %s7175_s7 }
0x1cac   :  { %v2612_v1 = vpop.xlane.xlu1 %2611 }
0x1cad   :  { %v2616_v2 = vsub.f32 %v2583_v45, %v2612_v1  ;;  %v2791_v45 = vpack.c.bf16 %v6483_v40, %v6483_v40 }
0x1caf   :  { %v2618_v3 = vmul.f32 1.442695, %v2616_v2  ;;  %v2796_v5 = vsel %vm307_vm2, %v2791_v45, 0 }
0x1cb0   :  { %2805 = vmatpush.bf16.msrb.mxu1 %v2796_v5 }
0x1cb1   :  { %6903 = vpow2.f32 %v2618_v3 }
0x1cb7   :  { %v6904_v8 = vpop.eup %6903 }
0x1cb8   :  { %v2622_v9 = vsel %vm234_vm1, %v6904_v8, 0.0 }
0x1cb9   :  { %2623 = vadd.xlane.f32.xlu2 %v2622_v9 }
0x1cbc   :  { %v2726_v11 = vpop.xlane.xlu0 %2725 }
0x1cbd   :  { %v2730_v12 = vsub.f32 %v2698_v51, %v2726_v11 }
0x1cbf   :  { %v2732_v33 = vmul.f32 1.442695, %v2730_v12 }
0x1cc1   :  { %6905 = vpow2.f32 %v2732_v33 }
0x1cc4   :  { %v2635_v30 = vpop.permute.xlu1 %2634 }
0x1cc5   :  { %v2640_v13 = vsel %vm307_vm2, %v2635_v30, 0 }
0x1cc6   :  { %2649 = vmatpush.bf16.msra.mxu3 %v2640_v13 }
0x1cc7   :  { %v6906_v15 = vpop.eup %6905 }
0x1cc8   :  { %v2736_v16 = vsel %vm234_vm1, %v6906_v15, 0.0 }
0x1cc9   :  { %2737 = vadd.xlane.f32.xlu2 %v2736_v16 }
0x1ccf   :  { %v2749_v18 = vpop.permute.xlu0 %2748 }
0x1cd0   :  { %v2754_v14 = vsel %vm307_vm2, %v2749_v18, 0 }
0x1cd1   :  { %2763 = vmatpush.bf16.msrb.mxu3 %v2754_v14  ;;  %v6482_v14 = vld [vmem:[%s7238_s14 + $0x60] sm:$0xff] }
0x1cd7   :  { %v2833_v20 = vpop.permute.xlu0 %2832 }
0x1ce1   :  { %2834 = vrot.lane.b32.xlu2 %v7979_v43, %s7173_s17 }
0x1cef   :  { %v2615_v54 = vpop.xlane.xlu1 %2614 }
0x1cf0   :  { %v2617_v52 = vsub.f32 %v2607_v61, %v2615_v54 }
0x1cf2   :  { %v2620_v21 = vmul.f32 1.442695, %v2617_v52  ;;  %v2677_v52 = vpack.c.bf16 %v6482_v14, %v6482_v14 }
0x1cf4   :  { %6907 = vpow2.f32 %v2620_v21 }
0x1cfa   :  { %v6908_v25 = vpop.eup %6907 }
0x1cfb   :  { %v2625_v27 = vsel %vm234_vm1, %v6908_v25, 0.0 }
0x1d02   :  { %v2729_v22 = vpop.xlane.xlu0 %2728 }
0x1d03   :  { %v2731_v23 = vsub.f32 %v2721_v63, %v2729_v22 }
0x1d05   :  { %v2734_v24 = vmul.f32 1.442695, %v2731_v23 }
0x1d07   :  { %6909 = vpow2.f32 %v2734_v24  ;;  %v2656_v58 = vpop.permute.xlu1 %2655 }
0x1d08   :  { %v2661_v26 = vsel %vm307_vm2, %v2656_v58, 0 }
0x1d09   :  { %2670 = vmatpush.bf16.msra.mxu0 %v2661_v26 }
0x1d0a   :  { %2626 = vadd.xlane.f32.xlu2 %v2625_v27 }
0x1d0d   :  { %v6910_v28 = vpop.eup %6909 }
0x1d0e   :  { %v2739_v29 = vsel %vm234_vm1, %v6910_v28, 0.0 }
0x1d0f   :  { %2740 = vadd.xlane.f32.xlu0 %v2739_v29 }
0x1d22   :  { %2769 = vrot.lane.b32.xlu2 %v7987_v7, %s7172_s1 }
0x1d23   :  { %2857 = vrot.lane.b32.xlu0 %v7987_v7, %s7173_s17 }
0x1d2b   :  { %2902 = vrot.lane.b32.xlu0 %v7979_v43, %s7176_s10 }
0x1d2c   :  { %v2624_v41 = vpop.xlane.xlu2 %2623 }
0x1d2d   :  { %6911 = vrcp.f32 %v2624_v41 }
0x1d33   :  { %v6912_v42 = vpop.eup %6911  ;;  %2970 = vrot.lane.b32.xlu0 %v7979_v43, %s8926_s11 }
0x1d34   :  { %v2630_v32 = vmul.f32 %v6912_v42, %v6904_v8  ;;  %v2856_v8 = vpop.permute.xlu1 %2855 }
0x1d36   :  { %v2632_v34 = vpack.c.bf16 %v2630_v32, %v2630_v32 }
0x1d38   :  { %6489 = vmatmul.msk.bf16.vlgmr.msra.gmra.mxu3 %vm234_vm1, %v2632_v34 }
0x1d3b   :  { %2993 = vrot.lane.b32.xlu0 %v7987_v7, %s8926_s11 }
0x1d3c   :  { %v2738_v35 = vpop.xlane.xlu2 %2737 }
0x1d3d   :  { %6913 = vrcp.f32 %v2738_v35 }
0x1d43   :  { %v6914_v4 = vpop.eup %6913  ;;  %2968 = vrot.lane.b32.xlu0 %v7979_v43, %s8924_s15 }
0x1d44   :  { %v2744_v36 = vmul.f32 %v6914_v4, %v6906_v15  ;;  %v2835_v19 = vpop.permute.xlu2 %2834 }
0x1d45   :  { %v2840_v37 = vsel %vm234_vm1, %v2835_v19, 0 }
0x1d46   :  { %v2746_v39 = vpack.c.bf16 %v2744_v36, %v2744_v36  ;;  %2849 = vmatpush.bf16.xpose.msra.mxu3 %v2840_v37 }
0x1d48   :  { %6493 = vmatmul.msk.bf16.vlgmr.msrb.gmra.mxu3 %vm234_vm1, %v2746_v39 }
0x1d4b   :  { %2991 = vrot.lane.b32.xlu0 %v7987_v7, %s8924_s15 }
0x1d58   :  { %6497 = vmatmul.msk.bf16.vlgmr.msra.gmra.mxu3 %vm234_vm1, %v2833_v20  ;;  %v2816_v20 = vsel %vm307_vm2, %v2677_v52, 0 }
0x1d59   :  { %2825 = vmatpush.bf16.msrb.mxu2 %v2816_v20 }
0x1d7d   :  { %v2627_v46 = vpop.xlane.xlu2 %2626 }
0x1d7e   :  { %6915 = vrcp.f32 %v2627_v46 }
0x1d82   :  { %v2741_v31 = vpop.xlane.xlu0 %2740 }
0x1d83   :  { %6917 = vrcp.f32 %v2741_v31 }
0x1d84   :  { %v6916_v48 = vpop.eup %6915 }
0x1d85   :  { %v2631_v44 = vmul.f32 %v6916_v48, %v6908_v25  ;;  %v2770_v51 = vpop.permute.xlu2 %2769 }
0x1d86   :  { %v2775_v55 = vsel %vm307_vm2, %v2770_v51, 0 }
0x1d87   :  { %v2633_v59 = vpack.c.bf16 %v2631_v44, %v2631_v44  ;;  %2784 = vmatpush.bf16.msrb.mxu0 %v2775_v55 }
0x1d89   :  { %6490 = vmatmul.msk.bf16.vlgmr.msra.gmra.mxu0 %vm234_vm1, %v2633_v59  ;;  %v6918_v53 = vpop.eup %6917 }
0x1d8a   :  { %v2745_v60 = vmul.f32 %v6918_v53, %v6910_v28 }
0x1d8c   :  { %v2747_v63 = vpack.c.bf16 %v2745_v60, %v2745_v60 }
0x1d95   :  { %v2858_v61 = vpop.permute.xlu0 %2857 }
0x1d96   :  { %v2863_v62 = vsel %vm234_vm1, %v2858_v61, 0 }
0x1d97   :  { %2872 = vmatpush.bf16.xpose.msra.mxu0 %v2863_v62 }
0x1d99   :  { %6494 = vmatmul.msk.bf16.vlgmr.msrb.gmra.mxu0 %vm234_vm1, %v2747_v63  ;;  %v6484_v63 = vld [vmem:[%s7238_s14 + $0x70] sm:$0xff] }
0x1d9d   :  { %v2903_v0 = vpop.permute.xlu0 %2902 }
0x1d9e   :  { %v2908_v1 = vsel %vm307_vm2, %v2903_v0, 0  ;;  %v2945_v0 = vpack.c.bf16 %v6484_v63, %v6484_v63 }
0x1d9f   :  { %2917 = vmatpush.bf16.msra.mxu1 %v2908_v1 }
0x1da0   :  { %v2950_v1 = vsel %vm307_vm2, %v2945_v0, 0 }
0x1da1   :  { %2959 = vmatpush.bf16.msrb.mxu3 %v2950_v1 }
0x1da5   :  { %v2971_v2 = vpop.permute.xlu0 %2970 }
0x1da6   :  { %v2976_v3 = vsel %vm234_vm1, %v2971_v2, 0 }
0x1da7   :  { %2985 = vmatpush.bf16.xpose.msrb.mxu0 %v2976_v3 }
0x1da9   :  { %6498 = vmatmul.msk.bf16.vlgmr.msra.gmra.mxu0 %vm234_vm1, %v2856_v8 }
0x1dad   :  { %v2994_v9 = vpop.permute.xlu0 %2993 }
0x1dae   :  { %v2999_v58 = vsel %vm234_vm1, %v2994_v9, 0 }
0x1db5   :  { %v2969_v11 = vpop.permute.xlu0 %2968 }
0x1db9   :  { %6502 = vmatmul.msk.bf16.vlgmr.msrb.gmra.mxu0 %vm234_vm1, %v2969_v11 }
0x1dbb   :  { %v2651_v12 = vpop.f32.mrf.mxu3 }
0x1dbd   :  { %v2992_v62 = vpop.permute.xlu0 %2991 }
0x1dc3   :  { %v2653_v33 = vpop.f32.mrf.mxu3 }
0x1dcb   :  { %v2765_v30 = vpop.f32.mrf.mxu3 }
0x1dd3   :  { %v2767_v13 = vpop.f32.mrf.mxu3 }
0x1ddb   :  { %v2851_v15 = vpop.f32.mrf.mxu3 }
0x1ddc   :  { %v2852_v16 = vadd.f32 %v2851_v15, %v7787_v56 }
0x1dde   :  { %v2878_v18 = vsel %vm234_vm1, %v2852_v16, -inf }
0x1ddf   :  { %2879 = vmax.xlane.f32.xlu2 %v2878_v18 }
0x1de3   :  { %v2853_v54 = vpop.f32.mrf.mxu3 }
0x1e06   :  { %v2672_v21 = vpop.f32.mrf.mxu0 }
0x1e07   :  { %v2676_v22 = vpack.c.bf16 %v2672_v21, %v2651_v12 }
0x1e09   :  { %6496 = vmatmul.msk.bf16.vlgmr.msrb.gmra.mxu2 %vm234_vm1, %v2676_v22 }
0x1e0e   :  { %v2674_v23 = vpop.f32.mrf.mxu0 }
0x1e16   :  { %v2786_v24 = vpop.f32.mrf.mxu0 }
0x1e17   :  { %v2790_v25 = vpack.c.bf16 %v2786_v24, %v2765_v30 }
0x1e19   :  { %6495 = vmatmul.msk.bf16.vlgmr.msrb.gmra.mxu1 %vm234_vm1, %v2790_v25 }
0x1e1a   :  { %3008 = vmatpush.bf16.xpose.msrb.mxu1 %v2999_v58 }
0x1e1e   :  { %v2788_v26 = vpop.f32.mrf.mxu0 }
0x1e26   :  { %v2874_v27 = vpop.f32.mrf.mxu0 }
0x1e27   :  { %v2875_v28 = vadd.f32 %v2874_v27, %v7833_v17 }
0x1e29   :  { %v2881_v29 = vsel %vm234_vm1, %v2875_v28, -inf }
0x1e2a   :  { %2882 = vmax.xlane.f32.xlu2 %v2881_v29 }
0x1e2e   :  { %v2876_v41 = vpop.f32.mrf.mxu0 }
0x1e36   :  { %v2987_v42 = vpop.f32.mrf.mxu0 }
0x1e37   :  { %v2988_v32 = vadd.f32 %v2987_v42, %v7787_v56 }
0x1e39   :  { %v3014_v34 = vsel %vm234_vm1, %v2988_v32, -inf }
0x1e3a   :  { %3015 = vmax.xlane.f32.xlu2 %v3014_v34 }
0x1e3e   :  { %v2989_v35 = vpop.f32.mrf.mxu0 }
0x1e52   :  { %v2880_v4 = vpop.xlane.xlu2 %2879 }
0x1e53   :  { %v2884_v36 = vsub.f32 %v2852_v16, %v2880_v4 }
0x1e55   :  { %v2886_v19 = vmul.f32 1.442695, %v2884_v36 }
0x1e57   :  { %6919 = vpow2.f32 %v2886_v19 }
0x1e5d   :  { %v6920_v37 = vpop.eup %6919 }
0x1e5e   :  { %v2890_v39 = vsel %vm234_vm1, %v6920_v37, 0.0 }
0x1e5f   :  { %2891 = vadd.xlane.f32.xlu1 %v2890_v39 }
0x1e78   :  { %2923 = vrot.lane.b32.xlu1 %v7987_v7, %s7176_s10 }
0x1e8c   :  { %v2827_v40 = vpop.f32.mrf.mxu2 }
0x1e94   :  { %v2829_v22 = vpop.f32.mrf.mxu2 }
0x1e96   :  { %v2807_v45 = vpop.f32.mrf.mxu1 }
0x1e97   :  { %v8072_v46 = vadd.f32 %v2827_v40, %v2807_v45 }
0x1e9d   :  { %v2883_v56 = vpop.xlane.xlu2 %2882 }
0x1e9e   :  { %v2885_v5 = vsub.f32 %v2875_v28, %v2883_v56  ;;  %v2809_v12 = vpop.f32.mrf.mxu1  ;;  %v6485_v56 = vld [vmem:[%s7238_s14 + $0x78] sm:$0xff]  ;;  %s8959_s14 = sld [smem:[#allocation11_spill]] }
0x1ea0   :  { %v2888_v48 = vmul.f32 1.442695, %v2885_v5  ;;  %v3081_v5 = vpack.c.bf16 %v6485_v56, %v6485_v56 }
0x1ea2   :  { %6921 = vpow2.f32 %v2888_v48  ;;  %v3086_v48 = vsel %vm307_vm2, %v3081_v5, 0  ;;  %v6749_v5 = vld [vmem:[%s7248_s24 + $0x3] ss:$0 sm:$0xff]  ;;  %s8961_s24 = sld [smem:[#allocation8_spill]] }
0x1ea3   :  { %3095 = vmatpush.bf16.msra.mxu0 %v3086_v48 }
0x1ea8   :  { %v6922_v44 = vpop.eup %6921 }
0x1ea9   :  { %v2893_v51 = vsel %vm234_vm1, %v6922_v44, 0.0 }
0x1eaa   :  { %2894 = vadd.xlane.f32.xlu0 %v2893_v51 }
0x1ead   :  { %v3016_v30 = vpop.xlane.xlu2 %3015 }
0x1eae   :  { %v3020_v15 = vsub.f32 %v2988_v32, %v3016_v30 }
0x1eb0   :  { %v3022_v16 = vmul.f32 1.442695, %v3020_v15 }
0x1ebe   :  { %3059 = vrot.lane.b32.xlu0 %v7987_v7, %s8922_s16 }
0x1ed2   :  { %v2892_v55 = vpop.xlane.xlu1 %2891 }
0x1ed3   :  { %6923 = vrcp.f32 %v2892_v55 }
0x1ed9   :  { %v6924_v59 = vpop.eup %6923 }
0x1eda   :  { %v2898_v31 = vmul.f32 %v6924_v59, %v6920_v37  ;;  %v6748_v59 = vld [vmem:[%s7243_s19 + $0x3] ss:$0 sm:$0xff]  ;;  %s8960_s19 = sld [smem:[#allocation31_spill]] }
0x1edc   :  { %v2900_v53 = vpack.c.bf16 %v2898_v31, %v2898_v31 }
0x1ede   :  { %6499 = vmatmul.msk.bf16.vlgmr.msra.gmra.mxu1 %vm234_vm1, %v2900_v53 }
0x1eea   :  { %v2924_v60 = vpop.permute.xlu1 %2923 }
0x1eeb   :  { %v2929_v61 = vsel %vm307_vm2, %v2924_v60, 0 }
0x1eec   :  { %2938 = vmatpush.bf16.msra.mxu2 %v2929_v61  ;;  %v2830_v61 = vadd.f32 %v2829_v22, %v2809_v12  ;;  %v6510_v22 = vld [vmem:[%s7258_s6 + $0x68] sm:$0xff] }
0x1eee   :  { %6503 = vmatmul.msk.bf16.vlgmr.msrb.gmra.mxu1 %vm234_vm1, %v2992_v62 }
0x1f1d   :  { %v2895_v7 = vpop.xlane.xlu0 %2894 }
0x1f1e   :  { %6925 = vrcp.f32 %v2895_v7 }
0x1f1f   :  { %6927 = vpow2.f32 %v3022_v16 }
0x1f24   :  { %v6926_v2 = vpop.eup %6925 }
0x1f25   :  { %v2899_v3 = vmul.f32 %v6926_v2, %v6922_v44  ;;  %v6928_v52 = vpop.eup %6927 }
0x1f26   :  { %v3026_v21 = vsel %vm234_vm1, %v6928_v52, 0.0 }
0x1f27   :  { %v2901_v8 = vpack.c.bf16 %v2899_v3, %v2899_v3 }
0x1f29   :  { %6500 = vmatmul.msk.bf16.vlgmr.msra.gmra.mxu2 %vm234_vm1, %v2901_v8 }
0x1f30   :  { %v3060_v9 = vpop.permute.xlu0 %3059 }
0x1f31   :  { %v3065_v11 = vsel %vm307_vm2, %v3060_v9, 0 }
0x1f32   :  { %3074 = vmatpush.bf16.msra.mxu3 %v3065_v11 }
0x1f5b   :  { %v2919_v33 = vpop.f32.mrf.mxu1 }
0x1f63   :  { %v2921_v13 = vpop.f32.mrf.mxu1 }
0x1f6b   :  { %v3010_v18 = vpop.f32.mrf.mxu1 }
0x1f6c   :  { %v3011_v14 = vadd.f32 %v3010_v18, %v7833_v17  ;;  %v6511_v18 = vld [vmem:[%s7258_s6 + $0x70] sm:$0xff] }
0x1f6e   :  { %v3017_v54 = vsel %vm234_vm1, %v3011_v14, -inf }
0x1f6f   :  { %3018 = vmax.xlane.f32.xlu2 %v3017_v54 }
0x1f73   :  { %v3012_v20 = vpop.f32.mrf.mxu1 }
0x1f77   :  { %3027 = vadd.xlane.f32.xlu2 %v3026_v21  ;;  %v6509_v21 = vld [vmem:[%s7258_s6 + $0x60] sm:$0xff] }
0x1f8f   :  { %3038 = vrot.lane.b32.xlu2 %v7979_v43, %s8922_s16 }
0x1fac   :  { %v2940_v23 = vpop.f32.mrf.mxu2 }
0x1fad   :  { %v2944_v24 = vpack.c.bf16 %v2940_v23, %v2919_v33 }
0x1faf   :  { %6501 = vmatmul.msk.bf16.vlgmr.msrb.gmra.mxu3 %vm234_vm1, %v2944_v24  ;;  %v3175_v24 = vpack.c.bf16 %v6510_v22, %v6509_v21  ;;  %v6752_v21 = vld [vmem:[%s8959_s14] ss:$0 sm:$0xff] }
0x1fb4   :  { %v2942_v25 = vpop.f32.mrf.mxu2 }
0x1fb5   :  { %v3374_v25 = vld [vmem:[%s8957_s3 + $0x10] sm:$0xff] }
0x1fe2   :  { %v3019_v58 = vpop.xlane.xlu2 %3018 }
0x1fe3   :  { %v3021_v17 = vsub.f32 %v3011_v14, %v3019_v58  ;;  %v6512_v14 = vld [vmem:[%s7258_s6 + $0x78] sm:$0xff]  ;;  %s8964_s6 = sld [smem:[#allocation18_spill]] }
0x1fe4   :  { %v3176_v54 = vpack.c.bf16 %v6512_v14, %v6511_v18  ;;  %v3375_v58 = vld [vmem:[%s8957_s3 + $0x18] sm:$0xff] }
0x1fe5   :  { %v3024_v26 = vmul.f32 1.442695, %v3021_v17  ;;  %v3372_v17 = vld [vmem:[%s8957_s3] sm:$0xff] }
0x1fe6   :  { %3191 = vmatpush.bf16.msra.mxu1 %v3176_v54 }
0x1fe7   :  { %6929 = vpow2.f32 %v3024_v26 }
0x1fea   :  { %v3028_v27 = vpop.xlane.xlu2 %3027  ;;  %3192 = vmatpush.bf16.msra.mxu1 %v3175_v24 }
0x1feb   :  { %6931 = vrcp.f32 %v3028_v27  ;;  %v3377_v27 = vpack.c.bf16 %v3375_v58, %v3374_v25 }
0x1fed   :  { %v6930_v28 = vpop.eup %6929 }
0x1fee   :  { %v3029_v29 = vsel %vm234_vm1, %v6930_v28, 0.0  ;;  %3391 = vmatpush.bf16.msrb.mxu1 %v3377_v27  ;;  %v6753_v27 = vld [vmem:[%s7273_s27 + $0x3] ss:$0 sm:$0xff] }
0x1fef   :  { %3030 = vadd.xlane.f32.xlu1 %v3029_v29 }
0x1ff1   :  { %v6932_v41 = vpop.eup %6931 }
0x1ff2   :  { %v3034_v42 = vmul.f32 %v6932_v41, %v6928_v52  ;;  %v3039_v43 = vpop.permute.xlu2 %3038 }
0x1ff3   :  { %v3044_v32 = vsel %vm307_vm2, %v3039_v43, 0 }
0x1ff4   :  { %v3036_v34 = vpack.c.bf16 %v3034_v42, %v3034_v42  ;;  %3053 = vmatpush.bf16.msrb.mxu2 %v3044_v32 }
0x1ff7   :  { %6504 = vmatmul.msk.bf16.vlgmr.msrb.gmra.mxu2 %vm234_vm1, %v3036_v34 }
0x2032   :  { %v2961_v35 = vpop.f32.mrf.mxu3 }
0x2033   :  { %v2966_v4 = vadd.f32 %v2961_v35, %v8072_v46 }
0x203a   :  { %v2963_v44 = vpop.f32.mrf.mxu3 }
0x203b   :  { %v2967_v63 = vadd.f32 %v2963_v44, %v2830_v61 }
0x2062   :  { %v3031_v36 = vpop.xlane.xlu1 %3030 }
0x2063   :  { %6933 = vrcp.f32 %v3031_v36 }
0x2069   :  { %v6934_v19 = vpop.eup %6933 }
0x206a   :  { %v3035_v37 = vmul.f32 %v6934_v19, %v6930_v28  ;;  %v3373_v28 = vld [vmem:[%s8957_s3 + $0x8] sm:$0xff] }
0x206b   :  { %v3376_v41 = vpack.c.bf16 %v3373_v28, %v3372_v17 }
0x206c   :  { %v3037_v39 = vpack.c.bf16 %v3035_v37, %v3035_v37 }
0x206d   :  { %3392 = vmatpush.bf16.msrb.mxu1 %v3376_v41 }
0x206e   :  { %6505 = vmatmul.msk.bf16.vlgmr.msra.gmra.mxu3 %vm234_vm1, %v3037_v39 }
0x207a   :  { %v3055_v40 = vpop.f32.mrf.mxu2 }
0x2082   :  { %v3057_v45 = vpop.f32.mrf.mxu2 }
0x20f1   :  { %v3076_v51 = vpop.f32.mrf.mxu3 }
0x20f2   :  { %v3080_v55 = vpack.c.bf16 %v3076_v51, %v3055_v40 }
0x20f4   :  { %6506 = vmatmul.msk.bf16.vlgmr.msra.gmra.mxu0 %vm234_vm1, %v3080_v55  ;;  %v6750_v55 = vld [vmem:[%s7253_s30 + $0x3] ss:$0 sm:$0xff]  ;;  %s8962_s30 = sld [smem:[#allocation30_spill]] }
0x20f9   :  { %v3078_v46 = vpop.f32.mrf.mxu3 }
0x2171   :  { %v3097_v31 = vpop.f32.mrf.mxu0 }
0x2172   :  { %v3102_v53 = vadd.f32 %v3097_v31, %v2966_v4 }
0x2174   :  { %v3107_v60 = vadd.f32 %v6748_v59, %v3102_v53 }
0x2176   :  { %v3109_v62 = vadd.f32 %v3107_v60, %v7971_v10 }
0x2178   :  { %v3115_v0 = vsel %vm200_vm0, %v3109_v62, 0.0 }
0x2179   :  { %3116 = vadd.xlane.f32.xlu2 %v3115_v0  ;;  %v3099_v1 = vpop.f32.mrf.mxu0 }
0x217a   :  { %v3103_v7 = vadd.f32 %v3099_v1, %v2967_v63  ;;  %v8124_v63 = vld [vmem:[%s8958_s8 + $0x8] sm:$0xff]  ;;  %v6521_v1 = vld [vmem:[%s7268_s20 + $0xf0] sm:$0xff] }
0x217c   :  { %v3108_v2 = vadd.f32 %v6748_v59, %v3103_v7  ;;  %v6522_v7 = vld [vmem:[%s7268_s20 + $0xf8] sm:$0xff] }
0x217e   :  { %v3110_v3 = vadd.f32 %v3108_v2, %v7973_v57  ;;  %v3214_v2 = vpack.c.bf16 %v6522_v7, %v6521_v1 }
0x2180   :  { %v3118_v8 = vsel %vm200_vm0, %v3110_v3, 0.0  ;;  %3227 = vmatpush.bf16.msra.mxu2 %v3214_v2 }
0x2181   :  { %3119 = vadd.xlane.f32.xlu0 %v3118_v8  ;;  %v6520_v8 = vld [vmem:[%s7268_s20 + $0xe8] sm:$0xff] }
0x21ec   :  { %v3117_v9 = vpop.xlane.xlu2 %3116 }
0x21ed   :  { %v3121_v11 = vmul.f32 %v3117_v9, %v7558_v47 }
0x21ef   :  { %v3123_v12 = vsub.f32 %v3109_v62, %v3121_v11  ;;  %v8121_v62 = vld [vmem:[%s8958_s8] sm:$0xff]  ;;  %v6517_v11 = vld [vmem:[%s7268_s20 + $0xd0] sm:$0xff]  ;;  %s8974_s8 = sld [smem:[#allocation24_spill]] }
0x21f0   :  { %v3371_v0 = vpack.c.bf16 %v8124_v63, %v8121_v62 }
0x21f1   :  { %v3125_v10 = vmul.f32 %v3123_v12, %v3123_v12 }
0x21f3   :  { %v3127_v33 = vsel %vm200_vm0, %v3125_v10, 0.0 }
0x21f4   :  { %3128 = vadd.xlane.f32.xlu1 %v3127_v33  ;;  %v3120_v30 = vpop.xlane.xlu0 %3119  ;;  %v6515_v33 = vld [vmem:[%s7268_s20 + $0xc0] sm:$0xff] }
0x21f5   :  { %v3122_v13 = vmul.f32 %v3120_v30, %v7558_v47  ;;  %v6516_v30 = vld [vmem:[%s7268_s20 + $0xc8] sm:$0xff] }
0x21f7   :  { %v3124_v15 = vsub.f32 %v3110_v3, %v3122_v13  ;;  %v6519_v3 = vld [vmem:[%s7268_s20 + $0xe0] sm:$0xff]  ;;  %v3211_v13 = vpack.c.bf16 %v6516_v30, %v6515_v33  ;;  %v3356_v30 = vlaneseq }
0x21f8   :  { %v3213_v9 = vpack.c.bf16 %v6520_v8, %v6519_v3 }
0x21f9   :  { %v3126_v57 = vmul.f32 %v3124_v15, %v3124_v15 }
0x21fa   :  { %3228 = vmatpush.bf16.msra.mxu2 %v3213_v9 }
0x21fb   :  { %v3130_v16 = vsel %vm200_vm0, %v3126_v57, 0.0  ;;  %v6751_v57 = vld [vmem:[%s7263_s12 + $0x3] ss:$0 sm:$0xff]  ;;  %s8966_s12 = sld [smem:[#allocation13_spill]] }
0x21fc   :  { %3131 = vadd.xlane.f32.xlu1 %v3130_v16 }
0x2267   :  { %v3129_v52 = vpop.xlane.xlu1 %3128 }
0x2268   :  { %v3133_v20 = vmul.f32 %v3129_v52, %v7558_v47 }
0x226a   :  { %v3135_v23 = vadd.f32 1e-05, %v3133_v20 }
0x226c   :  { %6935 = vrsqrt.f32 %v3135_v23  ;;  %vm3143_vm12 = vweird.f32 %v3135_v23 }
0x226f   :  { %v3132_v26 = vpop.xlane.xlu1 %3131 }
0x2270   :  { %v3134_v29 = vmul.f32 %v3132_v26, %v7558_v47 }
0x2272   :  { %v6936_v42 = vpop.eup %6935  ;;  %v3136_v43 = vadd.f32 1e-05, %v3134_v29 }
0x2273   :  { %v3138_v32 = vmul.f32 %v6936_v42, %v3135_v23  ;;  %vm3144_vm11 = vweird.f32 %v6936_v42 }
0x2274   :  { %6937 = vrsqrt.f32 %v3136_v43  ;;  %vm3145_vm13 = vmor %vm3143_vm12, %vm3144_vm11  ;;  %vm3153_vm15 = vweird.f32 %v3136_v43 }
0x2275   :  { %v3139_v34 = vmul.f32 %v6936_v42, %v3138_v32 }
0x2277   :  { %v3140_v35 = vmul.f32 0.5, %v3139_v34 }
0x2279   :  { %v3141_v4 = vsub.f32 1.5, %v3140_v35 }
0x227a   :  { %v6938_v36 = vpop.eup %6937 }
0x227b   :  { %v3142_v19 = vmul.f32 %v6936_v42, %v3141_v4  ;;  %v3148_v37 = vmul.f32 %v6938_v36, %v3136_v43  ;;  %vm3154_vm14 = vweird.f32 %v6938_v36 }
0x227c   :  { %vm3155_vm3 = vmor %vm3153_vm15, %vm3154_vm14 }
0x227d   :  { %v3149_v39 = vmul.f32 %v6938_v36, %v3148_v37  ;;  %v3146_v40 = vsel %vm3145_vm13, %v6936_v42, %v3142_v19 }
0x227e   :  { %v3157_v48 = vmul.f32 %v3146_v40, %v3123_v12  ;;  %v6518_v12 = vld [vmem:[%s7268_s20 + $0xd8] sm:$0xff]  ;;  %s8967_s20 = sld [smem:[#allocation16_spill]] }
0x227f   :  { %v3150_v45 = vmul.f32 0.5, %v3149_v39  ;;  %v3212_v10 = vpack.c.bf16 %v6518_v12, %v6517_v11 }
0x2280   :  { %v3162_v46 = vmul.f32 %v6749_v5, %v3157_v48 }
0x2281   :  { %v3151_v56 = vsub.f32 1.5, %v3150_v45  ;;  %3229 = vmatpush.bf16.msra.mxu2 %v3212_v10 }
0x2282   :  { %v3167_v53 = vadd.f32 %v6750_v55, %v3162_v46 }
0x2283   :  { %v3152_v44 = vmul.f32 %v6938_v36, %v3151_v56  ;;  %v6739_v56 = vld [vmem:[%s7273_s27 + $0x1] ss:$0 sm:$0xff]  ;;  %s8968_s27 = sld [smem:[#allocation14_spill]] }
0x2285   :  { %v3156_v51 = vsel %vm3155_vm3, %v6938_v36, %v3152_v44  ;;  %3230 = vmatpush.bf16.msra.mxu2 %v3211_v13  ;;  %v3357_v13 = vshrl.u32 %v3356_v30, 7 }
0x2286   :  { %v3158_v59 = vmul.f32 %v3156_v51, %v3124_v15  ;;  %v3307_v51 = vld [vmem:[%s8960_s19 + $0x10] sm:$0xff] }
0x2288   :  { %v3163_v31 = vmul.f32 %v6749_v5, %v3158_v59  ;;  %v1676_v5 = vadd.f32 %v6739_v56, %v7852_v50  ;;  %v3305_v59 = vld [vmem:[%s8960_s19] sm:$0xff] }
0x228a   :  { %v3168_v60 = vadd.f32 %v6750_v55, %v3163_v31  ;;  %v8164_v48 = vadd.f32 %v1676_v5, %v7817_v49  ;;  %v3308_v55 = vld [vmem:[%s8960_s19 + $0x18] sm:$0xff]  ;;  %v3306_v31 = vld [vmem:[%s8960_s19 + $0x8] sm:$0xff]  ;;  %s8975_s19 = sld [smem:[#allocation22_spill]] }
0x228b   :  { %v3310_v46 = vpack.c.bf16 %v3308_v55, %v3307_v51 }
0x228c   :  { %v3169_v61 = vpack.c.bf16 %v3168_v60, %v3167_v53  ;;  %v1686_v44 = vsel %vm200_vm0, %v8164_v48, 0.0 }
0x228d   :  { %3320 = vmatpush.bf16.msrb.mxu3 %v3310_v46 }
0x228e   :  { %6514 = vmatmul.msk.bf16.vlgmr.msra.gmra.mxu1 %vm200_vm0, %v3169_v61 }
0x229e   :  { %6529 = vmatmul.msk.bf16.vlgmr.msrb.gmra.mxu1 %vm200_vm0, %v3371_v0 }
0x230b   :  { %v3194_v15 = vpop.f32.mrf.mxu1 }
0x230c   :  { %v3195_v16 = vadd.f32 %v6751_v57, %v3194_v15  ;;  %v3359_v15 = vand.u32 127, %v3356_v30 }
0x230e   :  { %v3199_v54 = vmax.f32 %v3195_v16, 0.0  ;;  %vm3360_vm4 = vcmp.gt.s32.totalorder %v3359_v15, %v3357_v13  ;;  %v1678_v16 = vadd.f32 %v6739_v56, %v7856_v38  ;;  %v6754_v56 = vld [vmem:[%s7278_s4 + $0x3] ss:$0 sm:$0xff] }
0x2313   :  { %v3196_v18 = vpop.f32.mrf.mxu1 }
0x2314   :  { %v3197_v14 = vadd.f32 %v6751_v57, %v3196_v18  ;;  %v8187_v57 = vld [vmem:[%s8961_s24] sm:$0x3]  ;;  %s8976_s24 = sld [smem:[#allocation23_spill]] }
0x2315   :  { %v3365_v18 = vperm.slane %v8187_v57, 0 }
0x2316   :  { %v3200_v52 = vmax.f32 %v3197_v14, 0.0  ;;  %v7181_v14 = vmov 0.0  }
0x2318   :  { %v3201_v20 = vpack.c.bf16 %v3200_v52, %v3199_v54  ;;  %v8191_v54 = vsel %vm3360_vm4, -1e+09, %v7181_v14  ;;  %v8194_v52 = vadd.f32 %v1678_v16, %v7819_v6 }
0x231a   :  { %6524 = vmatmul.msk.bf16.vlgmr.msra.gmra.mxu2 %vm890_vm10, %v3201_v20  ;;  %v8197_v20 = vadd.f32 %v3365_v18, %v8191_v54 }
0x231b   :  { %v3394_v22 = vpop.f32.mrf.mxu1 }
0x231c   :  { %v3395_v23 = vadd.f32 %v6752_v21, %v3394_v22 }
0x231e   :  { %v3404_v24 = vpack.c.bf16 %v3395_v23, %v3395_v23 }
0x2320   :  { %v3407_v25 = vunpack.c.l.b16 %v3404_v24 }
0x2322   :  { %v8140_v58 = vpack.c.b16 %v3407_v25, %v3407_v25 }
0x2323   :  { %v3396_v4 = vpop.f32.mrf.mxu1 }
0x2324   :  { %3409 = vrot.lane.b32.xlu1 %v8140_v58, %s7169_s0  ;;  %3524 = vrot.lane.b32.xlu2 %v8140_v58, %s7170_s5  ;;  %v3397_v36 = vadd.f32 %v6752_v21, %v3396_v4  ;;  %v1689_v21 = vsel %vm200_vm0, %v8194_v52, 0.0 }
0x2326   :  { %v8153_v19 = vpack.c.bf16 %v3397_v36, %v3397_v36 }
0x2328   :  { %v3431_v37 = vunpack.c.l.b16 %v8153_v19 }
0x232a   :  { %v8156_v39 = vpack.c.b16 %v3431_v37, %v3431_v37 }
0x237e   :  { %v3525_v40 = vpop.permute.xlu2 %3524 }
0x237f   :  { %v3530_v45 = vsel %vm234_vm1, %v3525_v40, 0 }
0x2396   :  { %v3410_v17 = vpop.permute.xlu1 %3409 }
0x2397   :  { %v3415_v26 = vsel %vm234_vm1, %v3410_v17, 0 }
0x2398   :  { %3424 = vmatpush.bf16.xpose.msrb.mxu2 %v3415_v26 }
0x239d   :  { %v3232_v28 = vpop.f32.mrf.mxu2 }
0x239e   :  { %v3233_v29 = vadd.f32 %v6753_v27, %v3232_v28 }
0x239f   :  { %6530 = vmatmul.msk.bf16.vlgmr.msrb.gmra.mxu2 %vm234_vm1, %v3404_v24 }
0x23a0   :  { %v3237_v41 = vadd.f32 %v3233_v29, %v3167_v53  ;;  %3539 = vmatpush.bf16.xpose.msra.mxu2 %v3530_v45 }
0x23a2   :  { %v3243_v42 = vsel %vm200_vm0, %v3237_v41, 0.0 }
0x23a3   :  { %3244 = vadd.xlane.f32.xlu0 %v3243_v42 }
0x23a5   :  { %v3234_v43 = vpop.f32.mrf.mxu2 }
0x23a6   :  { %v3235_v32 = vadd.f32 %v6753_v27, %v3234_v43 }
0x23a8   :  { %v3238_v34 = vadd.f32 %v3235_v32, %v3168_v60  ;;  %v3309_v60 = vpack.c.bf16 %v3306_v31, %v3305_v59  ;;  %v6755_v31 = vld [vmem:[%s7283_s29 + $0x3] ss:$0 sm:$0xff] }
0x23aa   :  { %v3246_v35 = vsel %vm200_vm0, %v3238_v34, 0.0  ;;  %3321 = vmatpush.bf16.msrb.mxu3 %v3309_v60 }
0x23ab   :  { %3247 = vadd.xlane.f32.xlu1 %v3246_v35 }
0x23b7   :  { %3522 = vrot.lane.b32.xlu0 %v8140_v58, %s7171_s28 }
0x23c4   :  { %3433 = vrot.lane.b32.xlu1 %v8156_v39, %s7169_s0 }
0x23ee   :  { %1687 = vadd.xlane.f32.xlu1 %v1686_v44 }
0x2416   :  { %v3245_v53 = vpop.xlane.xlu0 %3244 }
0x2417   :  { %v3249_v61 = vmul.f32 %v3245_v53, %v7558_v47 }
0x2419   :  { %v3251_v0 = vsub.f32 %v3237_v41, %v3249_v61 }
0x241b   :  { %v3253_v50 = vmul.f32 %v3251_v0, %v3251_v0 }
0x241d   :  { %v3255_v49 = vsel %vm200_vm0, %v3253_v50, 0.0 }
0x241e   :  { %v3248_v1 = vpop.xlane.xlu1 %3247  ;;  %3256 = vadd.xlane.f32.xlu2 %v3255_v49 }
0x241f   :  { %v3250_v7 = vmul.f32 %v3248_v1, %v7558_v47 }
0x2421   :  { %v8175_v2 = vsub.f32 %v3238_v34, %v3250_v7 }
0x2422   :  { %v3426_v3 = vpop.f32.mrf.mxu2 }
0x2423   :  { %v3254_v8 = vmul.f32 %v8175_v2, %v8175_v2  ;;  %v8202_v22 = vadd.f32 %v3426_v3, %v8197_v20 }
0x2425   :  { %v3258_v9 = vsel %vm200_vm0, %v3254_v8, 0.0  ;;  %v3454_v38 = vsel %vm234_vm1, %v8202_v22, -inf }
0x2426   :  { %3259 = vadd.xlane.f32.xlu0 %v3258_v9 }
0x2429   :  { %v3523_v11 = vpop.permute.xlu0 %3522 }
0x242a   :  { %v3428_v12 = vpop.f32.mrf.mxu2  ;;  %6534 = vmatmul.msk.bf16.vlgmr.msra.gmra.mxu2 %vm234_vm1, %v3523_v11 }
0x2436   :  { %v3434_v10 = vpop.permute.xlu1 %3433  ;;  %3547 = vrot.lane.b32.xlu2 %v8156_v39, %s7170_s5 }
0x2437   :  { %v3439_v33 = vsel %vm234_vm1, %v3434_v10, 0 }
0x2438   :  { %3448 = vmatpush.bf16.xpose.msra.mxu3 %v3439_v33 }
0x243a   :  { %3545 = vrot.lane.b32.xlu0 %v8156_v39, %s7171_s28 }
0x245f   :  { %1690 = vadd.xlane.f32.xlu2 %v1689_v21 }
0x2461   :  { %v1688_v4 = vpop.xlane.xlu1 %1687 }
0x2462   :  { %v1692_v45 = vmul.f32 %v1688_v4, %v7558_v47 }
0x2464   :  { %3455 = vmax.xlane.f32.xlu0 %v3454_v38  ;;  %v8212_v59 = vsub.f32 %v8164_v48, %v1692_v45  ;;  %v3364_v45 = vrot.slane %v8187_v57, 1 }
0x2466   :  { %v1696_v1 = vmul.f32 %v8212_v59, %v8212_v59 }
0x2468   :  { %v1698_v48 = vsel %vm200_vm0, %v1696_v1, 0.0 }
0x2491   :  { %v3257_v23 = vpop.xlane.xlu2 %3256 }
0x2492   :  { %v3261_v24 = vmul.f32 %v3257_v23, %v7558_v47  ;;  %v3300_v23 = vld [vmem:[%s8962_s30 + $0x10] sm:$0xff] }
0x2494   :  { %v3263_v25 = vadd.f32 1e-05, %v3261_v24  ;;  %v3301_v24 = vld [vmem:[%s8962_s30 + $0x18] sm:$0xff] }
0x2496   :  { %6939 = vrsqrt.f32 %v3263_v25  ;;  %vm3271_vm6 = vweird.f32 %v3263_v25 }
0x2499   :  { %v3260_v6 = vpop.xlane.xlu0 %3259  ;;  %v3548_v7 = vpop.permute.xlu2 %3547 }
0x249a   :  { %v3262_v17 = vmul.f32 %v3260_v6, %v7558_v47  ;;  %v3553_v9 = vsel %vm234_vm1, %v3548_v7, 0  ;;  %v3298_v6 = vld [vmem:[%s8962_s30] sm:$0xff] }
0x249c   :  { %v6940_v26 = vpop.eup %6939  ;;  %v3264_v27 = vadd.f32 1e-05, %v3262_v17  ;;  %v3299_v17 = vld [vmem:[%s8962_s30 + $0x8] sm:$0xff]  ;;  %s8977_s30 = sld [smem:[#allocation26_spill]] }
0x249d   :  { %v3266_v28 = vmul.f32 %v6940_v26, %v3263_v25  ;;  %vm3272_vm5 = vweird.f32 %v6940_v26  ;;  %v3303_v25 = vpack.c.bf16 %v3301_v24, %v3300_v23 }
0x249e   :  { %6941 = vrsqrt.f32 %v3264_v27  ;;  %vm3273_vm7 = vmor %vm3271_vm6, %vm3272_vm5  ;;  %vm3281_vm9 = vweird.f32 %v3264_v27 }
0x249f   :  { %v3267_v29 = vmul.f32 %v6940_v26, %v3266_v28  ;;  %3337 = vmatpush.bf16.msrb.mxu0 %v3303_v25 }
0x24a1   :  { %v3268_v41 = vmul.f32 0.5, %v3267_v29 }
0x24a3   :  { %v3269_v42 = vsub.f32 1.5, %v3268_v41 }
0x24a4   :  { %v6942_v43 = vpop.eup %6941 }
0x24a5   :  { %v3270_v32 = vmul.f32 %v6940_v26, %v3269_v42  ;;  %v3276_v34 = vmul.f32 %v6942_v43, %v3264_v27  ;;  %vm3282_vm8 = vweird.f32 %v6942_v43  ;;  %v3302_v27 = vpack.c.bf16 %v3299_v17, %v3298_v6 }
0x24a6   :  { %vm3283_vm11 = vmor %vm3281_vm9, %vm3282_vm8 }
0x24a7   :  { %v3277_v35 = vmul.f32 %v6942_v43, %v3276_v34  ;;  %v3274_v36 = vsel %vm3273_vm7, %v6940_v26, %v3270_v32  ;;  %3338 = vmatpush.bf16.msrb.mxu0 %v3302_v27 }
0x24a8   :  { %v3285_v5 = vmul.f32 %v3274_v36, %v3251_v0 }
0x24a9   :  { %v3278_v37 = vmul.f32 0.5, %v3277_v35 }
0x24aa   :  { %v3290_v53 = vmul.f32 %v6754_v56, %v3285_v5 }
0x24ab   :  { %v3279_v40 = vsub.f32 1.5, %v3278_v37 }
0x24ac   :  { %v3295_v49 = vadd.f32 %v6755_v31, %v3290_v53 }
0x24ad   :  { %v3280_v44 = vmul.f32 %v6942_v43, %v3279_v40  ;;  %v3541_v51 = vpop.f32.mrf.mxu2 }
0x24ae   :  { %v3542_v55 = vadd.f32 %v3541_v51, %v8197_v20  ;;  %v3366_v51 = vperm.slane %v3364_v45, 0 }
0x24af   :  { %v3284_v46 = vsel %vm3283_vm11, %v6942_v43, %v3280_v44 }
0x24b0   :  { %v3286_v60 = vmul.f32 %v3284_v46, %v8175_v2  ;;  %v3568_v61 = vsel %vm234_vm1, %v3542_v55, -inf  ;;  %v3546_v2 = vpop.permute.xlu0 %3545 }
0x24b1   :  { %3569 = vmax.xlane.f32.xlu1 %v3568_v61 }
0x24b2   :  { %v3291_v50 = vmul.f32 %v6754_v56, %v3286_v60  ;;  %v8262_v60 = vadd.f32 %v3366_v51, %v8191_v54 }
0x24b4   :  { %v3296_v0 = vadd.f32 %v6755_v31, %v3291_v50 }
0x24b5   :  { %v3543_v3 = vpop.f32.mrf.mxu2 }
0x24b6   :  { %v3304_v8 = vpack.c.bf16 %v3296_v0, %v3295_v49  ;;  %v6756_v3 = vld [vmem:[%s7278_s4 + $0x1] ss:$0 sm:$0xff]  ;;  %s8969_s4 = sld [smem:[#allocation15_spill]] }
0x24b8   :  { %6527 = vmatmul.msk.bf16.vlgmr.msrb.gmra.mxu3 %vm200_vm0, %v3304_v8 }
0x24b9   :  { %3562 = vmatpush.bf16.xpose.msrb.mxu3 %v3553_v9  ;;  %1699 = vadd.xlane.f32.xlu1 %v1698_v48 }
0x24c8   :  { %6531 = vmatmul.msk.bf16.vlgmr.msra.gmra.mxu3 %vm234_vm1, %v8153_v19 }
0x24d2   :  { %v1691_v11 = vpop.xlane.xlu2 %1690 }
0x24d3   :  { %v1693_v12 = vmul.f32 %v1691_v11, %v7558_v47 }
0x24d5   :  { %v8226_v10 = vsub.f32 %v8194_v52, %v1693_v12 }
0x24d7   :  { %v3456_v33 = vpop.xlane.xlu0 %3455  ;;  %v1697_v30 = vmul.f32 %v8226_v10, %v8226_v10 }
0x24d8   :  { %v3460_v13 = vsub.f32 %v8202_v22, %v3456_v33  ;;  %6535 = vmatmul.msk.bf16.vlgmr.msrb.gmra.mxu3 %vm234_vm1, %v3546_v2  ;;  %v6757_v2 = vld [vmem:[%s7283_s29 + $0x1] ss:$0 sm:$0xff]  ;;  %s8963_s29 = sld [smem:[#allocation12_spill]] }
0x24d9   :  { %v1701_v15 = vsel %vm200_vm0, %v1697_v30, 0.0 }
0x24da   :  { %v3462_v16 = vmul.f32 1.442695, %v3460_v13  ;;  %1702 = vadd.xlane.f32.xlu2 %v1701_v15 }
0x24dc   :  { %6943 = vpow2.f32 %v3462_v16 }
0x24e2   :  { %v8233_v19 = vpop.eup %6943 }
0x24e3   :  { %v3466_v18 = vsel %vm234_vm1, %v8233_v19, 0.0 }
0x24e4   :  { %3467 = vadd.xlane.f32.xlu1 %v3466_v18 }
0x24f2   :  { %3478 = vrot.lane.b32.xlu2 %v8140_v58, %s7174_s2 }
0x24fa   :  { %3676 = vrot.lane.b32.xlu2 %v8140_v58, %s7175_s7 }
0x24fd   :  { %3592 = vrot.lane.b32.xlu1 %v8140_v58, %s7172_s1 }
0x2524   :  { %v3570_v14 = vpop.xlane.xlu1 %3569 }
0x2525   :  { %v3574_v52 = vsub.f32 %v3542_v55, %v3570_v14 }
0x2527   :  { %v3576_v21 = vmul.f32 1.442695, %v3574_v52 }
0x2529   :  { %6945 = vpow2.f32 %v3576_v21 }
0x252c   :  { %v1700_v26 = vpop.xlane.xlu1 %1699 }
0x252d   :  { %v1704_v28 = vmul.f32 %v1700_v26, %v7558_v47 }
0x252f   :  { %v8243_v22 = vpop.eup %6945  ;;  %v1706_v41 = vadd.f32 1e-05, %v1704_v28 }
0x2530   :  { %v3580_v38 = vsel %vm234_vm1, %v8243_v22, 0.0 }
0x2531   :  { %3581 = vadd.xlane.f32.xlu0 %v3580_v38  ;;  %6947 = vrsqrt.f32 %v1706_v41  ;;  %vm1714_vm13 = vweird.f32 %v1706_v41 }
0x2537   :  { %v6948_v43 = vpop.eup %6947 }
0x2538   :  { %v1709_v32 = vmul.f32 %v6948_v43, %v1706_v41  ;;  %vm1715_vm12 = vweird.f32 %v6948_v43 }
0x2539   :  { %vm1716_vm14 = vmor %vm1714_vm13, %vm1715_vm12 }
0x253a   :  { %v1710_v35 = vmul.f32 %v6948_v43, %v1709_v32 }
0x253b   :  { %v8252_v29 = vpop.f32.mrf.mxu3 }
0x253c   :  { %v1711_v40 = vmul.f32 0.5, %v1710_v35 }
0x253e   :  { %v1712_v5 = vsub.f32 1.5, %v1711_v40 }
0x2540   :  { %v1713_v31 = vmul.f32 %v6948_v43, %v1712_v5 }
0x2542   :  { %v1717_v49 = vsel %vm1716_vm14, %v6948_v43, %v1713_v31 }
0x2543   :  { %v8254_v42 = vpop.f32.mrf.mxu3  ;;  %v1728_v8 = vmul.f32 %v1717_v49, %v8212_v59 }
0x2545   :  { %3678 = vrot.lane.b32.xlu0 %v8140_v58, %s7173_s17  ;;  %v1733_v11 = vmul.f32 %v6756_v3, %v1728_v8 }
0x2547   :  { %v1738_v13 = vadd.f32 %v6757_v2, %v1733_v11 }
0x254b   :  { %v3450_v34 = vpop.f32.mrf.mxu3 }
0x254c   :  { %v3451_v16 = vadd.f32 %v3450_v34, %v8262_v60 }
0x254d   :  { %v1703_v4 = vpop.xlane.xlu2 %1702 }
0x254e   :  { %v1705_v36 = vmul.f32 %v1703_v4, %v7558_v47  ;;  %v3457_v59 = vsel %vm234_vm1, %v3451_v16, -inf }
0x2550   :  { %v1707_v37 = vadd.f32 1e-05, %v1705_v36 }
0x2552   :  { %6949 = vrsqrt.f32 %v1707_v37  ;;  %vm1724_vm3 = vweird.f32 %v1707_v37 }
0x2553   :  { %v3452_v56 = vpop.f32.mrf.mxu3 }
0x2555   :  { %v3479_v44 = vpop.permute.xlu2 %3478 }
0x2556   :  { %v3484_v55 = vsel %vm307_vm2, %v3479_v44, 0 }
0x2557   :  { %3493 = vmatpush.bf16.msra.mxu0 %v3484_v55  ;;  %v3468_v30 = vpop.xlane.xlu1 %3467 }
0x2558   :  { %v6950_v46 = vpop.eup %6949  ;;  %6951 = vrcp.f32 %v3468_v30 }
0x2559   :  { %v1719_v53 = vmul.f32 %v6950_v46, %v1707_v37  ;;  %vm1725_vm15 = vweird.f32 %v6950_v46 }
0x255a   :  { %vm1726_vm4 = vmor %vm1724_vm3, %vm1725_vm15 }
0x255b   :  { %v1720_v61 = vmul.f32 %v6950_v46, %v1719_v53  ;;  %v3564_v50 = vpop.f32.mrf.mxu3 }
0x255c   :  { %v3565_v57 = vadd.f32 %v3564_v50, %v8262_v60 }
0x255d   :  { %v1721_v0 = vmul.f32 0.5, %v1720_v61  ;;  %v3677_v26 = vpop.permute.xlu2 %3676  ;;  %v3400_v61 = vld [vmem:[%s8963_s29 + $0x8] sm:$0xff] }
0x255e   :  { %v3571_v1 = vsel %vm234_vm1, %v3565_v57, -inf  ;;  %v6952_v21 = vpop.eup %6951  ;;  %v3635_v50 = vpack.c.bf16 %v3400_v61, %v3400_v61 }
0x255f   :  { %v1722_v7 = vsub.f32 1.5, %v1721_v0  ;;  %3572 = vmax.xlane.f32.xlu2 %v3571_v1 }
0x2561   :  { %v1723_v9 = vmul.f32 %v6950_v46, %v1722_v7 }
0x2563   :  { %v1727_v54 = vsel %vm1726_vm4, %v6950_v46, %v1723_v9  ;;  %v3566_v48 = vpop.f32.mrf.mxu3  ;;  %v3399_v9 = vld [vmem:[%s8963_s29] sm:$0xff] }
0x2564   :  { %v1729_v12 = vmul.f32 %v1727_v54, %v8226_v10  ;;  %v3474_v10 = vmul.f32 %v6952_v21, %v8233_v19  ;;  %v3521_v48 = vpack.c.bf16 %v3399_v9, %v3399_v9 }
0x2566   :  { %v1734_v33 = vmul.f32 %v6756_v3, %v1729_v12  ;;  %v3476_v38 = vpack.c.bf16 %v3474_v10, %v3474_v10  ;;  %v3660_v12 = vsel %vm307_vm2, %v3521_v48, 0 }
0x2567   :  { %3669 = vmatpush.bf16.msra.mxu3 %v3660_v12 }
0x2568   :  { %v1739_v15 = vadd.f32 %v6757_v2, %v1734_v33 }
0x256a   :  { %v3297_v18 = vpack.c.bf16 %v1739_v15, %v1738_v13 }
0x256c   :  { %6528 = vmatmul.msk.bf16.vlgmr.msrb.gmra.mxu0 %vm200_vm0, %v3297_v18 }
0x256f   :  { %v3593_v14 = vpop.permute.xlu1 %3592  ;;  %3458 = vmax.xlane.f32.xlu0 %v3457_v59 }
0x2570   :  { %v3598_v52 = vsel %vm307_vm2, %v3593_v14, 0 }
0x2571   :  { %3607 = vmatpush.bf16.msrb.mxu0 %v3598_v52 }
0x257c   :  { %6532 = vmatmul.msk.bf16.vlgmr.msra.gmra.mxu0 %vm234_vm1, %v3476_v38 }
0x2583   :  { %3499 = vrot.lane.b32.xlu0 %v8156_v39, %s7174_s2 }
0x258b   :  { %3699 = vrot.lane.b32.xlu0 %v8156_v39, %s7175_s7 }
0x25a4   :  { %v3582_v23 = vpop.xlane.xlu0 %3581 }
0x25a5   :  { %6953 = vrcp.f32 %v3582_v23 }
0x25ab   :  { %v6954_v24 = vpop.eup %6953 }
0x25ac   :  { %v3588_v25 = vmul.f32 %v6954_v24, %v8243_v22 }
0x25ae   :  { %v3590_v6 = vpack.c.bf16 %v3588_v25, %v3588_v25 }
0x25b0   :  { %6536 = vmatmul.msk.bf16.vlgmr.msrb.gmra.mxu0 %vm234_vm1, %v3590_v6 }
0x25b7   :  { %v3679_v17 = vpop.permute.xlu0 %3678 }
0x25b8   :  { %v3684_v19 = vsel %vm234_vm1, %v3679_v17, 0 }
0x25b9   :  { %3693 = vmatpush.bf16.xpose.msra.mxu0 %v3684_v19 }
0x25c0   :  { %6540 = vmatmul.msk.bf16.vlgmr.msra.gmra.mxu0 %vm234_vm1, %v3677_v26 }
0x25d2   :  { %v3573_v27 = vpop.xlane.xlu2 %3572 }
0x25d3   :  { %v3575_v28 = vsub.f32 %v3565_v57, %v3573_v27  ;;  %v3640_v57 = vsel %vm307_vm2, %v3635_v50, 0 }
0x25d4   :  { %3649 = vmatpush.bf16.msrb.mxu2 %v3640_v57 }
0x25d5   :  { %v3578_v41 = vmul.f32 1.442695, %v3575_v28 }
0x25d7   :  { %6955 = vpow2.f32 %v3578_v41 }
0x25dd   :  { %v6956_v43 = vpop.eup %6955 }
0x25de   :  { %v3583_v32 = vsel %vm234_vm1, %v6956_v43, 0.0 }
0x25df   :  { %3584 = vadd.xlane.f32.xlu2 %v3583_v32 }
0x25e2   :  { %v3459_v34 = vpop.xlane.xlu0 %3458 }
0x25e3   :  { %v3461_v22 = vsub.f32 %v3451_v16, %v3459_v34 }
0x25e5   :  { %v3464_v35 = vmul.f32 1.442695, %v3461_v22 }
0x25e7   :  { %6957 = vpow2.f32 %v3464_v35 }
0x25e9   :  { %v8285_v4 = vpop.f32.mrf.mxu0 }
0x25ed   :  { %v6958_v36 = vpop.eup %6957 }
0x25ee   :  { %v3469_v37 = vsel %vm234_vm1, %v6958_v36, 0.0 }
0x25ef   :  { %3470 = vadd.xlane.f32.xlu1 %v3469_v37 }
0x25f1   :  { %v8288_v40 = vpop.f32.mrf.mxu0 }
0x25f5   :  { %v3500_v45 = vpop.permute.xlu0 %3499 }
0x25f6   :  { %v3505_v56 = vsel %vm307_vm2, %v3500_v45, 0 }
0x25f7   :  { %3701 = vrot.lane.b32.xlu2 %v8156_v39, %s7173_s17  ;;  %3514 = vmatpush.bf16.msra.mxu1 %v3505_v56 }
0x25f9   :  { %v8293_v5 = vpop.f32.mrf.mxu0 }
0x25fd   :  { %v3700_v24 = vpop.permute.xlu0 %3699 }
0x25ff   :  { %3746 = vrot.lane.b32.xlu2 %v8140_v58, %s7176_s10 }
0x2601   :  { %v3497_v44 = vpop.f32.mrf.mxu0 }
0x2607   :  { %3814 = vrot.lane.b32.xlu2 %v8140_v58, %s8926_s11 }
0x2608   :  { %3613 = vrot.lane.b32.xlu1 %v8156_v39, %s7172_s1 }
0x260f   :  { %3837 = vrot.lane.b32.xlu2 %v8156_v39, %s8926_s11 }
0x2617   :  { %3812 = vrot.lane.b32.xlu2 %v8140_v58, %s8924_s15 }
0x261f   :  { %3835 = vrot.lane.b32.xlu2 %v8156_v39, %s8924_s15 }
0x2627   :  { %3767 = vrot.lane.b32.xlu2 %v8156_v39, %s7176_s10 }
0x262d   :  { %v8309_v51 = vpop.f32.mrf.mxu0 }
0x2635   :  { %v3611_v55 = vpop.f32.mrf.mxu0 }
0x263d   :  { %v3695_v46 = vpop.f32.mrf.mxu0 }
0x263e   :  { %v3696_v31 = vadd.f32 %v3695_v46, %v8197_v20 }
0x2640   :  { %v3722_v53 = vsel %vm234_vm1, %v3696_v31, -inf }
0x2641   :  { %3723 = vmax.xlane.f32.xlu0 %v3722_v53 }
0x2645   :  { %v3697_v49 = vpop.f32.mrf.mxu0 }
0x2652   :  { %v3585_v0 = vpop.xlane.xlu2 %3584 }
0x265a   :  { %v3702_v1 = vpop.permute.xlu2 %3701 }
0x265b   :  { %v3707_v14 = vsel %vm234_vm1, %v3702_v1, 0 }
0x2662   :  { %v3747_v7 = vpop.permute.xlu2 %3746  ;;  %v3471_v3 = vpop.xlane.xlu1 %3470 }
0x2663   :  { %v3752_v8 = vsel %vm307_vm2, %v3747_v7, 0  ;;  %6959 = vrcp.f32 %v3471_v3 }
0x2664   :  { %3761 = vmatpush.bf16.msra.mxu2 %v3752_v8  ;;  %6961 = vrcp.f32 %v3585_v0 }
0x2669   :  { %v6960_v54 = vpop.eup %6959 }
0x266a   :  { %v3475_v2 = vmul.f32 %v6960_v54, %v6958_v36  ;;  %v3815_v11 = vpop.permute.xlu2 %3814  ;;  %v6962_v13 = vpop.eup %6961 }
0x266b   :  { %v3589_v15 = vmul.f32 %v6962_v13, %v6956_v43  ;;  %v3820_v21 = vsel %vm234_vm1, %v3815_v11, 0 }
0x266c   :  { %v3477_v33 = vpack.c.bf16 %v3475_v2, %v3475_v2 }
0x266d   :  { %v3591_v52 = vpack.c.bf16 %v3589_v15, %v3589_v15 }
0x266e   :  { %6533 = vmatmul.msk.bf16.vlgmr.msra.gmra.mxu1 %vm234_vm1, %v3477_v33 }
0x2672   :  { %v3838_v30 = vpop.permute.xlu2 %3837 }
0x2673   :  { %v3843_v34 = vsel %vm234_vm1, %v3838_v30, 0 }
0x267a   :  { %v3813_v16 = vpop.permute.xlu2 %3812  ;;  %v3614_v18 = vpop.permute.xlu1 %3613 }
0x267b   :  { %v3619_v59 = vsel %vm307_vm2, %v3614_v18, 0 }
0x267c   :  { %3628 = vmatpush.bf16.msrb.mxu1 %v3619_v59 }
0x267f   :  { %6537 = vmatmul.msk.bf16.vlgmr.msrb.gmra.mxu1 %vm234_vm1, %v3591_v52 }
0x2680   :  { %3716 = vmatpush.bf16.xpose.msra.mxu1 %v3707_v14 }
0x2682   :  { %v3836_v10 = vpop.permute.xlu2 %3835 }
0x2688   :  { %3829 = vmatpush.bf16.xpose.msrb.mxu1 %v3820_v21 }
0x268a   :  { %v3768_v38 = vpop.permute.xlu2 %3767 }
0x268b   :  { %v3773_v23 = vsel %vm307_vm2, %v3768_v38, 0 }
0x268c   :  { %3782 = vmatpush.bf16.msrb.mxu3 %v3773_v23 }
0x268f   :  { %6541 = vmatmul.msk.bf16.vlgmr.msra.gmra.mxu1 %vm234_vm1, %v3700_v24 }
0x269f   :  { %6545 = vmatmul.msk.bf16.vlgmr.msrb.gmra.mxu1 %vm234_vm1, %v3813_v16 }
0x26b4   :  { %v3724_v25 = vpop.xlane.xlu0 %3723 }
0x26b5   :  { %v3728_v6 = vsub.f32 %v3696_v31, %v3724_v25 }
0x26b7   :  { %v3730_v17 = vmul.f32 1.442695, %v3728_v6  ;;  %v4042_v6 = vld [vmem:[%s8964_s6 + $0x10] sm:$0xff] }
0x26b9   :  { %6963 = vpow2.f32 %v3730_v17  ;;  %v4043_v17 = vld [vmem:[%s8964_s6 + $0x18] sm:$0xff] }
0x26bf   :  { %v6964_v19 = vpop.eup %6963 }
0x26c0   :  { %v3734_v26 = vsel %vm234_vm1, %v6964_v19, 0.0 }
0x26c1   :  { %3735 = vadd.xlane.f32.xlu1 %v3734_v26  ;;  %v4045_v26 = vpack.c.bf16 %v4043_v17, %v4042_v6 }
0x26eb   :  { %v3516_v27 = vpop.f32.mrf.mxu1 }
0x26ec   :  { %v3520_v28 = vpack.c.bf16 %v3516_v27, %v8293_v5 }
0x26ee   :  { %6539 = vmatmul.msk.bf16.vlgmr.msra.gmra.mxu3 %vm234_vm1, %v3520_v28  ;;  %v4040_v28 = vld [vmem:[%s8964_s6] sm:$0xff] }
0x26f3   :  { %v3518_v41 = vpop.f32.mrf.mxu1 }
0x26f4   :  { %v4041_v41 = vld [vmem:[%s8964_s6 + $0x8] sm:$0xff] }
0x26fc   :  { %v3630_v43 = vpop.f32.mrf.mxu1 }
0x26fd   :  { %v3634_v32 = vpack.c.bf16 %v3630_v43, %v8309_v51 }
0x26ff   :  { %6538 = vmatmul.msk.bf16.vlgmr.msrb.gmra.mxu2 %vm234_vm1, %v3634_v32 }
0x2700   :  { %3852 = vmatpush.bf16.xpose.msrb.mxu2 %v3843_v34  ;;  %v4044_v34 = vpack.c.bf16 %v4041_v41, %v4040_v28 }
0x2704   :  { %v3632_v22 = vpop.f32.mrf.mxu1 }
0x2705   :  { %v3343_v22 = vadd.f32 %v8288_v40, %v8254_v42 }
0x270c   :  { %v3718_v35 = vpop.f32.mrf.mxu1 }
0x270d   :  { %v3719_v36 = vadd.f32 %v3718_v35, %v8262_v60  ;;  %v3341_v35 = vadd.f32 %v8285_v4, %v8252_v29 }
0x270f   :  { %v3725_v37 = vsel %vm234_vm1, %v3719_v36, -inf }
0x2710   :  { %3726 = vmax.xlane.f32.xlu0 %v3725_v37  ;;  %v3401_v37 = vld [vmem:[%s8963_s29 + $0x10] sm:$0xff] }
0x2714   :  { %v3720_v45 = vpop.f32.mrf.mxu1 }
0x2715   :  { %v3789_v45 = vpack.c.bf16 %v3401_v37, %v3401_v37 }
0x271c   :  { %v3831_v56 = vpop.f32.mrf.mxu1 }
0x271d   :  { %v3832_v5 = vadd.f32 %v3831_v56, %v8197_v20 }
0x271f   :  { %v3858_v44 = vsel %vm234_vm1, %v3832_v5, -inf }
0x2720   :  { %3859 = vmax.xlane.f32.xlu0 %v3858_v44 }
0x2724   :  { %v3833_v51 = vpop.f32.mrf.mxu1 }
0x2734   :  { %v3736_v55 = vpop.xlane.xlu1 %3735 }
0x2735   :  { %6965 = vrcp.f32 %v3736_v55 }
0x273b   :  { %v6966_v46 = vpop.eup %6965 }
0x273c   :  { %v3742_v31 = vmul.f32 %v6966_v46, %v6964_v19 }
0x273e   :  { %v3744_v53 = vpack.c.bf16 %v3742_v31, %v3742_v31 }
0x2740   :  { %6542 = vmatmul.msk.bf16.vlgmr.msra.gmra.mxu2 %vm234_vm1, %v3744_v53 }
0x2750   :  { %6546 = vmatmul.msk.bf16.vlgmr.msrb.gmra.mxu2 %vm234_vm1, %v3836_v10 }
0x2771   :  { %v3671_v61 = vpop.f32.mrf.mxu3 }
0x2782   :  { %v3651_v50 = vpop.f32.mrf.mxu2 }
0x2783   :  { %v8338_v57 = vadd.f32 %v3671_v61, %v3651_v50  ;;  %v3727_v49 = vpop.xlane.xlu0 %3726  ;;  %v3402_v50 = vld [vmem:[%s8963_s29 + $0x18] sm:$0xff] }
0x2784   :  { %v3729_v0 = vsub.f32 %v3719_v36, %v3727_v49  ;;  %v6758_v36 = vld [vmem:[%s7398_s21] ss:$0 sm:$0xff]  ;;  %s8965_s21 = sld [smem:[#allocation19_spill]]  ;;  %v3925_v49 = vpack.c.bf16 %v3402_v50, %v3402_v50 }
0x2785   :  { %v3350_v56 = vadd.f32 %v6758_v36, %v3343_v22  ;;  %v3349_v44 = vadd.f32 %v6758_v36, %v3341_v35 }
0x2786   :  { %v3732_v1 = vmul.f32 1.442695, %v3729_v0  ;;  %v3930_v0 = vsel %vm307_vm2, %v3925_v49, 0 }
0x2787   :  { %v8365_v51 = vpack.c.bf16 %v3350_v56, %v3349_v44  ;;  %3939 = vmatpush.bf16.msra.mxu1 %v3930_v0  ;;  %v4014_v44 = vld [vmem:[%s8967_s20 + $0x10] sm:$0xff] }
0x2788   :  { %6967 = vpow2.f32 %v3732_v1 }
0x278a   :  { %v8342_v11 = vpop.f32.mrf.mxu2 }
0x278e   :  { %v6968_v7 = vpop.eup %6967 }
0x278f   :  { %v3737_v3 = vsel %vm234_vm1, %v6968_v7, 0.0 }
0x2790   :  { %3738 = vadd.xlane.f32.xlu1 %v3737_v3  ;;  %v6759_v3 = vld [vmem:[%s8965_s21] ss:$0 sm:$0xff] }
0x2793   :  { %v3860_v8 = vpop.xlane.xlu0 %3859 }
0x2794   :  { %v3864_v9 = vsub.f32 %v3832_v5, %v3860_v8  ;;  %v3794_v5 = vsel %vm307_vm2, %v3789_v45, 0 }
0x2795   :  { %3803 = vmatpush.bf16.msrb.mxu0 %v3794_v5 }
0x2796   :  { %v3866_v54 = vmul.f32 1.442695, %v3864_v9 }
0x2798   :  { %6969 = vpow2.f32 %v3866_v54 }
0x279e   :  { %v6970_v48 = vpop.eup %6969 }
0x279f   :  { %v3870_v2 = vsel %vm234_vm1, %v6970_v48, 0.0 }
0x27a0   :  { %3871 = vadd.xlane.f32.xlu2 %v3870_v2 }
0x27c3   :  { %v3763_v12 = vpop.f32.mrf.mxu2 }
0x27cb   :  { %v3765_v33 = vpop.f32.mrf.mxu2 }
0x27d3   :  { %v3854_v30 = vpop.f32.mrf.mxu2 }
0x27d4   :  { %v3855_v13 = vadd.f32 %v3854_v30, %v8262_v60 }
0x27d6   :  { %v3861_v15 = vsel %vm234_vm1, %v3855_v13, -inf }
0x27d7   :  { %3862 = vmax.xlane.f32.xlu1 %v3861_v15 }
0x27db   :  { %v3856_v16 = vpop.f32.mrf.mxu2 }
0x27f0   :  { %3882 = vrot.lane.b32.xlu1 %v8140_v58, %s8922_s16 }
0x2803   :  { %v3739_v18 = vpop.xlane.xlu1 %3738 }
0x2804   :  { %6971 = vrcp.f32 %v3739_v18 }
0x280a   :  { %v6972_v59 = vpop.eup %6971 }
0x280b   :  { %v3743_v14 = vmul.f32 %v6972_v59, %v6968_v7 }
0x280d   :  { %v3745_v52 = vpack.c.bf16 %v3743_v14, %v3743_v14 }
0x280f   :  { %6543 = vmatmul.msk.bf16.vlgmr.msrb.gmra.mxu3 %vm234_vm1, %v3745_v52  ;;  %v6760_v52 = vld [vmem:[%s8966_s12] ss:$0 sm:$0xff] }
0x2813   :  { %v3872_v24 = vpop.xlane.xlu2 %3871 }
0x284a   :  { %v3863_v21 = vpop.xlane.xlu1 %3862 }
0x284b   :  { %v3865_v10 = vsub.f32 %v3855_v13, %v3863_v21 }
0x284d   :  { %v3868_v38 = vmul.f32 1.442695, %v3865_v10 }
0x284f   :  { %6973 = vpow2.f32 %v3868_v38 }
0x2850   :  { %6975 = vrcp.f32 %v3872_v24 }
0x2855   :  { %v6974_v23 = vpop.eup %6973 }
0x2856   :  { %v3873_v25 = vsel %vm234_vm1, %v6974_v23, 0.0  ;;  %v6976_v58 = vpop.eup %6975 }
0x2857   :  { %3874 = vadd.xlane.f32.xlu0 %v3873_v25  ;;  %v3878_v19 = vmul.f32 %v6976_v58, %v6970_v48 }
0x2859   :  { %v3880_v32 = vpack.c.bf16 %v3878_v19, %v3878_v19 }
0x2862   :  { %v3883_v27 = vpop.permute.xlu1 %3882 }
0x2863   :  { %v3888_v43 = vsel %vm307_vm2, %v3883_v27, 0 }
0x2864   :  { %3897 = vmatpush.bf16.msra.mxu3 %v3888_v43 }
0x2867   :  { %6547 = vmatmul.msk.bf16.vlgmr.msra.gmra.mxu3 %vm234_vm1, %v3880_v32 }
0x2868   :  { %4059 = vmatpush.bf16.msrb.mxu3 %v4045_v26 }
0x286b   :  { %3903 = vrot.lane.b32.xlu0 %v8156_v39, %s8922_s16  ;;  %v3673_v39 = vpop.f32.mrf.mxu3  ;;  %s8979_s16 = sld [smem:[#allocation27_spill]] }
0x286c   :  { %4060 = vmatpush.bf16.msrb.mxu3 %v4044_v34 }
0x2877   :  { %6551 = vmatmul.msk.bf16.vlgmr.msrb.gmra.mxu3 %vm200_vm0, %v8365_v51 }
0x2892   :  { %v3784_v55 = vpop.f32.mrf.mxu3 }
0x2893   :  { %v3788_v42 = vpack.c.bf16 %v3784_v55, %v3763_v12 }
0x2895   :  { %6544 = vmatmul.msk.bf16.vlgmr.msrb.gmra.mxu0 %vm234_vm1, %v3788_v42 }
0x289a   :  { %v3786_v29 = vpop.f32.mrf.mxu3 }
0x28ca   :  { %v3875_v4 = vpop.xlane.xlu0 %3874 }
0x28cb   :  { %6977 = vrcp.f32 %v3875_v4  ;;  %v4012_v4 = vld [vmem:[%s8967_s20] sm:$0xff] }
0x28d1   :  { %v6978_v40 = vpop.eup %6977 }
0x28d2   :  { %v3879_v46 = vmul.f32 %v6978_v40, %v6974_v23  ;;  %v3674_v23 = vadd.f32 %v3673_v39, %v8342_v11  ;;  %v4015_v39 = vld [vmem:[%s8967_s20 + $0x18] sm:$0xff]  ;;  %v4013_v40 = vld [vmem:[%s8967_s20 + $0x8] sm:$0xff] }
0x28d3   :  { %v4017_v55 = vpack.c.bf16 %v4015_v39, %v4014_v44 }
0x28d4   :  { %v3881_v61 = vpack.c.bf16 %v3879_v46, %v3879_v46 }
0x28d5   :  { %4031 = vmatpush.bf16.msra.mxu2 %v4017_v55 }
0x28dd   :  { %v3904_v31 = vpop.permute.xlu0 %3903 }
0x28de   :  { %v3909_v53 = vsel %vm307_vm2, %v3904_v31, 0  ;;  %v4016_v31 = vpack.c.bf16 %v4013_v40, %v4012_v4 }
0x28df   :  { %3918 = vmatpush.bf16.msra.mxu0 %v3909_v53 }
0x28e0   :  { %4032 = vmatpush.bf16.msra.mxu2 %v4016_v31 }
0x28e2   :  { %6548 = vmatmul.msk.bf16.vlgmr.msra.gmra.mxu0 %vm234_vm1, %v3881_v61 }
0x28ea   :  { %v3899_v1 = vpop.f32.mrf.mxu3 }
0x28f2   :  { %v3901_v7 = vpop.f32.mrf.mxu3 }
0x28fa   :  { %v4062_v8 = vpop.f32.mrf.mxu3 }
0x28fb   :  { %v4063_v9 = vadd.f32 %v6759_v3, %v4062_v8 }
0x28fd   :  { %v4074_v54 = vpack.c.bf16 %v4063_v9, %v4063_v9 }
0x28ff   :  { %v4084_v48 = vsel %vm234_vm1, %v4074_v54, 0  ;;  %v4143_v56 = vunpack.c.l.b16 %v4074_v54 }
0x2900   :  { %4093 = vmatpush.bf16.xpose.msrb.mxu0 %v4084_v48 }
0x2901   :  { %v8394_v5 = vpack.c.b16 %v4143_v56, %v4143_v56 }
0x2902   :  { %v4064_v2 = vpop.f32.mrf.mxu3 }
0x2903   :  { %v4065_v12 = vadd.f32 %v6759_v3, %v4064_v2 }
0x2905   :  { %v4075_v33 = vpack.c.bf16 %v4065_v12, %v4065_v12 }
0x2907   :  { %v4103_v30 = vsel %vm234_vm1, %v4075_v33, 0  ;;  %v4167_v27 = vunpack.c.l.b16 %v4075_v33 }
0x2908   :  { %4112 = vmatpush.bf16.xpose.msrb.mxu1 %v4103_v30 }
0x2909   :  { %v8385_v28 = vpack.c.b16 %v4167_v27, %v4167_v27 }
0x2912   :  { %v3805_v13 = vpop.f32.mrf.mxu0 }
0x2913   :  { %v3810_v15 = vadd.f32 %v3805_v13, %v8338_v57 }
0x291a   :  { %v3807_v16 = vpop.f32.mrf.mxu0 }
0x291b   :  { %v3811_v25 = vadd.f32 %v3807_v16, %v3674_v23 }
0x295f   :  { %v3920_v18 = vpop.f32.mrf.mxu0 }
0x2960   :  { %v3924_v59 = vpack.c.bf16 %v3920_v18, %v3899_v1 }
0x2962   :  { %6549 = vmatmul.msk.bf16.vlgmr.msra.gmra.mxu1 %vm234_vm1, %v3924_v59 }
0x2967   :  { %v3922_v14 = vpop.f32.mrf.mxu0 }
0x2968   :  { %v6762_v14 = vld [vmem:[%s8969_s4] ss:$0 sm:$0xff] }
0x29df   :  { %v3941_v21 = vpop.f32.mrf.mxu1 }
0x29e0   :  { %v3946_v10 = vadd.f32 %v3941_v21, %v3810_v15  ;;  %v6761_v15 = vld [vmem:[%s8968_s27] ss:$0 sm:$0xff] }
0x29e2   :  { %v3951_v38 = vadd.f32 %v6760_v52, %v3946_v10 }
0x29e4   :  { %v3953_v24 = vadd.f32 %v3951_v38, %v8121_v62 }
0x29e6   :  { %v3957_v58 = vsel %vm200_vm0, %v3953_v24, 0.0 }
0x29e7   :  { %3958 = vadd.xlane.f32.xlu1 %v3957_v58  ;;  %v3943_v6 = vpop.f32.mrf.mxu1 }
0x29e8   :  { %v3947_v57 = vadd.f32 %v3943_v6, %v3811_v25  ;;  %v6763_v25 = vld [vmem:[%s8970_s23] ss:$0 sm:$0xff] }
0x29ea   :  { %v3952_v17 = vadd.f32 %v6760_v52, %v3947_v57 }
0x29ec   :  { %v3954_v19 = vadd.f32 %v3952_v17, %v8124_v63 }
0x29ee   :  { %v3960_v26 = vsel %vm200_vm0, %v3954_v19, 0.0 }
0x29ef   :  { %3961 = vadd.xlane.f32.xlu0 %v3960_v26 }
0x2a03   :  { %4223 = vrot.lane.b32.xlu0 %v8385_v28, %s7171_s28 }
0x2a5a   :  { %v3959_v11 = vpop.xlane.xlu1 %3958 }
0x2a5b   :  { %v3963_v62 = vmul.f32 %v3959_v11, %v7558_v47 }
0x2a5d   :  { %v3965_v41 = vsub.f32 %v3953_v24, %v3963_v62 }
0x2a5f   :  { %v3967_v43 = vmul.f32 %v3965_v41, %v3965_v41 }
0x2a61   :  { %v3969_v32 = vsel %vm200_vm0, %v3967_v43, 0.0 }
0x2a62   :  { %3970 = vadd.xlane.f32.xlu2 %v3969_v32  ;;  %v3962_v63 = vpop.xlane.xlu0 %3961 }
0x2a63   :  { %v3964_v34 = vmul.f32 %v3962_v63, %v7558_v47  ;;  %v3351_v63 = vld [vmem:[%s8971_s26] sm:$0x3]  ;;  %s8978_s26 = sld [smem:[#allocation25_spill]] }
0x2a64   :  { %v3353_v44 = vrot.slane %v3351_v63, 1 }
0x2a65   :  { %v3966_v22 = vsub.f32 %v3954_v19, %v3964_v34  ;;  %v8428_v34 = vperm.slane %v3351_v63, 0 }
0x2a66   :  { %v8436_v39 = vperm.slane %v3353_v44, 0 }
0x2a67   :  { %v3968_v35 = vmul.f32 %v3966_v22, %v3966_v22 }
0x2a69   :  { %v3972_v36 = vsel %vm200_vm0, %v3968_v35, 0.0 }
0x2a6a   :  { %3973 = vadd.xlane.f32.xlu2 %v3972_v36 }
0x2a75   :  { %v4224_v37 = vpop.permute.xlu0 %4223 }
0x2a76   :  { %v4229_v45 = vsel %vm234_vm1, %v4224_v37, 0 }
0x2a77   :  { %4238 = vmatpush.bf16.xpose.msra.mxu1 %v4229_v45 }
0x2a82   :  { %4197 = vrot.lane.b32.xlu2 %v8394_v5, %s7171_s28 }
0x2ad5   :  { %v3971_v42 = vpop.xlane.xlu2 %3970 }
0x2ad6   :  { %v3975_v29 = vmul.f32 %v3971_v42, %v7558_v47 }
0x2ad8   :  { %v3977_v46 = vadd.f32 1e-05, %v3975_v29 }
0x2ada   :  { %6979 = vrsqrt.f32 %v3977_v46  ;;  %vm3985_vm6 = vweird.f32 %v3977_v46 }
0x2add   :  { %v3974_v53 = vpop.xlane.xlu2 %3973 }
0x2ade   :  { %v3976_v61 = vmul.f32 %v3974_v53, %v7558_v47 }
0x2ae0   :  { %v6980_v50 = vpop.eup %6979  ;;  %v3978_v49 = vadd.f32 1e-05, %v3976_v61 }
0x2ae1   :  { %v3980_v0 = vmul.f32 %v6980_v50, %v3977_v46  ;;  %vm3986_vm5 = vweird.f32 %v6980_v50 }
0x2ae2   :  { %6981 = vrsqrt.f32 %v3978_v49  ;;  %vm3987_vm7 = vmor %vm3985_vm6, %vm3986_vm5  ;;  %vm3995_vm9 = vweird.f32 %v3978_v49 }
0x2ae3   :  { %v3981_v1 = vmul.f32 %v6980_v50, %v3980_v0 }
0x2ae5   :  { %v3982_v7 = vmul.f32 0.5, %v3981_v1  ;;  %v4198_v3 = vpop.permute.xlu2 %4197 }
0x2ae6   :  { %v4203_v8 = vsel %vm234_vm1, %v4198_v3, 0 }
0x2ae7   :  { %v3983_v9 = vsub.f32 1.5, %v3982_v7  ;;  %4212 = vmatpush.bf16.xpose.msra.mxu0 %v4203_v8 }
0x2ae8   :  { %v6982_v54 = vpop.eup %6981 }
0x2ae9   :  { %v3984_v48 = vmul.f32 %v6980_v50, %v3983_v9  ;;  %v3990_v2 = vmul.f32 %v6982_v54, %v3978_v49  ;;  %vm3996_vm8 = vweird.f32 %v6982_v54 }
0x2aea   :  { %vm3997_vm11 = vmor %vm3995_vm9, %vm3996_vm8 }
0x2aeb   :  { %v3991_v12 = vmul.f32 %v6982_v54, %v3990_v2  ;;  %v3988_v33 = vsel %vm3987_vm7, %v6980_v50, %v3984_v48 }
0x2aec   :  { %v3999_v16 = vmul.f32 %v3988_v33, %v3965_v41 }
0x2aed   :  { %v3992_v30 = vmul.f32 0.5, %v3991_v12 }
0x2aee   :  { %v4004_v52 = vmul.f32 %v6761_v15, %v3999_v16 }
0x2aef   :  { %v3993_v13 = vsub.f32 1.5, %v3992_v30 }
0x2af0   :  { %v8407_v38 = vadd.f32 %v6762_v14, %v4004_v52 }
0x2af1   :  { %v3994_v18 = vmul.f32 %v6982_v54, %v3993_v13 }
0x2af3   :  { %v3998_v59 = vsel %vm3997_vm11, %v6982_v54, %v3994_v18 }
0x2af4   :  { %v4000_v21 = vmul.f32 %v3998_v59, %v3966_v22 }
0x2af6   :  { %v4005_v10 = vmul.f32 %v6761_v15, %v4000_v21 }
0x2af8   :  { %v8409_v23 = vadd.f32 %v6762_v14, %v4005_v10 }
0x2afa   :  { %v4011_v24 = vpack.c.bf16 %v8409_v23, %v8407_v38 }
0x2afc   :  { %6550 = vmatmul.msk.bf16.vlgmr.msra.gmra.mxu2 %vm200_vm0, %v4011_v24 }
0x2b7f   :  { %v4034_v58 = vpop.f32.mrf.mxu2 }
0x2b80   :  { %v4035_v6 = vadd.f32 %v6763_v25, %v4034_v58 }
0x2b82   :  { %v4072_v57 = vpack.c.bf16 %v4035_v6, %v4035_v6 }
0x2b84   :  { %v4193_v17 = vunpack.c.l.b16 %v4072_v57  ;;  %6552 = vmatmul.msk.bf16.vlgmr.msrb.gmra.mxu0 %vm234_vm1, %v4072_v57 }
0x2b86   :  { %v8416_v19 = vpack.c.b16 %v4193_v17, %v4193_v17 }
0x2b87   :  { %v4036_v26 = vpop.f32.mrf.mxu2 }
0x2b88   :  { %v4037_v27 = vadd.f32 %v6763_v25, %v4036_v26  ;;  %4195 = vrot.lane.b32.xlu1 %v8416_v19, %s7171_s28 }
0x2b8a   :  { %v4073_v11 = vpack.c.bf16 %v4037_v27, %v4037_v27 }
0x2b8c   :  { %v4219_v62 = vunpack.c.l.b16 %v4073_v11  ;;  %6553 = vmatmul.msk.bf16.vlgmr.msrb.gmra.mxu1 %vm234_vm1, %v4073_v11 }
0x2b8e   :  { %v8421_v41 = vpack.c.b16 %v4219_v62, %v4219_v62 }
0x2b90   :  { %4221 = vrot.lane.b32.xlu2 %v8421_v41, %s7171_s28 }
0x2bea   :  { %v4222_v43 = vpop.permute.xlu2 %4221 }
0x2beb   :  { %6557 = vmatmul.msk.bf16.vlgmr.msra.gmra.mxu1 %vm234_vm1, %v4222_v43 }
0x2bfa   :  { %v4196_v32 = vpop.permute.xlu1 %4195 }
0x2bfb   :  { %6556 = vmatmul.msk.bf16.vlgmr.msra.gmra.mxu0 %vm234_vm1, %v4196_v32 }
0x2c01   :  { %v4095_v22 = vpop.f32.mrf.mxu0 }
0x2c02   :  { %v4096_v35 = vadd.f32 %v4095_v22, %v8428_v34 }
0x2c04   :  { %v4118_v36 = vsel %vm234_vm1, %v4096_v35, -inf }
0x2c05   :  { %4119 = vmax.xlane.f32.xlu2 %v4118_v36 }
0x2c09   :  { %v4097_v37 = vpop.f32.mrf.mxu0  ;;  %v4114_v45 = vpop.f32.mrf.mxu1 }
0x2c0a   :  { %v4115_v55 = vadd.f32 %v4114_v45, %v8436_v39 }
0x2c0c   :  { %v4121_v42 = vsel %vm234_vm1, %v4115_v55, -inf }
0x2c11   :  { %v4116_v56 = vpop.f32.mrf.mxu1 }
0x2c1d   :  { %4145 = vrot.lane.b32.xlu2 %v8394_v5, %s7169_s0 }
0x2c25   :  { %4352 = vrot.lane.b32.xlu2 %v8416_v19, %s7175_s7 }
0x2c4e   :  { %4122 = vmax.xlane.f32.xlu2 %v4121_v42  ;;  %v4068_v42 = vld [vmem:[%s8972_s18 + $0x8] sm:$0xff] }
0x2c66   :  { %4169 = vrot.lane.b32.xlu2 %v8385_v28, %s7169_s0 }
0x2c68   :  { %v4240_v29 = vpop.f32.mrf.mxu1 }
0x2c69   :  { %v4241_v54 = vadd.f32 %v4240_v29, %v8436_v39  ;;  %v4311_v29 = vpack.c.bf16 %v4068_v42, %v4068_v42 }
0x2c6b   :  { %v4247_v48 = vsel %vm234_vm1, %v4241_v54, -inf }
0x2c70   :  { %v4242_v4 = vpop.f32.mrf.mxu1 }
0x2c78   :  { %v4214_v40 = vpop.f32.mrf.mxu0  ;;  %v4120_v46 = vpop.xlane.xlu2 %4119 }
0x2c79   :  { %v4215_v31 = vadd.f32 %v4214_v40, %v8428_v34  ;;  %v4124_v53 = vsub.f32 %v4096_v35, %v4120_v46 }
0x2c7b   :  { %v4126_v61 = vmul.f32 1.442695, %v4124_v53  ;;  %v4244_v50 = vsel %vm234_vm1, %v4215_v31, -inf }
0x2c7c   :  { %4245 = vmax.xlane.f32.xlu0 %v4244_v50 }
0x2c7d   :  { %6983 = vpow2.f32 %v4126_v61 }
0x2c80   :  { %v4216_v49 = vpop.f32.mrf.mxu0  ;;  %v4146_v0 = vpop.permute.xlu2 %4145 }
0x2c81   :  { %v4151_v1 = vsel %vm307_vm2, %v4146_v0, 0 }
0x2c82   :  { %4160 = vmatpush.bf16.msrb.mxu2 %v4151_v1 }
0x2c83   :  { %v6984_v7 = vpop.eup %6983 }
0x2c84   :  { %v4130_v3 = vsel %vm234_vm1, %v6984_v7, 0.0 }
0x2c85   :  { %4131 = vadd.xlane.f32.xlu1 %v4130_v3 }
0x2c88   :  { %v4353_v8 = vpop.permute.xlu2 %4352 }
0x2c9e   :  { %4268 = vrot.lane.b32.xlu1 %v8394_v5, %s7170_s5 }
0x2cc1   :  { %v4123_v9 = vpop.xlane.xlu2 %4122 }
0x2cc2   :  { %v4125_v24 = vsub.f32 %v4115_v55, %v4123_v9 }
0x2cc4   :  { %v4128_v25 = vmul.f32 1.442695, %v4125_v24 }
0x2cc8   :  { %4248 = vmax.xlane.f32.xlu1 %v4247_v48 }
0x2cc9   :  { %v4170_v2 = vpop.permute.xlu2 %4169 }
0x2cca   :  { %v4175_v12 = vsel %vm307_vm2, %v4170_v2, 0 }
0x2ccb   :  { %4184 = vmatpush.bf16.msra.mxu3 %v4175_v12 }
0x2cef   :  { %v4246_v33 = vpop.xlane.xlu0 %4245 }
0x2cf0   :  { %v4250_v30 = vsub.f32 %v4215_v31, %v4246_v33 }
0x2cf2   :  { %v4252_v13 = vmul.f32 1.442695, %v4250_v30 }
0x2cf4   :  { %6985 = vpow2.f32 %v4252_v13 }
0x2cf8   :  { %v4132_v15 = vpop.xlane.xlu1 %4131 }
0x2cf9   :  { %6987 = vrcp.f32 %v4132_v15  ;;  %v4067_v15 = vld [vmem:[%s8972_s18] sm:$0xff] }
0x2cfa   :  { %v6986_v16 = vpop.eup %6985  ;;  %6989 = vpow2.f32 %v4128_v25 }
0x2cfb   :  { %v4256_v18 = vsel %vm234_vm1, %v6986_v16, 0.0 }
0x2cfc   :  { %4257 = vadd.xlane.f32.xlu0 %v4256_v18 }
0x2cff   :  { %v6988_v59 = vpop.eup %6987 }
0x2d00   :  { %v4138_v14 = vmul.f32 %v6988_v59, %v6984_v7  ;;  %v6990_v58 = vpop.eup %6989 }
0x2d01   :  { %v4133_v6 = vsel %vm234_vm1, %v6990_v58, 0.0 }
0x2d02   :  { %v4140_v52 = vpack.c.bf16 %v4138_v14, %v4138_v14 }
0x2d04   :  { %6554 = vmatmul.msk.bf16.vlgmr.msrb.gmra.mxu2 %vm234_vm1, %v4140_v52 }
0x2d10   :  { %4354 = vrot.lane.b32.xlu0 %v8394_v5, %s7175_s7  ;;  %v4269_v21 = vpop.permute.xlu1 %4268 }
0x2d11   :  { %v4274_v10 = vsel %vm307_vm2, %v4269_v21, 0 }
0x2d12   :  { %4283 = vmatpush.bf16.msra.mxu2 %v4274_v10 }
0x2d3a   :  { %4134 = vadd.xlane.f32.xlu0 %v4133_v6 }
0x2d3b   :  { %v4249_v57 = vpop.xlane.xlu1 %4248 }
0x2d3c   :  { %v4251_v17 = vsub.f32 %v4241_v54, %v4249_v57 }
0x2d3e   :  { %v4254_v26 = vmul.f32 1.442695, %v4251_v17 }
0x2d40   :  { %6991 = vpow2.f32 %v4254_v26 }
0x2d46   :  { %v6992_v27 = vpop.eup %6991 }
0x2d47   :  { %v4259_v11 = vsel %vm234_vm1, %v6992_v27, 0.0 }
0x2d48   :  { %4260 = vadd.xlane.f32.xlu1 %v4259_v11 }
0x2d4e   :  { %4289 = vrot.lane.b32.xlu0 %v8385_v28, %s7170_s5 }
0x2d56   :  { %4375 = vrot.lane.b32.xlu0 %v8421_v41, %s7175_s7 }
0x2d61   :  { %4377 = vrot.lane.b32.xlu1 %v8385_v28, %s7175_s7 }
0x2d69   :  { %4422 = vrot.lane.b32.xlu1 %v8394_v5, %s7173_s17 }
0x2d6f   :  { %v4258_v62 = vpop.xlane.xlu0 %4257 }
0x2d70   :  { %6993 = vrcp.f32 %v4258_v62 }
0x2d71   :  { %4490 = vrot.lane.b32.xlu1 %v8394_v5, %s8924_s15 }
0x2d76   :  { %v6994_v43 = vpop.eup %6993 }
0x2d77   :  { %v4264_v32 = vmul.f32 %v6994_v43, %v6986_v16  ;;  %v4191_v16 = vpack.c.bf16 %v4067_v15, %v4067_v15  ;;  %v4069_v15 = vld [vmem:[%s8972_s18 + $0x10] sm:$0xff] }
0x2d79   :  { %v4266_v63 = vpack.c.bf16 %v4264_v32, %v4264_v32  ;;  %4513 = vrot.lane.b32.xlu1 %v8385_v28, %s8924_s15  ;;  %v4336_v18 = vsel %vm307_vm2, %v4191_v16, 0  ;;  %v4465_v16 = vpack.c.bf16 %v4069_v15, %v4069_v15  ;;  %v4690_v15 = vld [vmem:[%s8974_s8 + $0x10] sm:$0xff] }
0x2d7a   :  { %4345 = vmatpush.bf16.msrb.mxu1 %v4336_v18 }
0x2d7b   :  { %6558 = vmatmul.msk.bf16.vlgmr.msra.gmra.mxu2 %vm234_vm1, %v4266_v63  ;;  %v4470_v18 = vsel %vm307_vm2, %v4465_v16, 0  ;;  %v4691_v16 = vld [vmem:[%s8974_s8 + $0x18] sm:$0xff] }
0x2d81   :  { %4488 = vrot.lane.b32.xlu1 %v8416_v19, %s8924_s15  ;;  %v4316_v19 = vsel %vm307_vm2, %v4311_v29, 0 }
0x2d82   :  { %v4355_v22 = vpop.permute.xlu0 %4354  ;;  %4325 = vmatpush.bf16.msrb.mxu0 %v4316_v19 }
0x2d83   :  { %v4360_v35 = vsel %vm234_vm1, %v4355_v22, 0 }
0x2d84   :  { %4369 = vmatpush.bf16.xpose.msrb.mxu2 %v4360_v35 }
0x2d87   :  { %v4162_v36 = vpop.f32.mrf.mxu2 }
0x2d8b   :  { %6562 = vmatmul.msk.bf16.vlgmr.msrb.gmra.mxu2 %vm234_vm1, %v4353_v8 }
0x2d8c   :  { %4479 = vmatpush.bf16.msra.mxu2 %v4470_v18  ;;  %v4693_v18 = vpack.c.bf16 %v4691_v16, %v4690_v15 }
0x2d8f   :  { %v4164_v37 = vpop.f32.mrf.mxu2 }
0x2dad   :  { %v4135_v45 = vpop.xlane.xlu0 %4134 }
0x2dae   :  { %6995 = vrcp.f32 %v4135_v45 }
0x2db4   :  { %v6996_v56 = vpop.eup %6995 }
0x2db5   :  { %v4139_v44 = vmul.f32 %v6996_v56, %v6990_v58 }
0x2db7   :  { %v4141_v55 = vpack.c.bf16 %v4139_v44, %v4139_v44 }
0x2db9   :  { %6555 = vmatmul.msk.bf16.vlgmr.msra.gmra.mxu3 %vm234_vm1, %v4141_v55 }
0x2dbb   :  { %v4261_v4 = vpop.xlane.xlu1 %4260 }
0x2dbc   :  { %6997 = vrcp.f32 %v4261_v4 }
0x2dc0   :  { %v4290_v40 = vpop.permute.xlu0 %4289 }
0x2dc1   :  { %v4295_v46 = vsel %vm307_vm2, %v4290_v40, 0 }
0x2dc2   :  { %v6998_v31 = vpop.eup %6997  ;;  %4304 = vmatpush.bf16.msrb.mxu3 %v4295_v46 }
0x2dc3   :  { %v4265_v53 = vmul.f32 %v6998_v31, %v6992_v27 }
0x2dc5   :  { %v4267_v61 = vpack.c.bf16 %v4265_v53, %v4265_v53 }
0x2dc8   :  { %v4376_v0 = vpop.permute.xlu0 %4375 }
0x2dc9   :  { %6559 = vmatmul.msk.bf16.vlgmr.msrb.gmra.mxu3 %vm234_vm1, %v4267_v61 }
0x2dd3   :  { %v4378_v50 = vpop.permute.xlu1 %4377 }
0x2dd4   :  { %v4383_v49 = vsel %vm234_vm1, %v4378_v50, 0 }
0x2dd5   :  { %4392 = vmatpush.bf16.xpose.msra.mxu3 %v4383_v49 }
0x2ddb   :  { %v4423_v1 = vpop.permute.xlu1 %4422 }
0x2ddc   :  { %v4428_v7 = vsel %vm307_vm2, %v4423_v1, 0  ;;  %6563 = vmatmul.msk.bf16.vlgmr.msra.gmra.mxu3 %vm234_vm1, %v4376_v0 }
0x2ddd   :  { %4437 = vmatpush.bf16.msra.mxu0 %v4428_v7 }
0x2de3   :  { %v4491_v3 = vpop.permute.xlu1 %4490 }
0x2de4   :  { %v4496_v8 = vsel %vm234_vm1, %v4491_v3, 0 }
0x2de5   :  { %4505 = vmatpush.bf16.xpose.msrb.mxu3 %v4496_v8 }
0x2deb   :  { %v4514_v9 = vpop.permute.xlu1 %4513 }
0x2dec   :  { %v4519_v24 = vsel %vm234_vm1, %v4514_v9, 0 }
0x2df3   :  { %v4489_v54 = vpop.permute.xlu1 %4488 }
0x2df4   :  { %6567 = vmatmul.msk.bf16.vlgmr.msrb.gmra.mxu3 %vm234_vm1, %v4489_v54 }
0x2dfe   :  { %v4285_v48 = vpop.f32.mrf.mxu2 }
0x2e06   :  { %v4287_v2 = vpop.f32.mrf.mxu2 }
0x2e0e   :  { %v4371_v12 = vpop.f32.mrf.mxu2 }
0x2e0f   :  { %v4372_v33 = vadd.f32 %v4371_v12, %v8428_v34 }
0x2e11   :  { %v4398_v30 = vsel %vm234_vm1, %v4372_v33, -inf }
0x2e12   :  { %4399 = vmax.xlane.f32.xlu2 %v4398_v30 }
0x2e16   :  { %v4373_v13 = vpop.f32.mrf.mxu2 }
0x2e2a   :  { %4511 = vrot.lane.b32.xlu2 %v8421_v41, %s8924_s15  ;;  %s8980_s15 = sld [smem:[#allocation28_spill]] }
0x2e3c   :  { %v4186_v59 = vpop.f32.mrf.mxu3 }
0x2e3d   :  { %v4190_v14 = vpack.c.bf16 %v4186_v59, %v4162_v36 }
0x2e3f   :  { %6561 = vmatmul.msk.bf16.vlgmr.msrb.gmra.mxu1 %vm234_vm1, %v4190_v14 }
0x2e44   :  { %v4188_v52 = vpop.f32.mrf.mxu3 }
0x2e4c   :  { %v4306_v21 = vpop.f32.mrf.mxu3 }
0x2e4d   :  { %v4310_v10 = vpack.c.bf16 %v4306_v21, %v4285_v48 }
0x2e4f   :  { %6560 = vmatmul.msk.bf16.vlgmr.msrb.gmra.mxu0 %vm234_vm1, %v4310_v10 }
0x2e50   :  { %4528 = vmatpush.bf16.xpose.msrb.mxu0 %v4519_v24 }
0x2e54   :  { %v4308_v25 = vpop.f32.mrf.mxu3 }
0x2e5f   :  { %v4394_v58 = vpop.f32.mrf.mxu3 }
0x2e60   :  { %v4395_v6 = vadd.f32 %v4394_v58, %v8436_v39 }
0x2e62   :  { %v4401_v57 = vsel %vm234_vm1, %v4395_v6, -inf }
0x2e63   :  { %4402 = vmax.xlane.f32.xlu1 %v4401_v57 }
0x2e67   :  { %v4396_v41 = vpop.f32.mrf.mxu3 }
0x2e77   :  { %v4507_v17 = vpop.f32.mrf.mxu3 }
0x2e78   :  { %v4508_v19 = vadd.f32 %v4507_v17, %v8428_v34 }
0x2e7a   :  { %v4534_v46 = vsel %vm234_vm1, %v4508_v19, -inf }
0x2e7f   :  { %v4509_v26 = vpop.f32.mrf.mxu3 }
0x2e85   :  { %v4400_v27 = vpop.xlane.xlu2 %4399 }
0x2e86   :  { %v4404_v11 = vsub.f32 %v4372_v33, %v4400_v27 }
0x2e88   :  { %v4406_v62 = vmul.f32 1.442695, %v4404_v11 }
0x2e8a   :  { %6999 = vpow2.f32 %v4406_v62 }
0x2e8d   :  { %v4512_v40 = vpop.permute.xlu2 %4511 }
0x2e90   :  { %v7000_v43 = vpop.eup %6999 }
0x2e91   :  { %v4410_v32 = vsel %vm234_vm1, %v7000_v43, 0.0 }
0x2e92   :  { %4411 = vadd.xlane.f32.xlu0 %v4410_v32 }
0x2ebc   :  { %v4347_v63 = vpop.f32.mrf.mxu1 }
0x2ec4   :  { %v4349_v59 = vpop.f32.mrf.mxu1 }
0x2ecc   :  { %v4327_v22 = vpop.f32.mrf.mxu0 }
0x2ecd   :  { %v8497_v35 = vadd.f32 %v4347_v63, %v4327_v22 }
0x2ed4   :  { %v8508_v1 = vpop.f32.mrf.mxu0 }
0x2ed6   :  { %v4403_v36 = vpop.xlane.xlu1 %4402 }
0x2ed7   :  { %v4405_v37 = vsub.f32 %v4395_v6, %v4403_v36 }
0x2ed9   :  { %v4408_v45 = vmul.f32 1.442695, %v4405_v37 }
0x2edb   :  { %7001 = vpow2.f32 %v4408_v45 }
0x2ee1   :  { %v7002_v56 = vpop.eup %7001 }
0x2ee2   :  { %v4413_v44 = vsel %vm234_vm1, %v7002_v56, 0.0 }
0x2ee3   :  { %4414 = vadd.xlane.f32.xlu0 %v4413_v44  ;;  %v4070_v44 = vld [vmem:[%s8972_s18 + $0x18] sm:$0xff] }
0x2ef7   :  { %4443 = vrot.lane.b32.xlu0 %v8385_v28, %s7173_s17 }
0x2f05   :  { %v4412_v55 = vpop.xlane.xlu0 %4411 }
0x2f06   :  { %7003 = vrcp.f32 %v4412_v55  ;;  %v4601_v55 = vpack.c.bf16 %v4070_v44, %v4070_v44  ;;  %v6766_v44 = vld [vmem:[%s8976_s24] ss:$0 sm:$0xff] }
0x2f0c   :  { %v7004_v42 = vpop.eup %7003 }
0x2f0d   :  { %v4418_v29 = vmul.f32 %v7004_v42, %v7000_v43 }
0x2f0f   :  { %v4420_v4 = vpack.c.bf16 %v4418_v29, %v4418_v29 }
0x2f11   :  { %6564 = vmatmul.msk.bf16.vlgmr.msra.gmra.mxu0 %vm234_vm1, %v4420_v4 }
0x2f12   :  { %4707 = vmatpush.bf16.msra.mxu0 %v4693_v18 }
0x2f21   :  { %4535 = vmax.xlane.f32.xlu0 %v4534_v46  ;;  %6568 = vmatmul.msk.bf16.vlgmr.msrb.gmra.mxu0 %vm234_vm1, %v4512_v40 }
0x2f56   :  { %v4415_v31 = vpop.xlane.xlu0 %4414 }
0x2f57   :  { %7005 = vrcp.f32 %v4415_v31 }
0x2f5d   :  { %v7006_v53 = vpop.eup %7005 }
0x2f5e   :  { %v4419_v61 = vmul.f32 %v7006_v53, %v7002_v56  ;;  %v4350_v53 = vadd.f32 %v4349_v59, %v8508_v1 }
0x2f60   :  { %v4421_v0 = vpack.c.bf16 %v4419_v61, %v4419_v61 }
0x2f69   :  { %v4444_v50 = vpop.permute.xlu0 %4443 }
0x2f6a   :  { %v4449_v49 = vsel %vm307_vm2, %v4444_v50, 0 }
0x2f6b   :  { %4458 = vmatpush.bf16.msra.mxu1 %v4449_v49 }
0x2f6e   :  { %6565 = vmatmul.msk.bf16.vlgmr.msra.gmra.mxu1 %vm234_vm1, %v4421_v0 }
0x2f8e   :  { %v4439_v7 = vpop.f32.mrf.mxu0 }
0x2f94   :  { %v4536_v3 = vpop.xlane.xlu0 %4535 }
0x2f95   :  { %v4540_v8 = vsub.f32 %v4508_v19, %v4536_v3  ;;  %v6764_v19 = vld [vmem:[%s8973_s22] ss:$0 sm:$0xff] }
0x2f96   :  { %v4441_v9 = vpop.f32.mrf.mxu0 }
0x2f97   :  { %v4542_v54 = vmul.f32 1.442695, %v4540_v8 }
0x2f99   :  { %7007 = vpow2.f32 %v4542_v54 }
0x2f9e   :  { %v4530_v48 = vpop.f32.mrf.mxu0 }
0x2f9f   :  { %v7008_v2 = vpop.eup %7007  ;;  %v4531_v12 = vadd.f32 %v4530_v48, %v8436_v39 }
0x2fa0   :  { %v4546_v33 = vsel %vm234_vm1, %v7008_v2, 0.0 }
0x2fa1   :  { %4547 = vadd.xlane.f32.xlu1 %v4546_v33  ;;  %v4537_v30 = vsel %vm234_vm1, %v4531_v12, -inf }
0x2fa2   :  { %4538 = vmax.xlane.f32.xlu2 %v4537_v30 }
0x2fa6   :  { %v4532_v13 = vpop.f32.mrf.mxu0 }
0x2fba   :  { %4558 = vrot.lane.b32.xlu2 %v8394_v5, %s8926_s11 }
0x2feb   :  { %v4460_v14 = vpop.f32.mrf.mxu1 }
0x2fec   :  { %v4464_v52 = vpack.c.bf16 %v4460_v14, %v4439_v7 }
0x2fee   :  { %6566 = vmatmul.msk.bf16.vlgmr.msra.gmra.mxu2 %vm234_vm1, %v4464_v52  ;;  %v4688_v52 = vld [vmem:[%s8974_s8] sm:$0xff] }
0x2ff3   :  { %v4462_v21 = vpop.f32.mrf.mxu1 }
0x2ff4   :  { %v4689_v21 = vld [vmem:[%s8974_s8 + $0x8] sm:$0xff] }
0x3014   :  { %v4548_v10 = vpop.xlane.xlu1 %4547 }
0x3015   :  { %7009 = vrcp.f32 %v4548_v10  ;;  %v4539_v24 = vpop.xlane.xlu2 %4538 }
0x3016   :  { %v4541_v25 = vsub.f32 %v4531_v12, %v4539_v24  ;;  %v4692_v24 = vpack.c.bf16 %v4689_v21, %v4688_v52 }
0x3018   :  { %v4544_v58 = vmul.f32 1.442695, %v4541_v25  ;;  %4708 = vmatpush.bf16.msra.mxu0 %v4692_v24 }
0x301a   :  { %7011 = vpow2.f32 %v4544_v58 }
0x301b   :  { %v7010_v6 = vpop.eup %7009 }
0x301c   :  { %v4554_v57 = vmul.f32 %v7010_v6, %v7008_v2 }
0x301d   :  { %v4559_v5 = vpop.permute.xlu2 %4558 }
0x301e   :  { %v4564_v41 = vsel %vm307_vm2, %v4559_v5, 0  ;;  %v4556_v26 = vpack.c.bf16 %v4554_v57, %v4554_v57 }
0x301f   :  { %4573 = vmatpush.bf16.msrb.mxu1 %v4564_v41 }
0x3020   :  { %v7012_v17 = vpop.eup %7011 }
0x3021   :  { %v4549_v27 = vsel %vm234_vm1, %v7012_v17, 0.0 }
0x3022   :  { %4550 = vadd.xlane.f32.xlu1 %v4549_v27  ;;  %6569 = vmatmul.msk.bf16.vlgmr.msrb.gmra.mxu1 %vm234_vm1, %v4556_v26 }
0x303b   :  { %4579 = vrot.lane.b32.xlu1 %v8385_v28, %s8926_s11  ;;  %v4606_v28 = vsel %vm307_vm2, %v4601_v55, 0  ;;  %s8981_s11 = sld [smem:[#allocation29_spill]] }
0x303c   :  { %4615 = vmatpush.bf16.msra.mxu3 %v4606_v28 }
0x3071   :  { %v4481_v11 = vpop.f32.mrf.mxu2 }
0x3072   :  { %v4486_v62 = vadd.f32 %v4481_v11, %v8497_v35 }
0x3079   :  { %v4483_v35 = vpop.f32.mrf.mxu2 }
0x307a   :  { %v4487_v50 = vadd.f32 %v4483_v35, %v4350_v53  ;;  %v4723_v53 = vld [vmem:[%s8977_s30 + $0x28] sm:$0xff] }
0x3095   :  { %v4551_v32 = vpop.xlane.xlu1 %4550 }
0x3096   :  { %7013 = vrcp.f32 %v4551_v32 }
0x309c   :  { %v7014_v22 = vpop.eup %7013 }
0x309d   :  { %v4555_v36 = vmul.f32 %v7014_v22, %v7012_v17 }
0x309f   :  { %v4575_v43 = vpop.f32.mrf.mxu1  ;;  %v4557_v56 = vpack.c.bf16 %v4555_v36, %v4555_v36  ;;  %v6765_v36 = vld [vmem:[%s8975_s19] ss:$0 sm:$0xff] }
0x30a7   :  { %v4577_v63 = vpop.f32.mrf.mxu1 }
0x30ad   :  { %v4580_v37 = vpop.permute.xlu1 %4579 }
0x30ae   :  { %v4585_v45 = vsel %vm307_vm2, %v4580_v37, 0 }
0x30af   :  { %4594 = vmatpush.bf16.msrb.mxu2 %v4585_v45 }
0x30b2   :  { %6570 = vmatmul.msk.bf16.vlgmr.msrb.gmra.mxu2 %vm234_vm1, %v4557_v56 }
0x3135   :  { %v4596_v42 = vpop.f32.mrf.mxu2 }
0x3136   :  { %v4600_v29 = vpack.c.bf16 %v4596_v42, %v4575_v43 }
0x3138   :  { %6571 = vmatmul.msk.bf16.vlgmr.msra.gmra.mxu3 %vm234_vm1, %v4600_v29 }
0x313d   :  { %v4598_v4 = vpop.f32.mrf.mxu2 }
0x31bb   :  { %v4617_v40 = vpop.f32.mrf.mxu3 }
0x31bc   :  { %v4622_v46 = vadd.f32 %v4617_v40, %v4486_v62  ;;  %v4725_v40 = vld [vmem:[%s8977_s30 + $0x38] sm:$0xff] }
0x31be   :  { %v4627_v31 = vadd.f32 %v6764_v19, %v4622_v46 }
0x31c0   :  { %v4629_v61 = vadd.f32 %v4627_v31, %v8407_v38  ;;  %v4722_v31 = vld [vmem:[%s8977_s30 + $0x20] sm:$0xff] }
0x31c2   :  { %v4633_v49 = vsel %vm200_vm0, %v4629_v61, 0.0 }
0x31c3   :  { %4634 = vadd.xlane.f32.xlu0 %v4633_v49  ;;  %v4619_v0 = vpop.f32.mrf.mxu3  ;;  %v4721_v49 = vld [vmem:[%s8977_s30 + $0x18] sm:$0xff] }
0x31c4   :  { %v4623_v7 = vadd.f32 %v4619_v0, %v4487_v50  ;;  %v4720_v50 = vld [vmem:[%s8977_s30 + $0x10] sm:$0xff] }
0x31c5   :  { %v4727_v0 = vpack.c.bf16 %v4721_v49, %v4720_v50 }
0x31c6   :  { %v4628_v3 = vadd.f32 %v6764_v19, %v4623_v7  ;;  %v4724_v19 = vld [vmem:[%s8977_s30 + $0x30] sm:$0xff]  ;;  %v4718_v7 = vld [vmem:[%s8977_s30] sm:$0xff] }
0x31c7   :  { %v4729_v46 = vpack.c.bf16 %v4725_v40, %v4724_v19 }
0x31c8   :  { %v4630_v8 = vadd.f32 %v4628_v3, %v8409_v23  ;;  %v4719_v3 = vld [vmem:[%s8977_s30 + $0x8] sm:$0xff] }
0x31c9   :  { %4741 = vmatpush.bf16.msra.mxu1 %v4729_v46 }
0x31ca   :  { %v4636_v9 = vsel %vm200_vm0, %v4630_v8, 0.0 }
0x31cb   :  { %4637 = vadd.xlane.f32.xlu1 %v4636_v9 }
0x3236   :  { %v4635_v54 = vpop.xlane.xlu0 %4634 }
0x3237   :  { %v4639_v48 = vmul.f32 %v4635_v54, %v7558_v47  ;;  %v6767_v54 = vld [vmem:[%s8978_s26] ss:$0 sm:$0xff] }
0x3239   :  { %v4641_v1 = vsub.f32 %v4629_v61, %v4639_v48  ;;  %v4728_v61 = vpack.c.bf16 %v4723_v53, %v4722_v31 }
0x323b   :  { %v4643_v38 = vmul.f32 %v4641_v1, %v4641_v1  ;;  %4742 = vmatpush.bf16.msra.mxu1 %v4728_v61  ;;  %v6769_v61 = vld [vmem:[%s8980_s15] ss:$0 sm:$0xff] }
0x323d   :  { %v4645_v2 = vsel %vm200_vm0, %v4643_v38, 0.0 }
0x323e   :  { %4646 = vadd.xlane.f32.xlu0 %v4645_v2  ;;  %v4638_v12 = vpop.xlane.xlu1 %4637 }
0x323f   :  { %v4640_v33 = vmul.f32 %v4638_v12, %v7558_v47  ;;  %4743 = vmatpush.bf16.msra.mxu1 %v4727_v0 }
0x3241   :  { %v4642_v30 = vsub.f32 %v4630_v8, %v4640_v33  ;;  %v4726_v8 = vpack.c.bf16 %v4719_v3, %v4718_v7  ;;  %v6770_v7 = vld [vmem:[%s8981_s11] ss:$0 sm:$0xff] }
0x3243   :  { %v4644_v13 = vmul.f32 %v4642_v30, %v4642_v30  ;;  %4744 = vmatpush.bf16.msra.mxu1 %v4726_v8 }
0x3245   :  { %v4648_v23 = vsel %vm200_vm0, %v4644_v13, 0.0 }
0x3246   :  { %4649 = vadd.xlane.f32.xlu2 %v4648_v23 }
0x32b1   :  { %v4647_v59 = vpop.xlane.xlu0 %4646 }
0x32b2   :  { %v4651_v14 = vmul.f32 %v4647_v59, %v7558_v47 }
0x32b4   :  { %v4653_v10 = vadd.f32 1e-05, %v4651_v14 }
0x32b6   :  { %7015 = vrsqrt.f32 %v4653_v10  ;;  %vm4661_vm13 = vweird.f32 %v4653_v10 }
0x32b9   :  { %v4650_v25 = vpop.xlane.xlu2 %4649 }
0x32ba   :  { %v4652_v58 = vmul.f32 %v4650_v25, %v7558_v47 }
0x32bc   :  { %v7016_v6 = vpop.eup %7015  ;;  %v4654_v57 = vadd.f32 1e-05, %v4652_v58 }
0x32bd   :  { %v4656_v5 = vmul.f32 %v7016_v6, %v4653_v10  ;;  %vm4662_vm12 = vweird.f32 %v7016_v6 }
0x32be   :  { %7017 = vrsqrt.f32 %v4654_v57  ;;  %vm4663_vm14 = vmor %vm4661_vm13, %vm4662_vm12  ;;  %vm4671_vm3 = vweird.f32 %v4654_v57 }
0x32bf   :  { %v4657_v41 = vmul.f32 %v7016_v6, %v4656_v5 }
0x32c1   :  { %v4658_v17 = vmul.f32 0.5, %v4657_v41 }
0x32c3   :  { %v4659_v26 = vsub.f32 1.5, %v4658_v17 }
0x32c4   :  { %v7018_v27 = vpop.eup %7017 }
0x32c5   :  { %v4660_v11 = vmul.f32 %v7016_v6, %v4659_v26  ;;  %v4666_v62 = vmul.f32 %v7018_v27, %v4654_v57  ;;  %vm4672_vm15 = vweird.f32 %v7018_v27  ;;  %v6576_v26 = vld [vmem:[%s8957_s3 + $0x30] sm:$0xff] }
0x32c6   :  { %vm4673_vm4 = vmor %vm4671_vm3, %vm4672_vm15 }
0x32c7   :  { %v4667_v43 = vmul.f32 %v7018_v27, %v4666_v62  ;;  %v4664_v32 = vsel %vm4663_vm14, %v7016_v6, %v4660_v11 }
0x32c8   :  { %v4675_v37 = vmul.f32 %v4664_v32, %v4641_v1  ;;  %v6574_v32 = vld [vmem:[%s8957_s3 + $0x20] sm:$0xff] }
0x32c9   :  { %v4668_v63 = vmul.f32 0.5, %v4667_v43 }
0x32ca   :  { %v4680_v55 = vmul.f32 %v6765_v36, %v4675_v37 }
0x32cb   :  { %v4669_v22 = vsub.f32 1.5, %v4668_v63  ;;  %v6575_v63 = vld [vmem:[%s8957_s3 + $0x28] sm:$0xff] }
0x32cc   :  { %v4685_v42 = vadd.f32 %v6766_v44, %v4680_v55 }
0x32cd   :  { %v4670_v45 = vmul.f32 %v7018_v27, %v4669_v22 }
0x32cf   :  { %v4674_v56 = vsel %vm4673_vm4, %v7018_v27, %v4670_v45  ;;  %v6577_v27 = vld [vmem:[%s8957_s3 + $0x38] sm:$0xff]  ;;  %s8983_s3 = smov 104  }
0x32d0   :  { %v4676_v28 = vmul.f32 %v4674_v56, %v4642_v30  ;;  %v6768_v30 = vld [vmem:[%s8979_s16] ss:$0 sm:$0xff]  ;;  %v4816_v11 = vpack.c.bf16 %v6577_v27, %v6576_v26 }
0x32d2   :  { %v4681_v35 = vmul.f32 %v6765_v36, %v4676_v28  ;;  %4831 = vmatpush.bf16.msra.mxu2 %v4816_v11  ;;  %v4815_v36 = vpack.c.bf16 %v6575_v63, %v6574_v32 }
0x32d4   :  { %v4686_v29 = vadd.f32 %v6766_v44, %v4681_v35 }
0x32d6   :  { %v4687_v4 = vpack.c.bf16 %v4686_v29, %v4685_v42  ;;  %4832 = vmatpush.bf16.msra.mxu2 %v4815_v36 }
0x32d8   :  { %6572 = vmatmul.msk.bf16.vlgmr.msra.gmra.mxu0 %vm200_vm0, %v4687_v4 }
0x3355   :  { %v4710_v9 = vpop.f32.mrf.mxu0 }
0x3356   :  { %v4711_v48 = vadd.f32 %v6767_v54, %v4710_v9 }
0x3358   :  { %v4715_v2 = vmax.f32 %v4711_v48, 0.0 }
0x335d   :  { %v4712_v1 = vpop.f32.mrf.mxu0 }
0x335e   :  { %v4713_v38 = vadd.f32 %v6767_v54, %v4712_v1 }
0x3360   :  { %v4716_v12 = vmax.f32 %v4713_v38, 0.0  ;;  %v6771_v38 = vld [vmem:[%s8959_s14 + $0x1] ss:$0 sm:$0xff] }
0x3362   :  { %v4717_v33 = vpack.c.bf16 %v4716_v12, %v4715_v2 }
0x3364   :  { %6573 = vmatmul.msk.bf16.vlgmr.msra.gmra.mxu1 %vm890_vm10, %v4717_v33 }
0x33e1   :  { %v4746_v13 = vpop.f32.mrf.mxu1 }
0x33e2   :  { %v4747_v23 = vadd.f32 %v6768_v30, %v4746_v13 }
0x33e4   :  { %v4751_v15 = vadd.f32 %v4747_v23, %v4685_v42 }
0x33e6   :  { %v4755_v16 = vsel %vm200_vm0, %v4751_v15, 0.0 }
0x33e7   :  { %4756 = vadd.xlane.f32.xlu0 %v4755_v16 }
0x33e9   :  { %v4748_v18 = vpop.f32.mrf.mxu1 }
0x33ea   :  { %v4749_v59 = vadd.f32 %v6768_v30, %v4748_v18 }
0x33ec   :  { %v4752_v14 = vadd.f32 %v4749_v59, %v4686_v29 }
0x33ee   :  { %v4758_v52 = vsel %vm200_vm0, %v4752_v14, 0.0 }
0x33ef   :  { %4759 = vadd.xlane.f32.xlu0 %v4758_v52 }
0x345a   :  { %v4757_v21 = vpop.xlane.xlu0 %4756 }
0x345b   :  { %v4761_v10 = vmul.f32 %v4757_v21, %v7558_v47 }
0x345d   :  { %v4763_v24 = vsub.f32 %v4751_v15, %v4761_v10 }
0x345f   :  { %v4765_v25 = vmul.f32 %v4763_v24, %v4763_v24 }
0x3461   :  { %v4767_v58 = vsel %vm200_vm0, %v4765_v25, 0.0 }
0x3462   :  { %4768 = vadd.xlane.f32.xlu0 %v4767_v58  ;;  %v4760_v6 = vpop.xlane.xlu0 %4759 }
0x3463   :  { %v4762_v57 = vmul.f32 %v4760_v6, %v7558_v47 }
0x3465   :  { %v4764_v5 = vsub.f32 %v4752_v14, %v4762_v57 }
0x3467   :  { %v4766_v41 = vmul.f32 %v4764_v5, %v4764_v5 }
0x3469   :  { %v4770_v17 = vsel %vm200_vm0, %v4766_v41, 0.0 }
0x346a   :  { %4771 = vadd.xlane.f32.xlu0 %v4770_v17 }
0x34d5   :  { %v4769_v62 = vpop.xlane.xlu0 %4768 }
0x34d6   :  { %v4773_v43 = vmul.f32 %v4769_v62, %v7558_v47 }
0x34d8   :  { %v4775_v22 = vadd.f32 1e-05, %v4773_v43 }
0x34da   :  { %7019 = vrsqrt.f32 %v4775_v22  ;;  %vm4783_vm6 = vweird.f32 %v4775_v22 }
0x34dd   :  { %v4772_v37 = vpop.xlane.xlu0 %4771 }
0x34de   :  { %v4774_v45 = vmul.f32 %v4772_v37, %v7558_v47 }
0x34e0   :  { %v7020_v56 = vpop.eup %7019  ;;  %v4776_v44 = vadd.f32 1e-05, %v4774_v45 }
0x34e1   :  { %v4778_v55 = vmul.f32 %v7020_v56, %v4775_v22  ;;  %vm4784_vm5 = vweird.f32 %v7020_v56 }
0x34e2   :  { %7021 = vrsqrt.f32 %v4776_v44  ;;  %vm4785_vm7 = vmor %vm4783_vm6, %vm4784_vm5  ;;  %vm4793_vm9 = vweird.f32 %v4776_v44 }
0x34e3   :  { %v4779_v28 = vmul.f32 %v7020_v56, %v4778_v55 }
0x34e5   :  { %v4780_v35 = vmul.f32 0.5, %v4779_v28 }
0x34e7   :  { %v4781_v42 = vsub.f32 1.5, %v4780_v35 }
0x34e8   :  { %v7022_v29 = vpop.eup %7021 }
0x34e9   :  { %v4782_v4 = vmul.f32 %v7020_v56, %v4781_v42  ;;  %v4788_v19 = vmul.f32 %v7022_v29, %v4776_v44  ;;  %vm4794_vm8 = vweird.f32 %v7022_v29 }
0x34ea   :  { %vm4795_vm11 = vmor %vm4793_vm9, %vm4794_vm8 }
0x34eb   :  { %v4789_v40 = vmul.f32 %v7022_v29, %v4788_v19  ;;  %v4786_v46 = vsel %vm4785_vm7, %v7020_v56, %v4782_v4 }
0x34ec   :  { %v4797_v50 = vmul.f32 %v4786_v46, %v4763_v24 }
0x34ed   :  { %v4790_v31 = vmul.f32 0.5, %v4789_v40 }
0x34ee   :  { %v4802_v3 = vmul.f32 %v6769_v61, %v4797_v50 }
0x34ef   :  { %v4791_v53 = vsub.f32 1.5, %v4790_v31 }
0x34f0   :  { %v8573_v54 = vadd.f32 %v6770_v7, %v4802_v3 }
0x34f1   :  { %v4792_v49 = vmul.f32 %v7022_v29, %v4791_v53 }
0x34f3   :  { %v4796_v0 = vsel %vm4795_vm11, %v7022_v29, %v4792_v49 }
0x34f4   :  { %v4798_v8 = vmul.f32 %v4796_v0, %v4764_v5 }
0x34f6   :  { %v4803_v9 = vmul.f32 %v6769_v61, %v4798_v8 }
0x34f8   :  { %v8575_v48 = vadd.f32 %v6770_v7, %v4803_v9 }
0x34fa   :  { %v4809_v1 = vpack.c.bf16 %v8575_v48, %v8573_v54 }
0x34fc   :  { %6579 = vmatmul.msk.bf16.vlgmr.msra.gmra.mxu2 %vm200_vm0, %v4809_v1 }
0x357f   :  { %v4834_v2 = vpop.f32.mrf.mxu2 }
0x3580   :  { %v4835_v12 = vadd.f32 %v6771_v38, %v4834_v2 }
0x3582   :  { %v4846_v33 = vpack.c.bf16 %v4835_v12, %v4835_v12 }
0x3584   :  { %v4849_v30 = vunpack.c.l.b16 %v4846_v33 }
0x3586   :  { %v8581_v13 = vpack.c.b16 %v4849_v30, %v4849_v30 }
0x3587   :  { %v4836_v23 = vpop.f32.mrf.mxu2 }
0x3588   :  { %v4837_v15 = vadd.f32 %v6771_v38, %v4836_v23  ;;  %4964 = vrot.lane.b32.xlu2 %v8581_v13, %s7171_s28  ;;  %4966 = vrot.lane.b32.xlu1 %v8581_v13, %s7170_s5 }
0x3589   :  { %4851 = vrot.lane.b32.xlu0 %v8581_v13, %s7169_s0 }
0x358a   :  { %v4847_v16 = vpack.c.bf16 %v4837_v15, %v4837_v15 }
0x358c   :  { %v4873_v18 = vunpack.c.l.b16 %v4847_v16 }
0x358e   :  { %v8589_v59 = vpack.c.b16 %v4873_v18, %v4873_v18 }
0x3590   :  { %4987 = vrot.lane.b32.xlu2 %v8589_v59, %s7171_s28  ;;  %4989 = vrot.lane.b32.xlu1 %v8589_v59, %s7170_s5 }
0x3591   :  { %4875 = vrot.lane.b32.xlu0 %v8589_v59, %s7169_s0 }
0x35e2   :  { %v4965_v57 = vpop.permute.xlu2 %4964 }
0x35ea   :  { %v4988_v5 = vpop.permute.xlu2 %4987 }
0x35fa   :  { %v4967_v14 = vpop.permute.xlu1 %4966 }
0x35fb   :  { %v4972_v52 = vsel %vm234_vm1, %v4967_v14, 0  ;;  %v4852_v21 = vpop.permute.xlu0 %4851 }
0x35fc   :  { %v4857_v10 = vsel %vm234_vm1, %v4852_v21, 0 }
0x35fd   :  { %4866 = vmatpush.bf16.xpose.msrb.mxu3 %v4857_v10 }
0x3602   :  { %v4990_v24 = vpop.permute.xlu1 %4989 }
0x3603   :  { %v4995_v25 = vsel %vm234_vm1, %v4990_v24, 0  ;;  %v4876_v58 = vpop.permute.xlu0 %4875 }
0x3604   :  { %v4881_v6 = vsel %vm234_vm1, %v4876_v58, 0  ;;  %6585 = vmatmul.msk.bf16.vlgmr.msrb.gmra.mxu3 %vm234_vm1, %v4846_v33 }
0x3605   :  { %4981 = vmatpush.bf16.xpose.msra.mxu3 %v4972_v52  ;;  %4890 = vmatpush.bf16.xpose.msrb.mxu0 %v4881_v6 }
0x360c   :  { %6586 = vmatmul.msk.bf16.vlgmr.msrb.gmra.mxu0 %vm234_vm1, %v4847_v16 }
0x360d   :  { %5004 = vmatpush.bf16.xpose.msra.mxu0 %v4995_v25 }
0x3614   :  { %6589 = vmatmul.msk.bf16.vlgmr.msra.gmra.mxu3 %vm234_vm1, %v4965_v57 }
0x361c   :  { %6590 = vmatmul.msk.bf16.vlgmr.msra.gmra.mxu0 %vm234_vm1, %v4988_v5  ;;  %v6581_v5 = vld [vmem:[%s8963_s29 + $0x28] sm:$0xff] }
0x3687   :  { %v4868_v41 = vpop.f32.mrf.mxu3 }
0x3688   :  { %v4869_v17 = vadd.f32 %v4868_v41, %v8197_v20  ;;  %v5077_v41 = vpack.c.bf16 %v6581_v5, %v6581_v5 }
0x3689   :  { %v4892_v26 = vpop.f32.mrf.mxu0 }
0x368a   :  { %v4896_v27 = vsel %vm234_vm1, %v4869_v17, -inf  ;;  %v4893_v45 = vadd.f32 %v4892_v26, %v8262_v60  ;;  %v5082_v26 = vsel %vm307_vm2, %v5077_v41, 0 }
0x368b   :  { %4897 = vmax.xlane.f32.xlu0 %v4896_v27  ;;  %5091 = vmatpush.bf16.msrb.mxu3 %v5082_v26 }
0x368c   :  { %v4899_v56 = vsel %vm234_vm1, %v4893_v45, -inf }
0x368f   :  { %v4870_v11 = vpop.f32.mrf.mxu3 }
0x3691   :  { %v4894_v62 = vpop.f32.mrf.mxu0 }
0x3697   :  { %v4983_v43 = vpop.f32.mrf.mxu3 }
0x3698   :  { %v4984_v32 = vadd.f32 %v4983_v43, %v8197_v20 }
0x3699   :  { %v5006_v63 = vpop.f32.mrf.mxu0 }
0x369a   :  { %v5010_v22 = vsel %vm234_vm1, %v4984_v32, -inf  ;;  %v5007_v50 = vadd.f32 %v5006_v63, %v8262_v60 }
0x369b   :  { %5011 = vmax.xlane.f32.xlu1 %v5010_v22  ;;  %v6580_v22 = vld [vmem:[%s8963_s29 + $0x20] sm:$0xff] }
0x369c   :  { %v5013_v0 = vsel %vm234_vm1, %v5007_v50, -inf }
0x369f   :  { %v4985_v36 = vpop.f32.mrf.mxu3  ;;  %4920 = vrot.lane.b32.xlu0 %v8581_v13, %s7174_s2 }
0x36a0   :  { %v4963_v36 = vpack.c.bf16 %v6580_v22, %v6580_v22 }
0x36a1   :  { %v5008_v37 = vpop.f32.mrf.mxu0 }
0x36a7   :  { %5118 = vrot.lane.b32.xlu0 %v8581_v13, %s7175_s7 }
0x36d1   :  { %4900 = vmax.xlane.f32.xlu0 %v4899_v56 }
0x36e5   :  { %4941 = vrot.lane.b32.xlu0 %v8589_v59, %s7174_s2  ;;  %s8982_s2 = smov 72  }
0x36ed   :  { %5141 = vrot.lane.b32.xlu0 %v8589_v59, %s7175_s7 }
0x36fe   :  { %v4898_v44 = vpop.xlane.xlu0 %4897 }
0x36ff   :  { %v4902_v55 = vsub.f32 %v4869_v17, %v4898_v44 }
0x3701   :  { %v4904_v28 = vmul.f32 1.442695, %v4902_v55 }
0x3703   :  { %7023 = vpow2.f32 %v4904_v28 }
0x3709   :  { %v7024_v35 = vpop.eup %7023 }
0x370a   :  { %v4908_v42 = vsel %vm234_vm1, %v7024_v35, 0.0 }
0x370b   :  { %4909 = vadd.xlane.f32.xlu2 %v4908_v42 }
0x370e   :  { %v5012_v29 = vpop.xlane.xlu1 %5011 }
0x370f   :  { %v5016_v4 = vsub.f32 %v4984_v32, %v5012_v29 }
0x3711   :  { %v5018_v19 = vmul.f32 1.442695, %v5016_v4  ;;  %v4921_v40 = vpop.permute.xlu0 %4920 }
0x3712   :  { %v4926_v46 = vsel %vm307_vm2, %v4921_v40, 0 }
0x3713   :  { %7025 = vpow2.f32 %v5018_v19  ;;  %4935 = vmatpush.bf16.msrb.mxu1 %v4926_v46 }
0x3719   :  { %v7026_v31 = vpop.eup %7025  ;;  %v5119_v61 = vpop.permute.xlu0 %5118 }
0x371a   :  { %v5022_v53 = vsel %vm234_vm1, %v7026_v31, 0.0 }
0x371b   :  { %5023 = vadd.xlane.f32.xlu1 %v5022_v53 }
0x3723   :  { %5034 = vrot.lane.b32.xlu2 %v8581_v13, %s7172_s1 }
0x3734   :  { %5120 = vrot.lane.b32.xlu1 %v8581_v13, %s7173_s17 }
0x3744   :  { %v4901_v49 = vpop.xlane.xlu0 %4900 }
0x3745   :  { %v4903_v7 = vsub.f32 %v4893_v45, %v4901_v49  ;;  %v5102_v45 = vsel %vm307_vm2, %v4963_v36, 0 }
0x3746   :  { %5111 = vmatpush.bf16.msrb.mxu0 %v5102_v45 }
0x3747   :  { %v4906_v3 = vmul.f32 1.442695, %v4903_v7 }
0x3749   :  { %7027 = vpow2.f32 %v4906_v3 }
0x374c   :  { %5014 = vmax.xlane.f32.xlu2 %v5013_v0 }
0x374f   :  { %v7028_v1 = vpop.eup %7027 }
0x3750   :  { %v4911_v38 = vsel %vm234_vm1, %v7028_v1, 0.0 }
0x3757   :  { %v4942_v8 = vpop.permute.xlu0 %4941 }
0x3758   :  { %v4947_v9 = vsel %vm307_vm2, %v4942_v8, 0 }
0x3759   :  { %4956 = vmatpush.bf16.msrb.mxu2 %v4947_v9 }
0x375e   :  { %4912 = vadd.xlane.f32.xlu1 %v4911_v38 }
0x3777   :  { %5143 = vrot.lane.b32.xlu1 %v8589_v59, %s7173_s17 }
0x377e   :  { %v4910_v2 = vpop.xlane.xlu2 %4909 }
0x377f   :  { %7029 = vrcp.f32 %v4910_v2  ;;  %5188 = vrot.lane.b32.xlu1 %v8581_v13, %s7176_s10 }
0x3785   :  { %v7030_v12 = vpop.eup %7029 }
0x3786   :  { %v4916_v33 = vmul.f32 %v7030_v12, %v7024_v35  ;;  %v5035_v30 = vpop.permute.xlu2 %5034 }
0x3787   :  { %v5040_v23 = vsel %vm307_vm2, %v5035_v30, 0  ;;  %5256 = vrot.lane.b32.xlu1 %v8581_v13, %s8982_s2 }
0x3788   :  { %v4918_v15 = vpack.c.bf16 %v4916_v33, %v4916_v33  ;;  %5049 = vmatpush.bf16.msra.mxu1 %v5040_v23 }
0x378a   :  { %6587 = vmatmul.msk.bf16.vlgmr.msrb.gmra.mxu1 %vm234_vm1, %v4918_v15 }
0x378e   :  { %v5024_v16 = vpop.xlane.xlu1 %5023 }
0x378f   :  { %7031 = vrcp.f32 %v5024_v16  ;;  %5279 = vrot.lane.b32.xlu1 %v8589_v59, %s8982_s2 }
0x3795   :  { %v7032_v18 = vpop.eup %7031 }
0x3796   :  { %v5030_v14 = vmul.f32 %v7032_v18, %v7026_v31 }
0x3797   :  { %5254 = vrot.lane.b32.xlu1 %v8581_v13, %s8983_s3 }
0x3798   :  { %v5032_v52 = vpack.c.bf16 %v5030_v14, %v5030_v14 }
0x379a   :  { %6591 = vmatmul.msk.bf16.vlgmr.msra.gmra.mxu1 %vm234_vm1, %v5032_v52 }
0x379f   :  { %5277 = vrot.lane.b32.xlu1 %v8589_v59, %s8983_s3 }
0x37a6   :  { %v5121_v21 = vpop.permute.xlu1 %5120 }
0x37a7   :  { %v5126_v10 = vsel %vm234_vm1, %v5121_v21, 0  ;;  %5209 = vrot.lane.b32.xlu1 %v8589_v59, %s7176_s10 }
0x37a8   :  { %5135 = vmatpush.bf16.xpose.msrb.mxu1 %v5126_v10 }
0x37af   :  { %6595 = vmatmul.msk.bf16.vlgmr.msrb.gmra.mxu1 %vm234_vm1, %v5119_v61 }
0x37bf   :  { %v5015_v24 = vpop.xlane.xlu2 %5014 }
0x37c0   :  { %v5017_v25 = vsub.f32 %v5007_v50, %v5015_v24 }
0x37c2   :  { %v5020_v58 = vmul.f32 1.442695, %v5017_v25 }
0x37c4   :  { %7033 = vpow2.f32 %v5020_v58 }
0x37ca   :  { %v7034_v6 = vpop.eup %7033 }
0x37cb   :  { %v5025_v57 = vsel %vm234_vm1, %v7034_v6, 0.0 }
0x37cc   :  { %5026 = vadd.xlane.f32.xlu2 %v5025_v57 }
0x37d1   :  { %v4913_v17 = vpop.xlane.xlu1 %4912 }
0x37d2   :  { %7035 = vrcp.f32 %v4913_v17 }
0x37d8   :  { %v7036_v27 = vpop.eup %7035 }
0x37d9   :  { %v4917_v11 = vmul.f32 %v7036_v27, %v7028_v1  ;;  %v5142_v1 = vpop.permute.xlu0 %5141 }
0x37db   :  { %v4919_v62 = vpack.c.bf16 %v4917_v11, %v4917_v11 }
0x37dd   :  { %6588 = vmatmul.msk.bf16.vlgmr.msrb.gmra.mxu2 %vm234_vm1, %v4919_v62 }
0x37e4   :  { %5055 = vrot.lane.b32.xlu2 %v8589_v59, %s7172_s1  ;;  %s8984_s1 = smov 40  }
0x37e9   :  { %v5144_v43 = vpop.permute.xlu1 %5143 }
0x37ea   :  { %v5149_v3 = vsel %vm234_vm1, %v5144_v43, 0 }
0x37f1   :  { %v5189_v32 = vpop.permute.xlu1 %5188 }
0x37f2   :  { %v5194_v63 = vsel %vm307_vm2, %v5189_v32, 0 }
0x37f3   :  { %5203 = vmatpush.bf16.msra.mxu3 %v5194_v63 }
0x37f9   :  { %v5257_v37 = vpop.permute.xlu1 %5256 }
0x37fa   :  { %v5262_v9 = vsel %vm234_vm1, %v5257_v37, 0 }
0x3801   :  { %v5280_v56 = vpop.permute.xlu1 %5279 }
0x3802   :  { %v5285_v52 = vsel %vm234_vm1, %v5280_v56, 0 }
0x3807   :  { %v4937_v44 = vpop.f32.mrf.mxu1 }
0x3809   :  { %v5255_v55 = vpop.permute.xlu1 %5254 }
0x380f   :  { %v4939_v28 = vpop.f32.mrf.mxu1 }
0x3811   :  { %v5278_v35 = vpop.permute.xlu1 %5277 }
0x3817   :  { %v5051_v42 = vpop.f32.mrf.mxu1 }
0x3819   :  { %v5210_v29 = vpop.permute.xlu1 %5209 }
0x381a   :  { %v5215_v4 = vsel %vm307_vm2, %v5210_v29, 0 }
0x381b   :  { %5224 = vmatpush.bf16.msra.mxu0 %v5215_v4 }
0x381f   :  { %v5053_v19 = vpop.f32.mrf.mxu1 }
0x382c   :  { %v5137_v40 = vpop.f32.mrf.mxu1 }
0x382d   :  { %v5138_v46 = vadd.f32 %v5137_v40, %v8197_v20 }
0x382f   :  { %v5164_v31 = vsel %vm234_vm1, %v5138_v46, -inf }
0x3830   :  { %5165 = vmax.xlane.f32.xlu0 %v5164_v31 }
0x3834   :  { %v5139_v53 = vpop.f32.mrf.mxu1 }
0x383f   :  { %v5027_v61 = vpop.xlane.xlu2 %5026 }
0x3840   :  { %7037 = vrcp.f32 %v5027_v61 }
0x3846   :  { %v7038_v50 = vpop.eup %7037 }
0x3847   :  { %v5031_v49 = vmul.f32 %v7038_v50, %v7034_v6  ;;  %v5056_v0 = vpop.permute.xlu2 %5055 }
0x3848   :  { %v5061_v7 = vsel %vm307_vm2, %v5056_v0, 0  ;;  %v6582_v0 = vld [vmem:[%s8963_s29 + $0x30] sm:$0xff] }
0x3849   :  { %v5033_v8 = vpack.c.bf16 %v5031_v49, %v5031_v49  ;;  %5070 = vmatpush.bf16.msra.mxu2 %v5061_v7 }
0x384c   :  { %6592 = vmatmul.msk.bf16.vlgmr.msra.gmra.mxu2 %vm234_vm1, %v5033_v8  ;;  %v6616_v8 = vld [vmem:[%s8964_s6 + $0x38] sm:$0xff] }
0x384d   :  { %5158 = vmatpush.bf16.xpose.msrb.mxu2 %v5149_v3  ;;  %v6615_v3 = vld [vmem:[%s8964_s6 + $0x30] sm:$0xff] }
0x3855   :  { %5271 = vmatpush.bf16.xpose.msra.mxu2 %v5262_v9  ;;  %v5231_v9 = vpack.c.bf16 %v6582_v0, %v6582_v0 }
0x385c   :  { %6596 = vmatmul.msk.bf16.vlgmr.msrb.gmra.mxu2 %vm234_vm1, %v5142_v1  ;;  %v5236_v1 = vsel %vm307_vm2, %v5231_v9, 0 }
0x385d   :  { %5245 = vmatpush.bf16.msra.mxu1 %v5236_v1 }
0x3860   :  { %v4958_v38 = vpop.f32.mrf.mxu2 }
0x3861   :  { %v4962_v2 = vpack.c.bf16 %v4958_v38, %v4937_v44 }
0x3863   :  { %6594 = vmatmul.msk.bf16.vlgmr.msrb.gmra.mxu0 %vm234_vm1, %v4962_v2 }
0x3868   :  { %v4960_v12 = vpop.f32.mrf.mxu2 }
0x3869   :  { %v6613_v12 = vld [vmem:[%s8964_s6 + $0x20] sm:$0xff] }
0x386c   :  { %6600 = vmatmul.msk.bf16.vlgmr.msra.gmra.mxu2 %vm234_vm1, %v5255_v55 }
0x38a3   :  { %v5166_v33 = vpop.xlane.xlu0 %5165 }
0x38a4   :  { %v5170_v30 = vsub.f32 %v5138_v46, %v5166_v33  ;;  %v6614_v33 = vld [vmem:[%s8964_s6 + $0x28] sm:$0xff] }
0x38a6   :  { %v5172_v23 = vmul.f32 1.442695, %v5170_v30 }
0x38a8   :  { %7039 = vpow2.f32 %v5172_v23 }
0x38ae   :  { %v7040_v15 = vpop.eup %7039 }
0x38af   :  { %v5176_v16 = vsel %vm234_vm1, %v7040_v15, 0.0 }
0x38b0   :  { %5177 = vadd.xlane.f32.xlu2 %v5176_v16  ;;  %v5490_v16 = vpack.c.bf16 %v6614_v33, %v6613_v12 }
0x38cf   :  { %v5072_v18 = vpop.f32.mrf.mxu2 }
0x38d0   :  { %v5076_v14 = vpack.c.bf16 %v5072_v18, %v5051_v42 }
0x38d2   :  { %6593 = vmatmul.msk.bf16.vlgmr.msrb.gmra.mxu3 %vm234_vm1, %v5076_v14 }
0x38d3   :  { %5294 = vmatpush.bf16.xpose.msrb.mxu3 %v5285_v52 }
0x38d7   :  { %v5074_v21 = vpop.f32.mrf.mxu2 }
0x38df   :  { %v5160_v10 = vpop.f32.mrf.mxu2 }
0x38e0   :  { %v5161_v24 = vadd.f32 %v5160_v10, %v8262_v60  ;;  %v5113_v14 = vpop.f32.mrf.mxu0 }
0x38e2   :  { %v5167_v25 = vsel %vm234_vm1, %v5161_v24, -inf }
0x38e3   :  { %5168 = vmax.xlane.f32.xlu0 %v5167_v25  ;;  %v6583_v25 = vld [vmem:[%s8963_s29 + $0x38] sm:$0xff] }
0x38e7   :  { %v5162_v58 = vpop.f32.mrf.mxu2 }
0x38e8   :  { %v5115_v52 = vpop.f32.mrf.mxu0  ;;  %v5367_v58 = vpack.c.bf16 %v6583_v25, %v6583_v25  ;;  %v6607_v25 = vld [vmem:[%s8967_s20 + $0x20] sm:$0xff] }
0x38ef   :  { %v5273_v6 = vpop.f32.mrf.mxu2 }
0x38f0   :  { %v5274_v57 = vadd.f32 %v5273_v6, %v8197_v20 }
0x38f2   :  { %v5300_v5 = vsel %vm234_vm1, %v5274_v57, -inf }
0x38f3   :  { %5301 = vmax.xlane.f32.xlu0 %v5300_v5 }
0x38f7   :  { %v5275_v41 = vpop.f32.mrf.mxu2 }
0x3923   :  { %v5178_v17 = vpop.xlane.xlu2 %5177 }
0x3924   :  { %7041 = vrcp.f32 %v5178_v17 }
0x392a   :  { %v7042_v26 = vpop.eup %7041 }
0x392b   :  { %v5184_v27 = vmul.f32 %v7042_v26, %v7040_v15 }
0x392d   :  { %v5186_v11 = vpack.c.bf16 %v5184_v27, %v5184_v27 }
0x392f   :  { %6597 = vmatmul.msk.bf16.vlgmr.msra.gmra.mxu3 %vm234_vm1, %v5186_v11  ;;  %v6772_v11 = vld [vmem:[%s8965_s21 + $0x1] ss:$0 sm:$0xff] }
0x393f   :  { %6601 = vmatmul.msk.bf16.vlgmr.msrb.gmra.mxu3 %vm234_vm1, %v5278_v35 }
0x3955   :  { %v8679_v44 = vpop.f32.mrf.mxu3 }
0x3956   :  { %v5169_v62 = vpop.xlane.xlu0 %5168 }
0x3957   :  { %v5171_v43 = vsub.f32 %v5161_v24, %v5169_v62 }
0x3959   :  { %v5174_v32 = vmul.f32 1.442695, %v5171_v43 }
0x395b   :  { %7043 = vpow2.f32 %v5174_v32 }
0x395d   :  { %v8681_v55 = vpop.f32.mrf.mxu3 }
0x3961   :  { %v7044_v63 = vpop.eup %7043 }
0x3962   :  { %v5179_v20 = vsel %vm234_vm1, %v7044_v63, 0.0 }
0x3963   :  { %5180 = vadd.xlane.f32.xlu2 %v5179_v20 }
0x3966   :  { %v5302_v22 = vpop.xlane.xlu0 %5301 }
0x3967   :  { %v5306_v36 = vsub.f32 %v5274_v57, %v5302_v22  ;;  %v5372_v57 = vsel %vm307_vm2, %v5367_v58, 0  ;;  %v6608_v58 = vld [vmem:[%s8967_s20 + $0x28] sm:$0xff] }
0x3968   :  { %5381 = vmatpush.bf16.msrb.mxu2 %v5372_v57  ;;  %v5461_v57 = vpack.c.bf16 %v6608_v58, %v6607_v25 }
0x3969   :  { %v5308_v37 = vmul.f32 1.442695, %v5306_v36  ;;  %v5114_v36 = vadd.f32 %v5113_v14, %v8679_v44  ;;  %v6609_v14 = vld [vmem:[%s8967_s20 + $0x30] sm:$0xff] }
0x396b   :  { %7045 = vpow2.f32 %v5308_v37 }
0x3971   :  { %v7046_v45 = vpop.eup %7045 }
0x3972   :  { %v5312_v56 = vsel %vm234_vm1, %v7046_v45, 0.0 }
0x3973   :  { %5313 = vadd.xlane.f32.xlu1 %v5312_v56 }
0x39b2   :  { %v5205_v28 = vpop.f32.mrf.mxu3 }
0x39ba   :  { %v5207_v35 = vpop.f32.mrf.mxu3 }
0x39c2   :  { %v5296_v42 = vpop.f32.mrf.mxu3 }
0x39c3   :  { %v5297_v29 = vadd.f32 %v5296_v42, %v8262_v60 }
0x39c5   :  { %v5303_v4 = vsel %vm234_vm1, %v5297_v29, -inf }
0x39c6   :  { %5304 = vmax.xlane.f32.xlu2 %v5303_v4 }
0x39ca   :  { %v5298_v19 = vpop.f32.mrf.mxu3 }
0x39cb   :  { %v6773_v19 = vld [vmem:[%s8966_s12 + $0x1] ss:$0 sm:$0xff] }
0x39d6   :  { %v5181_v40 = vpop.xlane.xlu2 %5180 }
0x39d7   :  { %7047 = vrcp.f32 %v5181_v40 }
0x39dd   :  { %v7048_v46 = vpop.eup %7047 }
0x39de   :  { %v5185_v31 = vmul.f32 %v7048_v46, %v7044_v63  ;;  %5324 = vrot.lane.b32.xlu2 %v8581_v13, %s8984_s1  ;;  %v5491_v13 = vpack.c.bf16 %v6616_v8, %v6615_v3 }
0x39e0   :  { %v5187_v53 = vpack.c.bf16 %v5185_v31, %v5185_v31 }
0x39e2   :  { %6598 = vmatmul.msk.bf16.vlgmr.msra.gmra.mxu0 %vm234_vm1, %v5187_v53  ;;  %v5116_v53 = vadd.f32 %v5115_v52, %v8681_v55  ;;  %v6610_v52 = vld [vmem:[%s8967_s20 + $0x38] sm:$0xff] }
0x39e6   :  { %v5314_v61 = vpop.xlane.xlu1 %5313 }
0x39e7   :  { %7049 = vrcp.f32 %v5314_v61 }
0x39ed   :  { %v7050_v7 = vpop.eup %7049 }
0x39ee   :  { %v5320_v38 = vmul.f32 %v7050_v7, %v7046_v45 }
0x39f0   :  { %v5322_v15 = vpack.c.bf16 %v5320_v38, %v5320_v38 }
0x3a39   :  { %v5305_v60 = vpop.xlane.xlu2 %5304 }
0x3a3a   :  { %v5307_v50 = vsub.f32 %v5297_v29, %v5305_v60 }
0x3a3c   :  { %v5310_v49 = vmul.f32 1.442695, %v5307_v50 }
0x3a3e   :  { %7051 = vpow2.f32 %v5310_v49 }
0x3a41   :  { %v5325_v2 = vpop.permute.xlu2 %5324 }
0x3a42   :  { %v5330_v30 = vsel %vm307_vm2, %v5325_v2, 0 }
0x3a43   :  { %5339 = vmatpush.bf16.msrb.mxu0 %v5330_v30 }
0x3a44   :  { %v7052_v23 = vpop.eup %7051 }
0x3a45   :  { %v5315_v18 = vsel %vm234_vm1, %v7052_v23, 0.0 }
0x3a46   :  { %5316 = vadd.xlane.f32.xlu0 %v5315_v18  ;;  %6602 = vmatmul.msk.bf16.vlgmr.msrb.gmra.mxu0 %vm234_vm1, %v5322_v15 }
0x3a47   :  { %5503 = vmatpush.bf16.msra.mxu0 %v5491_v13 }
0x3a4b   :  { %5504 = vmatpush.bf16.msra.mxu0 %v5490_v16 }
0x3a56   :  { %6618 = vmatmul.msk.bf16.vlgmr.msra.gmra.mxu0 %vm200_vm0, %v8365_v51 }
0x3a5a   :  { %5345 = vrot.lane.b32.xlu0 %v8589_v59, %s8984_s1 }
0x3a5f   :  { %v5226_v21 = vpop.f32.mrf.mxu0 }
0x3a60   :  { %v5230_v10 = vpack.c.bf16 %v5226_v21, %v5205_v28  ;;  %v5462_v21 = vpack.c.bf16 %v6610_v52, %v6609_v14 }
0x3a62   :  { %6599 = vmatmul.msk.bf16.vlgmr.msra.gmra.mxu1 %vm234_vm1, %v5230_v10  ;;  %5477 = vmatpush.bf16.msra.mxu3 %v5462_v21 }
0x3a66   :  { %5478 = vmatpush.bf16.msra.mxu3 %v5461_v57 }
0x3a67   :  { %v5228_v24 = vpop.f32.mrf.mxu0 }
0x3ab9   :  { %v5317_v6 = vpop.xlane.xlu0 %5316 }
0x3aba   :  { %7053 = vrcp.f32 %v5317_v6 }
0x3ac0   :  { %v7054_v41 = vpop.eup %7053 }
0x3ac1   :  { %v5321_v51 = vmul.f32 %v7054_v41, %v7052_v23 }
0x3ac3   :  { %v5341_v5 = vpop.f32.mrf.mxu0  ;;  %v5323_v27 = vpack.c.bf16 %v5321_v51, %v5321_v51 }
0x3acb   :  { %v5343_v17 = vpop.f32.mrf.mxu0 }
0x3acc   :  { %v5346_v26 = vpop.permute.xlu0 %5345 }
0x3acd   :  { %v5351_v59 = vsel %vm307_vm2, %v5346_v26, 0 }
0x3ace   :  { %5360 = vmatpush.bf16.msrb.mxu1 %v5351_v59 }
0x3ad1   :  { %6603 = vmatmul.msk.bf16.vlgmr.msrb.gmra.mxu1 %vm234_vm1, %v5323_v27 }
0x3ad3   :  { %v5506_v62 = vpop.f32.mrf.mxu0 }
0x3ad4   :  { %v5507_v43 = vadd.f32 %v6772_v11, %v5506_v62 }
0x3ad6   :  { %v5520_v32 = vpack.c.bf16 %v5507_v43, %v5507_v43 }
0x3ad8   :  { %v5526_v63 = vsel %vm234_vm1, %v5520_v32, 0  ;;  %v5585_v16 = vunpack.c.l.b16 %v5520_v32 }
0x3ad9   :  { %5535 = vmatpush.bf16.xpose.msra.mxu1 %v5526_v63 }
0x3ada   :  { %v8726_v18 = vpack.c.b16 %v5585_v16, %v5585_v16 }
0x3adb   :  { %v5508_v20 = vpop.f32.mrf.mxu0 }
0x3adc   :  { %v5509_v22 = vadd.f32 %v6772_v11, %v5508_v20 }
0x3ade   :  { %v5521_v37 = vpack.c.bf16 %v5509_v22, %v5509_v22 }
0x3adf   :  { %v5247_v45 = vpop.f32.mrf.mxu1 }
0x3ae0   :  { %v5545_v56 = vsel %vm234_vm1, %v5521_v37, 0  ;;  %v5252_v28 = vadd.f32 %v5247_v45, %v5114_v36  ;;  %v5609_v8 = vunpack.c.l.b16 %v5521_v37  ;;  %v6774_v37 = vld [vmem:[%s8968_s27 + $0x1] ss:$0 sm:$0xff] }
0x3ae1   :  { %5554 = vmatpush.bf16.xpose.msra.mxu2 %v5545_v56 }
0x3ae2   :  { %v8717_v9 = vpack.c.b16 %v5609_v8, %v5609_v8 }
0x3ae7   :  { %v5249_v35 = vpop.f32.mrf.mxu1 }
0x3ae8   :  { %v5253_v61 = vadd.f32 %v5249_v35, %v5116_v53  ;;  %v6775_v35 = vld [vmem:[%s8969_s4 + $0x1] ss:$0 sm:$0xff] }
0x3b4e   :  { %v5362_v42 = vpop.f32.mrf.mxu1 }
0x3b4f   :  { %v5366_v29 = vpack.c.bf16 %v5362_v42, %v5341_v5 }
0x3b51   :  { %6604 = vmatmul.msk.bf16.vlgmr.msrb.gmra.mxu2 %vm234_vm1, %v5366_v29 }
0x3b56   :  { %v5364_v4 = vpop.f32.mrf.mxu1 }
0x3bd4   :  { %v5383_v40 = vpop.f32.mrf.mxu2 }
0x3bd5   :  { %v5388_v46 = vadd.f32 %v5383_v40, %v5252_v28 }
0x3bd7   :  { %v5393_v31 = vadd.f32 %v6773_v19, %v5388_v46 }
0x3bd9   :  { %v5395_v44 = vadd.f32 %v5393_v31, %v8573_v54 }
0x3bdb   :  { %v5401_v60 = vsel %vm200_vm0, %v5395_v44, 0.0 }
0x3bdc   :  { %5402 = vadd.xlane.f32.xlu0 %v5401_v60  ;;  %v5385_v50 = vpop.f32.mrf.mxu2 }
0x3bdd   :  { %v5389_v49 = vadd.f32 %v5385_v50, %v5253_v61 }
0x3bdf   :  { %v5394_v0 = vadd.f32 %v6773_v19, %v5389_v49 }
0x3be1   :  { %v5396_v7 = vadd.f32 %v5394_v0, %v8575_v48 }
0x3be3   :  { %v5404_v3 = vsel %vm200_vm0, %v5396_v7, 0.0 }
0x3be4   :  { %5405 = vadd.xlane.f32.xlu2 %v5404_v3 }
0x3bf0   :  { %5665 = vrot.lane.b32.xlu0 %v8717_v9, %s7171_s28 }
0x3c4f   :  { %v5403_v55 = vpop.xlane.xlu0 %5402 }
0x3c50   :  { %v5407_v54 = vmul.f32 %v5403_v55, %v7558_v47 }
0x3c52   :  { %v5409_v1 = vsub.f32 %v5395_v44, %v5407_v54  ;;  %v6776_v44 = vld [vmem:[%s8970_s23 + $0x1] ss:$0 sm:$0xff] }
0x3c54   :  { %v5411_v38 = vmul.f32 %v5409_v1, %v5409_v1 }
0x3c56   :  { %v5413_v13 = vsel %vm200_vm0, %v5411_v38, 0.0 }
0x3c57   :  { %5414 = vadd.xlane.f32.xlu1 %v5413_v13  ;;  %v5406_v48 = vpop.xlane.xlu2 %5405 }
0x3c58   :  { %v5408_v2 = vmul.f32 %v5406_v48, %v7558_v47 }
0x3c5a   :  { %v5410_v12 = vsub.f32 %v5396_v7, %v5408_v2 }
0x3c5c   :  { %v5412_v33 = vmul.f32 %v5410_v12, %v5410_v12 }
0x3c5e   :  { %v5416_v30 = vsel %vm200_vm0, %v5412_v33, 0.0 }
0x3c5f   :  { %5417 = vadd.xlane.f32.xlu1 %v5416_v30 }
0x3c62   :  { %v5666_v23 = vpop.permute.xlu0 %5665 }
0x3c63   :  { %v5671_v15 = vsel %vm234_vm1, %v5666_v23, 0 }
0x3c64   :  { %5680 = vmatpush.bf16.xpose.msrb.mxu2 %v5671_v15 }
0x3c78   :  { %5639 = vrot.lane.b32.xlu1 %v8726_v18, %s7171_s28 }
0x3cca   :  { %v5415_v10 = vpop.xlane.xlu1 %5414 }
0x3ccb   :  { %v5419_v24 = vmul.f32 %v5415_v10, %v7558_v47 }
0x3ccd   :  { %v5421_v6 = vadd.f32 1e-05, %v5419_v24 }
0x3ccf   :  { %7055 = vrsqrt.f32 %v5421_v6  ;;  %vm5429_vm13 = vweird.f32 %v5421_v6 }
0x3cd2   :  { %v5418_v5 = vpop.xlane.xlu1 %5417 }
0x3cd3   :  { %v5420_v41 = vmul.f32 %v5418_v5, %v7558_v47 }
0x3cd5   :  { %v7056_v51 = vpop.eup %7055  ;;  %v5422_v17 = vadd.f32 1e-05, %v5420_v41 }
0x3cd6   :  { %v5424_v26 = vmul.f32 %v7056_v51, %v5421_v6  ;;  %vm5430_vm12 = vweird.f32 %v7056_v51 }
0x3cd7   :  { %7057 = vrsqrt.f32 %v5422_v17  ;;  %vm5431_vm14 = vmor %vm5429_vm13, %vm5430_vm12  ;;  %vm5439_vm3 = vweird.f32 %v5422_v17 }
0x3cd8   :  { %v5425_v59 = vmul.f32 %v7056_v51, %v5424_v26 }
0x3cda   :  { %v5426_v27 = vmul.f32 0.5, %v5425_v59 }
0x3cdc   :  { %v5427_v11 = vsub.f32 1.5, %v5426_v27 }
0x3cdd   :  { %v7058_v62 = vpop.eup %7057 }
0x3cde   :  { %v5428_v43 = vmul.f32 %v7056_v51, %v5427_v11  ;;  %v5434_v32 = vmul.f32 %v7058_v62, %v5422_v17  ;;  %vm5440_vm15 = vweird.f32 %v7058_v62 }
0x3cdf   :  { %vm5441_vm4 = vmor %vm5439_vm3, %vm5440_vm15 }
0x3ce0   :  { %v5435_v63 = vmul.f32 %v7058_v62, %v5434_v32  ;;  %v5432_v20 = vsel %vm5431_vm14, %v7056_v51, %v5428_v43 }
0x3ce1   :  { %v5443_v45 = vmul.f32 %v5432_v20, %v5409_v1 }
0x3ce2   :  { %v5436_v22 = vmul.f32 0.5, %v5435_v63 }
0x3ce3   :  { %v5448_v42 = vmul.f32 %v6774_v37, %v5443_v45  ;;  %v6620_v45 = vld [vmem:[%s8972_s18 + $0x28] sm:$0xff] }
0x3ce4   :  { %v5437_v36 = vsub.f32 1.5, %v5436_v22 }
0x3ce5   :  { %v8739_v46 = vadd.f32 %v6775_v35, %v5448_v42 }
0x3ce6   :  { %v5438_v56 = vmul.f32 %v7058_v62, %v5437_v36 }
0x3ce8   :  { %v5442_v28 = vsel %vm5441_vm4, %v7058_v62, %v5438_v56  ;;  %v5753_v56 = vpack.c.bf16 %v6620_v45, %v6620_v45 }
0x3ce9   :  { %v5444_v29 = vmul.f32 %v5442_v28, %v5410_v12 }
0x3cea   :  { %v5640_v4 = vpop.permute.xlu1 %5639  ;;  %v5758_v28 = vsel %vm307_vm2, %v5753_v56, 0 }
0x3ceb   :  { %v5449_v19 = vmul.f32 %v6774_v37, %v5444_v29  ;;  %v5645_v40 = vsel %vm234_vm1, %v5640_v4, 0 }
0x3cec   :  { %5654 = vmatpush.bf16.xpose.msrb.mxu1 %v5645_v40 }
0x3ced   :  { %v8741_v31 = vadd.f32 %v6775_v35, %v5449_v19 }
0x3cef   :  { %v5455_v53 = vpack.c.bf16 %v8741_v31, %v8739_v46 }
0x3cf1   :  { %6612 = vmatmul.msk.bf16.vlgmr.msra.gmra.mxu3 %vm200_vm0, %v5455_v53 }
0x3d74   :  { %v5480_v61 = vpop.f32.mrf.mxu3 }
0x3d75   :  { %v5481_v60 = vadd.f32 %v6776_v44, %v5480_v61 }
0x3d77   :  { %v5518_v50 = vpack.c.bf16 %v5481_v60, %v5481_v60 }
0x3d79   :  { %v5635_v49 = vunpack.c.l.b16 %v5518_v50  ;;  %6624 = vmatmul.msk.bf16.vlgmr.msra.gmra.mxu1 %vm234_vm1, %v5518_v50 }
0x3d7a   :  { %5767 = vmatpush.bf16.msra.mxu1 %v5758_v28 }
0x3d7b   :  { %v8748_v0 = vpack.c.b16 %v5635_v49, %v5635_v49 }
0x3d7c   :  { %v5482_v7 = vpop.f32.mrf.mxu3 }
0x3d7d   :  { %v5483_v3 = vadd.f32 %v6776_v44, %v5482_v7  ;;  %5637 = vrot.lane.b32.xlu2 %v8748_v0, %s7171_s28 }
0x3d7f   :  { %v5519_v8 = vpack.c.bf16 %v5483_v3, %v5483_v3 }
0x3d81   :  { %v5661_v55 = vunpack.c.l.b16 %v5519_v8  ;;  %6625 = vmatmul.msk.bf16.vlgmr.msra.gmra.mxu2 %vm234_vm1, %v5519_v8 }
0x3d83   :  { %v5662_v54 = vpack.c.b16 %v5661_v55, %v5661_v55 }
0x3d85   :  { %5663 = vrot.lane.b32.xlu1 %v5662_v54, %s7171_s28 }
0x3dd7   :  { %v5638_v1 = vpop.permute.xlu2 %5637 }
0x3dd8   :  { %6628 = vmatmul.msk.bf16.vlgmr.msrb.gmra.mxu1 %vm234_vm1, %v5638_v1 }
0x3df6   :  { %v5537_v38 = vpop.f32.mrf.mxu1 }
0x3df7   :  { %v5538_v13 = vadd.f32 %v5537_v38, %v8428_v34  ;;  %v5664_v48 = vpop.permute.xlu1 %5663 }
0x3df8   :  { %6629 = vmatmul.msk.bf16.vlgmr.msrb.gmra.mxu2 %vm234_vm1, %v5664_v48 }
0x3df9   :  { %v5560_v2 = vsel %vm234_vm1, %v5538_v13, -inf }
0x3dfa   :  { %5561 = vmax.xlane.f32.xlu1 %v5560_v2 }
0x3dfe   :  { %v5539_v12 = vpop.f32.mrf.mxu1 }
0x3e04   :  { %v5556_v33 = vpop.f32.mrf.mxu2 }
0x3e05   :  { %v5557_v41 = vadd.f32 %v5556_v33, %v8436_v39 }
0x3e07   :  { %v5563_v51 = vsel %vm234_vm1, %v5557_v41, -inf }
0x3e0c   :  { %v5558_v30 = vpop.f32.mrf.mxu2 }
0x3e13   :  { %5587 = vrot.lane.b32.xlu1 %v8726_v18, %s7169_s0 }
0x3e1b   :  { %5794 = vrot.lane.b32.xlu1 %v8748_v0, %s7175_s7 }
0x3e55   :  { %v5656_v23 = vpop.f32.mrf.mxu1 }
0x3e56   :  { %v5657_v15 = vadd.f32 %v5656_v23, %v8428_v34 }
0x3e58   :  { %v5686_v16 = vsel %vm234_vm1, %v5657_v15, -inf }
0x3e59   :  { %5687 = vmax.xlane.f32.xlu0 %v5686_v16 }
0x3e5d   :  { %v5658_v14 = vpop.f32.mrf.mxu1 }
0x3e6d   :  { %v5562_v52 = vpop.xlane.xlu1 %5561 }
0x3e6e   :  { %v5566_v21 = vsub.f32 %v5538_v13, %v5562_v52 }
0x3e70   :  { %v5568_v10 = vmul.f32 1.442695, %v5566_v21 }
0x3e72   :  { %7059 = vpow2.f32 %v5568_v10 }
0x3e78   :  { %v7060_v24 = vpop.eup %7059 }
0x3e79   :  { %v5572_v25 = vsel %vm234_vm1, %v7060_v24, 0.0 }
0x3e7a   :  { %5573 = vadd.xlane.f32.xlu2 %v5572_v25 }
0x3e7b   :  { %v5682_v58 = vpop.f32.mrf.mxu2 }
0x3e7c   :  { %v5683_v36 = vadd.f32 %v5682_v58, %v8436_v39 }
0x3e7e   :  { %v5689_v37 = vsel %vm234_vm1, %v5683_v36, -inf }
0x3e83   :  { %v5684_v6 = vpop.f32.mrf.mxu2 }
0x3e85   :  { %v5588_v57 = vpop.permute.xlu1 %5587 }
0x3e86   :  { %v5593_v5 = vsel %vm307_vm2, %v5588_v57, 0 }
0x3e87   :  { %5602 = vmatpush.bf16.msrb.mxu3 %v5593_v5 }
0x3e8d   :  { %v5795_v55 = vpop.permute.xlu1 %5794 }
0x3e92   :  { %5710 = vrot.lane.b32.xlu2 %v8726_v18, %s7170_s5 }
0x3ebb   :  { %5564 = vmax.xlane.f32.xlu2 %v5563_v51  ;;  %v6619_v51 = vld [vmem:[%s8972_s18 + $0x20] sm:$0xff] }
0x3ecc   :  { %v5688_v17 = vpop.xlane.xlu0 %5687 }
0x3ecd   :  { %v5692_v26 = vsub.f32 %v5657_v15, %v5688_v17  ;;  %v5633_v17 = vpack.c.bf16 %v6619_v51, %v6619_v51 }
0x3ecf   :  { %v5694_v59 = vmul.f32 1.442695, %v5692_v26  ;;  %v5778_v26 = vsel %vm307_vm2, %v5633_v17, 0 }
0x3ed0   :  { %5787 = vmatpush.bf16.msra.mxu2 %v5778_v26 }
0x3ed1   :  { %7061 = vpow2.f32 %v5694_v59 }
0x3ed3   :  { %5611 = vrot.lane.b32.xlu2 %v8717_v9, %s7169_s0 }
0x3ed7   :  { %v7062_v27 = vpop.eup %7061 }
0x3ed8   :  { %v5698_v11 = vsel %vm234_vm1, %v7062_v27, 0.0 }
0x3ed9   :  { %5699 = vadd.xlane.f32.xlu0 %v5698_v11 }
0x3edb   :  { %5817 = vrot.lane.b32.xlu2 %v5662_v54, %s7175_s7 }
0x3ee3   :  { %5864 = vrot.lane.b32.xlu2 %v8726_v18, %s7173_s17 }
0x3eeb   :  { %5932 = vrot.lane.b32.xlu2 %v8726_v18, %s8983_s3 }
0x3eed   :  { %5796 = vrot.lane.b32.xlu0 %v8726_v18, %s7175_s7  ;;  %v5574_v62 = vpop.xlane.xlu2 %5573 }
0x3eee   :  { %7063 = vrcp.f32 %v5574_v62 }
0x3ef3   :  { %5955 = vrot.lane.b32.xlu2 %v8717_v9, %s8983_s3 }
0x3ef4   :  { %v7064_v43 = vpop.eup %7063 }
0x3ef5   :  { %v5580_v32 = vmul.f32 %v7064_v43, %v7060_v24  ;;  %v5711_v63 = vpop.permute.xlu2 %5710 }
0x3ef6   :  { %v5716_v20 = vsel %vm307_vm2, %v5711_v63, 0 }
0x3ef7   :  { %v5582_v22 = vpack.c.bf16 %v5580_v32, %v5580_v32  ;;  %5725 = vmatpush.bf16.msra.mxu3 %v5716_v20 }
0x3ef9   :  { %6626 = vmatmul.msk.bf16.vlgmr.msrb.gmra.mxu3 %vm234_vm1, %v5582_v22 }
0x3efb   :  { %5930 = vrot.lane.b32.xlu2 %v8748_v0, %s8983_s3 }
0x3f03   :  { %5953 = vrot.lane.b32.xlu2 %v5662_v54, %s8983_s3 }
0x3f17   :  { %5690 = vmax.xlane.f32.xlu0 %v5689_v37 }
0x3f2e   :  { %v5565_v35 = vpop.xlane.xlu2 %5564 }
0x3f2f   :  { %v5567_v42 = vsub.f32 %v5557_v41, %v5565_v35 }
0x3f31   :  { %v5570_v29 = vmul.f32 1.442695, %v5567_v42 }
0x3f33   :  { %7065 = vpow2.f32 %v5570_v29 }
0x3f36   :  { %v5612_v4 = vpop.permute.xlu2 %5611 }
0x3f37   :  { %v5617_v19 = vsel %vm307_vm2, %v5612_v4, 0 }
0x3f38   :  { %5626 = vmatpush.bf16.msrb.mxu0 %v5617_v19 }
0x3f39   :  { %v7066_v40 = vpop.eup %7065 }
0x3f3a   :  { %v5575_v53 = vsel %vm234_vm1, %v7066_v40, 0.0 }
0x3f3b   :  { %5576 = vadd.xlane.f32.xlu1 %v5575_v53 }
0x3f3e   :  { %v5818_v44 = vpop.permute.xlu2 %5817 }
0x3f46   :  { %v5865_v61 = vpop.permute.xlu2 %5864 }
0x3f47   :  { %v5870_v60 = vsel %vm307_vm2, %v5865_v61, 0 }
0x3f48   :  { %5879 = vmatpush.bf16.msrb.mxu1 %v5870_v60 }
0x3f4c   :  { %v5700_v50 = vpop.xlane.xlu0 %5699 }
0x3f4d   :  { %7067 = vrcp.f32 %v5700_v50 }
0x3f4e   :  { %v5933_v59 = vpop.permute.xlu2 %5932 }
0x3f4f   :  { %v5938_v62 = vsel %vm234_vm1, %v5933_v59, 0 }
0x3f53   :  { %v7068_v49 = vpop.eup %7067 }
0x3f54   :  { %v5706_v0 = vmul.f32 %v7068_v49, %v7062_v27  ;;  %5731 = vrot.lane.b32.xlu1 %v8717_v9, %s7170_s5  ;;  %s6295_s5 = sshll.u32 %s7413_s13, 4  ;;  %s6296_s5 = int_to_ptr.hbm [resolvable:$true] %s6295_s5 }
0x3f55   :  { %s7111_s28 = sshra.s32 %s6296_s5, 4  ;;  %s7112_s28 = int_to_ptr.hbm [resolvable:$true] %s7111_s28 }
0x3f56   :  { %v5708_v7 = vpack.c.bf16 %v5706_v0, %v5706_v0  ;;  %v5956_v43 = vpop.permute.xlu2 %5955  ;;  %p7116_p1 = scmp.lt.s32.totalorder %s7112_s28, %s7413_s13 }
0x3f57   :  { %v5961_v29 = vsel %vm234_vm1, %v5956_v43, 0 }
0x3f58   :  { %6630 = vmatmul.msk.bf16.vlgmr.msra.gmra.mxu3 %vm234_vm1, %v5708_v7 }
0x3f5e   :  { %v5931_v32 = vpop.permute.xlu2 %5930 }
0x3f5f   :  { %v5797_v3 = vpop.permute.xlu0 %5796 }
0x3f60   :  { %v5802_v8 = vsel %vm234_vm1, %v5797_v3, 0 }
0x3f61   :  { %5811 = vmatpush.bf16.xpose.msrb.mxu3 %v5802_v8 }
0x3f68   :  { %6634 = vmatmul.msk.bf16.vlgmr.msrb.gmra.mxu3 %vm234_vm1, %v5795_v55  ;;  %v5954_v55 = vpop.permute.xlu2 %5953 }
0x3f7c   :  { %v5604_v54 = vpop.f32.mrf.mxu3 }
0x3f84   :  { %v5606_v1 = vpop.f32.mrf.mxu3 }
0x3f8a   :  { %v5691_v38 = vpop.xlane.xlu0 %5690 }
0x3f8b   :  { %v5693_v13 = vsub.f32 %v5683_v36, %v5691_v38 }
0x3f8d   :  { %v5696_v48 = vmul.f32 1.442695, %v5693_v13 }
0x3f8f   :  { %7069 = vpow2.f32 %v5696_v48 }
0x3f95   :  { %v7070_v2 = vpop.eup %7069 }
0x3f96   :  { %v5701_v12 = vsel %vm234_vm1, %v7070_v2, 0.0 }
0x3f97   :  { %5702 = vadd.xlane.f32.xlu0 %v5701_v12 }
0x3fab   :  { %5819 = vrot.lane.b32.xlu0 %v8717_v9, %s7175_s7  ;;  %s7115_s7 = scalar_lea.hbm %s7413_s13, 16 }
0x3fae   :  { %v5577_v33 = vpop.xlane.xlu1 %5576 }
0x3faf   :  { %7071 = vrcp.f32 %v5577_v33 }
0x3fb5   :  { %v7072_v30 = vpop.eup %7071 }
0x3fb6   :  { %v5581_v23 = vmul.f32 %v7072_v30, %v7066_v40 }
0x3fb8   :  { %v5583_v15 = vpack.c.bf16 %v5581_v23, %v5581_v23 }
0x3fba   :  { %6627 = vmatmul.msk.bf16.vlgmr.msrb.gmra.mxu0 %vm234_vm1, %v5583_v15 }
0x3fc6   :  { %v5732_v16 = vpop.permute.xlu1 %5731 }
0x3fc7   :  { %v5737_v14 = vsel %vm307_vm2, %v5732_v16, 0 }
0x3fc8   :  { %5746 = vmatpush.bf16.msra.mxu0 %v5737_v14 }
0x3fdb   :  { %v5727_v52 = vpop.f32.mrf.mxu3 }
0x3fe3   :  { %v5729_v21 = vpop.f32.mrf.mxu3 }
0x3feb   :  { %v5813_v10 = vpop.f32.mrf.mxu3 }
0x3fec   :  { %v5814_v24 = vadd.f32 %v5813_v10, %v8428_v34 }
0x3fee   :  { %v5840_v25 = vsel %vm234_vm1, %v5814_v24, -inf }
0x3fef   :  { %5841 = vmax.xlane.f32.xlu0 %v5840_v25 }
0x3ff3   :  { %v5815_v58 = vpop.f32.mrf.mxu3 }
0x400a   :  { %v5703_v6 = vpop.xlane.xlu0 %5702 }
0x400b   :  { %7073 = vrcp.f32 %v5703_v6 }
0x4011   :  { %v7074_v57 = vpop.eup %7073 }
0x4012   :  { %v5707_v5 = vmul.f32 %v7074_v57, %v7070_v2 }
0x4014   :  { %v5709_v41 = vpack.c.bf16 %v5707_v5, %v5707_v5 }
0x4016   :  { %6631 = vmatmul.msk.bf16.vlgmr.msra.gmra.mxu0 %vm234_vm1, %v5709_v41 }
0x401d   :  { %v5820_v27 = vpop.permute.xlu0 %5819 }
0x401e   :  { %v5825_v11 = vsel %vm234_vm1, %v5820_v27, 0 }
0x401f   :  { %5834 = vmatpush.bf16.xpose.msrb.mxu0 %v5825_v11 }
0x4026   :  { %6635 = vmatmul.msk.bf16.vlgmr.msrb.gmra.mxu0 %vm234_vm1, %v5818_v44 }
0x4027   :  { %5947 = vmatpush.bf16.xpose.msra.mxu0 %v5938_v62 }
0x4036   :  { %6639 = vmatmul.msk.bf16.vlgmr.msra.gmra.mxu0 %vm234_vm1, %v5931_v32 }
0x4037   :  { %v5628_v63 = vpop.f32.mrf.mxu0 }
0x4038   :  { %v5632_v20 = vpack.c.bf16 %v5628_v63, %v5604_v54  ;;  %v6621_v54 = vld [vmem:[%s8972_s18 + $0x30] sm:$0xff] }
0x4039   :  { %v5907_v1 = vpack.c.bf16 %v6621_v54, %v6621_v54  ;;  %v6777_v54 = vld [vmem:[%s8973_s22 + $0x1] ss:$0 sm:$0xff] }
0x403a   :  { %6633 = vmatmul.msk.bf16.vlgmr.msra.gmra.mxu2 %vm234_vm1, %v5632_v20 }
0x403b   :  { %v5912_v38 = vsel %vm307_vm2, %v5907_v1, 0 }
0x403c   :  { %5921 = vmatpush.bf16.msra.mxu3 %v5912_v38 }
0x403f   :  { %v5630_v22 = vpop.f32.mrf.mxu0 }
0x4062   :  { %v5842_v36 = vpop.xlane.xlu0 %5841 }
0x4063   :  { %v5846_v37 = vsub.f32 %v5814_v24, %v5842_v36 }
0x4065   :  { %v5848_v45 = vmul.f32 1.442695, %v5846_v37 }
0x4067   :  { %7075 = vpow2.f32 %v5848_v45 }
0x406d   :  { %v7076_v56 = vpop.eup %7075 }
0x406e   :  { %v5852_v28 = vsel %vm234_vm1, %v7076_v56, 0.0 }
0x406f   :  { %5853 = vadd.xlane.f32.xlu1 %v5852_v28 }
0x4088   :  { %5885 = vrot.lane.b32.xlu1 %v8717_v9, %s7173_s17  ;;  %s7113_s17 = scalar_lea.hbm %s7112_s28, 16 }
0x4089   :  { %p7114_p0 = scmp.ne.s32.totalorder %s7112_s28, %s7113_s17  ;;  %p7117_p2 = scmp.lt.s32.totalorder %s7115_s7, %s7113_s17 }
0x408b   :  { %p7118_p3 = por %p7117_p2, %p7116_p1 }
0x408d   :  { %p7119_p4 = pnand %p7118_p3, %p7114_p0 }
0x4093   :  { %v5748_v35 = vpop.f32.mrf.mxu0 }
0x4094   :  { %v5752_v42 = vpack.c.bf16 %v5748_v35, %v5727_v52 }
0x4096   :  { %6632 = vmatmul.msk.bf16.vlgmr.msra.gmra.mxu1 %vm234_vm1, %v5752_v42 }
0x4097   :  { %5970 = vmatpush.bf16.xpose.msra.mxu1 %v5961_v29 }
0x409b   :  { %v5750_v4 = vpop.f32.mrf.mxu0 }
0x40a3   :  { %v5836_v19 = vpop.f32.mrf.mxu0 }
0x40a4   :  { %v5837_v40 = vadd.f32 %v5836_v19, %v8436_v39 }
0x40a6   :  { %v5843_v53 = vsel %vm234_vm1, %v5837_v40, -inf }
0x40a7   :  { %5844 = vmax.xlane.f32.xlu2 %v5843_v53 }
0x40ab   :  { %v5838_v44 = vpop.f32.mrf.mxu0 }
0x40b3   :  { %v5949_v61 = vpop.f32.mrf.mxu0 }
0x40b4   :  { %v5950_v23 = vadd.f32 %v5949_v61, %v8428_v34 }
0x40b6   :  { %v5976_v15 = vsel %vm234_vm1, %v5950_v23, -inf }
0x40bb   :  { %v5951_v60 = vpop.f32.mrf.mxu0 }
0x40bd   :  { %v5789_v32 = vpop.f32.mrf.mxu2 }
0x40bf   :  { %6021 = vrot.lane.b32.xlu2 %v8717_v9, %s8982_s2 }
0x40c5   :  { %v5791_v63 = vpop.f32.mrf.mxu2 }
0x40e2   :  { %v5854_v50 = vpop.xlane.xlu1 %5853 }
0x40e3   :  { %7077 = vrcp.f32 %v5854_v50  ;;  %v6622_v50 = vld [vmem:[%s8972_s18 + $0x38] sm:$0xff] }
0x40e9   :  { %v7078_v49 = vpop.eup %7077 }
0x40ea   :  { %v5860_v0 = vmul.f32 %v7078_v49, %v7076_v56  ;;  %v6043_v49 = vpack.c.bf16 %v6622_v50, %v6622_v50 }
0x40ec   :  { %v5862_v7 = vpack.c.bf16 %v5860_v0, %v5860_v0  ;;  %v6048_v0 = vsel %vm307_vm2, %v6043_v49, 0 }
0x40ed   :  { %6057 = vmatpush.bf16.msrb.mxu0 %v6048_v0  ;;  %v6658_v0 = vld [vmem:[%s8977_s30 + $0x70] sm:$0xff] }
0x40ee   :  { %6636 = vmatmul.msk.bf16.vlgmr.msrb.gmra.mxu1 %vm234_vm1, %v5862_v7 }
0x40fa   :  { %v5886_v3 = vpop.permute.xlu1 %5885 }
0x40fb   :  { %v5891_v8 = vsel %vm307_vm2, %v5886_v3, 0 }
0x40fc   :  { %5900 = vmatpush.bf16.msrb.mxu2 %v5891_v8 }
0x40fe   :  { %6640 = vmatmul.msk.bf16.vlgmr.msra.gmra.mxu1 %vm234_vm1, %v5954_v55 }
0x4113   :  { %v5769_v16 = vpop.f32.mrf.mxu1 }
0x411a   :  { %v5845_v9 = vpop.xlane.xlu2 %5844 }
0x411b   :  { %v5847_v13 = vsub.f32 %v5837_v40, %v5845_v9  ;;  %v8832_v14 = vpop.f32.mrf.mxu1  ;;  %v5790_v40 = vadd.f32 %v5789_v32, %v5769_v16 }
0x411d   :  { %v5850_v48 = vmul.f32 1.442695, %v5847_v13  ;;  %v5792_v13 = vadd.f32 %v5791_v63, %v8832_v14 }
0x411f   :  { %7079 = vpow2.f32 %v5850_v48 }
0x4122   :  { %v6022_v2 = vpop.permute.xlu2 %6021 }
0x4123   :  { %v6027_v12 = vsel %vm307_vm2, %v6022_v2, 0 }
0x4124   :  { %6036 = vmatpush.bf16.msrb.mxu3 %v6027_v12 }
0x4125   :  { %v7080_v33 = vpop.eup %7079 }
0x4126   :  { %v5855_v30 = vsel %vm234_vm1, %v7080_v33, 0.0 }
0x4127   :  { %5856 = vadd.xlane.f32.xlu0 %v5855_v30 }
0x412f   :  { %5977 = vmax.xlane.f32.xlu0 %v5976_v15 }
0x416b   :  { %v5881_v52 = vpop.f32.mrf.mxu1 }
0x4173   :  { %v5883_v21 = vpop.f32.mrf.mxu1 }
0x417b   :  { %v5972_v10 = vpop.f32.mrf.mxu1 }
0x417c   :  { %v5973_v24 = vadd.f32 %v5972_v10, %v8436_v39 }
0x417e   :  { %v5979_v25 = vsel %vm234_vm1, %v5973_v24, -inf }
0x417f   :  { %5980 = vmax.xlane.f32.xlu0 %v5979_v25 }
0x4183   :  { %v5974_v58 = vpop.f32.mrf.mxu1 }
0x419a   :  { %v5857_v6 = vpop.xlane.xlu0 %5856 }
0x419b   :  { %7081 = vrcp.f32 %v5857_v6 }
0x41a1   :  { %v7082_v57 = vpop.eup %7081 }
0x41a2   :  { %v5861_v5 = vmul.f32 %v7082_v57, %v7080_v33  ;;  %v5978_v34 = vpop.xlane.xlu0 %5977  ;;  %v6648_v57 = vld [vmem:[%s8974_s8 + $0x30] sm:$0xff] }
0x41a3   :  { %v5982_v41 = vsub.f32 %v5950_v23, %v5978_v34 }
0x41a4   :  { %v5863_v51 = vpack.c.bf16 %v5861_v5, %v5861_v5  ;;  %v6649_v5 = vld [vmem:[%s8974_s8 + $0x38] sm:$0xff] }
0x41a5   :  { %v5984_v17 = vmul.f32 1.442695, %v5982_v41  ;;  %v6138_v34 = vpack.c.bf16 %v6649_v5, %v6648_v57 }
0x41a6   :  { %6637 = vmatmul.msk.bf16.vlgmr.msrb.gmra.mxu2 %vm234_vm1, %v5863_v51 }
0x41a7   :  { %7083 = vpow2.f32 %v5984_v17  ;;  %6153 = vmatpush.bf16.msrb.mxu1 %v6138_v34  ;;  %v6646_v17 = vld [vmem:[%s8974_s8 + $0x20] sm:$0xff] }
0x41ad   :  { %v7084_v26 = vpop.eup %7083 }
0x41ae   :  { %v5988_v59 = vsel %vm234_vm1, %v7084_v26, 0.0 }
0x41af   :  { %5989 = vadd.xlane.f32.xlu0 %v5988_v59 }
0x41c3   :  { %6000 = vrot.lane.b32.xlu0 %v8726_v18, %s8982_s2 }
0x41f2   :  { %v5981_v39 = vpop.xlane.xlu0 %5980 }
0x41f3   :  { %v5983_v27 = vsub.f32 %v5973_v24, %v5981_v39 }
0x41f5   :  { %v5986_v11 = vmul.f32 1.442695, %v5983_v27 }
0x41f7   :  { %7085 = vpow2.f32 %v5986_v11 }
0x41fd   :  { %v7086_v62 = vpop.eup %7085 }
0x41fe   :  { %v5991_v43 = vsel %vm234_vm1, %v7086_v62, 0.0 }
0x41ff   :  { %5992 = vadd.xlane.f32.xlu1 %v5991_v43 }
0x4222   :  { %v5990_v20 = vpop.xlane.xlu0 %5989 }
0x4223   :  { %7087 = vrcp.f32 %v5990_v20 }
0x4229   :  { %v5902_v22 = vpop.f32.mrf.mxu2  ;;  %v7088_v37 = vpop.eup %7087 }
0x422a   :  { %v5906_v36 = vpack.c.bf16 %v5902_v22, %v5881_v52  ;;  %v5996_v56 = vmul.f32 %v7088_v37, %v7084_v26  ;;  %v6647_v26 = vld [vmem:[%s8974_s8 + $0x28] sm:$0xff] }
0x422b   :  { %v6137_v39 = vpack.c.bf16 %v6647_v26, %v6646_v17 }
0x422c   :  { %6638 = vmatmul.msk.bf16.vlgmr.msra.gmra.mxu3 %vm234_vm1, %v5906_v36  ;;  %v5998_v35 = vpack.c.bf16 %v5996_v56, %v5996_v56 }
0x422d   :  { %6154 = vmatpush.bf16.msrb.mxu1 %v6137_v39 }
0x4231   :  { %v5904_v45 = vpop.f32.mrf.mxu2 }
0x4235   :  { %v6001_v18 = vpop.permute.xlu0 %6000 }
0x4236   :  { %v6006_v28 = vsel %vm307_vm2, %v6001_v18, 0 }
0x4237   :  { %6015 = vmatpush.bf16.msra.mxu2 %v6006_v28 }
0x423a   :  { %6641 = vmatmul.msk.bf16.vlgmr.msra.gmra.mxu2 %vm234_vm1, %v5998_v35 }
0x4272   :  { %v5993_v42 = vpop.xlane.xlu1 %5992 }
0x4273   :  { %7089 = vrcp.f32 %v5993_v42  ;;  %v6778_v42 = vld [vmem:[%s8975_s19 + $0x1] ss:$0 sm:$0xff] }
0x4279   :  { %v7090_v29 = vpop.eup %7089 }
0x427a   :  { %v5997_v4 = vmul.f32 %v7090_v29, %v7086_v62 }
0x427c   :  { %v5999_v19 = vpack.c.bf16 %v5997_v4, %v5997_v4 }
0x427e   :  { %6642 = vmatmul.msk.bf16.vlgmr.msrb.gmra.mxu3 %vm234_vm1, %v5999_v19 }
0x42af   :  { %v5923_v53 = vpop.f32.mrf.mxu3 }
0x42b0   :  { %v5928_v44 = vadd.f32 %v5923_v53, %v5790_v40  ;;  %v6779_v40 = vld [vmem:[%s8976_s24 + $0x1] ss:$0 sm:$0xff] }
0x42b7   :  { %v5925_v7 = vpop.f32.mrf.mxu3 }
0x42b8   :  { %v5929_v2 = vadd.f32 %v5925_v7, %v5792_v13  ;;  %v6659_v7 = vld [vmem:[%s8977_s30 + $0x78] sm:$0xff]  ;;  %v6652_v13 = vld [vmem:[%s8977_s30 + $0x40] sm:$0xff] }
0x42bd   :  { %v6017_v61 = vpop.f32.mrf.mxu2 }
0x42c5   :  { %v6019_v60 = vpop.f32.mrf.mxu2 }
0x4301   :  { %v6038_v3 = vpop.f32.mrf.mxu3 }
0x4302   :  { %v6042_v8 = vpack.c.bf16 %v6038_v3, %v6017_v61  ;;  %v6176_v3 = vpack.c.bf16 %v6659_v7, %v6658_v0 }
0x4304   :  { %6643 = vmatmul.msk.bf16.vlgmr.msrb.gmra.mxu0 %vm234_vm1, %v6042_v8  ;;  %6189 = vmatpush.bf16.msrb.mxu2 %v6176_v3  ;;  %v6656_v8 = vld [vmem:[%s8977_s30 + $0x60] sm:$0xff] }
0x4309   :  { %v6040_v55 = vpop.f32.mrf.mxu3 }
0x430a   :  { %v6657_v55 = vld [vmem:[%s8977_s30 + $0x68] sm:$0xff] }
0x4381   :  { %v6059_v1 = vpop.f32.mrf.mxu0 }
0x4382   :  { %v6064_v38 = vadd.f32 %v6059_v1, %v5928_v44  ;;  %v6654_v1 = vld [vmem:[%s8977_s30 + $0x50] sm:$0xff] }
0x4384   :  { %v6069_v9 = vadd.f32 %v6777_v54, %v6064_v38  ;;  %v6655_v38 = vld [vmem:[%s8977_s30 + $0x58] sm:$0xff] }
0x4386   :  { %v6071_v48 = vadd.f32 %v6069_v9, %v8739_v46  ;;  %v6174_v9 = vpack.c.bf16 %v6655_v38, %v6654_v1 }
0x4388   :  { %v6077_v12 = vsel %vm200_vm0, %v6071_v48, 0.0 }
0x4389   :  { %6078 = vadd.xlane.f32.xlu0 %v6077_v12  ;;  %v6061_v33 = vpop.f32.mrf.mxu0 }
0x438a   :  { %v6065_v30 = vadd.f32 %v6061_v33, %v5929_v2  ;;  %v6780_v33 = vld [vmem:[%s8978_s26 + $0x1] ss:$0 sm:$0xff] }
0x438c   :  { %v6070_v23 = vadd.f32 %v6777_v54, %v6065_v30  ;;  %v6175_v54 = vpack.c.bf16 %v6657_v55, %v6656_v8  ;;  %v6783_v8 = vld [vmem:[%s8981_s11 + $0x1] ss:$0 sm:$0xff] }
0x438e   :  { %v6072_v15 = vadd.f32 %v6070_v23, %v8741_v31  ;;  %6190 = vmatpush.bf16.msrb.mxu2 %v6175_v54 }
0x4390   :  { %v6080_v16 = vsel %vm200_vm0, %v6072_v15, 0.0 }
0x4391   :  { %6081 = vadd.xlane.f32.xlu2 %v6080_v16 }
0x4392   :  { %6191 = vmatpush.bf16.msrb.mxu2 %v6174_v9 }
0x43fc   :  { %v6079_v52 = vpop.xlane.xlu0 %6078 }
0x43fd   :  { %v6083_v21 = vmul.f32 %v6079_v52, %v7558_v47 }
0x43ff   :  { %v6085_v14 = vsub.f32 %v6071_v48, %v6083_v21  ;;  %v6653_v48 = vld [vmem:[%s8977_s30 + $0x48] sm:$0xff] }
0x4400   :  { %v6173_v2 = vpack.c.bf16 %v6653_v48, %v6652_v13  ;;  %v6784_v48 = vld [vmem:[%s7408_s25] ss:$0 sm:$0xff] }
0x4401   :  { %v6087_v46 = vmul.f32 %v6085_v14, %v6085_v14 }
0x4402   :  { %6192 = vmatpush.bf16.msrb.mxu2 %v6173_v2 }
0x4403   :  { %v6089_v10 = vsel %vm200_vm0, %v6087_v46, 0.0 }
0x4404   :  { %6090 = vadd.xlane.f32.xlu1 %v6089_v10  ;;  %v6082_v24 = vpop.xlane.xlu2 %6081 }
0x4405   :  { %v6084_v25 = vmul.f32 %v6082_v24, %v7558_v47 }
0x4407   :  { %v6086_v58 = vsub.f32 %v6072_v15, %v6084_v25 }
0x4409   :  { %v6088_v6 = vmul.f32 %v6086_v58, %v6086_v58 }
0x440b   :  { %v6092_v31 = vsel %vm200_vm0, %v6088_v6, 0.0 }
0x440c   :  { %6093 = vadd.xlane.f32.xlu1 %v6092_v31 }
0x4477   :  { %v6091_v41 = vpop.xlane.xlu1 %6090 }
0x4478   :  { %v6095_v51 = vmul.f32 %v6091_v41, %v7558_v47 }
0x447a   :  { %v6097_v59 = vadd.f32 1e-05, %v6095_v51 }
0x447c   :  { %7091 = vrsqrt.f32 %v6097_v59  ;;  %vm6105_vm2 = vweird.f32 %v6097_v59 }
0x447f   :  { %v6094_v27 = vpop.xlane.xlu1 %6093 }
0x4480   :  { %v6096_v11 = vmul.f32 %v6094_v27, %v7558_v47 }
0x4482   :  { %v7092_v62 = vpop.eup %7091  ;;  %v6098_v43 = vadd.f32 1e-05, %v6096_v11 }
0x4483   :  { %v6100_v32 = vmul.f32 %v7092_v62, %v6097_v59  ;;  %vm6106_vm1 = vweird.f32 %v7092_v62 }
0x4484   :  { %7093 = vrsqrt.f32 %v6098_v43  ;;  %vm6107_vm5 = vmor %vm6105_vm2, %vm6106_vm1  ;;  %vm6115_vm7 = vweird.f32 %v6098_v43 }
0x4485   :  { %v6101_v63 = vmul.f32 %v7092_v62, %v6100_v32 }
0x4487   :  { %v6102_v20 = vmul.f32 0.5, %v6101_v63 }
0x4489   :  { %v6103_v22 = vsub.f32 1.5, %v6102_v20 }
0x448a   :  { %v7094_v36 = vpop.eup %7093 }
0x448b   :  { %v6104_v37 = vmul.f32 %v7092_v62, %v6103_v22  ;;  %v6110_v45 = vmul.f32 %v7094_v36, %v6098_v43  ;;  %vm6116_vm6 = vweird.f32 %v7094_v36  ;;  %v6263_v43 = vld [vmem:[%s7403_s9 + $0x18] sm:$0xff]  ;;  %v6260_v22 = vld [vmem:[%s7403_s9] sm:$0xff] }
0x448c   :  { %vm6117_vm8 = vmor %vm6115_vm7, %vm6116_vm6 }
0x448d   :  { %v6111_v56 = vmul.f32 %v7094_v36, %v6110_v45  ;;  %v6108_v18 = vsel %vm6107_vm5, %v7092_v62, %v6104_v37  ;;  %v6262_v62 = vld [vmem:[%s7403_s9 + $0x10] sm:$0xff] }
0x448e   :  { %v6119_v29 = vmul.f32 %v6108_v18, %v6085_v14  ;;  %v6781_v14 = vld [vmem:[%s8979_s16 + $0x1] ss:$0 sm:$0xff]  ;;  %v6265_v32 = vpack.c.bf16 %v6263_v43, %v6262_v62 }
0x448f   :  { %v6112_v28 = vmul.f32 0.5, %v6111_v56 }
0x4490   :  { %v6124_v53 = vmul.f32 %v6778_v42, %v6119_v29  ;;  %6279 = vmatpush.bf16.msra.mxu3 %v6265_v32 }
0x4491   :  { %v6113_v35 = vsub.f32 1.5, %v6112_v28 }
0x4492   :  { %v6129_v60 = vadd.f32 %v6779_v40, %v6124_v53 }
0x4493   :  { %v6114_v4 = vmul.f32 %v7094_v36, %v6113_v35 }
0x4495   :  { %v6118_v19 = vsel %vm6117_vm8, %v7094_v36, %v6114_v4  ;;  %v6261_v36 = vld [vmem:[%s7403_s9 + $0x8] sm:$0xff]  ;;  %s7182_s9 = smov [#allocation2]  }
0x4496   :  { %v6120_v44 = vmul.f32 %v6118_v19, %v6086_v58  ;;  %v6264_v45 = vpack.c.bf16 %v6261_v36, %v6260_v22  ;;  %s6293_s0 = sshll.u32 %s7182_s9, 4  ;;  %s6294_s0 = int_to_ptr.vmem [resolvable:$true] %s6293_s0 }
0x4498   :  { %v6125_v61 = vmul.f32 %v6778_v42, %v6120_v44  ;;  %6280 = vmatpush.bf16.msra.mxu3 %v6264_v45 }
0x449a   :  { %v6130_v50 = vadd.f32 %v6779_v40, %v6125_v61 }
0x449c   :  { %v6131_v49 = vpack.c.bf16 %v6130_v50, %v6129_v60 }
0x449e   :  { %6651 = vmatmul.msk.bf16.vlgmr.msrb.gmra.mxu1 %vm200_vm0, %v6131_v49 }
0x451b   :  { %v6156_v12 = vpop.f32.mrf.mxu1 }
0x451c   :  { %v6157_v30 = vadd.f32 %v6780_v33, %v6156_v12 }
0x451e   :  { %v6161_v16 = vmax.f32 %v6157_v30, 0.0 }
0x4523   :  { %v6158_v23 = vpop.f32.mrf.mxu1 }
0x4524   :  { %v6159_v15 = vadd.f32 %v6780_v33, %v6158_v23 }
0x4526   :  { %v6162_v52 = vmax.f32 %v6159_v15, 0.0 }
0x4528   :  { %v6163_v21 = vpack.c.bf16 %v6162_v52, %v6161_v16 }
0x452a   :  { %6661 = vmatmul.msk.bf16.vlgmr.msrb.gmra.mxu2 %vm890_vm10, %v6163_v21 }
0x45ad   :  { %v6194_v46 = vpop.f32.mrf.mxu2 }
0x45ae   :  { %v6195_v10 = vadd.f32 %v6781_v14, %v6194_v46 }
0x45b0   :  { %v6199_v24 = vadd.f32 %v6195_v10, %v6129_v60 }
0x45b2   :  { %v6205_v25 = vsel %vm200_vm0, %v6199_v24, 0.0 }
0x45b3   :  { %6206 = vadd.xlane.f32.xlu1 %v6205_v25 }
0x45b5   :  { %v6196_v58 = vpop.f32.mrf.mxu2 }
0x45b6   :  { %v6197_v6 = vadd.f32 %v6781_v14, %v6196_v58 }
0x45b8   :  { %v6200_v31 = vadd.f32 %v6197_v6, %v6130_v50 }
0x45ba   :  { %v6208_v57 = vsel %vm200_vm0, %v6200_v31, 0.0 }
0x45bb   :  { %6209 = vadd.xlane.f32.xlu1 %v6208_v57 }
0x4626   :  { %v6207_v5 = vpop.xlane.xlu1 %6206 }
0x4627   :  { %v6211_v34 = vmul.f32 %v6207_v5, %v7558_v47 }
0x4629   :  { %v6213_v41 = vsub.f32 %v6199_v24, %v6211_v34 }
0x462b   :  { %v6215_v51 = vmul.f32 %v6213_v41, %v6213_v41 }
0x462d   :  { %v6217_v17 = vsel %vm200_vm0, %v6215_v51, 0.0 }
0x462e   :  { %6218 = vadd.xlane.f32.xlu0 %v6217_v17  ;;  %v6210_v26 = vpop.xlane.xlu1 %6209 }
0x462f   :  { %v6212_v59 = vmul.f32 %v6210_v26, %v7558_v47 }
0x4631   :  { %v6214_v39 = vsub.f32 %v6200_v31, %v6212_v59 }
0x4633   :  { %v6216_v27 = vmul.f32 %v6214_v39, %v6214_v39 }
0x4635   :  { %v6220_v11 = vsel %vm200_vm0, %v6216_v27, 0.0 }
0x4636   :  { %6221 = vadd.xlane.f32.xlu1 %v6220_v11 }
0x46a1   :  { %v6219_v63 = vpop.xlane.xlu0 %6218 }
0x46a2   :  { %v6223_v20 = vmul.f32 %v6219_v63, %v7558_v47 }
0x46a4   :  { %v6225_v37 = vadd.f32 1e-05, %v6223_v20 }
0x46a6   :  { %7095 = vrsqrt.f32 %v6225_v37  ;;  %vm6233_vm9 = vweird.f32 %v6225_v37 }
0x46a9   :  { %v6222_v56 = vpop.xlane.xlu1 %6221 }
0x46aa   :  { %v6224_v18 = vmul.f32 %v6222_v56, %v7558_v47  ;;  %v6782_v47 = vld [vmem:[%s8980_s15 + $0x1] ss:$0 sm:$0xff] }
0x46ac   :  { %v7096_v28 = vpop.eup %7095  ;;  %v6226_v35 = vadd.f32 1e-05, %v6224_v18 }
0x46ad   :  { %v6228_v42 = vmul.f32 %v7096_v28, %v6225_v37  ;;  %vm6234_vm10 = vweird.f32 %v7096_v28 }
0x46ae   :  { %7097 = vrsqrt.f32 %v6226_v35  ;;  %vm6235_vm11 = vmor %vm6233_vm9, %vm6234_vm10  ;;  %vm6243_vm13 = vweird.f32 %v6226_v35 }
0x46af   :  { %v6229_v29 = vmul.f32 %v7096_v28, %v6228_v42 }
0x46b1   :  { %v6230_v4 = vmul.f32 0.5, %v6229_v29 }
0x46b3   :  { %v6231_v19 = vsub.f32 1.5, %v6230_v4 }
0x46b4   :  { %v7098_v40 = vpop.eup %7097 }
0x46b5   :  { %v6232_v53 = vmul.f32 %v7096_v28, %v6231_v19  ;;  %v6238_v44 = vmul.f32 %v7098_v40, %v6226_v35  ;;  %vm6244_vm12 = vweird.f32 %v7098_v40 }
0x46b6   :  { %vm6245_vm14 = vmor %vm6243_vm13, %vm6244_vm12 }
0x46b7   :  { %v6239_v61 = vmul.f32 %v7098_v40, %v6238_v44  ;;  %v6236_v60 = vsel %vm6235_vm11, %v7096_v28, %v6232_v53 }
0x46b8   :  { %v6247_v0 = vmul.f32 %v6236_v60, %v6213_v41 }
0x46b9   :  { %v6240_v50 = vmul.f32 0.5, %v6239_v61 }
0x46ba   :  { %v6252_v55 = vmul.f32 %v6782_v47, %v6247_v0 }
0x46bb   :  { %v6241_v49 = vsub.f32 1.5, %v6240_v50 }
0x46bc   :  { %v6257_v38 = vadd.f32 %v6783_v8, %v6252_v55 }
0x46bd   :  { %v6242_v7 = vmul.f32 %v7098_v40, %v6241_v49 }
0x46bf   :  { %v6246_v3 = vsel %vm6245_vm14, %v7098_v40, %v6242_v7 }
0x46c0   :  { %v6248_v54 = vmul.f32 %v6246_v3, %v6214_v39 }
0x46c2   :  { %v6253_v1 = vmul.f32 %v6782_v47, %v6248_v54 }
0x46c4   :  { %v6258_v9 = vadd.f32 %v6783_v8, %v6253_v1 }
0x46c6   :  { %v6259_v13 = vpack.c.bf16 %v6258_v9, %v6257_v38 }
0x46c8   :  { %6664 = vmatmul.msk.bf16.vlgmr.msra.gmra.mxu3 %vm200_vm0, %v6259_v13 }
0x474b   :  { %v6282_v2 = vpop.f32.mrf.mxu3 }
0x474c   :  { %v6283_v12 = vadd.f32 %v6784_v48, %v6282_v2 }
0x474e   :  { %6287 = vst [vmem:[#allocation2] sm:$0xff] %v6283_v12 }
0x4753   :  { %v6284_v33 = vpop.f32.mrf.mxu3 }
0x4754   :  { %v6285_v30 = vadd.f32 %v6784_v48, %v6284_v33 }
0x4756   :  { %6288 = vst [vmem:[#allocation2 + $0x8] sm:$0xff] %v6285_v30 }
0x4757   :  { %7122 = shalt.err (!%p7119_p4)
}
0x4758   :  { %s7183_s25 = smov 128   ;;  %s7184_s10 = smov 8  }
0x4759   :  { %6301 = dma.vmem_to_hbm [thread:$0]  %s6294_s0, 256, %s6296_s5, [#allocation3], %s7183_s25, %s7183_s25, %s7184_s10  }
0x475a   :  { %7123 = dma.done.wait [#allocation3], 256  }
0x475b   :  { %7124 = vsyncadd [#allocation3], 4294967040 }
0x475c   :  { %6306 = vsyncpa [#allocation3], 1 }

</bundles_post_ra>
